<compile_context>
chip_gen: v6e
topology: v6e:2x2x1
jax: 0.10.0
libtpu: 0.0.40
codegen_flags: <defaults>
</compile_context>

<pallas_src>
import math

import jax
import jax.numpy as jnp
import numpy as np
from jax import lax
from jax.experimental import pallas as pl
from jax.experimental.pallas import tpu as pltpu


# -----------------------------------------------------------------------------
# host-side helpers (pure data layout, no compute)
# -----------------------------------------------------------------------------
def to_dense_batch(x, batch, num_graphs, max_nodes):
    """torch_geometric.utils.to_dense_batch: ragged (N, C) -> zero-padded
    (num_graphs, max_nodes, C) + validity mask.
    # TODO(synk): the ragged scatter has no clean Pallas equivalent; done with a
    # jnp scatter in the host wrapper (data movement only)."""
    n, c = x.shape
    counts = jnp.bincount(batch, length=num_graphs)
    starts = jnp.concatenate([jnp.zeros((1,), counts.dtype), jnp.cumsum(counts)[:-1]])
    pos = jnp.arange(n, dtype=jnp.int32) - starts[batch].astype(jnp.int32)
    dense = jnp.zeros((num_graphs, max_nodes, c), x.dtype).at[batch, pos].set(x)
    mask = jnp.zeros((num_graphs, max_nodes), jnp.float32).at[batch, pos].set(1.0)
    return dense, mask


def _round_up(v, m):
    return -(-v // m) * m


def _pad_axis(x, axis, new_size):
    if new_size == x.shape[axis]:
        return x
    pads = [(0, 0)] * x.ndim
    pads[axis] = (0, new_size - x.shape[axis])
    return jnp.pad(x, pads)


# -----------------------------------------------------------------------------
# fused Hetero_GMT kernel (Bt graphs per grid step)
# -----------------------------------------------------------------------------
def build_kernel(Bt, M_a, M_b, D, H, n_seeds1):
    M_tot = M_a + M_b
    ds = D // H
    scale = 1.0 / math.sqrt(D)
    bf16 = jnp.bfloat16

    def _mm(a, b):
        # MXU matmul: bf16 operands (weights pre-cast on host), f32 accumulation.
        return lax.dot_general(a.astype(bf16), b, (((1,), (0,)), ((), ())),
                               preferred_element_type=jnp.float32)

    def _heads(x):
        # (L, D) f32 -> (H, L, ds) f32; one relayout per operand per stage.
        return x.reshape(x.shape[0], H, ds).transpose(1, 0, 2)

    def _attn(q, qh, k, v, wo, bo):
        # Hetero_MAB attention quirk: softmax over the QUERY dim, residual with Q,
        # then out + relu(fc_o(out)).  Head-batched einsums ('hqd,hkd->hqk').
        kh = _heads(k).astype(bf16)
        vh = _heads(v).astype(bf16)
        s = jnp.einsum("hqd,hkd->hqk", qh.astype(bf16), kh,
                       preferred_element_type=jnp.float32) * scale
        s = s - jnp.max(s, axis=1, keepdims=True)            # softmax over queries
        e = jnp.exp(s)
        a = e * pl.reciprocal(jnp.sum(e, axis=1, keepdims=True), approx=True)
        oh = jnp.einsum("hqk,hkd->hqd", a.astype(bf16), vh,
                        preferred_element_type=jnp.float32)
        o = q + oh.transpose(1, 0, 2).reshape(q.shape[0], D)
        return o + jnp.maximum(_mm(o, wo) + bo, 0.0)
        # TODO(synk): layer_norm=True branch (ln0/ln1) not implemented
        # (module default layer_norm=False).

    def kernel(xa_ref, xb_ref, m_ref, wlin_ref, blin_ref, w_ref, b_ref, seed_ref,
               o_ref):
        # ---- per-step constants: seed queries, shared by all Bt graphs ----
        q1 = _mm(seed_ref[0:n_seeds1, :], w_ref[0, :, 0:D]) + b_ref[0, :, 0:D]
        q3 = _mm(seed_ref[n_seeds1:n_seeds1 + 1, :], w_ref[2, :, 0:D]) + b_ref[2, :, 0:D]
        q1h = _heads(q1)
        q3h = _heads(q3)

        # ---- lin1 / lin2: one matmul per node type over all Bt graphs ----
        ha = _mm(xa_ref[...], wlin_ref[0]) + blin_ref[0]            # (Bt*M_a, D)
        hb = _mm(xb_ref[...], wlin_ref[1]) + blin_ref[1]            # (Bt*M_b, D)
        h = jnp.concatenate([ha.reshape(Bt, M_a, D),
                             hb.reshape(Bt, M_b, D)], axis=1)       # (Bt, M_tot, D)
        h = h.reshape(Bt * M_tot, D)

        # ---- pool 0: GMPool_G.  Fused K|V projection, batched over graphs.
        # Padded rows are zeroed AFTER the projection, matching PyTorch's
        # linear-on-ragged-then-dense-batch ordering.
        # TODO(synk): Conv != None (message passing over edge_index_dict) not
        # implemented; module default Conv=None makes layer_k/layer_v plain Linears.
        kv1 = (_mm(h, w_ref[0, :, D:3 * D]) + b_ref[0, :, D:3 * D]) * m_ref[...]
        kv1 = kv1.reshape(Bt, M_tot, 2 * D)
        wo0, bo0 = w_ref[0, :, 3 * D:4 * D], b_ref[0, :, 3 * D:4 * D]
        o1 = jnp.concatenate(
            [_attn(q1, q1h, kv1[g, :, 0:D], kv1[g, :, D:2 * D], wo0, bo0)
             for g in range(Bt)], axis=0)                           # (Bt*n1, D)

        # ---- pool 1: SelfAtt.  Fully fused Q|K|V projection, batched. ----
        qkv2 = (_mm(o1, w_ref[1, :, 0:3 * D]) + b_ref[1, :, 0:3 * D])
        qkv2 = qkv2.reshape(Bt, n_seeds1, 3 * D)
        wo1, bo1 = w_ref[1, :, 3 * D:4 * D], b_ref[1, :, 3 * D:4 * D]
        o2_parts = []
        for g in range(Bt):
            q2 = qkv2[g, :, 0:D]
            o2_parts.append(_attn(q2, _heads(q2), qkv2[g, :, D:2 * D],
                                  qkv2[g, :, 2 * D:3 * D], wo1, bo1))
        o2 = jnp.concatenate(o2_parts, axis=0)                      # (Bt*n1, D)

        # ---- pool 2: GMPool_I (single seed).  Fused K|V projection, batched. ----
        kv3 = (_mm(o2, w_ref[2, :, D:3 * D]) + b_ref[2, :, D:3 * D])
        kv3 = kv3.reshape(Bt, n_seeds1, 2 * D)
        wo2, bo2 = w_ref[2, :, 3 * D:4 * D], b_ref[2, :, 3 * D:4 * D]
        o3 = jnp.concatenate(
            [_attn(q3, q3h, kv3[g, :, 0:D], kv3[g, :, D:2 * D], wo2, bo2)
             for g in range(Bt)], axis=0)                           # (Bt, D)
        o_ref[...] = o3.reshape(Bt, 1, D)

    return kernel


def hetero_gmt_forward(xa_dense, xb_dense, mask_a, mask_b, params, num_heads,
                       graphs_per_step=4):
    """Returns (num_graphs, hidden) pooled graph embeddings (== batch_x.squeeze(1))."""
    B, M_a, c_in = xa_dense.shape
    _, M_b, _ = xb_dense.shape
    D = params["w_lin1"].shape[1]
    n1 = params["s1"].shape[0]
    Bt = min(graphs_per_step, B)
    assert B % Bt == 0, "num_graphs must be divisible by graphs_per_step"

    # ---- lane/sublane-dense padding: node counts -> x8, channels -> x128 -------
    Ma, Mb = _round_up(M_a, 8), _round_up(M_b, 8)
    Cp = _round_up(max(c_in, 128), 128)
    xa = _pad_axis(_pad_axis(xa_dense, 1, Ma), 2, Cp).reshape(B * Ma, Cp)
    xb = _pad_axis(_pad_axis(xb_dense, 1, Mb), 2, Cp).reshape(B * Mb, Cp)
    mask = jnp.concatenate([_pad_axis(mask_a, 1, Ma), _pad_axis(mask_b, 1, Mb)],
                           axis=1).reshape(B * (Ma + Mb), 1)

    # ---- pack weights host-side: bf16 slabs, few operands ----------------------
    w_lin = jnp.stack([_pad_axis(params["w_lin1"], 0, Cp),
                       _pad_axis(params["w_lin2"], 0, Cp)]).astype(jnp.bfloat16)
    b_lin = jnp.stack([params["b_lin1"], params["b_lin2"]])             # (2,1,D) f32
    w_qkvo = jnp.stack(
        [jnp.concatenate([params[k][s] for k in ("wq", "wk", "wv", "wo")], axis=1)
         for s in range(3)]).astype(jnp.bfloat16)                       # (3,D,4D)
    b_qkvo = jnp.stack(
        [jnp.concatenate([params[k][s] for k in ("bq", "bk", "bv", "bo")], axis=1)
         for s in range(3)])                                            # (3,1,4D) f32
    n_seed_rows = _round_up(n1 + 1, 8)
    seeds = (jnp.zeros((n_seed_rows, D), jnp.float32)
             .at[:n1].set(params["s1"]).at[n1].set(params["s3"][0])
             ).astype(jnp.bfloat16)

    kernel = build_kernel(Bt=Bt, M_a=Ma, M_b=Mb, D=D, H=num_heads, n_seeds1=n1)

    def full_spec(a):
        nd = a.ndim
        return pl.BlockSpec(a.shape, lambda b: (0,) * nd)

    out = pl.pallas_call(
        kernel,
        out_shape=jax.ShapeDtypeStruct((B, 1, D), jnp.float32),
        grid_spec=pltpu.PrefetchScalarGridSpec(
            num_scalar_prefetch=0,
            grid=(B // Bt,),
            in_specs=[
                pl.BlockSpec((Bt * Ma, Cp), lambda b: (b, 0)),
                pl.BlockSpec((Bt * Mb, Cp), lambda b: (b, 0)),
                pl.BlockSpec((Bt * (Ma + Mb), 1), lambda b: (b, 0)),
                full_spec(w_lin), full_spec(b_lin),
                full_spec(w_qkvo), full_spec(b_qkvo), full_spec(seeds),
            ],
            out_specs=pl.BlockSpec((Bt, 1, D), lambda b: (b, 0, 0)),
        ),
        compiler_params=pltpu.CompilerParams(
            dimension_semantics=("parallel",)),   # >= 2 grid steps -> both v7x TCs busy
    )(xa, xb, mask, w_lin, b_lin, w_qkvo, b_qkvo, seeds)
    return out[:, 0, :]


# -----------------------------------------------------------------------------
# parameter init (PyTorch-style defaults, deterministic)
# -----------------------------------------------------------------------------
def init_params(key, in_ch, hidden, n_seeds1):
    """Linear: U(+-1/sqrt(fan_in)) for W and b; seeds S: xavier_uniform.
    Weights stored (in, out) so matmuls are x @ W."""
    kit = iter(jax.random.split(key, 32))

    def linear(k, fan_in, fan_out):
        k_w, k_b = jax.random.split(k)
        bnd = 1.0 / math.sqrt(fan_in)
        w = jax.random.uniform(k_w, (fan_in, fan_out), jnp.float32, -bnd, bnd)
        b = jax.random.uniform(k_b, (1, fan_out), jnp.float32, -bnd, bnd)
        return w, b

    def xavier(k, shape):
        bnd = math.sqrt(6.0 / (shape[-2] + shape[-1]))
        return jax.random.uniform(k, shape, jnp.float32, -bnd, bnd)

    p = {}
    p["w_lin1"], p["b_lin1"] = linear(next(kit), in_ch, hidden)
    p["w_lin2"], p["b_lin2"] = linear(next(kit), in_ch, hidden)
    p["s1"] = xavier(next(kit), (n_seeds1, hidden))   # GMPool_G seeds
    p["s3"] = xavier(next(kit), (1, hidden))          # GMPool_I seed
    for n_ in ("q", "k", "v", "o"):
        p["w" + n_], p["b" + n_] = [], []
    for _ in range(3):                                # one MAB per pool stage
        for n_ in ("q", "k", "v", "o"):
            w, b = linear(next(kit), hidden, hidden)
            p["w" + n_].append(w)
            p["b" + n_].append(b)
    for n_ in ("q", "k", "v", "o"):
        p["w" + n_] = jnp.stack(p["w" + n_], 0)       # (3, hidden, hidden)
        p["b" + n_] = jnp.stack(p["b" + n_], 0)       # (3, 1, hidden)
    return p


# -----------------------------------------------------------------------------
# pure-JAX f32 reference (mirrors Hetero_GMT.forward, Conv=None, layer_norm=False)
# -----------------------------------------------------------------------------
def reference_forward(xa_dense, xb_dense, mask_a, mask_b, params, num_heads):
    D = params["w_lin1"].shape[1]
    H = num_heads
    B = xa_dense.shape[0]

    ha = (xa_dense @ params["w_lin1"] + params["b_lin1"]) * mask_a[..., None]
    hb = (xb_dense @ params["w_lin2"] + params["b_lin2"]) * mask_b[..., None]
    h = jnp.concatenate([ha, hb], axis=1)                         # (B, M_tot, D)
    mask = jnp.concatenate([mask_a, mask_b], axis=1)[..., None]

    def attn(Q, K, V, Wo, bo):
        Qh = jnp.stack(jnp.split(Q, H, axis=2), 0)                # (H,B,Lq,ds)
        Kh = jnp.stack(jnp.split(K, H, axis=2), 0)
        Vh = jnp.stack(jnp.split(V, H, axis=2), 0)
        S = jnp.einsum("hbqd,hbkd->hbqk", Qh, Kh) / math.sqrt(D)
        A = jax.nn.softmax(S, axis=2)                  # softmax over the query dim
        O = Qh + jnp.einsum("hbqk,hbkd->hbqd", A, Vh)
        O = jnp.concatenate([O[i] for i in range(H)], axis=-1)    # (B, Lq, D)
        return O + jax.nn.relu(O @ Wo + bo)

    wq, bq, wk, bk = params["wq"], params["bq"], params["wk"], params["bk"]
    wv, bv, wo, bo = params["wv"], params["bv"], params["wo"], params["bo"]

    # GMPool_G
    q1 = jnp.broadcast_to(params["s1"][None], (B,) + params["s1"].shape) @ wq[0] + bq[0]
    k1 = (h @ wk[0] + bk[0]) * mask
    v1 = (h @ wv[0] + bv[0]) * mask
    o1 = attn(q1, k1, v1, wo[0], bo[0])
    # SelfAtt
    o2 = attn(o1 @ wq[1] + bq[1], o1 @ wk[1] + bk[1], o1 @ wv[1] + bv[1], wo[1], bo[1])
    # GMPool_I
    q3 = jnp.broadcast_to(params["s3"][None], (B, 1, D)) @ wq[2] + bq[2]
    o3 = attn(q3, o2 @ wk[2] + bk[2], o2 @ wv[2] + bv[2], wo[2], bo[2])
    return o3[:, 0, :]                                            # .squeeze(1)


if __name__ == "__main__":
    # Small shapes consistent with the module: 2 node types, in_channels=32,
    # hidden_channels=128 (lane-dense), num_heads=4, num_nodes=32 with
    # pooling_ratio=0.25 -> 8 seeds for GMPool_G, 1 for GMPool_I.
    # 8 graphs with 4 graphs per grid step -> 2 grid steps (v7x megacore usable).
    B = 8
    in_channels = 32
    hidden_channels = 128
    num_heads = 4
    num_nodes = 32
    pooling_ratio = 0.25
    n_seeds1 = math.ceil(num_nodes * pooling_ratio)   # 8

    atoms_per_graph = [8, 6, 7, 5, 8, 4, 6, 7]        # ragged node counts ("atoms")
    bonds_per_graph = [5, 8, 6, 7, 4, 8, 5, 6]        # ragged node counts ("bonds")
    n_atoms, n_bonds = sum(atoms_per_graph), sum(bonds_per_graph)
    M_a, M_b = max(atoms_per_graph), max(bonds_per_graph)

    key = jax.random.PRNGKey(0)
    k_a, k_b, k_p = jax.random.split(key, 3)
    x_atoms = jax.random.normal(k_a, (n_atoms, in_channels), jnp.float32)
    x_bonds = jax.random.normal(k_b, (n_bonds, in_channels), jnp.float32)
    batch_atoms = jnp.asarray(np.repeat(np.arange(B), atoms_per_graph), jnp.int32)
    batch_bonds = jnp.asarray(np.repeat(np.arange(B), bonds_per_graph), jnp.int32)

    xa_dense, mask_a = to_dense_batch(x_atoms, batch_atoms, B, M_a)
    xb_dense, mask_b = to_dense_batch(x_bonds, batch_bonds, B, M_b)

    params = init_params(k_p, in_channels, hidden_channels, n_seeds1)

    out = hetero_gmt_forward(xa_dense, xb_dense, mask_a, mask_b, params,
                             num_heads, graphs_per_step=4)
    out = jax.block_until_ready(out)

    ref = reference_forward(xa_dense, xb_dense, mask_a, mask_b, params, num_heads)
    assert out.shape == (B, hidden_channels), out.shape
    max_err = float(jnp.max(jnp.abs(out - ref)))
    # bf16 MXU operands vs the f32 reference -> loose tolerance.
    assert jnp.allclose(out, ref, atol=5e-2, rtol=5e-2), f"max abs err {max_err}"
    print("KERNEL_OK")
</pallas_src>

<mosaic_0001>
module attributes {stable_mosaic.version = 11 : i64} {
  func.func @kernel(%arg0: i32, %arg1: memref<32x128xf32, #tpu.memory_space<vmem>>, %arg2: memref<32x128xf32, #tpu.memory_space<vmem>>, %arg3: memref<64x1xf32, #tpu.memory_space<vmem>>, %arg4: memref<2x128x128xbf16, #tpu.memory_space<vmem>>, %arg5: memref<2x1x128xf32, #tpu.memory_space<vmem>>, %arg6: memref<3x128x512xbf16, #tpu.memory_space<vmem>>, %arg7: memref<3x1x512xf32, #tpu.memory_space<vmem>>, %arg8: memref<16x128xbf16, #tpu.memory_space<vmem>>, %arg9: memref<4x1x128xf32, #tpu.memory_space<vmem>>) attributes {dimension_semantics = [#tpu.dimension_semantics<parallel>], iteration_bounds = array<i64: 2>, scalar_prefetch = 0 : i64, scratch_operands = 0 : i64, tpu.core_type = #tpu.core_type<tc>, window_params = [{transform_indices = @transform_0, window_bounds = array<i64: 32, 128>}, {transform_indices = @transform_1, window_bounds = array<i64: 32, 128>}, {transform_indices = @transform_2, window_bounds = array<i64: 64, 1>}, {pipeline_mode = #tpu.pipeline_mode<synchronous>, transform_indices = @transform_3, window_bounds = array<i64: 2, 128, 128>}, {pipeline_mode = #tpu.pipeline_mode<synchronous>, transform_indices = @transform_4, window_bounds = array<i64: 2, 1, 128>}, {pipeline_mode = #tpu.pipeline_mode<synchronous>, transform_indices = @transform_5, window_bounds = array<i64: 3, 128, 512>}, {pipeline_mode = #tpu.pipeline_mode<synchronous>, transform_indices = @transform_6, window_bounds = array<i64: 3, 1, 512>}, {pipeline_mode = #tpu.pipeline_mode<synchronous>, transform_indices = @transform_7, window_bounds = array<i64: 16, 128>}, {transform_indices = @transform_8, window_bounds = array<i64: 4, 1, 128>}]} {
    %c0 = arith.constant 0 : index
    %c0_0 = arith.constant 0 : index
    %0 = vector.load %arg8[%c0, %c0_0] : memref<16x128xbf16, #tpu.memory_space<vmem>>, vector<8x128xbf16>
    %c0_1 = arith.constant 0 : index
    %c0_2 = arith.constant 0 : index
    %c0_3 = arith.constant 0 : index
    %1 = vector.load %arg6[%c0_1, %c0_2, %c0_3] : memref<3x128x512xbf16, #tpu.memory_space<vmem>>, vector<1x128x128xbf16>
    %2 = vector.shape_cast %1 : vector<1x128x128xbf16> to vector<128x128xbf16>
    %cst = arith.constant dense<0.000000e+00> : vector<8x128xf32>
    %3 = tpu.matmul %0, %2, %cst {dimension_numbers = #tpu.dot_dimension_numbers<[1], [0], [0], [1], [0, 0, 1, 1], [], []>} : vector<8x128xbf16>, vector<128x128xbf16>, vector<8x128xf32> -> vector<8x128xf32>
    %c0_4 = arith.constant 0 : index
    %c0_5 = arith.constant 0 : index
    %c0_6 = arith.constant 0 : index
    %4 = vector.load %arg7[%c0_4, %c0_5, %c0_6] : memref<3x1x512xf32, #tpu.memory_space<vmem>>, vector<1x1x128xf32>
    %5 = vector.shape_cast %4 : vector<1x1x128xf32> to vector<1x128xf32>
    %6 = vector.broadcast %5 : vector<1x128xf32> to vector<8x128xf32>
    %7 = arith.addf %3, %6 : vector<8x128xf32>
    %c8 = arith.constant 8 : index
    %c0_7 = arith.constant 0 : index
    %8 = vector.load %arg8[%c8, %c0_7] : memref<16x128xbf16, #tpu.memory_space<vmem>>, vector<1x128xbf16>
    %c2 = arith.constant 2 : index
    %c0_8 = arith.constant 0 : index
    %c0_9 = arith.constant 0 : index
    %9 = vector.load %arg6[%c2, %c0_8, %c0_9] : memref<3x128x512xbf16, #tpu.memory_space<vmem>>, vector<1x128x128xbf16>
    %10 = vector.shape_cast %9 : vector<1x128x128xbf16> to vector<128x128xbf16>
    %cst_10 = arith.constant dense<0.000000e+00> : vector<1x128xf32>
    %11 = tpu.matmul %8, %10, %cst_10 {dimension_numbers = #tpu.dot_dimension_numbers<[1], [0], [0], [1], [0, 0, 1, 1], [], []>} : vector<1x128xbf16>, vector<128x128xbf16>, vector<1x128xf32> -> vector<1x128xf32>
    %c2_11 = arith.constant 2 : index
    %c0_12 = arith.constant 0 : index
    %c0_13 = arith.constant 0 : index
    %12 = vector.load %arg7[%c2_11, %c0_12, %c0_13] : memref<3x1x512xf32, #tpu.memory_space<vmem>>, vector<1x1x128xf32>
    %13 = vector.shape_cast %12 : vector<1x1x128xf32> to vector<1x128xf32>
    %14 = arith.addf %11, %13 : vector<1x128xf32>
    %15 = vector.shape_cast %7 : vector<8x128xf32> to vector<8x4x32xf32>
    %16 = tpu.transpose %15, [1, 0, 2] : vector<8x4x32xf32> -> vector<4x8x32xf32>
    %17 = vector.shape_cast %14 : vector<1x128xf32> to vector<1x4x32xf32>
    %18 = tpu.transpose %17, [1, 0, 2] : vector<1x4x32xf32> -> vector<4x1x32xf32>
    %c0_14 = arith.constant 0 : index
    %c0_15 = arith.constant 0 : index
    %19 = vector.load %arg1[%c0_14, %c0_15] : memref<32x128xf32, #tpu.memory_space<vmem>>, vector<32x128xf32>
    %c0_16 = arith.constant 0 : index
    %c0_17 = arith.constant 0 : index
    %c0_18 = arith.constant 0 : index
    %20 = vector.load %arg4[%c0_16, %c0_17, %c0_18] : memref<2x128x128xbf16, #tpu.memory_space<vmem>>, vector<1x128x128xbf16>
    %21 = vector.shape_cast %20 : vector<1x128x128xbf16> to vector<128x128xbf16>
    %22 = arith.truncf %19 : vector<32x128xf32> to vector<32x128xbf16>
    %cst_19 = arith.constant dense<0.000000e+00> : vector<32x128xf32>
    %23 = tpu.matmul %22, %21, %cst_19 {dimension_numbers = #tpu.dot_dimension_numbers<[1], [0], [0], [1], [0, 0, 1, 1], [], []>} : vector<32x128xbf16>, vector<128x128xbf16>, vector<32x128xf32> -> vector<32x128xf32>
    %c0_20 = arith.constant 0 : index
    %c0_21 = arith.constant 0 : index
    %c0_22 = arith.constant 0 : index
    %24 = vector.load %arg5[%c0_20, %c0_21, %c0_22] : memref<2x1x128xf32, #tpu.memory_space<vmem>>, vector<1x1x128xf32>
    %25 = vector.shape_cast %24 : vector<1x1x128xf32> to vector<1x128xf32>
    %26 = vector.broadcast %25 : vector<1x128xf32> to vector<32x128xf32>
    %27 = arith.addf %23, %26 : vector<32x128xf32>
    %c0_23 = arith.constant 0 : index
    %c0_24 = arith.constant 0 : index
    %28 = vector.load %arg2[%c0_23, %c0_24] : memref<32x128xf32, #tpu.memory_space<vmem>>, vector<32x128xf32>
    %c1 = arith.constant 1 : index
    %c0_25 = arith.constant 0 : index
    %c0_26 = arith.constant 0 : index
    %29 = vector.load %arg4[%c1, %c0_25, %c0_26] : memref<2x128x128xbf16, #tpu.memory_space<vmem>>, vector<1x128x128xbf16>
    %30 = vector.shape_cast %29 : vector<1x128x128xbf16> to vector<128x128xbf16>
    %31 = arith.truncf %28 : vector<32x128xf32> to vector<32x128xbf16>
    %cst_27 = arith.constant dense<0.000000e+00> : vector<32x128xf32>
    %32 = tpu.matmul %31, %30, %cst_27 {dimension_numbers = #tpu.dot_dimension_numbers<[1], [0], [0], [1], [0, 0, 1, 1], [], []>} : vector<32x128xbf16>, vector<128x128xbf16>, vector<32x128xf32> -> vector<32x128xf32>
    %c1_28 = arith.constant 1 : index
    %c0_29 = arith.constant 0 : index
    %c0_30 = arith.constant 0 : index
    %33 = vector.load %arg5[%c1_28, %c0_29, %c0_30] : memref<2x1x128xf32, #tpu.memory_space<vmem>>, vector<1x1x128xf32>
    %34 = vector.shape_cast %33 : vector<1x1x128xf32> to vector<1x128xf32>
    %35 = vector.broadcast %34 : vector<1x128xf32> to vector<32x128xf32>
    %36 = arith.addf %32, %35 : vector<32x128xf32>
    %37 = vector.shape_cast %27 : vector<32x128xf32> to vector<4x8x128xf32>
    %38 = vector.shape_cast %36 : vector<32x128xf32> to vector<4x8x128xf32>
    %39 = tpu.concatenate %37, %38 in 1 : vector<4x8x128xf32>, vector<4x8x128xf32> -> vector<4x16x128xf32>
    %40 = vector.shape_cast %39 : vector<4x16x128xf32> to vector<64x128xf32>
    %c0_31 = arith.constant 0 : index
    %c0_32 = arith.constant 0 : index
    %c128 = arith.constant 128 : index
    %41 = vector.load %arg6[%c0_31, %c0_32, %c128] : memref<3x128x512xbf16, #tpu.memory_space<vmem>>, vector<1x128x256xbf16>
    %42 = vector.shape_cast %41 : vector<1x128x256xbf16> to vector<128x256xbf16>
    %43 = arith.truncf %40 : vector<64x128xf32> to vector<64x128xbf16>
    %cst_33 = arith.constant dense<0.000000e+00> : vector<64x256xf32>
    %44 = tpu.matmul %43, %42, %cst_33 {dimension_numbers = #tpu.dot_dimension_numbers<[1], [0], [0], [1], [0, 0, 1, 1], [], []>} : vector<64x128xbf16>, vector<128x256xbf16>, vector<64x256xf32> -> vector<64x256xf32>
    %c0_34 = arith.constant 0 : index
    %c0_35 = arith.constant 0 : index
    %c128_36 = arith.constant 128 : index
    %45 = vector.load %arg7[%c0_34, %c0_35, %c128_36] : memref<3x1x512xf32, #tpu.memory_space<vmem>>, vector<1x1x256xf32>
    %46 = vector.shape_cast %45 : vector<1x1x256xf32> to vector<1x256xf32>
    %47 = vector.broadcast %46 : vector<1x256xf32> to vector<64x256xf32>
    %48 = arith.addf %44, %47 : vector<64x256xf32>
    %c0_37 = arith.constant 0 : index
    %c0_38 = arith.constant 0 : index
    %49 = vector.load %arg3[%c0_37, %c0_38] : memref<64x1xf32, #tpu.memory_space<vmem>>, vector<64x1xf32>
    %50 = vector.broadcast %49 : vector<64x1xf32> to vector<64x256xf32>
    %51 = arith.mulf %48, %50 : vector<64x256xf32>
    %52 = vector.shape_cast %51 : vector<64x256xf32> to vector<4x16x256xf32>
    %c0_39 = arith.constant 0 : index
    %c0_40 = arith.constant 0 : index
    %c384 = arith.constant 384 : index
    %53 = vector.load %arg6[%c0_39, %c0_40, %c384] : memref<3x128x512xbf16, #tpu.memory_space<vmem>>, vector<1x128x128xbf16>
    %54 = vector.shape_cast %53 : vector<1x128x128xbf16> to vector<128x128xbf16>
    %c0_41 = arith.constant 0 : index
    %c0_42 = arith.constant 0 : index
    %c384_43 = arith.constant 384 : index
    %55 = vector.load %arg7[%c0_41, %c0_42, %c384_43] : memref<3x1x512xf32, #tpu.memory_space<vmem>>, vector<1x1x128xf32>
    %56 = vector.shape_cast %55 : vector<1x1x128xf32> to vector<1x128xf32>
    %57 = vector.extract_strided_slice %52 {offsets = [0, 0, 0], sizes = [1, 16, 128], strides = [1, 1, 1]} : vector<4x16x256xf32> to vector<1x16x128xf32>
    %58 = vector.shape_cast %57 : vector<1x16x128xf32> to vector<16x128xf32>
    %59 = vector.extract_strided_slice %52 {offsets = [0, 0, 128], sizes = [1, 16, 128], strides = [1, 1, 1]} : vector<4x16x256xf32> to vector<1x16x128xf32>
    %60 = vector.shape_cast %59 : vector<1x16x128xf32> to vector<16x128xf32>
    %61 = vector.shape_cast %58 : vector<16x128xf32> to vector<16x4x32xf32>
    %62 = tpu.transpose %61, [1, 0, 2] : vector<16x4x32xf32> -> vector<4x16x32xf32>
    %63 = arith.truncf %62 : vector<4x16x32xf32> to vector<4x16x32xbf16>
    %64 = vector.shape_cast %60 : vector<16x128xf32> to vector<16x4x32xf32>
    %65 = tpu.transpose %64, [1, 0, 2] : vector<16x4x32xf32> -> vector<4x16x32xf32>
    %66 = arith.truncf %65 : vector<4x16x32xf32> to vector<4x16x32xbf16>
    %67 = arith.truncf %16 : vector<4x8x32xf32> to vector<4x8x32xbf16>
    "tpu.trace_start"() <{level = 10 : i32, message = "hqd,hkd->hqk"}> : () -> ()
    %cst_44 = arith.constant dense<0.000000e+00> : vector<4x8x16xf32>
    %68 = tpu.matmul %67, %63, %cst_44 {dimension_numbers = #tpu.dot_dimension_numbers<[2], [2], [1], [1], [0, 0, 0, 1, 1, 1], [0], [0]>} : vector<4x8x32xbf16>, vector<4x16x32xbf16>, vector<4x8x16xf32> -> vector<4x8x16xf32>
    "tpu.trace_stop"() : () -> ()
    %cst_45 = arith.constant 0.0883883461 : f32
    %69 = vector.broadcast %cst_45 : f32 to vector<4x8x16xf32>
    %70 = arith.mulf %68, %69 : vector<4x8x16xf32>
    %cst_46 = arith.constant dense<0xFF800000> : vector<4x16xf32>
    %71 = vector.multi_reduction <maximumf>, %70, %cst_46 [1] : vector<4x8x16xf32> to vector<4x16xf32>
    %72 = vector.shape_cast %71 : vector<4x16xf32> to vector<4x1x16xf32>
    %73 = vector.broadcast %72 : vector<4x1x16xf32> to vector<4x8x16xf32>
    %74 = arith.subf %70, %73 : vector<4x8x16xf32>
    %75 = math.exp %74 : vector<4x8x16xf32>
    %cst_47 = arith.constant dense<0.000000e+00> : vector<4x16xf32>
    %76 = vector.multi_reduction <add>, %75, %cst_47 [1] : vector<4x8x16xf32> to vector<4x16xf32>
    %77 = vector.shape_cast %76 : vector<4x16xf32> to vector<4x1x16xf32>
    %78 = tpu.reciprocal %77 {approx = true} : vector<4x1x16xf32> -> vector<4x1x16xf32>
    %79 = vector.broadcast %78 : vector<4x1x16xf32> to vector<4x8x16xf32>
    %80 = arith.mulf %75, %79 : vector<4x8x16xf32>
    %81 = arith.truncf %80 : vector<4x8x16xf32> to vector<4x8x16xbf16>
    "tpu.trace_start"() <{level = 10 : i32, message = "hqk,hkd->hqd"}> : () -> ()
    %cst_48 = arith.constant dense<0.000000e+00> : vector<4x8x32xf32>
    %82 = tpu.matmul %81, %66, %cst_48 {dimension_numbers = #tpu.dot_dimension_numbers<[2], [1], [1], [2], [0, 0, 0, 1, 1, 2], [0], [0]>} : vector<4x8x16xbf16>, vector<4x16x32xbf16>, vector<4x8x32xf32> -> vector<4x8x32xf32>
    "tpu.trace_stop"() : () -> ()
    %83 = tpu.transpose %82, [1, 0, 2] : vector<4x8x32xf32> -> vector<8x4x32xf32>
    %84 = vector.shape_cast %83 : vector<8x4x32xf32> to vector<8x128xf32>
    %85 = arith.addf %7, %84 : vector<8x128xf32>
    %86 = arith.truncf %85 : vector<8x128xf32> to vector<8x128xbf16>
    %cst_49 = arith.constant dense<0.000000e+00> : vector<8x128xf32>
    %87 = tpu.matmul %86, %54, %cst_49 {dimension_numbers = #tpu.dot_dimension_numbers<[1], [0], [0], [1], [0, 0, 1, 1], [], []>} : vector<8x128xbf16>, vector<128x128xbf16>, vector<8x128xf32> -> vector<8x128xf32>
    %88 = vector.broadcast %56 : vector<1x128xf32> to vector<8x128xf32>
    %89 = arith.addf %87, %88 : vector<8x128xf32>
    %cst_50 = arith.constant 0.000000e+00 : f32
    %90 = vector.broadcast %cst_50 : f32 to vector<8x128xf32>
    %91 = arith.maximumf %89, %90 : vector<8x128xf32>
    %92 = arith.addf %85, %91 : vector<8x128xf32>
    %93 = vector.extract_strided_slice %52 {offsets = [1, 0, 0], sizes = [1, 16, 128], strides = [1, 1, 1]} : vector<4x16x256xf32> to vector<1x16x128xf32>
    %94 = vector.shape_cast %93 : vector<1x16x128xf32> to vector<16x128xf32>
    %95 = vector.extract_strided_slice %52 {offsets = [1, 0, 128], sizes = [1, 16, 128], strides = [1, 1, 1]} : vector<4x16x256xf32> to vector<1x16x128xf32>
    %96 = vector.shape_cast %95 : vector<1x16x128xf32> to vector<16x128xf32>
    %97 = vector.shape_cast %94 : vector<16x128xf32> to vector<16x4x32xf32>
    %98 = tpu.transpose %97, [1, 0, 2] : vector<16x4x32xf32> -> vector<4x16x32xf32>
    %99 = arith.truncf %98 : vector<4x16x32xf32> to vector<4x16x32xbf16>
    %100 = vector.shape_cast %96 : vector<16x128xf32> to vector<16x4x32xf32>
    %101 = tpu.transpose %100, [1, 0, 2] : vector<16x4x32xf32> -> vector<4x16x32xf32>
    %102 = arith.truncf %101 : vector<4x16x32xf32> to vector<4x16x32xbf16>
    %103 = arith.truncf %16 : vector<4x8x32xf32> to vector<4x8x32xbf16>
    "tpu.trace_start"() <{level = 10 : i32, message = "hqd,hkd->hqk"}> : () -> ()
    %cst_51 = arith.constant dense<0.000000e+00> : vector<4x8x16xf32>
    %104 = tpu.matmul %103, %99, %cst_51 {dimension_numbers = #tpu.dot_dimension_numbers<[2], [2], [1], [1], [0, 0, 0, 1, 1, 1], [0], [0]>} : vector<4x8x32xbf16>, vector<4x16x32xbf16>, vector<4x8x16xf32> -> vector<4x8x16xf32>
    "tpu.trace_stop"() : () -> ()
    %cst_52 = arith.constant 0.0883883461 : f32
    %105 = vector.broadcast %cst_52 : f32 to vector<4x8x16xf32>
    %106 = arith.mulf %104, %105 : vector<4x8x16xf32>
    %cst_53 = arith.constant dense<0xFF800000> : vector<4x16xf32>
    %107 = vector.multi_reduction <maximumf>, %106, %cst_53 [1] : vector<4x8x16xf32> to vector<4x16xf32>
    %108 = vector.shape_cast %107 : vector<4x16xf32> to vector<4x1x16xf32>
    %109 = vector.broadcast %108 : vector<4x1x16xf32> to vector<4x8x16xf32>
    %110 = arith.subf %106, %109 : vector<4x8x16xf32>
    %111 = math.exp %110 : vector<4x8x16xf32>
    %cst_54 = arith.constant dense<0.000000e+00> : vector<4x16xf32>
    %112 = vector.multi_reduction <add>, %111, %cst_54 [1] : vector<4x8x16xf32> to vector<4x16xf32>
    %113 = vector.shape_cast %112 : vector<4x16xf32> to vector<4x1x16xf32>
    %114 = tpu.reciprocal %113 {approx = true} : vector<4x1x16xf32> -> vector<4x1x16xf32>
    %115 = vector.broadcast %114 : vector<4x1x16xf32> to vector<4x8x16xf32>
    %116 = arith.mulf %111, %115 : vector<4x8x16xf32>
    %117 = arith.truncf %116 : vector<4x8x16xf32> to vector<4x8x16xbf16>
    "tpu.trace_start"() <{level = 10 : i32, message = "hqk,hkd->hqd"}> : () -> ()
    %cst_55 = arith.constant dense<0.000000e+00> : vector<4x8x32xf32>
    %118 = tpu.matmul %117, %102, %cst_55 {dimension_numbers = #tpu.dot_dimension_numbers<[2], [1], [1], [2], [0, 0, 0, 1, 1, 2], [0], [0]>} : vector<4x8x16xbf16>, vector<4x16x32xbf16>, vector<4x8x32xf32> -> vector<4x8x32xf32>
    "tpu.trace_stop"() : () -> ()
    %119 = tpu.transpose %118, [1, 0, 2] : vector<4x8x32xf32> -> vector<8x4x32xf32>
    %120 = vector.shape_cast %119 : vector<8x4x32xf32> to vector<8x128xf32>
    %121 = arith.addf %7, %120 : vector<8x128xf32>
    %122 = arith.truncf %121 : vector<8x128xf32> to vector<8x128xbf16>
    %cst_56 = arith.constant dense<0.000000e+00> : vector<8x128xf32>
    %123 = tpu.matmul %122, %54, %cst_56 {dimension_numbers = #tpu.dot_dimension_numbers<[1], [0], [0], [1], [0, 0, 1, 1], [], []>} : vector<8x128xbf16>, vector<128x128xbf16>, vector<8x128xf32> -> vector<8x128xf32>
    %124 = vector.broadcast %56 : vector<1x128xf32> to vector<8x128xf32>
    %125 = arith.addf %123, %124 : vector<8x128xf32>
    %cst_57 = arith.constant 0.000000e+00 : f32
    %126 = vector.broadcast %cst_57 : f32 to vector<8x128xf32>
    %127 = arith.maximumf %125, %126 : vector<8x128xf32>
    %128 = arith.addf %121, %127 : vector<8x128xf32>
    %129 = vector.extract_strided_slice %52 {offsets = [2, 0, 0], sizes = [1, 16, 128], strides = [1, 1, 1]} : vector<4x16x256xf32> to vector<1x16x128xf32>
    %130 = vector.shape_cast %129 : vector<1x16x128xf32> to vector<16x128xf32>
    %131 = vector.extract_strided_slice %52 {offsets = [2, 0, 128], sizes = [1, 16, 128], strides = [1, 1, 1]} : vector<4x16x256xf32> to vector<1x16x128xf32>
    %132 = vector.shape_cast %131 : vector<1x16x128xf32> to vector<16x128xf32>
    %133 = vector.shape_cast %130 : vector<16x128xf32> to vector<16x4x32xf32>
    %134 = tpu.transpose %133, [1, 0, 2] : vector<16x4x32xf32> -> vector<4x16x32xf32>
    %135 = arith.truncf %134 : vector<4x16x32xf32> to vector<4x16x32xbf16>
    %136 = vector.shape_cast %132 : vector<16x128xf32> to vector<16x4x32xf32>
    %137 = tpu.transpose %136, [1, 0, 2] : vector<16x4x32xf32> -> vector<4x16x32xf32>
    %138 = arith.truncf %137 : vector<4x16x32xf32> to vector<4x16x32xbf16>
    %139 = arith.truncf %16 : vector<4x8x32xf32> to vector<4x8x32xbf16>
    "tpu.trace_start"() <{level = 10 : i32, message = "hqd,hkd->hqk"}> : () -> ()
    %cst_58 = arith.constant dense<0.000000e+00> : vector<4x8x16xf32>
    %140 = tpu.matmul %139, %135, %cst_58 {dimension_numbers = #tpu.dot_dimension_numbers<[2], [2], [1], [1], [0, 0, 0, 1, 1, 1], [0], [0]>} : vector<4x8x32xbf16>, vector<4x16x32xbf16>, vector<4x8x16xf32> -> vector<4x8x16xf32>
    "tpu.trace_stop"() : () -> ()
    %cst_59 = arith.constant 0.0883883461 : f32
    %141 = vector.broadcast %cst_59 : f32 to vector<4x8x16xf32>
    %142 = arith.mulf %140, %141 : vector<4x8x16xf32>
    %cst_60 = arith.constant dense<0xFF800000> : vector<4x16xf32>
    %143 = vector.multi_reduction <maximumf>, %142, %cst_60 [1] : vector<4x8x16xf32> to vector<4x16xf32>
    %144 = vector.shape_cast %143 : vector<4x16xf32> to vector<4x1x16xf32>
    %145 = vector.broadcast %144 : vector<4x1x16xf32> to vector<4x8x16xf32>
    %146 = arith.subf %142, %145 : vector<4x8x16xf32>
    %147 = math.exp %146 : vector<4x8x16xf32>
    %cst_61 = arith.constant dense<0.000000e+00> : vector<4x16xf32>
    %148 = vector.multi_reduction <add>, %147, %cst_61 [1] : vector<4x8x16xf32> to vector<4x16xf32>
    %149 = vector.shape_cast %148 : vector<4x16xf32> to vector<4x1x16xf32>
    %150 = tpu.reciprocal %149 {approx = true} : vector<4x1x16xf32> -> vector<4x1x16xf32>
    %151 = vector.broadcast %150 : vector<4x1x16xf32> to vector<4x8x16xf32>
    %152 = arith.mulf %147, %151 : vector<4x8x16xf32>
    %153 = arith.truncf %152 : vector<4x8x16xf32> to vector<4x8x16xbf16>
    "tpu.trace_start"() <{level = 10 : i32, message = "hqk,hkd->hqd"}> : () -> ()
    %cst_62 = arith.constant dense<0.000000e+00> : vector<4x8x32xf32>
    %154 = tpu.matmul %153, %138, %cst_62 {dimension_numbers = #tpu.dot_dimension_numbers<[2], [1], [1], [2], [0, 0, 0, 1, 1, 2], [0], [0]>} : vector<4x8x16xbf16>, vector<4x16x32xbf16>, vector<4x8x32xf32> -> vector<4x8x32xf32>
    "tpu.trace_stop"() : () -> ()
    %155 = tpu.transpose %154, [1, 0, 2] : vector<4x8x32xf32> -> vector<8x4x32xf32>
    %156 = vector.shape_cast %155 : vector<8x4x32xf32> to vector<8x128xf32>
    %157 = arith.addf %7, %156 : vector<8x128xf32>
    %158 = arith.truncf %157 : vector<8x128xf32> to vector<8x128xbf16>
    %cst_63 = arith.constant dense<0.000000e+00> : vector<8x128xf32>
    %159 = tpu.matmul %158, %54, %cst_63 {dimension_numbers = #tpu.dot_dimension_numbers<[1], [0], [0], [1], [0, 0, 1, 1], [], []>} : vector<8x128xbf16>, vector<128x128xbf16>, vector<8x128xf32> -> vector<8x128xf32>
    %160 = vector.broadcast %56 : vector<1x128xf32> to vector<8x128xf32>
    %161 = arith.addf %159, %160 : vector<8x128xf32>
    %cst_64 = arith.constant 0.000000e+00 : f32
    %162 = vector.broadcast %cst_64 : f32 to vector<8x128xf32>
    %163 = arith.maximumf %161, %162 : vector<8x128xf32>
    %164 = arith.addf %157, %163 : vector<8x128xf32>
    %165 = vector.extract_strided_slice %52 {offsets = [3, 0, 0], sizes = [1, 16, 128], strides = [1, 1, 1]} : vector<4x16x256xf32> to vector<1x16x128xf32>
    %166 = vector.shape_cast %165 : vector<1x16x128xf32> to vector<16x128xf32>
    %167 = vector.extract_strided_slice %52 {offsets = [3, 0, 128], sizes = [1, 16, 128], strides = [1, 1, 1]} : vector<4x16x256xf32> to vector<1x16x128xf32>
    %168 = vector.shape_cast %167 : vector<1x16x128xf32> to vector<16x128xf32>
    %169 = vector.shape_cast %166 : vector<16x128xf32> to vector<16x4x32xf32>
    %170 = tpu.transpose %169, [1, 0, 2] : vector<16x4x32xf32> -> vector<4x16x32xf32>
    %171 = arith.truncf %170 : vector<4x16x32xf32> to vector<4x16x32xbf16>
    %172 = vector.shape_cast %168 : vector<16x128xf32> to vector<16x4x32xf32>
    %173 = tpu.transpose %172, [1, 0, 2] : vector<16x4x32xf32> -> vector<4x16x32xf32>
    %174 = arith.truncf %173 : vector<4x16x32xf32> to vector<4x16x32xbf16>
    %175 = arith.truncf %16 : vector<4x8x32xf32> to vector<4x8x32xbf16>
    "tpu.trace_start"() <{level = 10 : i32, message = "hqd,hkd->hqk"}> : () -> ()
    %cst_65 = arith.constant dense<0.000000e+00> : vector<4x8x16xf32>
    %176 = tpu.matmul %175, %171, %cst_65 {dimension_numbers = #tpu.dot_dimension_numbers<[2], [2], [1], [1], [0, 0, 0, 1, 1, 1], [0], [0]>} : vector<4x8x32xbf16>, vector<4x16x32xbf16>, vector<4x8x16xf32> -> vector<4x8x16xf32>
    "tpu.trace_stop"() : () -> ()
    %cst_66 = arith.constant 0.0883883461 : f32
    %177 = vector.broadcast %cst_66 : f32 to vector<4x8x16xf32>
    %178 = arith.mulf %176, %177 : vector<4x8x16xf32>
    %cst_67 = arith.constant dense<0xFF800000> : vector<4x16xf32>
    %179 = vector.multi_reduction <maximumf>, %178, %cst_67 [1] : vector<4x8x16xf32> to vector<4x16xf32>
    %180 = vector.shape_cast %179 : vector<4x16xf32> to vector<4x1x16xf32>
    %181 = vector.broadcast %180 : vector<4x1x16xf32> to vector<4x8x16xf32>
    %182 = arith.subf %178, %181 : vector<4x8x16xf32>
    %183 = math.exp %182 : vector<4x8x16xf32>
    %cst_68 = arith.constant dense<0.000000e+00> : vector<4x16xf32>
    %184 = vector.multi_reduction <add>, %183, %cst_68 [1] : vector<4x8x16xf32> to vector<4x16xf32>
    %185 = vector.shape_cast %184 : vector<4x16xf32> to vector<4x1x16xf32>
    %186 = tpu.reciprocal %185 {approx = true} : vector<4x1x16xf32> -> vector<4x1x16xf32>
    %187 = vector.broadcast %186 : vector<4x1x16xf32> to vector<4x8x16xf32>
    %188 = arith.mulf %183, %187 : vector<4x8x16xf32>
    %189 = arith.truncf %188 : vector<4x8x16xf32> to vector<4x8x16xbf16>
    "tpu.trace_start"() <{level = 10 : i32, message = "hqk,hkd->hqd"}> : () -> ()
    %cst_69 = arith.constant dense<0.000000e+00> : vector<4x8x32xf32>
    %190 = tpu.matmul %189, %174, %cst_69 {dimension_numbers = #tpu.dot_dimension_numbers<[2], [1], [1], [2], [0, 0, 0, 1, 1, 2], [0], [0]>} : vector<4x8x16xbf16>, vector<4x16x32xbf16>, vector<4x8x32xf32> -> vector<4x8x32xf32>
    "tpu.trace_stop"() : () -> ()
    %191 = tpu.transpose %190, [1, 0, 2] : vector<4x8x32xf32> -> vector<8x4x32xf32>
    %192 = vector.shape_cast %191 : vector<8x4x32xf32> to vector<8x128xf32>
    %193 = arith.addf %7, %192 : vector<8x128xf32>
    %194 = arith.truncf %193 : vector<8x128xf32> to vector<8x128xbf16>
    %cst_70 = arith.constant dense<0.000000e+00> : vector<8x128xf32>
    %195 = tpu.matmul %194, %54, %cst_70 {dimension_numbers = #tpu.dot_dimension_numbers<[1], [0], [0], [1], [0, 0, 1, 1], [], []>} : vector<8x128xbf16>, vector<128x128xbf16>, vector<8x128xf32> -> vector<8x128xf32>
    %196 = vector.broadcast %56 : vector<1x128xf32> to vector<8x128xf32>
    %197 = arith.addf %195, %196 : vector<8x128xf32>
    %cst_71 = arith.constant 0.000000e+00 : f32
    %198 = vector.broadcast %cst_71 : f32 to vector<8x128xf32>
    %199 = arith.maximumf %197, %198 : vector<8x128xf32>
    %200 = arith.addf %193, %199 : vector<8x128xf32>
    %201 = tpu.concatenate %92, %128, %164, %200 in 0 : vector<8x128xf32>, vector<8x128xf32>, vector<8x128xf32>, vector<8x128xf32> -> vector<32x128xf32>
    %c1_72 = arith.constant 1 : index
    %c0_73 = arith.constant 0 : index
    %c0_74 = arith.constant 0 : index
    %202 = vector.load %arg6[%c1_72, %c0_73, %c0_74] : memref<3x128x512xbf16, #tpu.memory_space<vmem>>, vector<1x128x384xbf16>
    %203 = vector.shape_cast %202 : vector<1x128x384xbf16> to vector<128x384xbf16>
    %204 = arith.truncf %201 : vector<32x128xf32> to vector<32x128xbf16>
    %cst_75 = arith.constant dense<0.000000e+00> : vector<32x384xf32>
    %205 = tpu.matmul %204, %203, %cst_75 {dimension_numbers = #tpu.dot_dimension_numbers<[1], [0], [0], [1], [0, 0, 1, 1], [], []>} : vector<32x128xbf16>, vector<128x384xbf16>, vector<32x384xf32> -> vector<32x384xf32>
    %c1_76 = arith.constant 1 : index
    %c0_77 = arith.constant 0 : index
    %c0_78 = arith.constant 0 : index
    %206 = vector.load %arg7[%c1_76, %c0_77, %c0_78] : memref<3x1x512xf32, #tpu.memory_space<vmem>>, vector<1x1x384xf32>
    %207 = vector.shape_cast %206 : vector<1x1x384xf32> to vector<1x384xf32>
    %208 = vector.broadcast %207 : vector<1x384xf32> to vector<32x384xf32>
    %209 = arith.addf %205, %208 : vector<32x384xf32>
    %210 = vector.shape_cast %209 : vector<32x384xf32> to vector<4x8x384xf32>
    %c1_79 = arith.constant 1 : index
    %c0_80 = arith.constant 0 : index
    %c384_81 = arith.constant 384 : index
    %211 = vector.load %arg6[%c1_79, %c0_80, %c384_81] : memref<3x128x512xbf16, #tpu.memory_space<vmem>>, vector<1x128x128xbf16>
    %212 = vector.shape_cast %211 : vector<1x128x128xbf16> to vector<128x128xbf16>
    %c1_82 = arith.constant 1 : index
    %c0_83 = arith.constant 0 : index
    %c384_84 = arith.constant 384 : index
    %213 = vector.load %arg7[%c1_82, %c0_83, %c384_84] : memref<3x1x512xf32, #tpu.memory_space<vmem>>, vector<1x1x128xf32>
    %214 = vector.shape_cast %213 : vector<1x1x128xf32> to vector<1x128xf32>
    %215 = vector.extract_strided_slice %210 {offsets = [0, 0, 0], sizes = [1, 8, 128], strides = [1, 1, 1]} : vector<4x8x384xf32> to vector<1x8x128xf32>
    %216 = vector.shape_cast %215 : vector<1x8x128xf32> to vector<8x128xf32>
    %217 = vector.shape_cast %216 : vector<8x128xf32> to vector<8x4x32xf32>
    %218 = tpu.transpose %217, [1, 0, 2] : vector<8x4x32xf32> -> vector<4x8x32xf32>
    %219 = vector.extract_strided_slice %210 {offsets = [0, 0, 128], sizes = [1, 8, 128], strides = [1, 1, 1]} : vector<4x8x384xf32> to vector<1x8x128xf32>
    %220 = vector.shape_cast %219 : vector<1x8x128xf32> to vector<8x128xf32>
    %221 = vector.extract_strided_slice %210 {offsets = [0, 0, 256], sizes = [1, 8, 128], strides = [1, 1, 1]} : vector<4x8x384xf32> to vector<1x8x128xf32>
    %222 = vector.shape_cast %221 : vector<1x8x128xf32> to vector<8x128xf32>
    %223 = vector.shape_cast %220 : vector<8x128xf32> to vector<8x4x32xf32>
    %224 = tpu.transpose %223, [1, 0, 2] : vector<8x4x32xf32> -> vector<4x8x32xf32>
    %225 = arith.truncf %224 : vector<4x8x32xf32> to vector<4x8x32xbf16>
    %226 = vector.shape_cast %222 : vector<8x128xf32> to vector<8x4x32xf32>
    %227 = tpu.transpose %226, [1, 0, 2] : vector<8x4x32xf32> -> vector<4x8x32xf32>
    %228 = arith.truncf %227 : vector<4x8x32xf32> to vector<4x8x32xbf16>
    %229 = arith.truncf %218 : vector<4x8x32xf32> to vector<4x8x32xbf16>
    "tpu.trace_start"() <{level = 10 : i32, message = "hqd,hkd->hqk"}> : () -> ()
    %cst_85 = arith.constant dense<0.000000e+00> : vector<4x8x8xf32>
    %230 = tpu.matmul %229, %225, %cst_85 {dimension_numbers = #tpu.dot_dimension_numbers<[2], [2], [1], [1], [0, 0, 0, 1, 1, 1], [0], [0]>} : vector<4x8x32xbf16>, vector<4x8x32xbf16>, vector<4x8x8xf32> -> vector<4x8x8xf32>
    "tpu.trace_stop"() : () -> ()
    %cst_86 = arith.constant 0.0883883461 : f32
    %231 = vector.broadcast %cst_86 : f32 to vector<4x8x8xf32>
    %232 = arith.mulf %230, %231 : vector<4x8x8xf32>
    %cst_87 = arith.constant dense<0xFF800000> : vector<4x8xf32>
    %233 = vector.multi_reduction <maximumf>, %232, %cst_87 [1] : vector<4x8x8xf32> to vector<4x8xf32>
    %234 = vector.shape_cast %233 : vector<4x8xf32> to vector<4x1x8xf32>
    %235 = vector.broadcast %234 : vector<4x1x8xf32> to vector<4x8x8xf32>
    %236 = arith.subf %232, %235 : vector<4x8x8xf32>
    %237 = math.exp %236 : vector<4x8x8xf32>
    %cst_88 = arith.constant dense<0.000000e+00> : vector<4x8xf32>
    %238 = vector.multi_reduction <add>, %237, %cst_88 [1] : vector<4x8x8xf32> to vector<4x8xf32>
    %239 = vector.shape_cast %238 : vector<4x8xf32> to vector<4x1x8xf32>
    %240 = tpu.reciprocal %239 {approx = true} : vector<4x1x8xf32> -> vector<4x1x8xf32>
    %241 = vector.broadcast %240 : vector<4x1x8xf32> to vector<4x8x8xf32>
    %242 = arith.mulf %237, %241 : vector<4x8x8xf32>
    %243 = arith.truncf %242 : vector<4x8x8xf32> to vector<4x8x8xbf16>
    "tpu.trace_start"() <{level = 10 : i32, message = "hqk,hkd->hqd"}> : () -> ()
    %cst_89 = arith.constant dense<0.000000e+00> : vector<4x8x32xf32>
    %244 = tpu.matmul %243, %228, %cst_89 {dimension_numbers = #tpu.dot_dimension_numbers<[2], [1], [1], [2], [0, 0, 0, 1, 1, 2], [0], [0]>} : vector<4x8x8xbf16>, vector<4x8x32xbf16>, vector<4x8x32xf32> -> vector<4x8x32xf32>
    "tpu.trace_stop"() : () -> ()
    %245 = tpu.transpose %244, [1, 0, 2] : vector<4x8x32xf32> -> vector<8x4x32xf32>
    %246 = vector.shape_cast %245 : vector<8x4x32xf32> to vector<8x128xf32>
    %247 = arith.addf %216, %246 : vector<8x128xf32>
    %248 = arith.truncf %247 : vector<8x128xf32> to vector<8x128xbf16>
    %cst_90 = arith.constant dense<0.000000e+00> : vector<8x128xf32>
    %249 = tpu.matmul %248, %212, %cst_90 {dimension_numbers = #tpu.dot_dimension_numbers<[1], [0], [0], [1], [0, 0, 1, 1], [], []>} : vector<8x128xbf16>, vector<128x128xbf16>, vector<8x128xf32> -> vector<8x128xf32>
    %250 = vector.broadcast %214 : vector<1x128xf32> to vector<8x128xf32>
    %251 = arith.addf %249, %250 : vector<8x128xf32>
    %cst_91 = arith.constant 0.000000e+00 : f32
    %252 = vector.broadcast %cst_91 : f32 to vector<8x128xf32>
    %253 = arith.maximumf %251, %252 : vector<8x128xf32>
    %254 = arith.addf %247, %253 : vector<8x128xf32>
    %255 = vector.extract_strided_slice %210 {offsets = [1, 0, 0], sizes = [1, 8, 128], strides = [1, 1, 1]} : vector<4x8x384xf32> to vector<1x8x128xf32>
    %256 = vector.shape_cast %255 : vector<1x8x128xf32> to vector<8x128xf32>
    %257 = vector.shape_cast %256 : vector<8x128xf32> to vector<8x4x32xf32>
    %258 = tpu.transpose %257, [1, 0, 2] : vector<8x4x32xf32> -> vector<4x8x32xf32>
    %259 = vector.extract_strided_slice %210 {offsets = [1, 0, 128], sizes = [1, 8, 128], strides = [1, 1, 1]} : vector<4x8x384xf32> to vector<1x8x128xf32>
    %260 = vector.shape_cast %259 : vector<1x8x128xf32> to vector<8x128xf32>
    %261 = vector.extract_strided_slice %210 {offsets = [1, 0, 256], sizes = [1, 8, 128], strides = [1, 1, 1]} : vector<4x8x384xf32> to vector<1x8x128xf32>
    %262 = vector.shape_cast %261 : vector<1x8x128xf32> to vector<8x128xf32>
    %263 = vector.shape_cast %260 : vector<8x128xf32> to vector<8x4x32xf32>
    %264 = tpu.transpose %263, [1, 0, 2] : vector<8x4x32xf32> -> vector<4x8x32xf32>
    %265 = arith.truncf %264 : vector<4x8x32xf32> to vector<4x8x32xbf16>
    %266 = vector.shape_cast %262 : vector<8x128xf32> to vector<8x4x32xf32>
    %267 = tpu.transpose %266, [1, 0, 2] : vector<8x4x32xf32> -> vector<4x8x32xf32>
    %268 = arith.truncf %267 : vector<4x8x32xf32> to vector<4x8x32xbf16>
    %269 = arith.truncf %258 : vector<4x8x32xf32> to vector<4x8x32xbf16>
    "tpu.trace_start"() <{level = 10 : i32, message = "hqd,hkd->hqk"}> : () -> ()
    %cst_92 = arith.constant dense<0.000000e+00> : vector<4x8x8xf32>
    %270 = tpu.matmul %269, %265, %cst_92 {dimension_numbers = #tpu.dot_dimension_numbers<[2], [2], [1], [1], [0, 0, 0, 1, 1, 1], [0], [0]>} : vector<4x8x32xbf16>, vector<4x8x32xbf16>, vector<4x8x8xf32> -> vector<4x8x8xf32>
    "tpu.trace_stop"() : () -> ()
    %cst_93 = arith.constant 0.0883883461 : f32
    %271 = vector.broadcast %cst_93 : f32 to vector<4x8x8xf32>
    %272 = arith.mulf %270, %271 : vector<4x8x8xf32>
    %cst_94 = arith.constant dense<0xFF800000> : vector<4x8xf32>
    %273 = vector.multi_reduction <maximumf>, %272, %cst_94 [1] : vector<4x8x8xf32> to vector<4x8xf32>
    %274 = vector.shape_cast %273 : vector<4x8xf32> to vector<4x1x8xf32>
    %275 = vector.broadcast %274 : vector<4x1x8xf32> to vector<4x8x8xf32>
    %276 = arith.subf %272, %275 : vector<4x8x8xf32>
    %277 = math.exp %276 : vector<4x8x8xf32>
    %cst_95 = arith.constant dense<0.000000e+00> : vector<4x8xf32>
    %278 = vector.multi_reduction <add>, %277, %cst_95 [1] : vector<4x8x8xf32> to vector<4x8xf32>
    %279 = vector.shape_cast %278 : vector<4x8xf32> to vector<4x1x8xf32>
    %280 = tpu.reciprocal %279 {approx = true} : vector<4x1x8xf32> -> vector<4x1x8xf32>
    %281 = vector.broadcast %280 : vector<4x1x8xf32> to vector<4x8x8xf32>
    %282 = arith.mulf %277, %281 : vector<4x8x8xf32>
    %283 = arith.truncf %282 : vector<4x8x8xf32> to vector<4x8x8xbf16>
    "tpu.trace_start"() <{level = 10 : i32, message = "hqk,hkd->hqd"}> : () -> ()
    %cst_96 = arith.constant dense<0.000000e+00> : vector<4x8x32xf32>
    %284 = tpu.matmul %283, %268, %cst_96 {dimension_numbers = #tpu.dot_dimension_numbers<[2], [1], [1], [2], [0, 0, 0, 1, 1, 2], [0], [0]>} : vector<4x8x8xbf16>, vector<4x8x32xbf16>, vector<4x8x32xf32> -> vector<4x8x32xf32>
    "tpu.trace_stop"() : () -> ()
    %285 = tpu.transpose %284, [1, 0, 2] : vector<4x8x32xf32> -> vector<8x4x32xf32>
    %286 = vector.shape_cast %285 : vector<8x4x32xf32> to vector<8x128xf32>
    %287 = arith.addf %256, %286 : vector<8x128xf32>
    %288 = arith.truncf %287 : vector<8x128xf32> to vector<8x128xbf16>
    %cst_97 = arith.constant dense<0.000000e+00> : vector<8x128xf32>
    %289 = tpu.matmul %288, %212, %cst_97 {dimension_numbers = #tpu.dot_dimension_numbers<[1], [0], [0], [1], [0, 0, 1, 1], [], []>} : vector<8x128xbf16>, vector<128x128xbf16>, vector<8x128xf32> -> vector<8x128xf32>
    %290 = vector.broadcast %214 : vector<1x128xf32> to vector<8x128xf32>
    %291 = arith.addf %289, %290 : vector<8x128xf32>
    %cst_98 = arith.constant 0.000000e+00 : f32
    %292 = vector.broadcast %cst_98 : f32 to vector<8x128xf32>
    %293 = arith.maximumf %291, %292 : vector<8x128xf32>
    %294 = arith.addf %287, %293 : vector<8x128xf32>
    %295 = vector.extract_strided_slice %210 {offsets = [2, 0, 0], sizes = [1, 8, 128], strides = [1, 1, 1]} : vector<4x8x384xf32> to vector<1x8x128xf32>
    %296 = vector.shape_cast %295 : vector<1x8x128xf32> to vector<8x128xf32>
    %297 = vector.shape_cast %296 : vector<8x128xf32> to vector<8x4x32xf32>
    %298 = tpu.transpose %297, [1, 0, 2] : vector<8x4x32xf32> -> vector<4x8x32xf32>
    %299 = vector.extract_strided_slice %210 {offsets = [2, 0, 128], sizes = [1, 8, 128], strides = [1, 1, 1]} : vector<4x8x384xf32> to vector<1x8x128xf32>
    %300 = vector.shape_cast %299 : vector<1x8x128xf32> to vector<8x128xf32>
    %301 = vector.extract_strided_slice %210 {offsets = [2, 0, 256], sizes = [1, 8, 128], strides = [1, 1, 1]} : vector<4x8x384xf32> to vector<1x8x128xf32>
    %302 = vector.shape_cast %301 : vector<1x8x128xf32> to vector<8x128xf32>
    %303 = vector.shape_cast %300 : vector<8x128xf32> to vector<8x4x32xf32>
    %304 = tpu.transpose %303, [1, 0, 2] : vector<8x4x32xf32> -> vector<4x8x32xf32>
    %305 = arith.truncf %304 : vector<4x8x32xf32> to vector<4x8x32xbf16>
    %306 = vector.shape_cast %302 : vector<8x128xf32> to vector<8x4x32xf32>
    %307 = tpu.transpose %306, [1, 0, 2] : vector<8x4x32xf32> -> vector<4x8x32xf32>
    %308 = arith.truncf %307 : vector<4x8x32xf32> to vector<4x8x32xbf16>
    %309 = arith.truncf %298 : vector<4x8x32xf32> to vector<4x8x32xbf16>
    "tpu.trace_start"() <{level = 10 : i32, message = "hqd,hkd->hqk"}> : () -> ()
    %cst_99 = arith.constant dense<0.000000e+00> : vector<4x8x8xf32>
    %310 = tpu.matmul %309, %305, %cst_99 {dimension_numbers = #tpu.dot_dimension_numbers<[2], [2], [1], [1], [0, 0, 0, 1, 1, 1], [0], [0]>} : vector<4x8x32xbf16>, vector<4x8x32xbf16>, vector<4x8x8xf32> -> vector<4x8x8xf32>
    "tpu.trace_stop"() : () -> ()
    %cst_100 = arith.constant 0.0883883461 : f32
    %311 = vector.broadcast %cst_100 : f32 to vector<4x8x8xf32>
    %312 = arith.mulf %310, %311 : vector<4x8x8xf32>
    %cst_101 = arith.constant dense<0xFF800000> : vector<4x8xf32>
    %313 = vector.multi_reduction <maximumf>, %312, %cst_101 [1] : vector<4x8x8xf32> to vector<4x8xf32>
    %314 = vector.shape_cast %313 : vector<4x8xf32> to vector<4x1x8xf32>
    %315 = vector.broadcast %314 : vector<4x1x8xf32> to vector<4x8x8xf32>
    %316 = arith.subf %312, %315 : vector<4x8x8xf32>
    %317 = math.exp %316 : vector<4x8x8xf32>
    %cst_102 = arith.constant dense<0.000000e+00> : vector<4x8xf32>
    %318 = vector.multi_reduction <add>, %317, %cst_102 [1] : vector<4x8x8xf32> to vector<4x8xf32>
    %319 = vector.shape_cast %318 : vector<4x8xf32> to vector<4x1x8xf32>
    %320 = tpu.reciprocal %319 {approx = true} : vector<4x1x8xf32> -> vector<4x1x8xf32>
    %321 = vector.broadcast %320 : vector<4x1x8xf32> to vector<4x8x8xf32>
    %322 = arith.mulf %317, %321 : vector<4x8x8xf32>
    %323 = arith.truncf %322 : vector<4x8x8xf32> to vector<4x8x8xbf16>
    "tpu.trace_start"() <{level = 10 : i32, message = "hqk,hkd->hqd"}> : () -> ()
    %cst_103 = arith.constant dense<0.000000e+00> : vector<4x8x32xf32>
    %324 = tpu.matmul %323, %308, %cst_103 {dimension_numbers = #tpu.dot_dimension_numbers<[2], [1], [1], [2], [0, 0, 0, 1, 1, 2], [0], [0]>} : vector<4x8x8xbf16>, vector<4x8x32xbf16>, vector<4x8x32xf32> -> vector<4x8x32xf32>
    "tpu.trace_stop"() : () -> ()
    %325 = tpu.transpose %324, [1, 0, 2] : vector<4x8x32xf32> -> vector<8x4x32xf32>
    %326 = vector.shape_cast %325 : vector<8x4x32xf32> to vector<8x128xf32>
    %327 = arith.addf %296, %326 : vector<8x128xf32>
    %328 = arith.truncf %327 : vector<8x128xf32> to vector<8x128xbf16>
    %cst_104 = arith.constant dense<0.000000e+00> : vector<8x128xf32>
    %329 = tpu.matmul %328, %212, %cst_104 {dimension_numbers = #tpu.dot_dimension_numbers<[1], [0], [0], [1], [0, 0, 1, 1], [], []>} : vector<8x128xbf16>, vector<128x128xbf16>, vector<8x128xf32> -> vector<8x128xf32>
    %330 = vector.broadcast %214 : vector<1x128xf32> to vector<8x128xf32>
    %331 = arith.addf %329, %330 : vector<8x128xf32>
    %cst_105 = arith.constant 0.000000e+00 : f32
    %332 = vector.broadcast %cst_105 : f32 to vector<8x128xf32>
    %333 = arith.maximumf %331, %332 : vector<8x128xf32>
    %334 = arith.addf %327, %333 : vector<8x128xf32>
    %335 = vector.extract_strided_slice %210 {offsets = [3, 0, 0], sizes = [1, 8, 128], strides = [1, 1, 1]} : vector<4x8x384xf32> to vector<1x8x128xf32>
    %336 = vector.shape_cast %335 : vector<1x8x128xf32> to vector<8x128xf32>
    %337 = vector.shape_cast %336 : vector<8x128xf32> to vector<8x4x32xf32>
    %338 = tpu.transpose %337, [1, 0, 2] : vector<8x4x32xf32> -> vector<4x8x32xf32>
    %339 = vector.extract_strided_slice %210 {offsets = [3, 0, 128], sizes = [1, 8, 128], strides = [1, 1, 1]} : vector<4x8x384xf32> to vector<1x8x128xf32>
    %340 = vector.shape_cast %339 : vector<1x8x128xf32> to vector<8x128xf32>
    %341 = vector.extract_strided_slice %210 {offsets = [3, 0, 256], sizes = [1, 8, 128], strides = [1, 1, 1]} : vector<4x8x384xf32> to vector<1x8x128xf32>
    %342 = vector.shape_cast %341 : vector<1x8x128xf32> to vector<8x128xf32>
    %343 = vector.shape_cast %340 : vector<8x128xf32> to vector<8x4x32xf32>
    %344 = tpu.transpose %343, [1, 0, 2] : vector<8x4x32xf32> -> vector<4x8x32xf32>
    %345 = arith.truncf %344 : vector<4x8x32xf32> to vector<4x8x32xbf16>
    %346 = vector.shape_cast %342 : vector<8x128xf32> to vector<8x4x32xf32>
    %347 = tpu.transpose %346, [1, 0, 2] : vector<8x4x32xf32> -> vector<4x8x32xf32>
    %348 = arith.truncf %347 : vector<4x8x32xf32> to vector<4x8x32xbf16>
    %349 = arith.truncf %338 : vector<4x8x32xf32> to vector<4x8x32xbf16>
    "tpu.trace_start"() <{level = 10 : i32, message = "hqd,hkd->hqk"}> : () -> ()
    %cst_106 = arith.constant dense<0.000000e+00> : vector<4x8x8xf32>
    %350 = tpu.matmul %349, %345, %cst_106 {dimension_numbers = #tpu.dot_dimension_numbers<[2], [2], [1], [1], [0, 0, 0, 1, 1, 1], [0], [0]>} : vector<4x8x32xbf16>, vector<4x8x32xbf16>, vector<4x8x8xf32> -> vector<4x8x8xf32>
    "tpu.trace_stop"() : () -> ()
    %cst_107 = arith.constant 0.0883883461 : f32
    %351 = vector.broadcast %cst_107 : f32 to vector<4x8x8xf32>
    %352 = arith.mulf %350, %351 : vector<4x8x8xf32>
    %cst_108 = arith.constant dense<0xFF800000> : vector<4x8xf32>
    %353 = vector.multi_reduction <maximumf>, %352, %cst_108 [1] : vector<4x8x8xf32> to vector<4x8xf32>
    %354 = vector.shape_cast %353 : vector<4x8xf32> to vector<4x1x8xf32>
    %355 = vector.broadcast %354 : vector<4x1x8xf32> to vector<4x8x8xf32>
    %356 = arith.subf %352, %355 : vector<4x8x8xf32>
    %357 = math.exp %356 : vector<4x8x8xf32>
    %cst_109 = arith.constant dense<0.000000e+00> : vector<4x8xf32>
    %358 = vector.multi_reduction <add>, %357, %cst_109 [1] : vector<4x8x8xf32> to vector<4x8xf32>
    %359 = vector.shape_cast %358 : vector<4x8xf32> to vector<4x1x8xf32>
    %360 = tpu.reciprocal %359 {approx = true} : vector<4x1x8xf32> -> vector<4x1x8xf32>
    %361 = vector.broadcast %360 : vector<4x1x8xf32> to vector<4x8x8xf32>
    %362 = arith.mulf %357, %361 : vector<4x8x8xf32>
    %363 = arith.truncf %362 : vector<4x8x8xf32> to vector<4x8x8xbf16>
    "tpu.trace_start"() <{level = 10 : i32, message = "hqk,hkd->hqd"}> : () -> ()
    %cst_110 = arith.constant dense<0.000000e+00> : vector<4x8x32xf32>
    %364 = tpu.matmul %363, %348, %cst_110 {dimension_numbers = #tpu.dot_dimension_numbers<[2], [1], [1], [2], [0, 0, 0, 1, 1, 2], [0], [0]>} : vector<4x8x8xbf16>, vector<4x8x32xbf16>, vector<4x8x32xf32> -> vector<4x8x32xf32>
    "tpu.trace_stop"() : () -> ()
    %365 = tpu.transpose %364, [1, 0, 2] : vector<4x8x32xf32> -> vector<8x4x32xf32>
    %366 = vector.shape_cast %365 : vector<8x4x32xf32> to vector<8x128xf32>
    %367 = arith.addf %336, %366 : vector<8x128xf32>
    %368 = arith.truncf %367 : vector<8x128xf32> to vector<8x128xbf16>
    %cst_111 = arith.constant dense<0.000000e+00> : vector<8x128xf32>
    %369 = tpu.matmul %368, %212, %cst_111 {dimension_numbers = #tpu.dot_dimension_numbers<[1], [0], [0], [1], [0, 0, 1, 1], [], []>} : vector<8x128xbf16>, vector<128x128xbf16>, vector<8x128xf32> -> vector<8x128xf32>
    %370 = vector.broadcast %214 : vector<1x128xf32> to vector<8x128xf32>
    %371 = arith.addf %369, %370 : vector<8x128xf32>
    %cst_112 = arith.constant 0.000000e+00 : f32
    %372 = vector.broadcast %cst_112 : f32 to vector<8x128xf32>
    %373 = arith.maximumf %371, %372 : vector<8x128xf32>
    %374 = arith.addf %367, %373 : vector<8x128xf32>
    %375 = tpu.concatenate %254, %294, %334, %374 in 0 : vector<8x128xf32>, vector<8x128xf32>, vector<8x128xf32>, vector<8x128xf32> -> vector<32x128xf32>
    %c2_113 = arith.constant 2 : index
    %c0_114 = arith.constant 0 : index
    %c128_115 = arith.constant 128 : index
    %376 = vector.load %arg6[%c2_113, %c0_114, %c128_115] : memref<3x128x512xbf16, #tpu.memory_space<vmem>>, vector<1x128x256xbf16>
    %377 = vector.shape_cast %376 : vector<1x128x256xbf16> to vector<128x256xbf16>
    %378 = arith.truncf %375 : vector<32x128xf32> to vector<32x128xbf16>
    %cst_116 = arith.constant dense<0.000000e+00> : vector<32x256xf32>
    %379 = tpu.matmul %378, %377, %cst_116 {dimension_numbers = #tpu.dot_dimension_numbers<[1], [0], [0], [1], [0, 0, 1, 1], [], []>} : vector<32x128xbf16>, vector<128x256xbf16>, vector<32x256xf32> -> vector<32x256xf32>
    %c2_117 = arith.constant 2 : index
    %c0_118 = arith.constant 0 : index
    %c128_119 = arith.constant 128 : index
    %380 = vector.load %arg7[%c2_117, %c0_118, %c128_119] : memref<3x1x512xf32, #tpu.memory_space<vmem>>, vector<1x1x256xf32>
    %381 = vector.shape_cast %380 : vector<1x1x256xf32> to vector<1x256xf32>
    %382 = vector.broadcast %381 : vector<1x256xf32> to vector<32x256xf32>
    %383 = arith.addf %379, %382 : vector<32x256xf32>
    %384 = vector.shape_cast %383 : vector<32x256xf32> to vector<4x8x256xf32>
    %c2_120 = arith.constant 2 : index
    %c0_121 = arith.constant 0 : index
    %c384_122 = arith.constant 384 : index
    %385 = vector.load %arg6[%c2_120, %c0_121, %c384_122] : memref<3x128x512xbf16, #tpu.memory_space<vmem>>, vector<1x128x128xbf16>
    %386 = vector.shape_cast %385 : vector<1x128x128xbf16> to vector<128x128xbf16>
    %c2_123 = arith.constant 2 : index
    %c0_124 = arith.constant 0 : index
    %c384_125 = arith.constant 384 : index
    %387 = vector.load %arg7[%c2_123, %c0_124, %c384_125] : memref<3x1x512xf32, #tpu.memory_space<vmem>>, vector<1x1x128xf32>
    %388 = vector.shape_cast %387 : vector<1x1x128xf32> to vector<1x128xf32>
    %389 = vector.extract_strided_slice %384 {offsets = [0, 0, 0], sizes = [1, 8, 128], strides = [1, 1, 1]} : vector<4x8x256xf32> to vector<1x8x128xf32>
    %390 = vector.shape_cast %389 : vector<1x8x128xf32> to vector<8x128xf32>
    %391 = vector.extract_strided_slice %384 {offsets = [0, 0, 128], sizes = [1, 8, 128], strides = [1, 1, 1]} : vector<4x8x256xf32> to vector<1x8x128xf32>
    %392 = vector.shape_cast %391 : vector<1x8x128xf32> to vector<8x128xf32>
    %393 = vector.shape_cast %390 : vector<8x128xf32> to vector<8x4x32xf32>
    %394 = tpu.transpose %393, [1, 0, 2] : vector<8x4x32xf32> -> vector<4x8x32xf32>
    %395 = arith.truncf %394 : vector<4x8x32xf32> to vector<4x8x32xbf16>
    %396 = vector.shape_cast %392 : vector<8x128xf32> to vector<8x4x32xf32>
    %397 = tpu.transpose %396, [1, 0, 2] : vector<8x4x32xf32> -> vector<4x8x32xf32>
    %398 = arith.truncf %397 : vector<4x8x32xf32> to vector<4x8x32xbf16>
    %399 = arith.truncf %18 : vector<4x1x32xf32> to vector<4x1x32xbf16>
    "tpu.trace_start"() <{level = 10 : i32, message = "hqd,hkd->hqk"}> : () -> ()
    %cst_126 = arith.constant dense<0.000000e+00> : vector<4x1x8xf32>
    %400 = tpu.matmul %399, %395, %cst_126 {dimension_numbers = #tpu.dot_dimension_numbers<[2], [2], [1], [1], [0, 0, 0, 1, 1, 1], [0], [0]>} : vector<4x1x32xbf16>, vector<4x8x32xbf16>, vector<4x1x8xf32> -> vector<4x1x8xf32>
    "tpu.trace_stop"() : () -> ()
    %cst_127 = arith.constant 0.0883883461 : f32
    %401 = vector.broadcast %cst_127 : f32 to vector<4x1x8xf32>
    %402 = arith.mulf %400, %401 : vector<4x1x8xf32>
    %cst_128 = arith.constant dense<0xFF800000> : vector<4x8xf32>
    %403 = vector.multi_reduction <maximumf>, %402, %cst_128 [1] : vector<4x1x8xf32> to vector<4x8xf32>
    %404 = vector.shape_cast %403 : vector<4x8xf32> to vector<4x1x8xf32>
    %405 = arith.subf %402, %404 : vector<4x1x8xf32>
    %406 = math.exp %405 : vector<4x1x8xf32>
    %cst_129 = arith.constant dense<0.000000e+00> : vector<4x8xf32>
    %407 = vector.multi_reduction <add>, %406, %cst_129 [1] : vector<4x1x8xf32> to vector<4x8xf32>
    %408 = vector.shape_cast %407 : vector<4x8xf32> to vector<4x1x8xf32>
    %409 = tpu.reciprocal %408 {approx = true} : vector<4x1x8xf32> -> vector<4x1x8xf32>
    %410 = arith.mulf %406, %409 : vector<4x1x8xf32>
    %411 = arith.truncf %410 : vector<4x1x8xf32> to vector<4x1x8xbf16>
    "tpu.trace_start"() <{level = 10 : i32, message = "hqk,hkd->hqd"}> : () -> ()
    %cst_130 = arith.constant dense<0.000000e+00> : vector<4x1x32xf32>
    %412 = tpu.matmul %411, %398, %cst_130 {dimension_numbers = #tpu.dot_dimension_numbers<[2], [1], [1], [2], [0, 0, 0, 1, 1, 2], [0], [0]>} : vector<4x1x8xbf16>, vector<4x8x32xbf16>, vector<4x1x32xf32> -> vector<4x1x32xf32>
    "tpu.trace_stop"() : () -> ()
    %413 = tpu.transpose %412, [1, 0, 2] : vector<4x1x32xf32> -> vector<1x4x32xf32>
    %414 = vector.shape_cast %413 : vector<1x4x32xf32> to vector<1x128xf32>
    %415 = arith.addf %14, %414 : vector<1x128xf32>
    %416 = arith.truncf %415 : vector<1x128xf32> to vector<1x128xbf16>
    %cst_131 = arith.constant dense<0.000000e+00> : vector<1x128xf32>
    %417 = tpu.matmul %416, %386, %cst_131 {dimension_numbers = #tpu.dot_dimension_numbers<[1], [0], [0], [1], [0, 0, 1, 1], [], []>} : vector<1x128xbf16>, vector<128x128xbf16>, vector<1x128xf32> -> vector<1x128xf32>
    %418 = arith.addf %417, %388 : vector<1x128xf32>
    %cst_132 = arith.constant 0.000000e+00 : f32
    %419 = vector.broadcast %cst_132 : f32 to vector<1x128xf32>
    %420 = arith.maximumf %418, %419 : vector<1x128xf32>
    %421 = arith.addf %415, %420 : vector<1x128xf32>
    %422 = vector.extract_strided_slice %384 {offsets = [1, 0, 0], sizes = [1, 8, 128], strides = [1, 1, 1]} : vector<4x8x256xf32> to vector<1x8x128xf32>
    %423 = vector.shape_cast %422 : vector<1x8x128xf32> to vector<8x128xf32>
    %424 = vector.extract_strided_slice %384 {offsets = [1, 0, 128], sizes = [1, 8, 128], strides = [1, 1, 1]} : vector<4x8x256xf32> to vector<1x8x128xf32>
    %425 = vector.shape_cast %424 : vector<1x8x128xf32> to vector<8x128xf32>
    %426 = vector.shape_cast %423 : vector<8x128xf32> to vector<8x4x32xf32>
    %427 = tpu.transpose %426, [1, 0, 2] : vector<8x4x32xf32> -> vector<4x8x32xf32>
    %428 = arith.truncf %427 : vector<4x8x32xf32> to vector<4x8x32xbf16>
    %429 = vector.shape_cast %425 : vector<8x128xf32> to vector<8x4x32xf32>
    %430 = tpu.transpose %429, [1, 0, 2] : vector<8x4x32xf32> -> vector<4x8x32xf32>
    %431 = arith.truncf %430 : vector<4x8x32xf32> to vector<4x8x32xbf16>
    %432 = arith.truncf %18 : vector<4x1x32xf32> to vector<4x1x32xbf16>
    "tpu.trace_start"() <{level = 10 : i32, message = "hqd,hkd->hqk"}> : () -> ()
    %cst_133 = arith.constant dense<0.000000e+00> : vector<4x1x8xf32>
    %433 = tpu.matmul %432, %428, %cst_133 {dimension_numbers = #tpu.dot_dimension_numbers<[2], [2], [1], [1], [0, 0, 0, 1, 1, 1], [0], [0]>} : vector<4x1x32xbf16>, vector<4x8x32xbf16>, vector<4x1x8xf32> -> vector<4x1x8xf32>
    "tpu.trace_stop"() : () -> ()
    %cst_134 = arith.constant 0.0883883461 : f32
    %434 = vector.broadcast %cst_134 : f32 to vector<4x1x8xf32>
    %435 = arith.mulf %433, %434 : vector<4x1x8xf32>
    %cst_135 = arith.constant dense<0xFF800000> : vector<4x8xf32>
    %436 = vector.multi_reduction <maximumf>, %435, %cst_135 [1] : vector<4x1x8xf32> to vector<4x8xf32>
    %437 = vector.shape_cast %436 : vector<4x8xf32> to vector<4x1x8xf32>
    %438 = arith.subf %435, %437 : vector<4x1x8xf32>
    %439 = math.exp %438 : vector<4x1x8xf32>
    %cst_136 = arith.constant dense<0.000000e+00> : vector<4x8xf32>
    %440 = vector.multi_reduction <add>, %439, %cst_136 [1] : vector<4x1x8xf32> to vector<4x8xf32>
    %441 = vector.shape_cast %440 : vector<4x8xf32> to vector<4x1x8xf32>
    %442 = tpu.reciprocal %441 {approx = true} : vector<4x1x8xf32> -> vector<4x1x8xf32>
    %443 = arith.mulf %439, %442 : vector<4x1x8xf32>
    %444 = arith.truncf %443 : vector<4x1x8xf32> to vector<4x1x8xbf16>
    "tpu.trace_start"() <{level = 10 : i32, message = "hqk,hkd->hqd"}> : () -> ()
    %cst_137 = arith.constant dense<0.000000e+00> : vector<4x1x32xf32>
    %445 = tpu.matmul %444, %431, %cst_137 {dimension_numbers = #tpu.dot_dimension_numbers<[2], [1], [1], [2], [0, 0, 0, 1, 1, 2], [0], [0]>} : vector<4x1x8xbf16>, vector<4x8x32xbf16>, vector<4x1x32xf32> -> vector<4x1x32xf32>
    "tpu.trace_stop"() : () -> ()
    %446 = tpu.transpose %445, [1, 0, 2] : vector<4x1x32xf32> -> vector<1x4x32xf32>
    %447 = vector.shape_cast %446 : vector<1x4x32xf32> to vector<1x128xf32>
    %448 = arith.addf %14, %447 : vector<1x128xf32>
    %449 = arith.truncf %448 : vector<1x128xf32> to vector<1x128xbf16>
    %cst_138 = arith.constant dense<0.000000e+00> : vector<1x128xf32>
    %450 = tpu.matmul %449, %386, %cst_138 {dimension_numbers = #tpu.dot_dimension_numbers<[1], [0], [0], [1], [0, 0, 1, 1], [], []>} : vector<1x128xbf16>, vector<128x128xbf16>, vector<1x128xf32> -> vector<1x128xf32>
    %451 = arith.addf %450, %388 : vector<1x128xf32>
    %cst_139 = arith.constant 0.000000e+00 : f32
    %452 = vector.broadcast %cst_139 : f32 to vector<1x128xf32>
    %453 = arith.maximumf %451, %452 : vector<1x128xf32>
    %454 = arith.addf %448, %453 : vector<1x128xf32>
    %455 = vector.extract_strided_slice %384 {offsets = [2, 0, 0], sizes = [1, 8, 128], strides = [1, 1, 1]} : vector<4x8x256xf32> to vector<1x8x128xf32>
    %456 = vector.shape_cast %455 : vector<1x8x128xf32> to vector<8x128xf32>
    %457 = vector.extract_strided_slice %384 {offsets = [2, 0, 128], sizes = [1, 8, 128], strides = [1, 1, 1]} : vector<4x8x256xf32> to vector<1x8x128xf32>
    %458 = vector.shape_cast %457 : vector<1x8x128xf32> to vector<8x128xf32>
    %459 = vector.shape_cast %456 : vector<8x128xf32> to vector<8x4x32xf32>
    %460 = tpu.transpose %459, [1, 0, 2] : vector<8x4x32xf32> -> vector<4x8x32xf32>
    %461 = arith.truncf %460 : vector<4x8x32xf32> to vector<4x8x32xbf16>
    %462 = vector.shape_cast %458 : vector<8x128xf32> to vector<8x4x32xf32>
    %463 = tpu.transpose %462, [1, 0, 2] : vector<8x4x32xf32> -> vector<4x8x32xf32>
    %464 = arith.truncf %463 : vector<4x8x32xf32> to vector<4x8x32xbf16>
    %465 = arith.truncf %18 : vector<4x1x32xf32> to vector<4x1x32xbf16>
    "tpu.trace_start"() <{level = 10 : i32, message = "hqd,hkd->hqk"}> : () -> ()
    %cst_140 = arith.constant dense<0.000000e+00> : vector<4x1x8xf32>
    %466 = tpu.matmul %465, %461, %cst_140 {dimension_numbers = #tpu.dot_dimension_numbers<[2], [2], [1], [1], [0, 0, 0, 1, 1, 1], [0], [0]>} : vector<4x1x32xbf16>, vector<4x8x32xbf16>, vector<4x1x8xf32> -> vector<4x1x8xf32>
    "tpu.trace_stop"() : () -> ()
    %cst_141 = arith.constant 0.0883883461 : f32
    %467 = vector.broadcast %cst_141 : f32 to vector<4x1x8xf32>
    %468 = arith.mulf %466, %467 : vector<4x1x8xf32>
    %cst_142 = arith.constant dense<0xFF800000> : vector<4x8xf32>
    %469 = vector.multi_reduction <maximumf>, %468, %cst_142 [1] : vector<4x1x8xf32> to vector<4x8xf32>
    %470 = vector.shape_cast %469 : vector<4x8xf32> to vector<4x1x8xf32>
    %471 = arith.subf %468, %470 : vector<4x1x8xf32>
    %472 = math.exp %471 : vector<4x1x8xf32>
    %cst_143 = arith.constant dense<0.000000e+00> : vector<4x8xf32>
    %473 = vector.multi_reduction <add>, %472, %cst_143 [1] : vector<4x1x8xf32> to vector<4x8xf32>
    %474 = vector.shape_cast %473 : vector<4x8xf32> to vector<4x1x8xf32>
    %475 = tpu.reciprocal %474 {approx = true} : vector<4x1x8xf32> -> vector<4x1x8xf32>
    %476 = arith.mulf %472, %475 : vector<4x1x8xf32>
    %477 = arith.truncf %476 : vector<4x1x8xf32> to vector<4x1x8xbf16>
    "tpu.trace_start"() <{level = 10 : i32, message = "hqk,hkd->hqd"}> : () -> ()
    %cst_144 = arith.constant dense<0.000000e+00> : vector<4x1x32xf32>
    %478 = tpu.matmul %477, %464, %cst_144 {dimension_numbers = #tpu.dot_dimension_numbers<[2], [1], [1], [2], [0, 0, 0, 1, 1, 2], [0], [0]>} : vector<4x1x8xbf16>, vector<4x8x32xbf16>, vector<4x1x32xf32> -> vector<4x1x32xf32>
    "tpu.trace_stop"() : () -> ()
    %479 = tpu.transpose %478, [1, 0, 2] : vector<4x1x32xf32> -> vector<1x4x32xf32>
    %480 = vector.shape_cast %479 : vector<1x4x32xf32> to vector<1x128xf32>
    %481 = arith.addf %14, %480 : vector<1x128xf32>
    %482 = arith.truncf %481 : vector<1x128xf32> to vector<1x128xbf16>
    %cst_145 = arith.constant dense<0.000000e+00> : vector<1x128xf32>
    %483 = tpu.matmul %482, %386, %cst_145 {dimension_numbers = #tpu.dot_dimension_numbers<[1], [0], [0], [1], [0, 0, 1, 1], [], []>} : vector<1x128xbf16>, vector<128x128xbf16>, vector<1x128xf32> -> vector<1x128xf32>
    %484 = arith.addf %483, %388 : vector<1x128xf32>
    %cst_146 = arith.constant 0.000000e+00 : f32
    %485 = vector.broadcast %cst_146 : f32 to vector<1x128xf32>
    %486 = arith.maximumf %484, %485 : vector<1x128xf32>
    %487 = arith.addf %481, %486 : vector<1x128xf32>
    %488 = vector.extract_strided_slice %384 {offsets = [3, 0, 0], sizes = [1, 8, 128], strides = [1, 1, 1]} : vector<4x8x256xf32> to vector<1x8x128xf32>
    %489 = vector.shape_cast %488 : vector<1x8x128xf32> to vector<8x128xf32>
    %490 = vector.extract_strided_slice %384 {offsets = [3, 0, 128], sizes = [1, 8, 128], strides = [1, 1, 1]} : vector<4x8x256xf32> to vector<1x8x128xf32>
    %491 = vector.shape_cast %490 : vector<1x8x128xf32> to vector<8x128xf32>
    %492 = vector.shape_cast %489 : vector<8x128xf32> to vector<8x4x32xf32>
    %493 = tpu.transpose %492, [1, 0, 2] : vector<8x4x32xf32> -> vector<4x8x32xf32>
    %494 = arith.truncf %493 : vector<4x8x32xf32> to vector<4x8x32xbf16>
    %495 = vector.shape_cast %491 : vector<8x128xf32> to vector<8x4x32xf32>
    %496 = tpu.transpose %495, [1, 0, 2] : vector<8x4x32xf32> -> vector<4x8x32xf32>
    %497 = arith.truncf %496 : vector<4x8x32xf32> to vector<4x8x32xbf16>
    %498 = arith.truncf %18 : vector<4x1x32xf32> to vector<4x1x32xbf16>
    "tpu.trace_start"() <{level = 10 : i32, message = "hqd,hkd->hqk"}> : () -> ()
    %cst_147 = arith.constant dense<0.000000e+00> : vector<4x1x8xf32>
    %499 = tpu.matmul %498, %494, %cst_147 {dimension_numbers = #tpu.dot_dimension_numbers<[2], [2], [1], [1], [0, 0, 0, 1, 1, 1], [0], [0]>} : vector<4x1x32xbf16>, vector<4x8x32xbf16>, vector<4x1x8xf32> -> vector<4x1x8xf32>
    "tpu.trace_stop"() : () -> ()
    %cst_148 = arith.constant 0.0883883461 : f32
    %500 = vector.broadcast %cst_148 : f32 to vector<4x1x8xf32>
    %501 = arith.mulf %499, %500 : vector<4x1x8xf32>
    %cst_149 = arith.constant dense<0xFF800000> : vector<4x8xf32>
    %502 = vector.multi_reduction <maximumf>, %501, %cst_149 [1] : vector<4x1x8xf32> to vector<4x8xf32>
    %503 = vector.shape_cast %502 : vector<4x8xf32> to vector<4x1x8xf32>
    %504 = arith.subf %501, %503 : vector<4x1x8xf32>
    %505 = math.exp %504 : vector<4x1x8xf32>
    %cst_150 = arith.constant dense<0.000000e+00> : vector<4x8xf32>
    %506 = vector.multi_reduction <add>, %505, %cst_150 [1] : vector<4x1x8xf32> to vector<4x8xf32>
    %507 = vector.shape_cast %506 : vector<4x8xf32> to vector<4x1x8xf32>
    %508 = tpu.reciprocal %507 {approx = true} : vector<4x1x8xf32> -> vector<4x1x8xf32>
    %509 = arith.mulf %505, %508 : vector<4x1x8xf32>
    %510 = arith.truncf %509 : vector<4x1x8xf32> to vector<4x1x8xbf16>
    "tpu.trace_start"() <{level = 10 : i32, message = "hqk,hkd->hqd"}> : () -> ()
    %cst_151 = arith.constant dense<0.000000e+00> : vector<4x1x32xf32>
    %511 = tpu.matmul %510, %497, %cst_151 {dimension_numbers = #tpu.dot_dimension_numbers<[2], [1], [1], [2], [0, 0, 0, 1, 1, 2], [0], [0]>} : vector<4x1x8xbf16>, vector<4x8x32xbf16>, vector<4x1x32xf32> -> vector<4x1x32xf32>
    "tpu.trace_stop"() : () -> ()
    %512 = tpu.transpose %511, [1, 0, 2] : vector<4x1x32xf32> -> vector<1x4x32xf32>
    %513 = vector.shape_cast %512 : vector<1x4x32xf32> to vector<1x128xf32>
    %514 = arith.addf %14, %513 : vector<1x128xf32>
    %515 = arith.truncf %514 : vector<1x128xf32> to vector<1x128xbf16>
    %cst_152 = arith.constant dense<0.000000e+00> : vector<1x128xf32>
    %516 = tpu.matmul %515, %386, %cst_152 {dimension_numbers = #tpu.dot_dimension_numbers<[1], [0], [0], [1], [0, 0, 1, 1], [], []>} : vector<1x128xbf16>, vector<128x128xbf16>, vector<1x128xf32> -> vector<1x128xf32>
    %517 = arith.addf %516, %388 : vector<1x128xf32>
    %cst_153 = arith.constant 0.000000e+00 : f32
    %518 = vector.broadcast %cst_153 : f32 to vector<1x128xf32>
    %519 = arith.maximumf %517, %518 : vector<1x128xf32>
    %520 = arith.addf %514, %519 : vector<1x128xf32>
    %521 = tpu.concatenate %421, %454, %487, %520 in 0 : vector<1x128xf32>, vector<1x128xf32>, vector<1x128xf32>, vector<1x128xf32> -> vector<4x128xf32>
    %522 = vector.shape_cast %521 : vector<4x128xf32> to vector<4x1x128xf32>
    %c0_154 = arith.constant 0 : index
    %c0_155 = arith.constant 0 : index
    %c0_156 = arith.constant 0 : index
    %523 = vector.load %arg9[%c0_154, %c0_155, %c0_156] : memref<4x1x128xf32, #tpu.memory_space<vmem>>, vector<4x1x128xf32>
    tpu.vector_store %arg9[%c0_154, %c0_155, %c0_156], %522 {strides = array<i32>} : memref<4x1x128xf32, #tpu.memory_space<vmem>>, vector<4x1x128xf32>,
    return
  }
  func.func @transform_0(%arg0: i32) -> (i32, i32) {
    %c0_i32 = arith.constant 0 : i32
    %c0_i32_0 = arith.constant 0 : i32
    return %arg0, %c0_i32 : i32, i32
  }
  func.func @transform_1(%arg0: i32) -> (i32, i32) {
    %c0_i32 = arith.constant 0 : i32
    %c0_i32_0 = arith.constant 0 : i32
    return %arg0, %c0_i32 : i32, i32
  }
  func.func @transform_2(%arg0: i32) -> (i32, i32) {
    %c0_i32 = arith.constant 0 : i32
    %c0_i32_0 = arith.constant 0 : i32
    return %arg0, %c0_i32 : i32, i32
  }
  func.func @transform_3(%arg0: i32) -> (i32, i32, i32) {
    %c0_i32 = arith.constant 0 : i32
    %c0_i32_0 = arith.constant 0 : i32
    %c0_i32_1 = arith.constant 0 : i32
    %c0_i32_2 = arith.constant 0 : i32
    return %c0_i32, %c0_i32_0, %c0_i32_1 : i32, i32, i32
  }
  func.func @transform_4(%arg0: i32) -> (i32, i32, i32) {
    %c0_i32 = arith.constant 0 : i32
    %c0_i32_0 = arith.constant 0 : i32
    %c0_i32_1 = arith.constant 0 : i32
    %c0_i32_2 = arith.constant 0 : i32
    return %c0_i32, %c0_i32_0, %c0_i32_1 : i32, i32, i32
  }
  func.func @transform_5(%arg0: i32) -> (i32, i32, i32) {
    %c0_i32 = arith.constant 0 : i32
    %c0_i32_0 = arith.constant 0 : i32
    %c0_i32_1 = arith.constant 0 : i32
    %c0_i32_2 = arith.constant 0 : i32
    return %c0_i32, %c0_i32_0, %c0_i32_1 : i32, i32, i32
  }
  func.func @transform_6(%arg0: i32) -> (i32, i32, i32) {
    %c0_i32 = arith.constant 0 : i32
    %c0_i32_0 = arith.constant 0 : i32
    %c0_i32_1 = arith.constant 0 : i32
    %c0_i32_2 = arith.constant 0 : i32
    return %c0_i32, %c0_i32_0, %c0_i32_1 : i32, i32, i32
  }
  func.func @transform_7(%arg0: i32) -> (i32, i32) {
    %c0_i32 = arith.constant 0 : i32
    %c0_i32_0 = arith.constant 0 : i32
    %c0_i32_1 = arith.constant 0 : i32
    return %c0_i32, %c0_i32_0 : i32, i32
  }
  func.func @transform_8(%arg0: i32) -> (i32, i32, i32) {
    %c0_i32 = arith.constant 0 : i32
    %c0_i32_0 = arith.constant 0 : i32
    %c0_i32_1 = arith.constant 0 : i32
    return %arg0, %c0_i32, %c0_i32_0 : i32, i32, i32
  }
}

</mosaic_0001>

<bundles_post_ra>
// kernel: tpu_custom_call.1
= control target key start
LH: loop header
LB: loop body
LE: loop exit
PB: predicated region body
PF: predicated region fallthrough
CT: control target
= control target key end

     0   :  { %s20241_s0 = inlined_call_operand.hbm [shape: f32[64,128], index: 0, kind: input, shape index: {}]   ;;  %s20242_s1 = inlined_call_operand.hbm [shape: f32[64,128], index: 1, kind: input, shape index: {}]   ;;  %s20243_s2 = inlined_call_operand.vmem [shape: f32[128,1], index: 2, kind: input, shape index: {}]   ;;  %s20244_s3 = inlined_call_operand.vmem [shape: bf16[2,128,128], index: 3, kind: input, shape index: {}]   ;;  %s20245_s4 = inlined_call_operand.hbm [shape: f32[2,1,128], index: 4, kind: input, shape index: {}]   ;;  %s20246_s5 = inlined_call_operand.hbm [shape: bf16[3,128,512], index: 5, kind: input, shape index: {}]   ;;  %s20247_s6 = inlined_call_operand.hbm [shape: f32[3,1,512], index: 6, kind: input, shape index: {}]   ;;  %s20248_s7 = inlined_call_operand.vmem [shape: bf16[16,128], index: 7, kind: input, shape index: {}]   ;;  %s20249_s8 = inlined_call_operand.hbm [shape: f32[8,1,128], index: 8, kind: output, shape index: {}]  }
   0x1   :  { %20258 = sst [smem:[#allocation19_spill]] %s20241_s0 }
   0x2   :  { %20259 = sst [smem:[#allocation20_spill]] %s20245_s4 }
   0x3   :  { %20260 = sst [smem:[#allocation21_spill]] %s20246_s5 }
   0x4   :  { %20261 = sst [smem:[#allocation22_spill]] %s20247_s6 }
   0x5   :  { %13 = vsyncpa [#allocation3], 0 }
   0x6   :  { %15 = vsyncpa [#allocation3 + $0x1], 0 }
   0x7   :  { %16 = vsyncpa [#allocation6], 0 }
   0x8   :  { %18 = vsyncpa [#allocation6 + $0x1], 0 }
   0x9   :  { %19 = vsyncpa [#allocation9], 0 }
   0xa   :  { %20 = vsyncpa [#allocation4], 0 }
   0xb   :  { %22 = vsyncpa [#allocation4 + $0x1], 0  ;;  %s17026_s27 = smov 0   ;;  %s17028_s28 = smov 0  }
   0xc   :  { %s17030_s29 = smov 0   ;;  %s17032_s30 = smov 0  }
   0xd LB: > { %s17047_s9 = sadd.s32 4294967295, %s16955_s30   ;;  %s14677_s10 = sadd.s32 4294967294, %s16955_s30   ;;  %s16955_s30 = sphi %s17032_s30, %s20291_s30   ;;  %s16951_s29 = sphi %s17030_s29, %s20290_s29   ;;  %s16947_s28 = sphi %s17028_s28, %s20289_s28   ;;  %s16943_s27 = sphi %s17026_s27, %s20288_s27  }
   0xe   : > { %p48_p0 = scmp.ne.s32.totalorder %s16947_s28, %s16943_s27  ;;  %p20250_p1 = scmp.eq.s32.totalorder %s17047_s9, 0 }
   0xf   : > { %p235_p3 = scmp.eq.s32.totalorder %s14677_s10, 1  ;;  %p14678_p5 = scmp.ge.s32.totalorder %s16955_s30, 1 }
  0x10   : > { %p17056_p4 = por %p20250_p1, %p48_p0  ;;  %p242_p7 = scmp.lt.s32.totalorder %s16955_s30, 3 }
  0x11   : > { %p17061_p6 = por %p235_p3, %p48_p0  ;;  %s16957_s14 = smov [#allocation7]  }
  0x12   : > { %s20262_s11 = scalar_select %p17056_p4, 1, 0 }
  0x13   : > { %s20263_s12 = scalar_select %p17061_p6, 1, 0 }
  0x14   : > { %p17066_p8 = pnand %p14678_p5, %p242_p7  ;;  %s257_s15 = sshll.u32 %s16957_s14, 4  ;;  %s258_s15 = int_to_ptr.vmem [resolvable:$true] %s257_s15 }
  0x15   : > { %s16958_s17 = smov [#allocation8]   ;;  %s16756_s19 = scalar_lea.vmem %s258_s15, 32 }
  0x16   : > { %p16309_p9 = pneg %p17066_p8  ;;  %s270_s18 = sshll.u32 %s16958_s17, 4  ;;  %s271_s18 = int_to_ptr.vmem [resolvable:$true] %s270_s18 }
  0x17   : > { %p16757_p13 = scmp.ne.s32.totalorder %s258_s15, %s16756_s19  ;;  %p16764_p5 = scmp.lt.s32.totalorder %s258_s15, %s258_s15 }
  0x18   : > { %p17075_p11 = pnand %p16309_p9, %p20250_p1  ;;  %p16765_p7 = scmp.lt.s32.totalorder %s16756_s19, %s16756_s19 }
  0x1a   : > { %p16747_p12 = pneg %p17075_p11  ;;  %p16766_p10 = por %p16765_p7, %p16764_p5 }
  0x1c   : > { %p16759_p0 = pnand %p16757_p13, %p16747_p12 }
  0x1e   : > { %p16760_p3 = pneg %p16759_p0 }
  0x20   : > { %p16767_p9 = pnand %p16766_p10, %p16760_p3 }
  0x22   : > { %16770 = shalt.err (!%p16767_p9)
}
  0x23   : > { %s16959_s20 = smov 16   ;;  %s16960_s21 = smov 1  }
  0x24   : > { %s20266_s4 = sld [smem:[#allocation20_spill]]  ;;  %s16782_s24 = scalar_lea.vmem %s271_s18, 12288 }
  0x25   : > { %p16783_p1 = scmp.ne.s32.totalorder %s271_s18, %s16782_s24  ;;  %p16790_p2 = scmp.lt.s32.totalorder %s271_s18, %s271_s18 }
  0x26   : > { %p16791_p6 = scmp.lt.s32.totalorder %s16782_s24, %s16782_s24 }
  0x27   : > { %p16785_p13 = pnand %p16783_p1, %p16747_p12 }
  0x28   : > { %p16792_p5 = por %p16791_p6, %p16790_p2 }
  0x29   : > { %p16786_p0 = pneg %p16785_p13 }
  0x2a   : > { %16312 = dma.hbm_to_vmem [thread:$0]  (!%p17075_p11), %s20266_s4, 32, %s258_s15, [#allocation6], %s16959_s20, %s16959_s20, %s16960_s21  }
  0x2b   : > { %p16793_p10 = pnand %p16792_p5, %p16786_p0 }
  0x2d   : > { %16796 = shalt.err (!%p16793_p10)
}
  0x2e   : > { %s16961_s25 = smov 256   ;;  %s20267_s5 = sld [smem:[#allocation21_spill]] }
  0x2f   : > { %s16962_s14 = smov [#allocation10]  }
  0x30   : > { %s283_s15 = sshll.u32 %s16962_s14, 4  ;;  %s284_s15 = int_to_ptr.vmem [resolvable:$true] %s283_s15 }
  0x31   : > { %s16808_s17 = scalar_lea.vmem %s284_s15, 192  ;;  %p16816_p2 = scmp.lt.s32.totalorder %s284_s15, %s284_s15 }
  0x32   : > { %p16809_p3 = scmp.ne.s32.totalorder %s284_s15, %s16808_s17  ;;  %p16817_p6 = scmp.lt.s32.totalorder %s16808_s17, %s16808_s17 }
  0x34   : > { %16315 = dma.hbm_to_vmem [thread:$0]  (!%p17075_p11), %s20267_s5, 12288, %s271_s18, [#allocation9], %s16961_s25, %s16961_s25, %s16959_s20  }
  0x35   : > { %p16811_p1 = pnand %p16809_p3, %p16747_p12  ;;  %p16818_p9 = por %p16817_p6, %p16816_p2 }
  0x37   : > { %p16812_p7 = pneg %p16811_p1 }
  0x39   : > { %p16819_p13 = pnand %p16818_p9, %p16812_p7 }
  0x3b   : > { %16822 = shalt.err (!%p16819_p13)
}
  0x3c   : > { %s16963_s19 = smov 64   ;;  %s16964_s18 = smov 4  }
  0x3d   : > { %s20268_s6 = sld [smem:[#allocation22_spill]]  ;;  %s17106_s22 = sadd.s32 1, %s16955_s30  }
  0x3e   : > { %s32_s23 = ssub.s32 %s16955_s30, %s17106_s22  ;;  %s35_s24 = sadd.s32 1, %s16951_s29 }
  0x3f   : > { %p33_p12 = scmp.eq.s32.totalorder %s32_s23, 0  ;;  %p42_p0 = scmp.ne.s32.totalorder %s16951_s29, %s16947_s28 }
  0x40   : > { %p43_p5 = scmp.eq.s32.totalorder %s16955_s30, 0  ;;  %p20270_p3 = scmp.eq.s32.totalorder %s17047_s9, 1 }
  0x41   : > { %s17115_s25 = scalar_select %p33_p12, %s16951_s29, %s35_s24  }
  0x42   : > { %p44_p10 = por %p43_p5, %p42_p0  ;;  %p17119_p1 = por %p20270_p3, %p42_p0 }
  0x43   : > { %16318 = dma.hbm_to_vmem [thread:$0]  (!%p17075_p11), %s20268_s6, 192, %s284_s15, [#allocation9], %s16963_s19, %s16963_s19, %s16964_s18  }
  0x44   : > { %20269 = sst [smem:[#allocation17_spill]] %s17115_s25  ;;  %p16333_p7 = scmp.lt.s32.totalorder %s16955_s30, 2 }
  0x45   : > { %s20271_s26 = scalar_select %p17119_p1, 1, 0 }
  0x46   : > { %s300_s16 = sand.u32 1, %s16951_s29   ;;  %s20251_s14 = sshll.u32 %s16955_s30, 9 }
  0x47   : > { %s17125_s10 = sshll.u32 %s300_s16, 5  ;;  %s20272_s0 = sld [smem:[#allocation19_spill]] }
  0x48   : > { %s304_s18 = scalar_lea.vmem [#allocation2], %s17125_s10  ;;  %p17138_p11 = pnand %p16333_p7, %p44_p10 }
  0x49   : > { %s311_s20 = sshll.u32 %s304_s18, 4  ;;  %s17142_s23 = scalar_lea.sflag [#allocation3], %s300_s16  ;;  %s17136_s20 = int_to_ptr.vmem [resolvable:$true] %s311_s20 }
  0x4a   : > { %p16825_p6 = pneg %p17138_p11 }
  0x4d   : > { %s17133_s19 = scalar_lea.hbm %s20272_s0, %s20251_s14  ;;  %s16828_s18 = scalar_lea.hbm %s20272_s0, 1024 }
  0x4e   : > { %s16823_s24 = scalar_lea.hbm %s17133_s19, 512  ;;  %p16829_p12 = scmp.lt.s32.totalorder %s17133_s19, %s20272_s0 }
  0x4f   : > { %p16824_p2 = scmp.ne.s32.totalorder %s17133_s19, %s16823_s24  ;;  %p16830_p0 = scmp.lt.s32.totalorder %s16828_s18, %s16823_s24 }
  0x51   : > { %p16826_p9 = pnand %p16825_p6, %p16824_p2  ;;  %p16831_p5 = por %p16830_p0, %p16829_p12 }
  0x53   : > { %p16827_p13 = pneg %p16826_p9 }
  0x55   : > { %p16832_p10 = pnand %p16831_p5, %p16827_p13 }
  0x57   : > { %16835 = shalt.err (!%p16832_p10)
}
  0x58   : > { %s16836_s16 = scalar_lea.vmem %s17136_s20, 512  ;;  %s16965_s15 = smov [#allocation2]  }
  0x59   : > { %p16837_p3 = scmp.ne.s32.totalorder %s17136_s20, %s16836_s16  ;;  %s16841_s17 = sshll.u32 %s16965_s15, 4  ;;  %s16842_s17 = int_to_ptr.vmem [resolvable:$false] %s16841_s17 }
  0x5a   : > { %s16843_s5 = scalar_lea.vmem %s16842_s17, 1024  ;;  %p16844_p9 = scmp.lt.s32.totalorder %s17136_s20, %s16842_s17 }
  0x5b   : > { %p16839_p7 = pnand %p16837_p3, %p16825_p6  ;;  %p16845_p1 = scmp.lt.s32.totalorder %s16843_s5, %s16836_s16 }
  0x5d   : > { %p16840_p2 = pneg %p16839_p7  ;;  %p16846_p4 = por %p16845_p1, %p16844_p9 }
  0x5f   : > { %p16847_p12 = pnand %p16846_p4, %p16840_p2 }
  0x61   : > { %16850 = shalt.err (!%p16847_p12)
}
  0x62   : > { %s16966_s4 = smov 128   ;;  %s16967_s14 = smov 8  }
  0x63   : > { %16322 = dma.hbm_to_vmem [thread:$0]  (!%p17138_p11), %s17133_s19, 512, %s17136_s20, %s17142_s23, %s16966_s4, %s16966_s4, %s16967_s14  }
  0x64   : > { %s20274_s24 = sshll.u32 %s16955_s30, 9  ;;  %s325_s15 = scalar_lea.vmem [#allocation5], %s17125_s10 }
  0x65   : > { %s17177_s16 = scalar_lea.hbm %s20242_s1, %s20274_s24  ;;  %s332_s17 = sshll.u32 %s325_s15, 4  ;;  %s17180_s17 = int_to_ptr.vmem [resolvable:$true] %s332_s17 }
  0x66   : > { %s321_s0 = sand.u32 1, %s16955_s30   ;;  %s16851_s25 = scalar_lea.hbm %s17177_s16, 512 }
  0x67   : > { %s322_s6 = scalar_lea.sflag [#allocation6], %s321_s0  ;;  %p16852_p4 = scmp.ne.s32.totalorder %s17177_s16, %s16851_s25 }
  0x68   : > { %s16856_s23 = scalar_lea.hbm %s20242_s1, 1024  ;;  %p16857_p0 = scmp.lt.s32.totalorder %s17177_s16, %s20242_s1 }
  0x69   : > { %p16854_p1 = pnand %p16852_p4, %p16825_p6  ;;  %p16858_p5 = scmp.lt.s32.totalorder %s16856_s23, %s16851_s25 }
  0x6b   : > { %p16855_p13 = pneg %p16854_p1  ;;  %p16859_p10 = por %p16858_p5, %p16857_p0 }
  0x6d   : > { %p16860_p3 = pnand %p16859_p10, %p16855_p13 }
  0x6f   : > { %16863 = shalt.err (!%p16860_p3)
}
  0x70   : > { %s16864_s0 = scalar_lea.vmem %s17180_s17, 512  ;;  %s16968_s10 = smov [#allocation5]  }
  0x71   : > { %p16865_p7 = scmp.ne.s32.totalorder %s17180_s17, %s16864_s0  ;;  %s16869_s18 = sshll.u32 %s16968_s10, 4  ;;  %s16870_s18 = int_to_ptr.vmem [resolvable:$false] %s16869_s18 }
  0x72   : > { %s16871_s15 = scalar_lea.vmem %s16870_s18, 1024  ;;  %p16872_p12 = scmp.lt.s32.totalorder %s17180_s17, %s16870_s18 }
  0x73   : > { %p16867_p2 = pnand %p16865_p7, %p16825_p6  ;;  %p16873_p4 = scmp.lt.s32.totalorder %s16871_s15, %s16864_s0 }
  0x75   : > { %p16868_p9 = pneg %p16867_p2  ;;  %p16874_p1 = por %p16873_p4, %p16872_p12 }
  0x77   : > { %p16875_p0 = pnand %p16874_p1, %p16868_p9 }
  0x79   : > { %16878 = shalt.err (!%p16875_p0)
}
  0x7a   : > { %16325 = dma.hbm_to_vmem [thread:$0]  (!%p17138_p11), %s17177_s16, 512, %s17180_s17, %s322_s6, %s16966_s4, %s16966_s4, %s16967_s14  }
  0x7b   : > { %353 = sbr.rel (%p17066_p8) target bundleno = 6414 (0x190e), region = 52 }
  0x80   : > { %s17211_s25 = sand.u32 1, %s16947_s28   ;;  %p20275_p6 = scmp.ne.s32.totalorder %s20262_s11, 0 }
  0x81   : > { %s14690_s19 = sshll.u32 %s17211_s25, 5  ;;  %s356_s20 = scalar_lea.sflag [#allocation3], %s17211_s25 }
  0x82   : > { %s17215_s23 = scalar_lea.vmem [#allocation2], %s14690_s19 }
  0x83   : > { %16922 = dma.done.wait (%p20275_p6), %s356_s20, 512  }
  0x84   : > { %16924 = vsyncadd (%p20275_p6), %s356_s20, 4294966784  ;;  %s364_s6 = sand.u32 1, %s17047_s9   ;;  %s17222_s21 = scalar_lea.vmem [#allocation5], %s14690_s19 }
  0x85   : > { %s365_s13 = scalar_lea.sflag [#allocation6], %s364_s6 }
  0x86   : > { %16926 = dma.done.wait (%p20275_p6), %s365_s13, 512  }
  0x87   : > { %16928 = vsyncadd (%p20275_p6), %s365_s13, 4294966784  ;;  %p20276_p8 = scmp.eq.s32.totalorder %s17047_s9, 0 }
  0x89   : > { %16930 = dma.done.wait (%p20276_p8), [#allocation6], 32   ;;  %p20277_p11 = pmov %p20276_p8 }
  0x8a   : > { %p20278_p13 = pmov %p20276_p8 }
  0x8b   : > { %16932 = vsyncadd (%p20277_p11), [#allocation6], 4294967264 }
  0x8c   : > { %16934 = dma.done.wait (%p20278_p13), [#allocation9], 12480   ;;  %p20279_p5 = pmov %p20276_p8 }
  0x8d   : > { %v20256_v0 = vmov 0.0   ;;  %vm16970_vm0 = vmmov 0   ;;  %v16393_v1 = vld [vmem:[#allocation8 + $0xe0] ss:$16 sps:$4 sm:$0xff]   ;;  %v16409_v17 = vld [vmem:[%s20244_s3 + $0x38] sm:$0xff]   ;;  %v858_v24 = vld [vmem:[%s17215_s23 + $0x8] sm:$0xff] }
  0x8e   : > { %16936 = vsyncadd (%p20279_p5), [#allocation9], 4294954816  ;;  %15375 = vmatprep.subr.bf16.mxu0 %v20256_v0  ;;  %15395 = vmatprep.subr.bf16.mxu1 %v20256_v0  ;;  %v16394_v2 = vld [vmem:[#allocation8 + $0x2e0] ss:$16 sps:$4 sm:$0xff]   ;;  %v16410_v18 = vld [vmem:[%s20244_s3 + $0x78] sm:$0xff]   ;;  %v20254_v63 = vmov 0  }
  0x8f   : > { %15391 = vmatprep.mubr.msk.bf16.mxu0 %vm16970_vm0, %v20256_v0  ;;  %15411 = vmatprep.mubr.msk.bf16.mxu1 %vm16970_vm0, %v20256_v0  ;;  %v16395_v3 = vld [vmem:[#allocation8 + $0xc0] ss:$16 sps:$4 sm:$0xff]   ;;  %v984_v26 = vld [vmem:[%s17222_s21 + $0x8] sm:$0xff]  ;;  %v16417_v33 = vld [vmem:[%s20244_s3 + $0x18] sm:$0xff]   ;;  %s16972_s18 = smov 64   ;;  %s16973_s15 = smov 96  }
  0x90   : > { %15376 = vmatpush3.bf16.msra.mxu0 %v16393_v1  ;;  %15396 = vmatpush3.bf16.msra.mxu1 %v16394_v2  ;;  %v16396_v4 = vld [vmem:[#allocation8 + $0x2c0] ss:$16 sps:$4 sm:$0xff]   ;;  %v16413_v29 = vld [vmem:[%s20244_s3 + $0x28] sm:$0xff]   ;;  %v16418_v34 = vld [vmem:[%s20244_s3 + $0x58] sm:$0xff]   ;;  %s16974_s19 = smov 32   ;;  %vm1973_vm1 = vcmask 261120  }
  0x91   : > { %15377 = vmatprep.subr.bf16.mxu0 %v20256_v0  ;;  %15397 = vmatprep.subr.bf16.mxu1 %v20256_v0  ;;  %v16397_v5 = vld [vmem:[#allocation8 + $0xa0] ss:$16 sps:$4 sm:$0xff]   ;;  %v16414_v30 = vld [vmem:[%s20244_s3 + $0x68] sm:$0xff]   ;;  %v860_v42 = vld [vmem:[%s17215_s23 + $0x18] sm:$0xff]  ;;  %vm2162_vm2 = vcmask 130048   ;;  %vm2564_vm3 = vcmask 523264  }
  0x92   : > { %v16398_v6 = vld [vmem:[#allocation8 + $0x2a0] ss:$16 sps:$4 sm:$0xff]   ;;  %v16421_v37 = vld [vmem:[%s20244_s3 + $0x8] sm:$0xff]   ;;  %v986_v44 = vld [vmem:[%s17222_s21 + $0x18] sm:$0xff]  ;;  %16391 = vset.pattern.permute.xlu0 %v20254_v63  ;;  %16392 = vset.pattern.permute.xlu1 %v20254_v63  ;;  %vm2566_vm4 = vcmask 785408   ;;  %vm7249_vm5 = vcmask 64512  }
  0x93   : > { %v16399_v7 = vld [vmem:[#allocation8 + $0x80] ss:$16 sps:$4 sm:$0xff]   ;;  %v16422_v38 = vld [vmem:[%s20244_s3 + $0x48] sm:$0xff]   ;;  %vm7333_vm6 = vcmask 1043456   ;;  %vm14488_vm7 = vcmask 1040384   ;;  %vm14490_vm8 = vcmask 1041408  }
  0x94   : > { %15378 = vmatpush3.bf16.msra.mxu0 %v16395_v3  ;;  %15398 = vmatpush3.bf16.msra.mxu1 %v16396_v4  ;;  %v16400_v8 = vld [vmem:[#allocation8 + $0x280] ss:$16 sps:$4 sm:$0xff]   ;;  %v16427_v47 = vld [vmem:[#allocation8 + $0xe8] ss:$16 sps:$4 sm:$0xff]   ;;  %v16425_v48 = vld [vmem:[#allocation8 + $0xe4] ss:$16 sps:$4 sm:$0xff]  }
  0x95   : > { %15379 = vmatprep.subr.bf16.mxu0 %v20256_v0  ;;  %15399 = vmatprep.subr.bf16.mxu1 %v20256_v0  ;;  %v16401_v9 = vld [vmem:[#allocation8 + $0x60] ss:$16 sps:$4 sm:$0xff]   ;;  %v16430_v49 = vld [vmem:[#allocation8 + $0xc8] ss:$16 sps:$4 sm:$0xff]   ;;  %v16428_v50 = vld [vmem:[#allocation8 + $0xc4] ss:$16 sps:$4 sm:$0xff]  }
  0x96   : > { %v16402_v10 = vld [vmem:[#allocation8 + $0x260] ss:$16 sps:$4 sm:$0xff]   ;;  %v16433_v51 = vld [vmem:[#allocation8 + $0xa8] ss:$16 sps:$4 sm:$0xff]   ;;  %v16431_v52 = vld [vmem:[#allocation8 + $0xa4] ss:$16 sps:$4 sm:$0xff]  }
  0x97   : > { %v16403_v11 = vld [vmem:[#allocation8 + $0x40] ss:$16 sps:$4 sm:$0xff]   ;;  %v16436_v53 = vld [vmem:[#allocation8 + $0x88] ss:$16 sps:$4 sm:$0xff]   ;;  %v16434_v54 = vld [vmem:[#allocation8 + $0x84] ss:$16 sps:$4 sm:$0xff]  }
  0x98   : > { %15380 = vmatpush3.bf16.msra.mxu0 %v16397_v5  ;;  %15400 = vmatpush3.bf16.msra.mxu1 %v16398_v6  ;;  %v16404_v12 = vld [vmem:[#allocation8 + $0x240] ss:$16 sps:$4 sm:$0xff]   ;;  %v16439_v55 = vld [vmem:[#allocation8 + $0x68] ss:$16 sps:$4 sm:$0xff]   ;;  %v16437_v56 = vld [vmem:[#allocation8 + $0x64] ss:$16 sps:$4 sm:$0xff]  }
  0x99   : > { %15381 = vmatprep.subr.bf16.mxu0 %v20256_v0  ;;  %15401 = vmatprep.subr.bf16.mxu1 %v20256_v0  ;;  %v16405_v13 = vld [vmem:[#allocation8 + $0x20] ss:$16 sps:$4 sm:$0xff]   ;;  %v16442_v57 = vld [vmem:[#allocation8 + $0x48] ss:$16 sps:$4 sm:$0xff]   ;;  %v16440_v58 = vld [vmem:[#allocation8 + $0x44] ss:$16 sps:$4 sm:$0xff]  }
  0x9a   : > { %v16406_v14 = vld [vmem:[#allocation8 + $0x220] ss:$16 sps:$4 sm:$0xff]   ;;  %v16445_v59 = vld [vmem:[#allocation8 + $0x28] ss:$16 sps:$4 sm:$0xff]   ;;  %v16443_v60 = vld [vmem:[#allocation8 + $0x24] ss:$16 sps:$4 sm:$0xff]  }
  0x9b   : > { %v16407_v15 = vld [vmem:[#allocation8] ss:$16 sps:$4 sm:$0xff]   ;;  %v16448_v61 = vld [vmem:[#allocation8 + $0x8] ss:$16 sps:$4 sm:$0xff]   ;;  %v16446_v62 = vld [vmem:[#allocation8 + $0x4] ss:$16 sps:$4 sm:$0xff]  }
  0x9c   : > { %15382 = vmatpush3.bf16.msra.mxu0 %v16399_v7  ;;  %15402 = vmatpush3.bf16.msra.mxu1 %v16400_v8  ;;  %v16408_v16 = vld [vmem:[#allocation8 + $0x200] ss:$16 sps:$4 sm:$0xff]   ;;  %s14695_s20 = sshll.u32 %s17211_s25, 2  ;;  %vm14492_vm9 = vcmask 1042432   ;;  %s15026_s13 = sshll.u32 %s17047_s9, 6 }
  0x9d   : > { %15383 = vmatprep.subr.bf16.mxu0 %v20256_v0  ;;  %15403 = vmatprep.subr.bf16.mxu1 %v20256_v0  ;;  %v433_v19 = vld [vmem:[%s20248_s7] sm:$0xf]  ;;  %v545_v20 = vld [vmem:[%s20248_s7 + $0x4] sm:$0x1]  ;;  %v16411_v21 = vld [vmem:[%s20244_s3 + $0x30] sm:$0xff]   ;;  %s422_s6 = scalar_lea.vmem [#allocation11], %s14695_s20  ;;  %s20196_s16 = scalar_lea.hbm %s20249_s8, %s15026_s13 }
  0x9e   : > { %v16412_v22 = vld [vmem:[%s20244_s3 + $0x70] sm:$0xff]   ;;  %v857_v23 = vld [vmem:[%s17215_s23] sm:$0xff]  ;;  %s14541_s11 = sshll.u32 %s422_s6, 4  ;;  %s14528_s17 = scalar_lea.sflag [#allocation4], %s17211_s25  ;;  %s20198_s11 = int_to_ptr.vmem [resolvable:$true] %s14541_s11 }
  0x9f   : > { %v983_v25 = vld [vmem:[%s17222_s21] sm:$0xff]  ;;  %v877_v27 = vpack.c.bf16 %v858_v24, %v857_v23  ;;  %v16419_v35 = vld [vmem:[%s20244_s3 + $0x10] sm:$0xff]   ;;  %s16879_s24 = scalar_lea.vmem %s20198_s11, 64  ;;  %p20284_p7 = scmp.ne.s32.totalorder %s20271_s26, 0 }
  0xa0   : > { %15384 = vmatpush3.bf16.msra.mxu0 %v16401_v9  ;;  %15404 = vmatpush3.bf16.msra.mxu1 %v16402_v10  ;;  %v1004_v28 = vpack.c.bf16 %v984_v26, %v983_v25  ;;  %v16415_v31 = vld [vmem:[%s20244_s3 + $0x20] sm:$0xff]   ;;  %v16420_v36 = vld [vmem:[%s20244_s3 + $0x50] sm:$0xff]   ;;  %p16880_p3 = scmp.ne.s32.totalorder %s20198_s11, %s16879_s24 }
  0xa1   : > { %15385 = vmatprep.subr.bf16.mxu0 %v20256_v0  ;;  %15405 = vmatprep.subr.bf16.mxu1 %v20256_v0  ;;  %v16416_v32 = vld [vmem:[%s20244_s3 + $0x60] sm:$0xff]   ;;  %v859_v41 = vld [vmem:[%s17215_s23 + $0x10] sm:$0xff]  ;;  %s14696_s23 = sshll.u32 %s17047_s9, 3  ;;  %s16978_s9 = smov [#allocation11]  }
  0xa2   : > { %v16423_v39 = vld [vmem:[%s20244_s3] sm:$0xff]   ;;  %v985_v43 = vld [vmem:[%s17222_s21 + $0x10] sm:$0xff]  ;;  %v878_v45 = vpack.c.bf16 %v860_v42, %v859_v41  ;;  %p426_p10 = scmp.lt.s32.totalorder %s14696_s23, 15  ;;  %p16881_p2 = pnand %p16880_p3, %p20284_p7 }
  0xa3   : > { %v16424_v40 = vld [vmem:[%s20244_s3 + $0x40] sm:$0xff]   ;;  %v1005_v46 = vpack.c.bf16 %v986_v44, %v985_v43 }
  0xa4   : > { %15386 = vmatpush3.bf16.msra.mxu0 %v16403_v11  ;;  %15406 = vmatpush3.bf16.msra.mxu1 %v16404_v12  ;;  %s20293_s23 = smov (!%p426_p10, %s14696_s23), 15  ;;  %p16882_p9 = pneg %p16881_p2 }
  0xa5   : > { %15387 = vmatprep.subr.bf16.mxu0 %v20256_v0  ;;  %15407 = vmatprep.subr.bf16.mxu1 %v20256_v0  ;;  %s14697_s21 = sshll.u32 %s20293_s23, 3  ;;  %s16883_s23 = sshll.u32 %s16978_s9, 4  ;;  %s16884_s23 = int_to_ptr.vmem [resolvable:$false] %s16883_s23 }
  0xa6   : > { %s17329_s10 = scalar_lea.vmem %s20243_s2, %s14697_s21  ;;  %s16885_s21 = scalar_lea.vmem %s16884_s23, 128 }
  0xa7   : > { %v1296_v1 = vld [vmem:[%s17329_s10] sm:$0xff]  ;;  %v1297_v2 = vld [vmem:[%s17329_s10 + $0x8] sm:$0xff]  ;;  %p16886_p12 = scmp.lt.s32.totalorder %s20198_s11, %s16884_s23  ;;  %p16887_p4 = scmp.lt.s32.totalorder %s16885_s21, %s16879_s24 }
  0xa8   : > { %15388 = vmatpush3.bf16.msra.mxu0 %v16405_v13  ;;  %15408 = vmatpush3.bf16.msra.mxu1 %v16406_v14  ;;  %v14717_v13 = vld [vmem:[#allocation7] ss:$0 sm:$0xff] }
  0xa9   : > { %15389 = vmatprep.subr.bf16.mxu0 %v20256_v0  ;;  %15409 = vmatprep.subr.bf16.mxu1 %v20256_v0  ;;  %p16888_p1 = por %p16887_p4, %p16886_p12 }
  0xaa   : > { %1306 = vperm.xlu0 %16391, %v1296_v1   ;;  %v1298_v1 = vld [vmem:[%s17329_s10 + $0x10] sm:$0xff] }
  0xab   : > { %p16889_p0 = pnand %p16888_p1, %p16882_p9 }
  0xac   : > { %15390 = vmatpush3.bf16.msra.mxu0 %v16407_v15  ;;  %15410 = vmatpush3.bf16.msra.mxu1 %v16408_v16  ;;  %v14742_v15 = vld [vmem:[#allocation7 + $0x1] ss:$0 sm:$0xff] }
  0xad   : > { %15415 = vmatprep.subr.bf16.mxu0 %v16409_v17  ;;  %15435 = vmatprep.subr.bf16.mxu1 %v16410_v18 }
  0xae   : > { %1311 = vperm.xlu0 %16391, %v1297_v2  }
  0xaf   : > { %15392 = vmatmul.mubr.bf16.vlgmr.msra.gmra.mxu0 %v433_v19  ;;  %15412 = vmatmul.mubr.bf16.vlgmr.msra.gmra.mxu1 %v545_v20 }
  0xb0   : > { %15416 = vmatpush3.bf16.msra.mxu0 %v16409_v17  ;;  %15436 = vmatpush3.bf16.msra.mxu1 %v16410_v18 }
  0xb1   : > { %15417 = vmatprep.subr.bf16.mxu0 %v16411_v21  ;;  %15437 = vmatprep.subr.bf16.mxu1 %v16412_v22 }
  0xb2   : > { %15431 = vmatprep.mubr.bf16.mxu0 %v877_v27  ;;  %15451 = vmatprep.mubr.bf16.mxu1 %v1004_v28 }
  0xb4   : > { %15418 = vmatpush3.bf16.msra.mxu0 %v16411_v21  ;;  %15438 = vmatpush3.bf16.msra.mxu1 %v16412_v22 }
  0xb5   : > { %15419 = vmatprep.subr.bf16.mxu0 %v16413_v29  ;;  %15439 = vmatprep.subr.bf16.mxu1 %v16414_v30 }
  0xb8   : > { %15420 = vmatpush3.bf16.msra.mxu0 %v16413_v29  ;;  %15440 = vmatpush3.bf16.msra.mxu1 %v16414_v30 }
  0xb9   : > { %15421 = vmatprep.subr.bf16.mxu0 %v16415_v31  ;;  %15441 = vmatprep.subr.bf16.mxu1 %v16416_v32 }
  0xbc   : > { %15422 = vmatpush3.bf16.msra.mxu0 %v16415_v31  ;;  %15442 = vmatpush3.bf16.msra.mxu1 %v16416_v32 }
  0xbd   : > { %15423 = vmatprep.subr.bf16.mxu0 %v16417_v33  ;;  %15443 = vmatprep.subr.bf16.mxu1 %v16418_v34 }
  0xc0   : > { %15424 = vmatpush3.bf16.msra.mxu0 %v16417_v33  ;;  %15444 = vmatpush3.bf16.msra.mxu1 %v16418_v34  ;;  %v668_v33 = vlaneseq }
  0xc1   : > { %15425 = vmatprep.subr.bf16.mxu0 %v16419_v35  ;;  %15445 = vmatprep.subr.bf16.mxu1 %v16420_v36 }
  0xc2   : > { %v17342_v34 = vshrl.u32 %v668_v33, 7 }
  0xc4   : > { %15426 = vmatpush3.bf16.msra.mxu0 %v16419_v35  ;;  %15446 = vmatpush3.bf16.msra.mxu1 %v16420_v36  ;;  %v17345_v35 = vsub.s32 0, %v17342_v34  ;;  %v1131_v36 = vld [vmem:[#allocation10 + $0x1] sm:$0x3] }
  0xc5   : > { %15427 = vmatprep.subr.bf16.mxu0 %v16421_v37  ;;  %15447 = vmatprep.subr.bf16.mxu1 %v16422_v38 }
  0xc8   : > { %15428 = vmatpush3.bf16.msra.mxu0 %v16421_v37  ;;  %15448 = vmatpush3.bf16.msra.mxu1 %v16422_v38  ;;  %v17348_v37 = vrot.slane %v1131_v36, %v17345_v35 }
  0xc9   : > { %15429 = vmatprep.subr.bf16.mxu0 %v16423_v39  ;;  %15449 = vmatprep.subr.bf16.mxu1 %v16424_v40 }
  0xcc   : > { %15430 = vmatpush3.bf16.msra.mxu0 %v16423_v39  ;;  %15450 = vmatpush3.bf16.msra.mxu1 %v16424_v40 }
  0xcd   : > { %15461 = vmatprep.subr.bf16.mxu1 %v20256_v0  ;;  %1223 = vmatprep.subr.bf16.mxu0 %v16427_v47 }
  0xcf   : > { %15432 = vmatmul.mubr.bf16.vlgmr.msra.gmra.mxu0 %v878_v45  ;;  %15452 = vmatmul.mubr.bf16.vlgmr.msra.gmra.mxu1 %v1005_v46 }
  0xd0   : > { %15463 = vmatprep.mubr.msk.bf16.mxu1 %vm16970_vm0, %v20256_v0  ;;  %1224 = vmatpush1.bf16.msra.mxu0 %v16425_v48  ;;  %v14698_v48 = vld [vmem:[#allocation10] ss:$0 sm:$0xff] }
  0xd1   : > { %1225 = vmatprep.subr.bf16.mxu0 %v16430_v49  ;;  %1255 = vmatprep.mubr.bf16.mxu0 %v20254_v63 }
  0xd4   : > { %1226 = vmatpush1.bf16.msra.mxu0 %v16428_v50 }
  0xd5   : > { %1227 = vmatprep.subr.bf16.mxu0 %v16433_v51 }
  0xd8   : > { %1228 = vmatpush1.bf16.msra.mxu0 %v16431_v52 }
  0xd9   : > { %1229 = vmatprep.subr.bf16.mxu0 %v16436_v53  ;;  %v17374_v53 = vsub.s32 1, %v17342_v34 }
  0xdc   : > { %1230 = vmatpush1.bf16.msra.mxu0 %v16434_v54 }
  0xdd   : > { %1231 = vmatprep.subr.bf16.mxu0 %v16439_v55 }
  0xe0   : > { %1232 = vmatpush1.bf16.msra.mxu0 %v16437_v56  ;;  %v17385_v56 = vrot.slane %v1131_v36, %v17374_v53 }
  0xe1   : > { %1233 = vmatprep.subr.bf16.mxu0 %v16442_v57 }
  0xe4   : > { %1234 = vmatpush1.bf16.msra.mxu0 %v16440_v58  ;;  %v1299_v58 = vld [vmem:[%s17329_s10 + $0x18] sm:$0xff] }
  0xe5   : > { %1235 = vmatprep.subr.bf16.mxu0 %v16445_v59 }
  0xe8   : > { %1236 = vmatpush1.bf16.msra.mxu0 %v16443_v60 }
  0xe9   : > { %1237 = vmatprep.subr.bf16.mxu0 %v16448_v61 }
  0xec   : > { %1238 = vmatpush1.bf16.msra.mxu0 %v16446_v62 }
  0xed   : > { %15455 = vmatprep.subr.bf16.mxu0 %v20256_v0 }
 0x125   : > { %v1307_v38 = vpop.permute.xlu0 %1306 }
 0x129   : > { %v1312_v45 = vpop.permute.xlu0 %1311 }
 0x16f   : > { %v17333_v3 = vpop.f32.mrf.mxu0  ;;  %v17335_v4 = vpop.f32.mrf.mxu1 }
 0x170   : > { %20280 = vst [vmem:[#allocation18_spill] sm:$0xff] %v17335_v4  ;;  %v17369_v51 = vadd.f32 %v14698_v48, %v17333_v3 }
 0x171   : > { %v15393_v5 = vpop.f32.mrf.mxu0  ;;  %v15413_v6 = vpop.f32.mrf.mxu1 }
 0x173   : > { %v542_v7 = vpop.f32.mrf.mxu0  ;;  %v650_v8 = vpop.f32.mrf.mxu1 }
 0x175   : > { %v15394_v9 = vpop.f32.mrf.mxu0  ;;  %v15414_v10 = vpop.f32.mrf.mxu1 }
 0x18f   : > { %v15433_v11 = vpop.f32.mrf.mxu0  ;;  %v15453_v12 = vpop.f32.mrf.mxu1 }
 0x190   : > { %v977_v27 = vadd.f32 %v15433_v11, %v14717_v13  ;;  %v1105_v28 = vadd.f32 %v15453_v12, %v14742_v15  ;;  %v16975_v12 = vmov 1983009808  }
 0x191   : > { %v968_v14 = vpop.f32.mrf.mxu0  ;;  %v1096_v17 = vpop.f32.mrf.mxu1 }
 0x192   : > { %v969_v16 = vadd.f32 %v14717_v13, %v968_v14  ;;  %v1097_v18 = vadd.f32 %v14742_v15, %v1096_v17  ;;  %v1129_v29 = vpack.c.bf16 %v1105_v28, %v977_v27  ;;  %v16976_v14 = vmov 1934713408  }
 0x193   : > { %v15434_v19 = vpop.f32.mrf.mxu0  ;;  %v15454_v20 = vpop.f32.mrf.mxu1 }
 0x194   : > { %v1127_v21 = vpack.c.bf16 %v1097_v18, %v969_v16  ;;  %v980_v30 = vadd.f32 %v15434_v19, %v14717_v13  ;;  %v1108_v31 = vadd.f32 %v15454_v20, %v14742_v15 }
 0x195   : > { %v971_v22 = vpop.f32.mrf.mxu0  ;;  %v1099_v23 = vpop.f32.mrf.mxu1 }
 0x196   : > { %1256 = vmatmul.mubr.bf16.vlgmr.msra.gmra.mxu0 %v1127_v21  ;;  %v972_v24 = vadd.f32 %v14717_v13, %v971_v22  ;;  %v1100_v25 = vadd.f32 %v14742_v15, %v1099_v23  ;;  %v1130_v32 = vpack.c.bf16 %v1108_v31, %v980_v30  ;;  %v666_v13 = vunpack.c.l.s4 %v16975_v12 }
 0x197   : > { %1265 = vmatprep.mubr.bf16.mxu0 %v20254_v63  ;;  %v698_v15 = vunpack.c.l.s4 %v16976_v14 }
 0x198   : > { %v1128_v26 = vpack.c.bf16 %v1100_v25, %v972_v24  ;;  %v667_v16 = vunpack.c.0.s8 %v666_v13 }
 0x199   : > { %v699_v19 = vunpack.c.0.s8 %v698_v15 }
 0x19a   : > { %v17430_v20 = vsub.s32 %v667_v16, %v17342_v34 }
 0x19b   : > { %v17435_v27 = vsub.s32 %v699_v19, %v17342_v34 }
 0x19e   : > { %1266 = vmatmul.mubr.bf16.gmra.mxu0 %v1128_v26 }
 0x19f   : > { %1275 = vmatprep.mubr.bf16.mxu0 %v20254_v63 }
 0x1a6   : > { %1276 = vmatmul.mubr.bf16.gmra.mxu0 %v1129_v29 }
 0x1a7   : > { %1285 = vmatprep.mubr.bf16.mxu0 %v20254_v63 }
 0x1ae   : > { %1286 = vmatmul.mubr.bf16.gmra.mxu0 %v1130_v32 }
 0x1af   : > { %15457 = vmatprep.mubr.msk.bf16.mxu0 %vm16970_vm0, %v20256_v0 }
 0x256   : > { %v1257_v39 = vpop.f32.mrf.mxu0 }
 0x257   : > { %v1258_v40 = vadd.f32 %v1257_v39, %v17348_v37 }
 0x258   : > { %v1259_v41 = vpop.f32.mrf.mxu0 }
 0x259   : > { %v17351_v42 = vmul.f32 %v1307_v38, %v1258_v40  ;;  %v1260_v2 = vadd.f32 %v1259_v41, %v17385_v56 }
 0x25a   : > { %v1261_v43 = vpop.f32.mrf.mxu0 }
 0x25b   : > { %v1262_v44 = vadd.f32 %v1261_v43, %v17348_v37  ;;  %1385 = vrot.lane.b32.xlu0 %v17351_v42, %s16972_s18  ;;  %1379 = vrot.lane.b32.xlu1 %v17351_v42, %s16973_s15  ;;  %v17411_v8 = vmul.f32 %v1307_v38, %v1260_v2 }
 0x25c   : > { %v1263_v46 = vpop.f32.mrf.mxu0 }
 0x25d   : > { %v17358_v47 = vmul.f32 %v1312_v45, %v1262_v44  ;;  %v1264_v59 = vadd.f32 %v1263_v46, %v17385_v56 }
 0x25e   : > { %v17360_v49 = vpop.f32.mrf.mxu0 }
 0x25f   : > { %1391 = vrot.lane.b32.xlu0 %v17351_v42, %s16974_s19  ;;  %1381 = vrot.lane.b32.xlu1 %v17358_v47, %s16973_s15  ;;  %v17404_v3 = vmul.f32 %v1312_v45, %v1264_v59 }
 0x260   : > { %v17366_v50 = vpop.f32.mrf.mxu0 }
 0x262   : > { %v17371_v52 = vpop.f32.mrf.mxu0 }
 0x263   : > { %654 = vrot.lane.b32.xlu0 %v17369_v51, %s16973_s15  ;;  %1387 = vrot.lane.b32.xlu1 %v17358_v47, %s16972_s18  ;;  %v1272_v46 = vadd.f32 %v17371_v52, %v17348_v37 }
 0x264   : > { %v17380_v54 = vpop.f32.mrf.mxu0 }
 0x266   : > { %v17382_v55 = vpop.f32.mrf.mxu0 }
 0x267   : > { %660 = vrot.lane.b32.xlu0 %v17369_v51, %s16974_s19  ;;  %1393 = vrot.lane.b32.xlu1 %v17358_v47, %s16974_s19 }
 0x268   : > { %v1279_v57 = vpop.f32.mrf.mxu0 }
 0x269   : > { %v17394_v60 = vadd.f32 %v1279_v57, %v17385_v56 }
 0x26a   : > { %v17396_v61 = vpop.f32.mrf.mxu0 }
 0x26b   : > { %1321 = vperm.xlu0 %16391, %v1299_v58   ;;  %657 = vrot.lane.b32.xlu1 %v17369_v51, %s16972_s18 }
 0x26c   : > { %v17400_v62 = vpop.f32.mrf.mxu0 }
 0x26e   : > { %v1287_v5 = vpop.f32.mrf.mxu0 }
 0x26f   : > { %v17407_v6 = vadd.f32 %v1287_v5, %v17348_v37  ;;  %1677 = vrot.lane.b32.xlu0 %v17404_v3, %s16973_s15  ;;  %1316 = vperm.xlu1 %16392, %v1298_v1  }
 0x270   : > { %v1289_v7 = vpop.f32.mrf.mxu0 }
 0x271   : > { %v17414_v9 = vadd.f32 %v1289_v7, %v17385_v56 }
 0x272   : > { %v1291_v10 = vpop.f32.mrf.mxu0 }
 0x273   : > { %v17417_v11 = vadd.f32 %v1291_v10, %v17348_v37  ;;  %1683 = vrot.lane.b32.xlu0 %v17404_v3, %s16972_s18  ;;  %1675 = vrot.lane.b32.xlu1 %v17411_v8, %s16973_s15 }
 0x277   : > { %1689 = vrot.lane.b32.xlu0 %v17404_v3, %s16974_s19  ;;  %1681 = vrot.lane.b32.xlu1 %v17411_v8, %s16972_s18 }
 0x27b   : > { %1687 = vrot.lane.b32.xlu1 %v17411_v8, %s16974_s19 }
 0x2cd   : > { %v1386_v17 = vpop.permute.xlu0 %1385  ;;  %v1380_v18 = vpop.permute.xlu1 %1379 }
 0x2ce   : > { %v1397_v21 = vcombine.low %v17351_v42, %v1386_v17  ;;  %v1398_v22 = vcombine.high %v17351_v42, %v1386_v17 }
 0x2d0   : > { %v1405_v28 = vrot.slane %v1397_v21, %v17430_v20  ;;  %v1412_v29 = vrot.slane %v1398_v22, %v17430_v20 }
 0x2d1   : > { %v1392_v23 = vpop.permute.xlu0 %1391  ;;  %v1382_v24 = vpop.permute.xlu1 %1381 }
 0x2d2   : > { %v1413_v25 = vcombine.low %v1380_v18, %v1392_v23  ;;  %v1414_v26 = vcombine.high %v1380_v18, %v1392_v23 }
 0x2d4   : > { %v1421_v30 = vrot.slane %v1413_v25, %v17430_v20  ;;  %v1428_v31 = vrot.slane %v1414_v26, %v17430_v20 }
 0x2d5   : > { %v655_v32 = vpop.permute.xlu0 %654  ;;  %v1388_v33 = vpop.permute.xlu1 %1387 }
 0x2d6   : > { %v1429_v36 = vcombine.low %v1405_v28, %v1421_v30  ;;  %v1430_v38 = vcombine.high %v1405_v28, %v1421_v30  ;;  %v1445_v39 = vcombine.low %v1412_v29, %v1428_v31  ;;  %v1446_v40 = vcombine.high %v1412_v29, %v1428_v31 }
 0x2d7   : > { %v1465_v41 = vcombine.low %v17358_v47, %v1388_v33  ;;  %v1466_v48 = vcombine.high %v17358_v47, %v1388_v33 }
 0x2d8   : > { %v1437_v42 = vrot.slane %v1429_v36, %v17435_v27  ;;  %v1444_v43 = vrot.slane %v1430_v38, %v17435_v27  ;;  %v1453_v44 = vrot.slane %v1445_v39, %v17435_v27  ;;  %v1460_v45 = vrot.slane %v1446_v40, %v17435_v27 }
 0x2d9   : > { %v1473_v57 = vrot.slane %v1465_v41, %v17430_v20  ;;  %v661_v58 = vpop.permute.xlu0 %660  ;;  %v1394_v59 = vpop.permute.xlu1 %1393  ;;  %v1480_v17 = vrot.slane %v1466_v48, %v17430_v20 }
 0x2da   : > { %v1533_v1 = vcombine.low %v1437_v42, %v1444_v43  ;;  %v14767_v2 = vcombine.high %v1437_v42, %v1444_v43  ;;  %v1549_v5 = vcombine.low %v1453_v44, %v1460_v45  ;;  %v14768_v7 = vcombine.high %v1453_v44, %v1460_v45 }
 0x2db   : > { %v679_v10 = vcombine.low %v655_v32, %v661_v58  ;;  %v680_v12 = vcombine.high %v655_v32, %v661_v58  ;;  %v1481_v13 = vcombine.low %v1382_v24, %v1394_v59  ;;  %v1482_v14 = vcombine.high %v1382_v24, %v1394_v59 }
 0x2dc   : > { %v17451_v15 = vrot.slane %v1533_v1, %v17430_v20  ;;  %v17454_v16 = vrot.slane %v14767_v2, %v17430_v20  ;;  %v17457_v47 = vrot.slane %v1549_v5, %v17430_v20  ;;  %v17460_v52 = vrot.slane %v14768_v7, %v17430_v20 }
 0x2dd   : > { %v687_v18 = vrot.slane %v679_v10, %v17430_v20  ;;  %v1489_v19 = vrot.slane %v1481_v13, %v17430_v20  ;;  %v1496_v21 = vrot.slane %v1482_v14, %v17430_v20  ;;  %v658_v22 = vpop.permute.xlu1 %657  ;;  %v694_v23 = vrot.slane %v680_v12, %v17430_v20 }
 0x2de   : > { %v663_v24 = vcombine.low %v17369_v51, %v658_v22  ;;  %v664_v25 = vcombine.high %v17369_v51, %v658_v22  ;;  %v1565_v26 = vcombine.low %v17451_v15, %v17454_v16  ;;  %v1581_v38 = vcombine.low %v17457_v47, %v17460_v52 }
 0x2df   : > { %v1497_v28 = vcombine.low %v1473_v57, %v1489_v19  ;;  %v1498_v29 = vcombine.high %v1473_v57, %v1489_v19  ;;  %v1513_v30 = vcombine.low %v1480_v17, %v1496_v21  ;;  %v1514_v31 = vcombine.high %v1480_v17, %v1496_v21 }
 0x2e0   : > { %v671_v32 = vrot.slane %v663_v24, %v17430_v20  ;;  %v678_v33 = vrot.slane %v664_v25, %v17430_v20  ;;  %v17474_v36 = vrot.slane %v1565_v26, %v17435_v27  ;;  %v1589_v12 = vrot.slane %v1581_v38, %v17435_v27 }
 0x2e1   : > { %v1505_v39 = vrot.slane %v1497_v28, %v17435_v27  ;;  %v1512_v40 = vrot.slane %v1498_v29, %v17435_v27  ;;  %v1521_v41 = vrot.slane %v1513_v30, %v17435_v27  ;;  %v1528_v42 = vrot.slane %v1514_v31, %v17435_v27 }
 0x2e2   : > { %v695_v43 = vcombine.low %v671_v32, %v687_v18  ;;  %v696_v44 = vcombine.high %v671_v32, %v687_v18  ;;  %v711_v45 = vcombine.low %v678_v33, %v694_v23  ;;  %v712_v48 = vcombine.high %v678_v33, %v694_v23 }
 0x2e3   : > { %v1601_v57 = vcombine.low %v1505_v39, %v1512_v40  ;;  %v14769_v58 = vcombine.high %v1505_v39, %v1512_v40  ;;  %v1617_v59 = vcombine.low %v1521_v41, %v1528_v42  ;;  %v14770_v1 = vcombine.high %v1521_v41, %v1528_v42 }
 0x2e4   : > { %v703_v2 = vrot.slane %v695_v43, %v17435_v27  ;;  %v710_v5 = vrot.slane %v696_v44, %v17435_v27  ;;  %v719_v7 = vrot.slane %v711_v45, %v17435_v27  ;;  %v726_v10 = vrot.slane %v712_v48, %v17435_v27 }
 0x2e5   : > { %v1608_v13 = vrot.slane %v1601_v57, %v17430_v20  ;;  %v1616_v14 = vrot.slane %v14769_v58, %v17430_v20  ;;  %v1624_v17 = vrot.slane %v1617_v59, %v17430_v20  ;;  %v1268_v24 = vadd.f32 %v17360_v49, %v17348_v37 }
 0x2e6   : > { %v731_v18 = vcombine.low %v703_v2, %v710_v5  ;;  %v14715_v19 = vcombine.high %v703_v2, %v710_v5  ;;  %v747_v21 = vcombine.low %v719_v7, %v726_v10  ;;  %v14716_v22 = vcombine.high %v719_v7, %v726_v10  ;;  %v1322_v23 = vpop.permute.xlu0 %1321 }
 0x2e7   : > { %v17492_v25 = vmul.f32 %v1322_v23, %v1272_v46  ;;  %v1632_v26 = vrot.slane %v14770_v1, %v17430_v20  ;;  %v1633_v28 = vcombine.low %v1608_v13, %v1616_v14  ;;  %v1270_v33 = vadd.f32 %v17366_v50, %v17385_v56 }
 0x2e8   : > { %v738_v29 = vrot.slane %v731_v18, %v17430_v20  ;;  %v746_v30 = vrot.slane %v14715_v19, %v17430_v20  ;;  %v754_v31 = vrot.slane %v747_v21, %v17430_v20  ;;  %v762_v32 = vrot.slane %v14716_v22, %v17430_v20 }
 0x2e9   : > { %2670 = vrot.lane.b32.xlu0 %v17492_v25, %s16973_s15  ;;  %v1641_v49 = vrot.slane %v1633_v28, %v17435_v27  ;;  %v1649_v46 = vcombine.low %v1624_v17, %v1632_v26  ;;  %v1566_v38 = vcombine.high %v17451_v15, %v17454_v16  ;;  %v1274_v39 = vadd.f32 %v17380_v54, %v17385_v56 }
 0x2ea   : > { %v763_v40 = vcombine.low %v738_v29, %v746_v30  ;;  %v779_v41 = vcombine.low %v754_v31, %v762_v32  ;;  %v1678_v42 = vpop.permute.xlu0 %1677  ;;  %v1317_v43 = vpop.permute.xlu1 %1316  ;;  %v1597_v44 = vcombine.low %v17474_v36, %v1589_v12  ;;  %v1598_v48 = vcombine.high %v17474_v36, %v1589_v12 }
 0x2eb   : > { %v17509_v45 = vmul.f32 %v1317_v43, %v1268_v24  ;;  %v1657_v50 = vrot.slane %v1649_v46, %v17435_v27  ;;  %v1580_v57 = vrot.slane %v1566_v38, %v17435_v27  ;;  %v1582_v54 = vcombine.high %v17457_v47, %v17460_v52 }
 0x2ec   : > { %v771_v58 = vrot.slane %v763_v40, %v17435_v27  ;;  %v787_v15 = vrot.slane %v779_v41, %v17435_v27  ;;  %v1634_v16 = vcombine.high %v1608_v13, %v1616_v14  ;;  %v1650_v36 = vcombine.high %v1624_v17, %v1632_v26 }
 0x2ed   : > { %2676 = vrot.lane.b32.xlu0 %v17492_v25, %s16972_s18  ;;  %2668 = vrot.lane.b32.xlu1 %v17509_v45, %s16973_s15  ;;  %v1665_v59 = vcombine.low %v1641_v49, %v1657_v50  ;;  %v1666_v1 = vcombine.high %v1641_v49, %v1657_v50  ;;  %v764_v2 = vcombine.high %v738_v29, %v746_v30 }
 0x2ee   : > { %v780_v5 = vcombine.high %v754_v31, %v762_v32  ;;  %v1684_v7 = vpop.permute.xlu0 %1683  ;;  %v17522_v10 = vpop.permute.xlu1 %1675  ;;  %v1596_v12 = vrot.slane %v1582_v54, %v17435_v27  ;;  %v1648_v47 = vrot.slane %v1634_v16, %v17435_v27  ;;  %v17526_v52 = vmul.f32 %v1322_v23, %v1274_v39  ;;  %v1301_v31 = vld [vmem:[%s17329_s10 + $0x28] sm:$0xff] }
 0x2ef   : > { %v1669_v13 = vpack.c.bf16 %v1665_v59, %v1597_v44  ;;  %v1670_v14 = vpack.c.bf16 %v1666_v1, %v1598_v48  ;;  %v795_v18 = vcombine.low %v771_v58, %v787_v15  ;;  %v17528_v19 = vmul.f32 %v1317_v43, %v1270_v33 }
 0x2f0   : > { %v1761_v21 = vcombine.low %v17404_v3, %v1684_v7  ;;  %v796_v17 = vcombine.high %v771_v58, %v787_v15  ;;  %v1664_v22 = vrot.slane %v1650_v36, %v17435_v27  ;;  %v1762_v24 = vcombine.high %v17404_v3, %v1684_v7 }
 0x2f1   : > { %v1978_v26 = vsel %vm1973_vm1, %v1669_v13, 0  ;;  %v2024_v28 = vsel %vm1973_vm1, %v1670_v14, 0  ;;  %2682 = vrot.lane.b32.xlu0 %v17492_v25, %s16974_s19  ;;  %2674 = vrot.lane.b32.xlu1 %v17509_v45, %s16972_s18  ;;  %v1599_v23 = vcombine.low %v1580_v57, %v1596_v12  ;;  %v17541_v33 = vrot.slane %v764_v2, %v17435_v27 }
 0x2f2   : > { %15456 = vmatpush3.bf16.xpose.msra.mxu0 %v1978_v26  ;;  %15462 = vmatpush3.bf16.xpose.msra.mxu1 %v2024_v28  ;;  %v1690_v29 = vpop.permute.xlu0 %1689  ;;  %v1682_v30 = vpop.permute.xlu1 %1681  ;;  %v1667_v32 = vcombine.low %v1648_v47, %v1664_v22  ;;  %v17544_v3 = vrot.slane %v780_v5, %v17435_v27  ;;  %v17547_v39 = vpack.c.bf16 %v795_v18, %v795_v18 }
 0x2f3   : > { %v1777_v49 = vcombine.low %v1678_v42, %v1690_v29  ;;  %v1778_v46 = vcombine.high %v1678_v42, %v1690_v29  ;;  %v1693_v38 = vcombine.low %v17411_v8, %v1682_v30  ;;  %15467 = vmatprep.subr.bf16.mxu1 %v20256_v0  ;;  %v1694_v40 = vcombine.high %v17411_v8, %v1682_v30 }
 0x2f4   : > { %v1671_v41 = vpack.c.bf16 %v1667_v32, %v1599_v23  ;;  %v1600_v43 = vcombine.high %v1580_v57, %v1596_v12  ;;  %v1668_v44 = vcombine.high %v1648_v47, %v1664_v22  ;;  %15497 = vmatprep.subr.bf16.mxu0 %v20256_v0  ;;  %v1769_v50 = vrot.slane %v1761_v21, %v17430_v20 }
 0x2f5   : > { %v1776_v48 = vrot.slane %v1762_v24, %v17430_v20  ;;  %v1785_v58 = vrot.slane %v1777_v49, %v17430_v20  ;;  %v1792_v42 = vrot.slane %v1778_v46, %v17430_v20  ;;  %1331 = vperm.xlu0 %16391, %v1301_v31   ;;  %v1701_v15 = vrot.slane %v1693_v38, %v17430_v20 }
 0x2f6   : > { %2680 = vrot.lane.b32.xlu1 %v17509_v45, %s16974_s19  ;;  %v17559_v8 = vpack.c.bf16 %v796_v17, %v796_v17  ;;  %v1688_v57 = vpop.permute.xlu1 %1687  ;;  %v797_v54 = vcombine.low %v17541_v33, %v17544_v3  ;;  %v1672_v16 = vpack.c.bf16 %v1668_v44, %v1600_v43  ;;  %v1708_v5 = vrot.slane %v1694_v40, %v17430_v20  ;;  %v1300_v17 = vld [vmem:[%s17329_s10 + $0x20] sm:$0xff] }
 0x2f7   : > { %v1793_v59 = vcombine.low %v1769_v50, %v1785_v58  ;;  %v1794_v1 = vcombine.high %v1769_v50, %v1785_v58  ;;  %v1809_v36 = vcombine.low %v1776_v48, %v1792_v42  ;;  %v1810_v2 = vcombine.high %v1776_v48, %v1792_v42 }
 0x2f8   : > { %v1709_v7 = vcombine.low %v17522_v10, %v1688_v57  ;;  %v1710_v12 = vcombine.high %v17522_v10, %v1688_v57  ;;  %v2070_v47 = vsel %vm1973_vm1, %v1671_v41, 0  ;;  %v17580_v24 = vpack.c.bf16 %v797_v54, %v797_v54 }
 0x2f9   : > { %v1801_v13 = vrot.slane %v1793_v59, %v17435_v27  ;;  %v1808_v14 = vrot.slane %v1794_v1, %v17435_v27  ;;  %v1817_v18 = vrot.slane %v1809_v36, %v17435_v27  ;;  %v1824_v21 = vrot.slane %v1810_v2, %v17435_v27  ;;  %15458 = vmatmul.mubr.msk.bf16.vlgmr.msra.gmra.mxu0 %vm1973_vm1, %v17547_v39 }
 0x2fa   : > { %15464 = vmatmul.mubr.msk.bf16.vlgmr.msra.gmra.mxu1 %vm1973_vm1, %v17559_v8  ;;  %v1717_v22 = vrot.slane %v1709_v7, %v17430_v20  ;;  %v1724_v10 = vrot.slane %v1710_v12, %v17430_v20  ;;  %2966 = vrot.lane.b32.xlu0 %v17526_v52, %s16973_s15  ;;  %v2116_v26 = vsel %vm1973_vm1, %v1672_v16, 0 }
 0x2fb   : > { %v1897_v28 = vcombine.low %v1801_v13, %v1808_v14  ;;  %v14773_v23 = vcombine.high %v1801_v13, %v1808_v14  ;;  %v1913_v29 = vcombine.low %v1817_v18, %v1824_v21  ;;  %v14774_v30 = vcombine.high %v1817_v18, %v1824_v21  ;;  %15468 = vmatpush3.bf16.xpose.msra.mxu1 %v2070_v47 }
 0x2fc   : > { %v1725_v31 = vcombine.low %v1701_v15, %v1717_v22  ;;  %v1726_v32 = vcombine.high %v1701_v15, %v1717_v22  ;;  %v1741_v49 = vcombine.low %v1708_v5, %v1724_v10  ;;  %v1742_v46 = vcombine.high %v1708_v5, %v1724_v10  ;;  %1326 = vperm.xlu1 %16392, %v1300_v17  }
 0x2fd   : > { %v1904_v38 = vrot.slane %v1897_v28, %v17430_v20  ;;  %v1912_v40 = vrot.slane %v14773_v23, %v17430_v20  ;;  %v1920_v41 = vrot.slane %v1913_v29, %v17430_v20  ;;  %v1928_v43 = vrot.slane %v14774_v30, %v17430_v20  ;;  %15469 = vmatprep.mubr.msk.bf16.mxu1 %vm16970_vm0, %v20256_v0 }
 0x2fe   : > { %v1733_v44 = vrot.slane %v1725_v31, %v17435_v27  ;;  %v1740_v50 = vrot.slane %v1726_v32, %v17435_v27  ;;  %v1749_v48 = vrot.slane %v1741_v49, %v17435_v27  ;;  %v1756_v58 = vrot.slane %v1742_v46, %v17435_v27  ;;  %2972 = vrot.lane.b32.xlu0 %v17526_v52, %s16972_s18 }
 0x2ff   : > { %15473 = vmatprep.subr.bf16.mxu1 %v20256_v0  ;;  %v1929_v42 = vcombine.low %v1904_v38, %v1912_v40  ;;  %v1945_v15 = vcombine.low %v1920_v41, %v1928_v43  ;;  %v1930_v57 = vcombine.high %v1904_v38, %v1912_v40  ;;  %v1946_v54 = vcombine.high %v1920_v41, %v1928_v43 }
 0x300   : > { %v1829_v16 = vcombine.low %v1733_v44, %v1740_v50  ;;  %v14771_v59 = vcombine.high %v1733_v44, %v1740_v50  ;;  %v1845_v1 = vcombine.low %v1749_v48, %v1756_v58  ;;  %v14772_v36 = vcombine.high %v1749_v48, %v1756_v58  ;;  %2964 = vrot.lane.b32.xlu1 %v17528_v19, %s16973_s15 }
 0x301   : > { %v1937_v2 = vrot.slane %v1929_v42, %v17435_v27  ;;  %v1953_v5 = vrot.slane %v1945_v15, %v17435_v27  ;;  %v1944_v7 = vrot.slane %v1930_v57, %v17435_v27  ;;  %v1960_v12 = vrot.slane %v1946_v54, %v17435_v27  ;;  %15499 = vmatprep.mubr.msk.bf16.mxu0 %vm16970_vm0, %v20256_v0 }
 0x302   : > { %v1836_v47 = vrot.slane %v1829_v16, %v17430_v20  ;;  %v1844_v13 = vrot.slane %v14771_v59, %v17430_v20  ;;  %v1852_v14 = vrot.slane %v1845_v1, %v17430_v20  ;;  %v1860_v18 = vrot.slane %v14772_v36, %v17430_v20  ;;  %15470 = vmatmul.mubr.msk.bf16.vlgmr.msra.gmra.mxu1 %vm1973_vm1, %v17580_v24 }
 0x303   : > { %15474 = vmatpush3.bf16.xpose.msra.mxu1 %v2116_v26  ;;  %2978 = vrot.lane.b32.xlu0 %v17526_v52, %s16974_s19  ;;  %v798_v21 = vcombine.high %v17541_v33, %v17544_v3  ;;  %v1962_v17 = vcombine.high %v1937_v2, %v1953_v5  ;;  %v1963_v26 = vcombine.low %v1944_v7, %v1960_v12 }
 0x304   : > { %2970 = vrot.lane.b32.xlu1 %v17528_v19, %s16972_s18  ;;  %15475 = vmatprep.mubr.msk.bf16.mxu1 %vm16970_vm0, %v20256_v0  ;;  %v1861_v22 = vcombine.low %v1836_v47, %v1844_v13  ;;  %v1877_v10 = vcombine.low %v1852_v14, %v1860_v18  ;;  %v1862_v28 = vcombine.high %v1836_v47, %v1844_v13 }
 0x305   : > { %15479 = vmatprep.subr.bf16.mxu1 %v20256_v0  ;;  %v1878_v23 = vcombine.high %v1852_v14, %v1860_v18  ;;  %v17625_v31 = vpack.c.bf16 %v798_v21, %v798_v21  ;;  %v1961_v49 = vcombine.low %v1937_v2, %v1953_v5  ;;  %v1964_v40 = vcombine.high %v1944_v7, %v1960_v12 }
 0x306   : > { %v1869_v29 = vrot.slane %v1861_v22, %v17435_v27  ;;  %v1885_v30 = vrot.slane %v1877_v10, %v17435_v27  ;;  %v1876_v33 = vrot.slane %v1862_v28, %v17435_v27  ;;  %v1282_v16 = vadd.f32 %v17396_v61, %v17348_v37 }
 0x307   : > { %v1892_v3 = vrot.slane %v1878_v23, %v17435_v27  ;;  %v1278_v5 = vadd.f32 %v17382_v55, %v17348_v37 }
 0x308   : > { %2976 = vrot.lane.b32.xlu1 %v17528_v19, %s16974_s19  ;;  %v1893_v32 = vcombine.low %v1869_v29, %v1885_v30  ;;  %v1894_v46 = vcombine.high %v1869_v29, %v1885_v30 }
 0x309   : > { %v1896_v38 = vcombine.high %v1876_v33, %v1892_v3  ;;  %v1895_v41 = vcombine.low %v1876_v33, %v1892_v3 }
 0x30a   : > { %15476 = vmatmul.mubr.msk.bf16.vlgmr.msra.gmra.mxu1 %vm1973_vm1, %v17625_v31  ;;  %v1965_v43 = vpack.c.bf16 %v1961_v49, %v1893_v32  ;;  %v17629_v44 = vpack.c.bf16 %v1962_v17, %v1894_v46 }
 0x30b   : > { %v1968_v50 = vpack.c.bf16 %v1964_v40, %v1896_v38  ;;  %15481 = vmatprep.mubr.msk.bf16.mxu1 %vm16970_vm0, %v20256_v0  ;;  %v17633_v48 = vpack.c.bf16 %v1963_v26, %v1895_v41 }
 0x30c   : > { %15480 = vmatpush3.bf16.msra.mxu1 %v1965_v43 }
 0x30d   : > { %15498 = vmatpush3.bf16.msra.mxu0 %v1968_v50  ;;  %15485 = vmatprep.subr.bf16.mxu1 %v20256_v0 }
 0x30e   : > { %15523 = vmatprep.subr.bf16.mxu0 %v20256_v0 }
 0x35b   : > { %v17637_v58 = vpop.permute.xlu0 %2670 }
 0x35f   : > { %v17639_v42 = vpop.permute.xlu0 %2676  ;;  %v17641_v15 = vpop.permute.xlu1 %2668 }
 0x363   : > { %v17643_v57 = vpop.permute.xlu0 %2682  ;;  %v17645_v54 = vpop.permute.xlu1 %2674 }
 0x368   : > { %v17654_v36 = vpop.permute.xlu1 %2680 }
 0x370   : > { %v17649_v59 = vpop.permute.xlu0 %1331 }
 0x371   : > { %v17652_v1 = vmul.f32 %v17649_v59, %v1282_v16 }
 0x373   : > { %3885 = vrot.lane.b32.xlu1 %v17652_v1, %s16973_s15 }
 0x374   : > { %v2967_v2 = vpop.permute.xlu0 %2966 }
 0x377   : > { %v17660_v7 = vpop.permute.xlu1 %1326 }
 0x378   : > { %v17663_v12 = vmul.f32 %v17660_v7, %v1278_v5  ;;  %v2973_v61 = vpop.permute.xlu0 %2972 }
 0x379   : > { %v3050_v47 = vcombine.low %v17526_v52, %v2973_v61  ;;  %v3051_v13 = vcombine.high %v17526_v52, %v2973_v61 }
 0x37a   : > { %3883 = vrot.lane.b32.xlu0 %v17663_v12, %s16973_s15 }
 0x37b   : > { %v2965_v14 = vpop.permute.xlu1 %2964  ;;  %v3058_v22 = vrot.slane %v3050_v47, %v17430_v20  ;;  %v3065_v37 = vrot.slane %v3051_v13, %v17430_v20 }
 0x37c   : > { %v2979_v18 = vpop.permute.xlu0 %2978 }
 0x37d   : > { %v3066_v21 = vcombine.low %v2967_v2, %v2979_v18  ;;  %v3067_v17 = vcombine.high %v2967_v2, %v2979_v18 }
 0x37f   : > { %v3074_v55 = vrot.slane %v3066_v21, %v17430_v20  ;;  %v3081_v10 = vrot.slane %v3067_v17, %v17430_v20  ;;  %v2971_v28 = vpop.permute.xlu1 %2970 }
 0x380   : > { %v2982_v33 = vcombine.low %v17528_v19, %v2971_v28  ;;  %v2983_v52 = vcombine.high %v17528_v19, %v2971_v28 }
 0x381   : > { %v3082_v23 = vcombine.low %v3058_v22, %v3074_v55  ;;  %v3083_v26 = vcombine.high %v3058_v22, %v3074_v55  ;;  %v3098_v29 = vcombine.low %v3065_v37, %v3081_v10  ;;  %v3099_v30 = vcombine.high %v3065_v37, %v3081_v10 }
 0x382   : > { %v2990_v5 = vrot.slane %v2982_v33, %v17430_v20  ;;  %v2997_v61 = vrot.slane %v2983_v52, %v17430_v20 }
 0x383   : > { %v3090_v3 = vrot.slane %v3082_v23, %v17435_v27  ;;  %v3097_v32 = vrot.slane %v3083_v26, %v17435_v27  ;;  %v3106_v49 = vrot.slane %v3098_v29, %v17435_v27  ;;  %v3113_v46 = vrot.slane %v3099_v30, %v17435_v27  ;;  %v2977_v38 = vpop.permute.xlu1 %2976 }
 0x384   : > { %v2998_v40 = vcombine.low %v2965_v14, %v2977_v38  ;;  %v2999_v41 = vcombine.high %v2965_v14, %v2977_v38 }
 0x385   : > { %v3186_v43 = vcombine.low %v3090_v3, %v3097_v32  ;;  %v14800_v50 = vcombine.high %v3090_v3, %v3097_v32  ;;  %v3202_v16 = vcombine.low %v3106_v49, %v3113_v46  ;;  %v14801_v2 = vcombine.high %v3106_v49, %v3113_v46 }
 0x386   : > { %v3006_v19 = vrot.slane %v2998_v40, %v17430_v20  ;;  %v3013_v47 = vrot.slane %v2999_v41, %v17430_v20 }
 0x387   : > { %v3193_v13 = vrot.slane %v3186_v43, %v17430_v20  ;;  %v3201_v18 = vrot.slane %v14800_v50, %v17430_v20  ;;  %v3209_v21 = vrot.slane %v3202_v16, %v17430_v20  ;;  %v3217_v14 = vrot.slane %v14801_v2, %v17430_v20 }
 0x388   : > { %v3014_v17 = vcombine.low %v2990_v5, %v3006_v19  ;;  %v3015_v22 = vcombine.high %v2990_v5, %v3006_v19  ;;  %v3030_v37 = vcombine.low %v2997_v61, %v3013_v47  ;;  %v3031_v55 = vcombine.high %v2997_v61, %v3013_v47 }
 0x389   : > { %v3218_v10 = vcombine.low %v3193_v13, %v3201_v18  ;;  %v3234_v28 = vcombine.low %v3209_v21, %v3217_v14  ;;  %v3219_v23 = vcombine.high %v3193_v13, %v3201_v18  ;;  %v3235_v26 = vcombine.high %v3209_v21, %v3217_v14 }
 0x38a   : > { %v3022_v29 = vrot.slane %v3014_v17, %v17435_v27  ;;  %v3029_v30 = vrot.slane %v3015_v22, %v17435_v27  ;;  %v3038_v33 = vrot.slane %v3030_v37, %v17435_v27  ;;  %v3045_v52 = vrot.slane %v3031_v55, %v17435_v27 }
 0x38b   : > { %v17692_v3 = vrot.slane %v3218_v10, %v17435_v27  ;;  %v17695_v32 = vrot.slane %v3234_v28, %v17435_v27  ;;  %v3233_v49 = vrot.slane %v3219_v23, %v17435_v27  ;;  %v3249_v46 = vrot.slane %v3235_v26, %v17435_v27 }
 0x38c   : > { %v3118_v38 = vcombine.low %v3022_v29, %v3029_v30  ;;  %v14798_v40 = vcombine.high %v3022_v29, %v3029_v30  ;;  %v3134_v41 = vcombine.low %v3038_v33, %v3045_v52  ;;  %v14799_v43 = vcombine.high %v3038_v33, %v3045_v52  ;;  %v17721_v33 = vpop.f32.mrf.mxu0 }
 0x38d   : > { %v3253_v50 = vcombine.high %v3233_v49, %v3249_v46  ;;  %v3250_v16 = vcombine.low %v17692_v3, %v17695_v32  ;;  %v3252_v2 = vcombine.low %v3233_v49, %v3249_v46 }
 0x38e   : > { %v3125_v5 = vrot.slane %v3118_v38, %v17430_v20  ;;  %v3133_v61 = vrot.slane %v14798_v40, %v17430_v20  ;;  %v3141_v19 = vrot.slane %v3134_v41, %v17430_v20  ;;  %v3149_v47 = vrot.slane %v14799_v43, %v17430_v20 }
 0x390   : > { %v3150_v13 = vcombine.low %v3125_v5, %v3133_v61  ;;  %v3166_v18 = vcombine.low %v3141_v19, %v3149_v47  ;;  %v3151_v21 = vcombine.high %v3125_v5, %v3133_v61  ;;  %v3167_v14 = vcombine.high %v3141_v19, %v3149_v47 }
 0x392   : > { %v17706_v17 = vrot.slane %v3150_v13, %v17435_v27  ;;  %v17709_v22 = vrot.slane %v3166_v18, %v17435_v27  ;;  %v3165_v37 = vrot.slane %v3151_v21, %v17435_v27  ;;  %v3181_v55 = vrot.slane %v3167_v14, %v17435_v27 }
 0x394   : > { %v3185_v10 = vcombine.high %v3165_v37, %v3181_v55  ;;  %v3182_v28 = vcombine.low %v17706_v17, %v17709_v22  ;;  %v3184_v23 = vcombine.low %v3165_v37, %v3181_v55 }
 0x396   : > { %v17715_v26 = vpack.c.bf16 %v3253_v50, %v3185_v10  ;;  %v17717_v29 = vpack.c.bf16 %v3250_v16, %v3182_v28  ;;  %v17719_v30 = vpack.c.bf16 %v3252_v2, %v3184_v23 }
 0x3b9   : > { %v2014_v52 = vpop.f32.mrf.mxu0 }
 0x3ba   : > { %v2158_v49 = vmul.f32 0.088388346, %v2014_v52  ;;  %v2060_v46 = vpop.f32.mrf.mxu1 }
 0x3bb   : > { %v2159_v38 = vmul.f32 0.088388346, %v2060_v46  ;;  %v15459_v40 = vpop.f32.mrf.mxu0 }
 0x3bc   : > { %v2163_v41 = vsel %vm2162_vm2, %v2158_v49, -inf  ;;  %v15465_v43 = vpop.f32.mrf.mxu1 }
 0x3bd   : > { %v2164_v5 = vrot.slane %v2163_v41, 4  ;;  %v2170_v61 = vsel %vm2162_vm2, %v2159_v38, -inf  ;;  %v2017_v50 = vpop.f32.mrf.mxu0 }
 0x3be   : > { %v2171_v19 = vrot.slane %v2170_v61, 4  ;;  %v2063_v16 = vpop.f32.mrf.mxu1 }
 0x3bf   : > { %v2165_v47 = vmax.f32 %v2163_v41, %v2164_v5  ;;  %v15460_v2 = vpop.f32.mrf.mxu0 }
 0x3c0   : > { %v2172_v13 = vmax.f32 %v2170_v61, %v2171_v19  ;;  %v15466_v18 = vpop.f32.mrf.mxu1 }
 0x3c1   : > { %v2166_v21 = vrot.slane %v2165_v47, 2 }
 0x3c2   : > { %v2173_v14 = vrot.slane %v2172_v13, 2  ;;  %v2106_v37 = vpop.f32.mrf.mxu1 }
 0x3c3   : > { %v2167_v55 = vmax.f32 %v2165_v47, %v2166_v21  ;;  %v2160_v10 = vmul.f32 0.088388346, %v2106_v37 }
 0x3c4   : > { %v2174_v28 = vmax.f32 %v2172_v13, %v2173_v14  ;;  %v15471_v23 = vpop.f32.mrf.mxu1 }
 0x3c5   : > { %v2168_v52 = vrot.slane %v2167_v55, 1  ;;  %v2177_v46 = vsel %vm2162_vm2, %v2160_v10, -inf }
 0x3c6   : > { %v2175_v40 = vrot.slane %v2174_v28, 1  ;;  %v2178_v43 = vrot.slane %v2177_v46, 4  ;;  %v2109_v63 = vpop.f32.mrf.mxu1 }
 0x3c7   : > { %v2169_v50 = vmax.f32 %v2167_v55, %v2168_v52 }
 0x3c8   : > { %v2176_v0 = vmax.f32 %v2174_v28, %v2175_v40  ;;  %v2179_v16 = vmax.f32 %v2177_v46, %v2178_v43  ;;  %v15472_v41 = vpop.f32.mrf.mxu1 }
 0x3c9   : > { %v2191_v5 = vsub.f32 %v2158_v49, %v2169_v50 }
 0x3ca   : > { %v2192_v61 = vsub.f32 %v2159_v38, %v2176_v0  ;;  %v2180_v19 = vrot.slane %v2179_v16, 2  ;;  %v2152_v2 = vpop.f32.mrf.mxu1 }
 0x3cb   : > { %v2195_v18 = vmul.f32 1.442695, %v2191_v5  ;;  %v2161_v4 = vmul.f32 0.088388346, %v2152_v2 }
 0x3cc   : > { %v2197_v47 = vmul.f32 1.442695, %v2192_v61  ;;  %v2181_v21 = vmax.f32 %v2179_v16, %v2180_v19  ;;  %v15477_v13 = vpop.f32.mrf.mxu1 }
 0x3cd   : > { %16529 = vpow2.f32 %v2195_v18  ;;  %v2184_v14 = vsel %vm2162_vm2, %v2161_v4, -inf }
 0x3ce   : > { %16531 = vpow2.f32 %v2197_v47  ;;  %v2182_v37 = vrot.slane %v2181_v21, 1  ;;  %v2185_v23 = vrot.slane %v2184_v14, 4  ;;  %v2155_v63 = vpop.f32.mrf.mxu1 }
 0x3d0   : > { %v2183_v55 = vmax.f32 %v2181_v21, %v2182_v37  ;;  %v2186_v28 = vmax.f32 %v2184_v14, %v2185_v23  ;;  %v15478_v52 = vpop.f32.mrf.mxu1  ;;  %v2702_v14 = vcombine.low %v17641_v15, %v17654_v36  ;;  %v2703_v23 = vcombine.high %v17641_v15, %v17654_v36 }
 0x3d1   : > { %v2754_v15 = vcombine.low %v17492_v25, %v17639_v42 }
 0x3d2   : > { %v2193_v46 = vsub.f32 %v2160_v10, %v2183_v55  ;;  %v2187_v49 = vrot.slane %v2186_v28, 2  ;;  %v2770_v55 = vcombine.low %v17637_v58, %v17643_v57  ;;  %v2710_v36 = vrot.slane %v2702_v14, %v17430_v20 }
 0x3d4   : > { %v2199_v0 = vmul.f32 1.442695, %v2193_v46  ;;  %v2188_v38 = vmax.f32 %v2186_v28, %v2187_v49  ;;  %v2686_v28 = vcombine.low %v17509_v45, %v17645_v54  ;;  %v2771_v49 = vcombine.high %v17637_v58, %v17643_v57 }
 0x3d6   : > { %16533 = vpow2.f32 %v2199_v0  ;;  %v2189_v40 = vrot.slane %v2188_v38, 1  ;;  %v2687_v0 = vcombine.high %v17509_v45, %v17645_v54  ;;  %v2694_v58 = vrot.slane %v2686_v28, %v17430_v20 }
 0x3d7   : > { %v2785_v57 = vrot.slane %v2771_v49, %v17430_v20 }
 0x3d8   : > { %v2190_v43 = vmax.f32 %v2188_v38, %v2189_v40  ;;  %v2701_v54 = vrot.slane %v2687_v0, %v17430_v20 }
 0x3da   : > { %v17727_v50 = vpop.eup %16529  ;;  %v2194_v16 = vsub.f32 %v2161_v4, %v2190_v43 }
 0x3db   : > { %v17729_v41 = vpop.eup %16531  ;;  %v2203_v5 = vsel %vm2162_vm2, %v17727_v50, 0.0 }
 0x3dc   : > { %v2204_v61 = vrot.slane %v2203_v5, 4  ;;  %v2210_v19 = vsel %vm2162_vm2, %v17729_v41, 0.0  ;;  %v2201_v2 = vmul.f32 1.442695, %v2194_v16  ;;  %v2755_v16 = vcombine.high %v17492_v25, %v17639_v42 }
 0x3dd   : > { %v2211_v10 = vrot.slane %v2210_v19, 4 }
 0x3de   : > { %v2205_v18 = vadd.f32 %v2204_v61, %v2203_v5  ;;  %16535 = vpow2.f32 %v2201_v2  ;;  %v2717_v5 = vrot.slane %v2703_v23, %v17430_v20  ;;  %v2769_v25 = vrot.slane %v2755_v16, %v17430_v20 }
 0x3df   : > { %v2212_v47 = vadd.f32 %v2211_v10, %v2210_v19  ;;  %v2778_v19 = vrot.slane %v2770_v55, %v17430_v20  ;;  %v2762_v10 = vrot.slane %v2754_v15, %v17430_v20 }
 0x3e0   : > { %v2206_v21 = vrot.slane %v2205_v18, 2  ;;  %v2734_v42 = vcombine.low %v2701_v54, %v2717_v5  ;;  %v2802_v55 = vcombine.low %v2769_v25, %v2785_v57  ;;  %v2803_v28 = vcombine.high %v2769_v25, %v2785_v57 }
 0x3e1   : > { %v2213_v13 = vrot.slane %v2212_v47, 2  ;;  %v2787_v23 = vcombine.high %v2762_v10, %v2778_v19 }
 0x3e2   : > { %v2207_v4 = vadd.f32 %v2206_v21, %v2205_v18  ;;  %v2718_v18 = vcombine.low %v2694_v58, %v2710_v36 }
 0x3e3   : > { %v17737_v37 = vpop.eup %16533  ;;  %v2214_v63 = vadd.f32 %v2213_v13, %v2212_v47  ;;  %v2719_v47 = vcombine.high %v2694_v58, %v2710_v36  ;;  %v2735_v13 = vcombine.high %v2701_v54, %v2717_v5  ;;  %v2810_v5 = vrot.slane %v2802_v55, %v17435_v27 }
 0x3e4   : > { %v2208_v52 = vrot.slane %v2207_v4, 1  ;;  %v2217_v46 = vsel %vm2162_vm2, %v17737_v37, 0.0  ;;  %v2726_v49 = vrot.slane %v2718_v18, %v17435_v27 }
 0x3e5   : > { %v2215_v38 = vrot.slane %v2214_v63, 1  ;;  %v2218_v40 = vrot.slane %v2217_v46, 4  ;;  %v2733_v0 = vrot.slane %v2719_v47, %v17435_v27 }
 0x3e6   : > { %v2209_v43 = vadd.f32 %v2208_v52, %v2207_v4  ;;  %v2786_v4 = vcombine.low %v2762_v10, %v2778_v19 }
 0x3e7   : > { %v2219_v61 = vadd.f32 %v2218_v40, %v2217_v46  ;;  %v2216_v45 = vadd.f32 %v2215_v38, %v2214_v63  ;;  %v2742_v38 = vrot.slane %v2734_v42, %v17435_v27  ;;  %v2749_v40 = vrot.slane %v2735_v13, %v17435_v27 }
 0x3e8   : > { %16537 = vrcp.f32 %v2209_v43  ;;  %v2794_v36 = vrot.slane %v2786_v4, %v17435_v27  ;;  %v2801_v43 = vrot.slane %v2787_v23, %v17435_v27  ;;  %v2822_v58 = vcombine.low %v2726_v49, %v2733_v0 }
 0x3e9   : > { %v2220_v2 = vrot.slane %v2219_v61, 2  ;;  %16539 = vrcp.f32 %v2216_v45  ;;  %v14794_v45 = vcombine.high %v2726_v49, %v2733_v0  ;;  %v2838_v57 = vcombine.low %v2742_v38, %v2749_v40 }
 0x3ea   : > { %v14795_v54 = vcombine.high %v2742_v38, %v2749_v40  ;;  %v2890_v10 = vcombine.low %v2794_v36, %v2801_v43  ;;  %v14796_v47 = vcombine.high %v2794_v36, %v2801_v43  ;;  %v20281_v40 = vmov 0.0  }
 0x3eb   : > { %v17762_v21 = vpop.eup %16535  ;;  %v2221_v14 = vadd.f32 %v2220_v2, %v2219_v61  ;;  %v2817_v61 = vrot.slane %v2803_v28, %v17435_v27  ;;  %v2845_v55 = vrot.slane %v2838_v57, %v17430_v20 }
 0x3ec   : > { %v2224_v63 = vsel %vm2162_vm2, %v17762_v21, 0.0  ;;  %v2853_v28 = vrot.slane %v14795_v54, %v17430_v20  ;;  %v2905_v0 = vrot.slane %v14796_v47, %v17430_v20 }
 0x3ed   : > { %v2222_v52 = vrot.slane %v2221_v14, 1  ;;  %v2225_v46 = vrot.slane %v2224_v63, 4  ;;  %v2906_v25 = vcombine.low %v2810_v5, %v2817_v61  ;;  %v14797_v42 = vcombine.high %v2810_v5, %v2817_v61 }
 0x3ee   : > { %v2870_v36 = vcombine.low %v2845_v55, %v2853_v28 }
 0x3ef   : > { %v2226_v15 = vadd.f32 %v2225_v46, %v2224_v63  ;;  %v2223_v16 = vadd.f32 %v2222_v52, %v2221_v14  ;;  %v2829_v14 = vrot.slane %v2822_v58, %v17430_v20  ;;  %v2837_v63 = vrot.slane %v14794_v45, %v17430_v20 }
 0x3f0   : > { %v2897_v46 = vrot.slane %v2890_v10, %v17430_v20  ;;  %v2913_v38 = vrot.slane %v2906_v25, %v17430_v20 }
 0x3f1   : > { %v2227_v19 = vrot.slane %v2226_v15, 2  ;;  %16541 = vrcp.f32 %v2223_v16 }
 0x3f2   : > { %v2922_v16 = vcombine.low %v2897_v46, %v2905_v0 }
 0x3f3   : > { %v2228_v2 = vadd.f32 %v2227_v19, %v2226_v15  ;;  %v2854_v15 = vcombine.low %v2829_v14, %v2837_v63  ;;  %v2878_v19 = vrot.slane %v2870_v36, %v17435_v27 }
 0x3f4   : > { %v2930_v57 = vrot.slane %v2922_v16, %v17435_v27 }
 0x3f5   : > { %v16538_v18 = vpop.eup %16537  ;;  %v2229_v13 = vrot.slane %v2228_v2, 1  ;;  %v2862_v61 = vrot.slane %v2854_v15, %v17435_v27 }
 0x3f6   : > { %v2235_v4 = vmul.f32 %v16538_v18, %v17727_v50  ;;  %v16540_v49 = vpop.eup %16539  ;;  %v2921_v50 = vrot.slane %v14797_v42, %v17430_v20 }
 0x3f7   : > { %v2230_v23 = vadd.f32 %v2229_v13, %v2228_v2  ;;  %v2236_v43 = vmul.f32 %v16540_v49, %v17729_v41  ;;  %v2886_v41 = vcombine.low %v2862_v61, %v2878_v19  ;;  %v2887_v13 = vcombine.high %v2862_v61, %v2878_v19 }
 0x3f8   : > { %v2239_v52 = vpack.c.bf16 %v2235_v4, %v2235_v4  ;;  %v2938_v5 = vcombine.low %v2913_v38, %v2921_v50  ;;  %v2855_v4 = vcombine.high %v2829_v14, %v2837_v63  ;;  %v3183_v61 = vcombine.high %v17706_v17, %v17709_v22  ;;  %v17855_v22 = vld [vmem:[#allocation8 + $0x6c] ss:$16 sps:$4 sm:$0xff]  }
 0x3f9   : > { %16543 = vrcp.f32 %v2230_v23  ;;  %v2240_v58 = vpack.c.bf16 %v2236_v43, %v2236_v43  ;;  %v2871_v23 = vcombine.high %v2845_v55, %v2853_v28  ;;  %v3251_v19 = vcombine.high %v17692_v3, %v17695_v32  ;;  %v17847_v3 = vld [vmem:[#allocation8 + $0xac] ss:$16 sps:$4 sm:$0xff]  }
 0x3fa   : > { %15482 = vmatmul.mubr.msk.bf16.vlgmr.msra.gmra.mxu1 %vm2162_vm2, %v2239_v52  ;;  %v2939_v52 = vcombine.high %v2913_v38, %v2921_v50  ;;  %v2869_v15 = vrot.slane %v2855_v4, %v17435_v27  ;;  %v17851_v32 = vld [vmem:[#allocation8 + $0x8c] ss:$16 sps:$4 sm:$0xff]  }
 0x3fb   : > { %15486 = vmatpush3.bf16.msra.mxu1 %v17629_v44  ;;  %15487 = vmatprep.mubr.msk.bf16.mxu1 %vm16970_vm0, %v20281_v40  ;;  %v2946_v44 = vrot.slane %v2938_v5, %v17435_v27  ;;  %v2885_v36 = vrot.slane %v2871_v23, %v17435_v27 }
 0x3fc   : > { %15491 = vmatprep.subr.bf16.mxu1 %v20281_v40  ;;  %v2953_v63 = vrot.slane %v2939_v52, %v17435_v27 }
 0x3fd   : > { %v2954_v2 = vcombine.low %v2930_v57, %v2946_v44  ;;  %v2888_v28 = vcombine.low %v2869_v15, %v2885_v36  ;;  %v2889_v50 = vcombine.high %v2869_v15, %v2885_v36 }
 0x3fe   : > { %v16542_v45 = vpop.eup %16541 }
 0x3ff   : > { %v2237_v54 = vmul.f32 %v16542_v45, %v17737_v37  ;;  %v2958_v47 = vpack.c.bf16 %v2954_v2, %v2886_v41  ;;  %v2955_v37 = vcombine.high %v2930_v57, %v2946_v44  ;;  %v17840_v45 = vld [vmem:[#allocation8 + $0xec] ss:$16 sps:$4 sm:$0xff]  }
 0x400   : > { %v17843_v57 = vld [vmem:[#allocation8 + $0xcc] ss:$16 sps:$4 sm:$0xff]  }
 0x401   : > { %v2241_v25 = vpack.c.bf16 %v2237_v54, %v2237_v54  ;;  %v2959_v49 = vpack.c.bf16 %v2955_v37, %v2887_v13 }
 0x402   : > { %15488 = vmatmul.mubr.msk.bf16.vlgmr.msra.gmra.mxu1 %vm2162_vm2, %v2240_v58  ;;  %v3255_v58 = vpack.c.bf16 %v3251_v19, %v3183_v61 }
 0x403   : > { %15492 = vmatpush3.bf16.msra.mxu1 %v17633_v48  ;;  %15493 = vmatprep.mubr.msk.bf16.mxu1 %vm16970_vm0, %v20281_v40  ;;  %v3259_v48 = vsel %vm1973_vm1, %v2958_v47, 0  ;;  %v3302_v55 = vsel %vm1973_vm1, %v2959_v49, 0 }
 0x404   : > { %15503 = vmatprep.subr.bf16.mxu1 %v20281_v40 }
 0x406   : > { %v16544_v10 = vpop.eup %16543 }
 0x407   : > { %v2238_v18 = vmul.f32 %v16544_v10, %v17762_v21  ;;  %v2923_v21 = vcombine.high %v2897_v46, %v2905_v0 }
 0x409   : > { %v2242_v42 = vpack.c.bf16 %v2238_v18, %v2238_v18  ;;  %v2937_v14 = vrot.slane %v2923_v21, %v17435_v27 }
 0x40a   : > { %15494 = vmatmul.mubr.msk.bf16.vlgmr.msra.gmra.mxu1 %vm2162_vm2, %v2241_v25 }
 0x40b   : > { %15500 = vmatmul.mubr.msk.bf16.vlgmr.msra.gmra.mxu0 %vm2162_vm2, %v2242_v42  ;;  %15519 = vmatprep.mubr.msk.bf16.mxu1 %vm16970_vm0, %v20281_v40  ;;  %v2956_v46 = vcombine.low %v2937_v14, %v2953_v63  ;;  %v2957_v43 = vcombine.high %v2937_v14, %v2953_v63 }
 0x40c   : > { %15524 = vmatpush3.bf16.xpose.msra.mxu0 %v3259_v48  ;;  %15525 = vmatprep.mubr.msk.bf16.mxu0 %vm16970_vm0, %v20281_v40 }
 0x40d   : > { %15529 = vmatprep.subr.bf16.mxu0 %v20281_v40  ;;  %v2960_v0 = vpack.c.bf16 %v2956_v46, %v2888_v28  ;;  %v2961_v16 = vpack.c.bf16 %v2957_v43, %v2889_v50  ;;  %15504 = vmatpush3.bf16.msra.mxu1 %v17840_v45  ;;  %v17864_v43 = vld [vmem:[#allocation8 + $0x4c] ss:$16 sps:$4 sm:$0xff]  }
 0x40e   : > { %15505 = vmatprep.subr.bf16.mxu1 %v20281_v40 }
 0x40f   : > { %v3345_v38 = vsel %vm1973_vm1, %v2960_v0, 0  ;;  %v3388_v5 = vsel %vm1973_vm1, %v2961_v16, 0 }
 0x411   : > { %15506 = vmatpush3.bf16.msra.mxu1 %v17843_v57 }
 0x412   : > { %15507 = vmatprep.subr.bf16.mxu1 %v20281_v40 }
 0x413   : > { %15526 = vmatmul.mubr.msk.bf16.vlgmr.msra.gmra.mxu0 %vm1973_vm1, %v17547_v39 }
 0x414   : > { %15530 = vmatpush3.bf16.xpose.msra.mxu0 %v3302_v55  ;;  %15531 = vmatprep.mubr.msk.bf16.mxu0 %vm16970_vm0, %v20281_v40 }
 0x415   : > { %15535 = vmatprep.subr.bf16.mxu0 %v20281_v40  ;;  %15508 = vmatpush3.bf16.msra.mxu1 %v17847_v3 }
 0x416   : > { %15509 = vmatprep.subr.bf16.mxu1 %v20281_v40 }
 0x419   : > { %15510 = vmatpush3.bf16.msra.mxu1 %v17851_v32 }
 0x41a   : > { %15511 = vmatprep.subr.bf16.mxu1 %v20281_v40 }
 0x41b   : > { %15532 = vmatmul.mubr.msk.bf16.vlgmr.msra.gmra.mxu0 %vm1973_vm1, %v17559_v8 }
 0x41c   : > { %15536 = vmatpush3.bf16.xpose.msra.mxu0 %v3345_v38  ;;  %15537 = vmatprep.mubr.msk.bf16.mxu0 %vm16970_vm0, %v20281_v40 }
 0x41d   : > { %15541 = vmatprep.subr.bf16.mxu0 %v20281_v40  ;;  %15512 = vmatpush3.bf16.msra.mxu1 %v17855_v22 }
 0x41e   : > { %15513 = vmatprep.subr.bf16.mxu1 %v20281_v40 }
 0x421   : > { %15514 = vmatpush3.bf16.msra.mxu1 %v17864_v43 }
 0x422   : > { %15515 = vmatprep.subr.bf16.mxu1 %v20281_v40 }
 0x423   : > { %15538 = vmatmul.mubr.msk.bf16.vlgmr.msra.gmra.mxu0 %vm1973_vm1, %v17580_v24 }
 0x424   : > { %15542 = vmatpush3.bf16.xpose.msra.mxu0 %v3388_v5  ;;  %15543 = vmatprep.mubr.msk.bf16.mxu0 %vm16970_vm0, %v20281_v40 }
 0x425   : > { %15553 = vmatprep.subr.bf16.mxu0 %v20281_v40 }
 0x42b   : > { %15544 = vmatmul.mubr.msk.bf16.vlgmr.msra.gmra.mxu0 %vm1973_vm1, %v17625_v31 }
 0x42c   : > { %15554 = vmatpush3.bf16.msra.mxu0 %v3255_v58  ;;  %15555 = vmatprep.mubr.msk.bf16.mxu0 %vm16970_vm0, %v20281_v40 }
 0x42d   : > { %15565 = vmatprep.subr.bf16.mxu0 %v20281_v40 }
 0x4ba   : > { %v2280_v17 = vpop.f32.mrf.mxu1 }
 0x4bc   : > { %v15483_v44 = vpop.f32.mrf.mxu1 }
 0x4be   : > { %v2283_v41 = vpop.f32.mrf.mxu1 }
 0x4c0   : > { %v15484_v54 = vpop.f32.mrf.mxu1 }
 0x4c2   : > { %v2323_v2 = vpop.f32.mrf.mxu1 }
 0x4c4   : > { %v15489_v10 = vpop.f32.mrf.mxu1 }
 0x4c6   : > { %v2326_v18 = vpop.f32.mrf.mxu1 }
 0x4c8   : > { %v15490_v47 = vpop.f32.mrf.mxu1 }
 0x4ca   : > { %v2366_v25 = vpop.f32.mrf.mxu1 }
 0x4cb   : > { %v2415_v42 = vcombine.low %v2280_v17, %v2366_v25  ;;  %v2416_v48 = vcombine.high %v2280_v17, %v2366_v25  ;;  %v2409_v13 = vpop.f32.mrf.mxu0 }
 0x4cc   : > { %v2431_v4 = vcombine.low %v2323_v2, %v2409_v13  ;;  %v2432_v23 = vcombine.high %v2323_v2, %v2409_v13  ;;  %v15495_v37 = vpop.f32.mrf.mxu1 }
 0x4cd   : > { %v2423_v21 = vrot.slane %v2415_v42, %v17430_v20  ;;  %v2430_v52 = vrot.slane %v2416_v48, %v17430_v20  ;;  %v15501_v49 = vpop.f32.mrf.mxu0 }
 0x4ce   : > { %v2439_v15 = vrot.slane %v2431_v4, %v17430_v20  ;;  %v2446_v36 = vrot.slane %v2432_v23, %v17430_v20  ;;  %v2369_v14 = vpop.f32.mrf.mxu1  ;;  %v17878_v23 = vld [vmem:[#allocation8 + $0x2c] ss:$16 sps:$4 sm:$0xff]  }
 0x4cf   : > { %v2412_v63 = vpop.f32.mrf.mxu0  ;;  %15516 = vmatpush3.bf16.msra.mxu1 %v17878_v23 }
 0x4d0   : > { %v2447_v55 = vcombine.low %v2423_v21, %v2439_v15  ;;  %v2448_v28 = vcombine.high %v2423_v21, %v2439_v15  ;;  %v2463_v46 = vcombine.low %v2430_v52, %v2446_v36  ;;  %v2464_v0 = vcombine.high %v2430_v52, %v2446_v36  ;;  %v15496_v38 = vpop.f32.mrf.mxu1  ;;  %15517 = vmatprep.subr.bf16.mxu1 %v20281_v40 }
 0x4d1   : > { %v15502_v50 = vpop.f32.mrf.mxu0 }
 0x4d2   : > { %v2455_v16 = vrot.slane %v2447_v55, %v17435_v27  ;;  %v2462_v5 = vrot.slane %v2448_v28, %v17435_v27  ;;  %v2471_v61 = vrot.slane %v2463_v46, %v17435_v27  ;;  %v2478_v19 = vrot.slane %v2464_v0, %v17435_v27 }
 0x4d3   : > { %v17870_v58 = vpop.f32.mrf.mxu0 }
 0x4d4   : > { %v2483_v17 = vcombine.low %v2455_v16, %v2462_v5  ;;  %v14783_v44 = vcombine.high %v2455_v16, %v2462_v5  ;;  %v2499_v41 = vcombine.low %v2471_v61, %v2478_v19  ;;  %v14784_v54 = vcombine.high %v2471_v61, %v2478_v19  ;;  %v17899_v19 = vld [vmem:[#allocation8 + $0xc] ss:$16 sps:$4 sm:$0xff]  }
 0x4d5   : > { %v15527_v2 = vpop.f32.mrf.mxu0  ;;  %15518 = vmatpush3.bf16.msra.mxu1 %v17899_v19 }
 0x4d6   : > { %v2490_v10 = vrot.slane %v2483_v17, %v17430_v20  ;;  %v2498_v18 = vrot.slane %v14783_v44, %v17430_v20  ;;  %v2506_v47 = vrot.slane %v2499_v41, %v17430_v20  ;;  %v2514_v25 = vrot.slane %v14784_v54, %v17430_v20  ;;  %15547 = vmatprep.subr.bf16.mxu1 %v20281_v40 }
 0x4d7   : > { %v3298_v42 = vpop.f32.mrf.mxu0 }
 0x4d8   : > { %v2515_v48 = vcombine.low %v2490_v10, %v2498_v18  ;;  %v2531_v13 = vcombine.low %v2506_v47, %v2514_v25  ;;  %v2516_v4 = vcombine.high %v2490_v10, %v2498_v18  ;;  %v2532_v21 = vcombine.high %v2506_v47, %v2514_v25  ;;  %v1302_v47 = vld [vmem:[%s17329_s10 + $0x30] sm:$0xff] }
 0x4d9   : > { %v15528_v37 = vpop.f32.mrf.mxu0 }
 0x4da   : > { %v17881_v52 = vrot.slane %v2515_v48, %v17435_v27  ;;  %v17884_v49 = vrot.slane %v2531_v13, %v17435_v27  ;;  %v2530_v15 = vrot.slane %v2516_v4, %v17435_v27  ;;  %v2546_v14 = vrot.slane %v2532_v21, %v17435_v27  ;;  %v1303_v4 = vld [vmem:[%s17329_s10 + $0x38] sm:$0xff] }
 0x4db   : > { %v3338_v36 = vpop.f32.mrf.mxu0  ;;  %v17914_v21 = vmul.f32 %v17660_v7, %v17394_v60 }
 0x4dc   : > { %v3431_v63 = vmul.f32 0.088388346, %v3338_v36  ;;  %v2548_v55 = vcombine.high %v17881_v52, %v17884_v49  ;;  %v2547_v28 = vcombine.low %v17881_v52, %v17884_v49  ;;  %v2549_v0 = vcombine.low %v2530_v15, %v2546_v14 }
 0x4dd   : > { %v15533_v46 = vpop.f32.mrf.mxu0  ;;  %v2550_v41 = vcombine.high %v2530_v15, %v2546_v14  ;;  %v1284_v14 = vadd.f32 %v17400_v62, %v17385_v56 }
 0x4de   : > { %v3441_v38 = vsel %vm2162_vm2, %v3431_v63, -inf  ;;  %2552 = vrot.lane.b32.xlu1 %v2548_v55, %s16974_s19  ;;  %2556 = vrot.lane.b32.xlu0 %v2549_v0, %s16972_s18 }
 0x4df   : > { %v3442_v50 = vrot.slane %v3441_v38, 4  ;;  %v3341_v16 = vpop.f32.mrf.mxu0  ;;  %v17922_v0 = vmul.f32 %v17649_v59, %v1284_v14 }
 0x4e1   : > { %v3443_v5 = vmax.f32 %v3441_v38, %v3442_v50  ;;  %v15534_v61 = vpop.f32.mrf.mxu0  ;;  %v3430_v50 = vmul.f32 0.088388346, %v17870_v58 }
 0x4e2   : > { %3891 = vrot.lane.b32.xlu1 %v17652_v1, %s16972_s18  ;;  %3889 = vrot.lane.b32.xlu0 %v17663_v12, %s16972_s18 }
 0x4e3   : > { %v3444_v17 = vrot.slane %v3443_v5, 2  ;;  %v3381_v44 = vpop.f32.mrf.mxu0 }
 0x4e5   : > { %v3445_v54 = vmax.f32 %v3443_v5, %v3444_v17  ;;  %v15539_v2 = vpop.f32.mrf.mxu0  ;;  %v3434_v5 = vsel %vm2162_vm2, %v3430_v50, -inf }
 0x4e6   : > { %2560 = vrot.lane.b32.xlu1 %v2550_v41, %s16973_s15  ;;  %3895 = vrot.lane.b32.xlu0 %v17663_v12, %s16974_s19  ;;  %v3435_v2 = vrot.slane %v3434_v5, 4 }
 0x4e7   : > { %v3446_v10 = vrot.slane %v3445_v54, 1  ;;  %v3384_v18 = vpop.f32.mrf.mxu0 }
 0x4e8   : > { %v3436_v58 = vmax.f32 %v3434_v5, %v3435_v2 }
 0x4e9   : > { %v3447_v25 = vmax.f32 %v3445_v54, %v3446_v10  ;;  %v15540_v42 = vpop.f32.mrf.mxu0 }
 0x4ea   : > { %3897 = vrot.lane.b32.xlu1 %v17652_v1, %s16974_s19  ;;  %1336 = vperm.xlu0 %16391, %v1302_v47   ;;  %v3432_v42 = vmul.f32 0.088388346, %v3381_v44 }
 0x4eb   : > { %v3463_v48 = vsub.f32 %v3431_v63, %v3447_v25  ;;  %v3424_v13 = vpop.f32.mrf.mxu0 }
 0x4ec   : > { %v3433_v37 = vmul.f32 0.088388346, %v3424_v13 }
 0x4ed   : > { %v3468_v15 = vmul.f32 1.442695, %v3463_v48  ;;  %v15545_v36 = vpop.f32.mrf.mxu0  ;;  %v3437_v48 = vrot.slane %v3436_v58, 2 }
 0x4ee   : > { %v3455_v55 = vsel %vm2162_vm2, %v3433_v37, -inf  ;;  %1341 = vperm.xlu1 %16392, %v1303_v4   ;;  %4179 = vrot.lane.b32.xlu0 %v17914_v21, %s16973_s15 }
 0x4ef   : > { %16545 = vpow2.f32 %v3468_v15  ;;  %v3456_v46 = vrot.slane %v3455_v55, 4  ;;  %v3427_v63 = vpop.f32.mrf.mxu0  ;;  %v3448_v15 = vsel %vm2162_vm2, %v3432_v42, -inf  ;;  %v3438_v36 = vmax.f32 %v3436_v58, %v3437_v48 }
 0x4f1   : > { %v3457_v38 = vmax.f32 %v3455_v55, %v3456_v46  ;;  %v15546_v60 = vpop.f32.mrf.mxu0  ;;  %v3439_v46 = vrot.slane %v3438_v36, 1 }
 0x4f2   : > { %4181 = vrot.lane.b32.xlu1 %v17922_v0, %s16973_s15  ;;  %4185 = vrot.lane.b32.xlu0 %v17914_v21, %s16972_s18 }
 0x4f3   : > { %v3458_v7 = vrot.slane %v3457_v38, 2 }
 0x4f5   : > { %v3459_v62 = vmax.f32 %v3457_v38, %v3458_v7  ;;  %v3440_v7 = vmax.f32 %v3438_v36, %v3439_v46 }
 0x4f6   : > { %4187 = vrot.lane.b32.xlu1 %v17922_v0, %s16972_s18  ;;  %4191 = vrot.lane.b32.xlu0 %v17914_v21, %s16974_s19 }
 0x4f7   : > { %v3460_v16 = vrot.slane %v3459_v62, 1  ;;  %v3462_v44 = vsub.f32 %v3430_v50, %v3440_v7 }
 0x4f9   : > { %v3461_v59 = vmax.f32 %v3459_v62, %v3460_v16 }
 0x4fa   : > { %4193 = vrot.lane.b32.xlu1 %v17922_v0, %s16974_s19 }
 0x4fb   : > { %v3465_v61 = vsub.f32 %v3433_v37, %v3461_v59  ;;  %v3449_v37 = vrot.slane %v3448_v15, 4 }
 0x4fc   : > { %v16546_v17 = vpop.eup %16545 }
 0x4fd   : > { %v3481_v41 = vsel %vm2162_vm2, %v16546_v17, 0.0  ;;  %v3472_v54 = vmul.f32 1.442695, %v3465_v61  ;;  %v3450_v38 = vmax.f32 %v3448_v15, %v3449_v37 }
 0x4fe   : > { %v3482_v10 = vrot.slane %v3481_v41, 4 }
 0x4ff   : > { %16547 = vpow2.f32 %v3472_v54  ;;  %v3451_v16 = vrot.slane %v3450_v38, 2 }
 0x500   : > { %v3483_v18 = vadd.f32 %v3482_v10, %v3481_v41  ;;  %v3466_v10 = vmul.f32 1.442695, %v3462_v44 }
 0x501   : > { %v3452_v41 = vmax.f32 %v3450_v38, %v3451_v16  ;;  %v3886_v16 = vpop.permute.xlu1 %3885 }
 0x502   : > { %v3484_v47 = vrot.slane %v3483_v18, 2 }
 0x503   : > { %v3453_v58 = vrot.slane %v3452_v41, 1 }
 0x504   : > { %v3485_v25 = vadd.f32 %v3484_v47, %v3483_v18 }
 0x505   : > { %v3454_v50 = vmax.f32 %v3452_v41, %v3453_v58 }
 0x506   : > { %v3486_v13 = vrot.slane %v3485_v25, 1 }
 0x507   : > { %v3464_v47 = vsub.f32 %v3432_v42, %v3454_v50 }
 0x508   : > { %v3487_v4 = vadd.f32 %v3486_v13, %v3485_v25 }
 0x509   : > { %v3470_v48 = vmul.f32 1.442695, %v3464_v47 }
 0x50a   : > { %16549 = vrcp.f32 %v3487_v4 }
 0x50c   : > { %v16548_v14 = vpop.eup %16547 }
 0x50d   : > { %v3495_v55 = vsel %vm2162_vm2, %v16548_v14, 0.0 }
 0x50e   : > { %v3496_v63 = vrot.slane %v3495_v55, 4 }
 0x510   : > { %v3497_v60 = vadd.f32 %v3496_v63, %v3495_v55 }
 0x512   : > { %v3498_v62 = vrot.slane %v3497_v60, 2 }
 0x514   : > { %v3499_v59 = vadd.f32 %v3498_v62, %v3497_v60 }
 0x516   : > { %v3500_v5 = vrot.slane %v3499_v59, 1 }
 0x517   : > { %v16550_v61 = vpop.eup %16549 }
 0x518   : > { %v3501_v54 = vadd.f32 %v3500_v5, %v3499_v59  ;;  %v3507_v2 = vmul.f32 %v16550_v61, %v16546_v17  ;;  %v3884_v59 = vpop.permute.xlu0 %3883 }
 0x51a   : > { %16551 = vrcp.f32 %v3501_v54  ;;  %v3511_v18 = vpack.c.bf16 %v3507_v2, %v3507_v2 }
 0x51b   : > { %16553 = vpow2.f32 %v3466_v10 }
 0x51c   : > { %15556 = vmatmul.mubr.msk.bf16.vlgmr.msra.gmra.mxu0 %vm2162_vm2, %v3511_v18  ;;  %16555 = vpow2.f32 %v3470_v48 }
 0x51d   : > { %15566 = vmatpush3.bf16.msra.mxu0 %v17715_v26  ;;  %15567 = vmatprep.mubr.msk.bf16.mxu0 %vm16970_vm0, %v20281_v40 }
 0x51e   : > { %15591 = vmatprep.subr.bf16.mxu0 %v20281_v40 }
 0x527   : > { %v16552_v25 = vpop.eup %16551 }
 0x528   : > { %v3509_v13 = vmul.f32 %v16552_v25, %v16548_v14  ;;  %v16554_v4 = vpop.eup %16553 }
 0x529   : > { %v3474_v26 = vsel %vm2162_vm2, %v16554_v4, 0.0  ;;  %v17948_v37 = vpop.eup %16555 }
 0x52a   : > { %v3513_v17 = vpack.c.bf16 %v3509_v13, %v3509_v13  ;;  %v3475_v15 = vrot.slane %v3474_v26, 4  ;;  %v3488_v42 = vsel %vm2162_vm2, %v17948_v37, 0.0 }
 0x52b   : > { %v3489_v14 = vrot.slane %v3488_v42, 4 }
 0x52c   : > { %15568 = vmatmul.mubr.msk.bf16.vlgmr.msra.gmra.mxu0 %vm2162_vm2, %v3513_v17  ;;  %v3476_v36 = vadd.f32 %v3475_v15, %v3474_v26 }
 0x52d   : > { %15593 = vmatprep.mubr.msk.bf16.mxu0 %vm16970_vm0, %v20281_v40  ;;  %v3490_v38 = vadd.f32 %v3489_v14, %v3488_v42 }
 0x52e   : > { %v3477_v55 = vrot.slane %v3476_v36, 2 }
 0x52f   : > { %v3491_v7 = vrot.slane %v3490_v38, 2 }
 0x530   : > { %v3478_v46 = vadd.f32 %v3477_v55, %v3476_v36 }
 0x531   : > { %v3492_v62 = vadd.f32 %v3491_v7, %v3490_v38 }
 0x532   : > { %v3479_v63 = vrot.slane %v3478_v46, 1 }
 0x533   : > { %v3493_v44 = vrot.slane %v3492_v62, 1 }
 0x534   : > { %v3480_v60 = vadd.f32 %v3479_v63, %v3478_v46 }
 0x535   : > { %v3494_v41 = vadd.f32 %v3493_v44, %v3492_v62 }
 0x536   : > { %16557 = vrcp.f32 %v3480_v60 }
 0x537   : > { %16559 = vrcp.f32 %v3494_v41 }
 0x543   : > { %v16558_v18 = vpop.eup %16557 }
 0x544   : > { %v3506_v52 = vmul.f32 %v16558_v18, %v16554_v4 }
 0x546   : > { %v3510_v60 = vpack.c.bf16 %v3506_v52, %v3506_v52 }
 0x550   : > { %v2553_v5 = vpop.permute.xlu1 %2552  ;;  %v2557_v61 = vpop.permute.xlu0 %2556 }
 0x551   : > { %v2563_v2 = vsel %vm1973_vm1, %v2547_v28, %v2553_v5 }
 0x552   : > { %v2565_v47 = vsel %vm2564_vm3, %v2563_v2, %v2557_v61 }
 0x554   : > { %v3892_v54 = vpop.permute.xlu1 %3891  ;;  %v3890_v10 = vpop.permute.xlu0 %3889 }
 0x555   : > { %v3901_v58 = vcombine.low %v17663_v12, %v3890_v10  ;;  %v3902_v50 = vcombine.high %v17663_v12, %v3890_v10  ;;  %v3969_v48 = vcombine.low %v17652_v1, %v3892_v54  ;;  %v3970_v36 = vcombine.high %v17652_v1, %v3892_v54 }
 0x557   : > { %v3909_v15 = vrot.slane %v3901_v58, %v17430_v20  ;;  %v3916_v12 = vrot.slane %v3902_v50, %v17430_v20  ;;  %v3977_v4 = vrot.slane %v3969_v48, %v17430_v20  ;;  %v3984_v1 = vrot.slane %v3970_v36, %v17430_v20 }
 0x558   : > { %v2561_v25 = vpop.permute.xlu1 %2560  ;;  %v3896_v13 = vpop.permute.xlu0 %3895 }
 0x559   : > { %v2567_v17 = vsel %vm2566_vm4, %v2565_v47, %v2561_v25  ;;  %v3917_v49 = vcombine.low %v3884_v59, %v3896_v13  ;;  %v3918_v28 = vcombine.high %v3884_v59, %v3896_v13  ;;  %v16560_v13 = vpop.eup %16559 }
 0x55a   : > { %v17962_v26 = vadd.f32 %v2567_v17, %v17369_v51 }
 0x55b   : > { %v3925_v55 = vrot.slane %v3917_v49, %v17430_v20  ;;  %v3932_v42 = vrot.slane %v3918_v28, %v17430_v20 }
 0x55c   : > { %v2569_v46 = vpack.c.bf16 %v17962_v26, %v17962_v26  ;;  %v3898_v14 = vpop.permute.xlu1 %3897 }
 0x55d   : > { %v3985_v63 = vcombine.low %v3886_v16, %v3898_v14  ;;  %v3986_v38 = vcombine.high %v3886_v16, %v3898_v14  ;;  %v3933_v7 = vcombine.low %v3909_v15, %v3925_v55  ;;  %v3934_v62 = vcombine.high %v3909_v15, %v3925_v55 }
 0x55e   : > { %v3949_v59 = vcombine.low %v3916_v12, %v3932_v42  ;;  %v3950_v44 = vcombine.high %v3916_v12, %v3932_v42  ;;  %15520 = vmatmul.mubr.bf16.vlgmr.msra.gmra.mxu1 %v2569_v46 }
 0x55f   : > { %v3993_v5 = vrot.slane %v3985_v63, %v17430_v20  ;;  %v4000_v61 = vrot.slane %v3986_v38, %v17430_v20  ;;  %15548 = vmatpush3.bf16.msra.mxu1 %v17717_v29  ;;  %15549 = vmatprep.mubr.msk.bf16.mxu1 %vm16970_vm0, %v20281_v40  ;;  %v3941_v41 = vrot.slane %v3933_v7, %v17435_v27 }
 0x560   : > { %v3948_v16 = vrot.slane %v3934_v62, %v17435_v27  ;;  %v3957_v54 = vrot.slane %v3949_v59, %v17435_v27  ;;  %v3964_v2 = vrot.slane %v3950_v44, %v17435_v27  ;;  %15559 = vmatprep.subr.bf16.mxu1 %v20281_v40  ;;  %v3508_v38 = vmul.f32 %v16560_v13, %v17948_v37 }
 0x561   : > { %v4001_v10 = vcombine.low %v3977_v4, %v3993_v5  ;;  %v4002_v18 = vcombine.high %v3977_v4, %v3993_v5  ;;  %v4017_v58 = vcombine.low %v3984_v1, %v4000_v61  ;;  %v4018_v50 = vcombine.high %v3984_v1, %v4000_v61 }
 0x562   : > { %v4037_v47 = vcombine.low %v3941_v41, %v3948_v16  ;;  %v14812_v25 = vcombine.high %v3941_v41, %v3948_v16  ;;  %v4053_v29 = vcombine.low %v3957_v54, %v3964_v2  ;;  %v14813_v48 = vcombine.high %v3957_v54, %v3964_v2 }
 0x563   : > { %v4009_v17 = vrot.slane %v4001_v10, %v17435_v27  ;;  %v4016_v52 = vrot.slane %v4002_v18, %v17435_v27  ;;  %v4025_v49 = vrot.slane %v4017_v58, %v17435_v27  ;;  %v4032_v28 = vrot.slane %v4018_v50, %v17435_v27 }
 0x564   : > { %v4044_v15 = vrot.slane %v4037_v47, %v17430_v20  ;;  %v4052_v36 = vrot.slane %v14812_v25, %v17430_v20  ;;  %v4060_v12 = vrot.slane %v4053_v29, %v17430_v20  ;;  %v4068_v55 = vrot.slane %v14813_v48, %v17430_v20 }
 0x565   : > { %v4105_v42 = vcombine.low %v4009_v17, %v4016_v52  ;;  %v14814_v46 = vcombine.high %v4009_v17, %v4016_v52  ;;  %v4121_v14 = vcombine.low %v4025_v49, %v4032_v28  ;;  %v14815_v4 = vcombine.high %v4025_v49, %v4032_v28  ;;  %v17991_v63 = vpop.permute.xlu0 %1336 }
 0x566   : > { %15550 = vmatmul.mubr.msk.bf16.vlgmr.msra.gmra.mxu1 %vm2162_vm2, %v3510_v60  ;;  %v4069_v7 = vcombine.low %v4044_v15, %v4052_v36  ;;  %v17997_v62 = vmul.f32 %v17991_v63, %v17407_v6  ;;  %v4085_v59 = vcombine.low %v4060_v12, %v4068_v55  ;;  %v3512_v61 = vpack.c.bf16 %v3508_v38, %v3508_v38 }
 0x567   : > { %15560 = vmatpush3.bf16.msra.mxu1 %v17719_v30  ;;  %15561 = vmatprep.mubr.msk.bf16.mxu1 %vm16970_vm0, %v20281_v40  ;;  %v4112_v44 = vrot.slane %v4105_v42, %v17430_v20  ;;  %v4120_v1 = vrot.slane %v14814_v46, %v17430_v20  ;;  %v4128_v5 = vrot.slane %v4121_v14, %v17430_v20 }
 0x568   : > { %15571 = vmatprep.subr.bf16.mxu1 %v20281_v40  ;;  %5098 = vrot.lane.b32.xlu1 %v17997_v62, %s16973_s15  ;;  %v4136_v6 = vrot.slane %v14815_v4, %v17430_v20  ;;  %v4077_v16 = vrot.slane %v4069_v7, %v17435_v27  ;;  %v4093_v54 = vrot.slane %v4085_v59, %v17435_v27 }
 0x569   : > { %v18008_v37 = vpop.permute.xlu1 %1341  ;;  %v4180_v30 = vpop.permute.xlu0 %4179  ;;  %v4137_v41 = vcombine.low %v4112_v44, %v4120_v1  ;;  %v4138_v10 = vcombine.high %v4112_v44, %v4120_v1  ;;  %v4070_v58 = vcombine.high %v4044_v15, %v4052_v36  ;;  %v4086_v50 = vcombine.high %v4060_v12, %v4068_v55 }
 0x56a   : > { %v18013_v60 = vmul.f32 %v18008_v37, %v17417_v11  ;;  %v4153_v2 = vcombine.low %v4128_v5, %v4136_v6  ;;  %v4154_v47 = vcombine.high %v4128_v5, %v4136_v6  ;;  %v4101_v17 = vcombine.low %v4077_v16, %v4093_v54 }
 0x56b   : > { %v4145_v18 = vrot.slane %v4137_v41, %v17435_v27  ;;  %v18023_v48 = vrot.slane %v4138_v10, %v17435_v27  ;;  %v4102_v28 = vcombine.high %v4077_v16, %v4093_v54  ;;  %v18030_v15 = vrot.slane %v4070_v58, %v17435_v27 }
 0x56c   : > { %5100 = vrot.lane.b32.xlu0 %v18013_v60, %s16973_s15  ;;  %v4161_v11 = vrot.slane %v4153_v2, %v17435_v27  ;;  %v18026_v13 = vrot.slane %v4154_v47, %v17435_v27  ;;  %v18033_v36 = vrot.slane %v4086_v50, %v17435_v27 }
 0x56d   : > { %v4182_v25 = vpop.permute.xlu1 %4181  ;;  %v4186_v29 = vpop.permute.xlu0 %4185 }
 0x56e   : > { %15562 = vmatmul.mubr.msk.bf16.vlgmr.msra.gmra.mxu1 %vm2162_vm2, %v3512_v61  ;;  %v4169_v52 = vcombine.low %v4145_v18, %v4161_v11  ;;  %v4170_v49 = vcombine.high %v4145_v18, %v4161_v11  ;;  %v4197_v12 = vcombine.low %v17914_v21, %v4186_v29  ;;  %v4198_v55 = vcombine.high %v17914_v21, %v4186_v29 }
 0x56f   : > { %15572 = vmatpush3.bf16.msra.mxu1 %v17840_v45  ;;  %15587 = vmatprep.mubr.msk.bf16.mxu1 %vm16970_vm0, %v20281_v40  ;;  %v4171_v4 = vcombine.low %v18023_v48, %v18026_v13  ;;  %v4103_v21 = vcombine.low %v18030_v15, %v18033_v36 }
 0x570   : > { %15573 = vmatprep.subr.bf16.mxu1 %v20281_v40  ;;  %v4173_v46 = vpack.c.bf16 %v4169_v52, %v4101_v17  ;;  %v4174_v45 = vpack.c.bf16 %v4170_v49, %v4102_v28  ;;  %v4205_v5 = vrot.slane %v4197_v12, %v17430_v20  ;;  %v4212_v6 = vrot.slane %v4198_v55, %v17430_v20 }
 0x571   : > { %v4188_v42 = vpop.permute.xlu1 %4187  ;;  %v4192_v14 = vpop.permute.xlu0 %4191  ;;  %v4175_v54 = vpack.c.bf16 %v4171_v4, %v4103_v21 }
 0x572   : > { %v4213_v38 = vcombine.low %v4180_v30, %v4192_v14  ;;  %v4214_v7 = vcombine.high %v4180_v30, %v4192_v14  ;;  %v4474_v59 = vsel %vm1973_vm1, %v4173_v46, 0  ;;  %v4265_v44 = vcombine.low %v17922_v0, %v4188_v42 }
 0x573   : > { %15574 = vmatpush3.bf16.msra.mxu1 %v17843_v57  ;;  %v4266_v1 = vcombine.high %v17922_v0, %v4188_v42  ;;  %15592 = vmatpush3.bf16.xpose.msra.mxu0 %v4474_v59  ;;  %v4517_v0 = vsel %vm1973_vm1, %v4174_v45, 0 }
 0x574   : > { %15575 = vmatprep.subr.bf16.mxu1 %v20281_v40  ;;  %v4221_v30 = vrot.slane %v4213_v38, %v17430_v20  ;;  %v4228_v61 = vrot.slane %v4214_v7, %v17430_v20  ;;  %15597 = vmatprep.subr.bf16.mxu0 %v20281_v40  ;;  %v4273_v50 = vrot.slane %v4265_v44, %v17430_v20 }
 0x575   : > { %v4194_v41 = vpop.permute.xlu1 %4193  ;;  %v4280_v47 = vrot.slane %v4266_v1, %v17430_v20 }
 0x576   : > { %v4281_v57 = vcombine.low %v4182_v25, %v4194_v41  ;;  %v4282_v16 = vcombine.high %v4182_v25, %v4194_v41  ;;  %v4229_v2 = vcombine.low %v4205_v5, %v4221_v30  ;;  %v4230_v10 = vcombine.high %v4205_v5, %v4221_v30 }
 0x577   : > { %v4245_v18 = vcombine.low %v4212_v6, %v4228_v61  ;;  %v4246_v58 = vcombine.high %v4212_v6, %v4228_v61  ;;  %15576 = vmatpush3.bf16.msra.mxu1 %v17847_v3 }
 0x578   : > { %v4289_v11 = vrot.slane %v4281_v57, %v17430_v20  ;;  %v4296_v29 = vrot.slane %v4282_v16, %v17430_v20  ;;  %15577 = vmatprep.subr.bf16.mxu1 %v20281_v40  ;;  %v4237_v25 = vrot.slane %v4229_v2, %v17435_v27  ;;  %v4244_v17 = vrot.slane %v4230_v10, %v17435_v27 }
 0x579   : > { %v4253_v52 = vrot.slane %v4245_v18, %v17435_v27  ;;  %v4260_v49 = vrot.slane %v4246_v58, %v17435_v27 }
 0x57a   : > { %v4297_v28 = vcombine.low %v4273_v50, %v4289_v11  ;;  %v4298_v3 = vcombine.high %v4273_v50, %v4289_v11  ;;  %v4313_v12 = vcombine.low %v4280_v47, %v4296_v29  ;;  %v4314_v55 = vcombine.high %v4280_v47, %v4296_v29  ;;  %15594 = vmatmul.mubr.msk.bf16.vlgmr.msra.gmra.mxu0 %vm1973_vm1, %v17547_v39 }
 0x57b   : > { %v4333_v42 = vcombine.low %v4237_v25, %v4244_v17  ;;  %v14816_v46 = vcombine.high %v4237_v25, %v4244_v17  ;;  %v4349_v14 = vcombine.low %v4253_v52, %v4260_v49  ;;  %v14817_v45 = vcombine.high %v4253_v52, %v4260_v49  ;;  %15598 = vmatpush3.bf16.xpose.msra.mxu0 %v4517_v0 }
 0x57c   : > { %v4305_v4 = vrot.slane %v4297_v28, %v17435_v27  ;;  %v4312_v38 = vrot.slane %v4298_v3, %v17435_v27  ;;  %v4321_v7 = vrot.slane %v4313_v12, %v17435_v27  ;;  %v4328_v59 = vrot.slane %v4314_v55, %v17435_v27  ;;  %15599 = vmatprep.mubr.msk.bf16.mxu0 %vm16970_vm0, %v20281_v40 }
 0x57d   : > { %v4340_v44 = vrot.slane %v4333_v42, %v17430_v20  ;;  %v4348_v1 = vrot.slane %v14816_v46, %v17430_v20  ;;  %v4356_v21 = vrot.slane %v4349_v14, %v17430_v20  ;;  %v4364_v5 = vrot.slane %v14817_v45, %v17430_v20  ;;  %15603 = vmatprep.subr.bf16.mxu0 %v20281_v40 }
 0x57e   : > { %v4401_v6 = vcombine.low %v4305_v4, %v4312_v38  ;;  %v14818_v30 = vcombine.high %v4305_v4, %v4312_v38  ;;  %v4417_v61 = vcombine.low %v4321_v7, %v4328_v59  ;;  %v14819_v41 = vcombine.high %v4321_v7, %v4328_v59  ;;  %15578 = vmatpush3.bf16.msra.mxu1 %v17851_v32 }
 0x57f   : > { %v4365_v57 = vcombine.low %v4340_v44, %v4348_v1  ;;  %v4381_v16 = vcombine.low %v4356_v21, %v4364_v5  ;;  %v4366_v0 = vcombine.high %v4340_v44, %v4348_v1  ;;  %v4382_v2 = vcombine.high %v4356_v21, %v4364_v5  ;;  %15579 = vmatprep.subr.bf16.mxu1 %v20281_v40 }
 0x580   : > { %v4408_v10 = vrot.slane %v4401_v6, %v17430_v20  ;;  %v4416_v18 = vrot.slane %v14818_v30, %v17430_v20  ;;  %v4424_v58 = vrot.slane %v4417_v61, %v17430_v20  ;;  %v4432_v50 = vrot.slane %v14819_v41, %v17430_v20 }
 0x581   : > { %v4373_v47 = vrot.slane %v4365_v57, %v17435_v27  ;;  %v4389_v11 = vrot.slane %v4381_v16, %v17435_v27  ;;  %v4380_v29 = vrot.slane %v4366_v0, %v17435_v27  ;;  %v4396_v25 = vrot.slane %v4382_v2, %v17435_v27 }
 0x582   : > { %v4433_v17 = vcombine.low %v4408_v10, %v4416_v18  ;;  %v4449_v32 = vcombine.low %v4424_v58, %v4432_v50  ;;  %v4434_v52 = vcombine.high %v4408_v10, %v4416_v18  ;;  %v4450_v49 = vcombine.high %v4424_v58, %v4432_v50  ;;  %15600 = vmatmul.mubr.msk.bf16.vlgmr.msra.gmra.mxu0 %vm1973_vm1, %v17559_v8 }
 0x583   : > { %v4560_v28 = vsel %vm1973_vm1, %v4175_v54, 0  ;;  %v4172_v3 = vcombine.high %v18023_v48, %v18026_v13  ;;  %v4400_v12 = vcombine.high %v4380_v29, %v4396_v25  ;;  %15580 = vmatpush3.bf16.msra.mxu1 %v17855_v22  ;;  %v4397_v55 = vcombine.low %v4373_v47, %v4389_v11  ;;  %15605 = vmatprep.mubr.msk.bf16.mxu0 %vm16970_vm0, %v20281_v40 }
 0x584   : > { %15604 = vmatpush3.bf16.xpose.msra.mxu0 %v4560_v28  ;;  %v4441_v42 = vrot.slane %v4433_v17, %v17435_v27  ;;  %v4457_v46 = vrot.slane %v4449_v32, %v17435_v27  ;;  %v4448_v14 = vrot.slane %v4434_v52, %v17435_v27  ;;  %v4104_v54 = vcombine.high %v18030_v15, %v18033_v36 }
 0x585   : > { %15609 = vmatprep.subr.bf16.mxu0 %v20281_v40  ;;  %v4464_v48 = vrot.slane %v4450_v49, %v17435_v27  ;;  %15581 = vmatprep.subr.bf16.mxu1 %v20281_v40  ;;  %v4399_v22 = vcombine.low %v4380_v29, %v4396_v25  ;;  %v4398_v36 = vcombine.high %v4373_v47, %v4389_v11 }
 0x586   : > { %v4465_v13 = vcombine.low %v4441_v42, %v4457_v46  ;;  %v4176_v45 = vpack.c.bf16 %v4172_v3, %v4104_v54 }
 0x587   : > { %v4468_v4 = vcombine.high %v4448_v14, %v4464_v48  ;;  %15582 = vmatpush3.bf16.msra.mxu1 %v17864_v43  ;;  %v4467_v38 = vcombine.low %v4448_v14, %v4464_v48  ;;  %v4466_v43 = vcombine.high %v4441_v42, %v4457_v46 }
 0x588   : > { %15583 = vmatprep.subr.bf16.mxu1 %v20281_v40  ;;  %v18106_v7 = vpack.c.bf16 %v4465_v13, %v4397_v55  ;;  %v4603_v15 = vsel %vm1973_vm1, %v4176_v45, 0 }
 0x589   : > { %v18108_v59 = vpack.c.bf16 %v4468_v4, %v4400_v12  ;;  %v18110_v44 = vpack.c.bf16 %v4467_v38, %v4399_v22  ;;  %v4470_v1 = vpack.c.bf16 %v4466_v43, %v4398_v36 }
 0x58b   : > { %15606 = vmatmul.mubr.msk.bf16.vlgmr.msra.gmra.mxu0 %vm1973_vm1, %v17580_v24  ;;  %15584 = vmatpush3.bf16.msra.mxu1 %v17878_v23 }
 0x58c   : > { %15610 = vmatpush3.bf16.xpose.msra.mxu0 %v4603_v15  ;;  %15611 = vmatprep.mubr.msk.bf16.mxu0 %vm16970_vm0, %v20281_v40 }
 0x58d   : > { %15621 = vmatprep.subr.bf16.mxu0 %v20281_v40  ;;  %15585 = vmatprep.subr.bf16.mxu1 %v20281_v40 }
 0x58f   : > { %15586 = vmatpush3.bf16.msra.mxu1 %v17899_v19 }
 0x590   : > { %15615 = vmatprep.subr.bf16.mxu1 %v20281_v40 }
 0x593   : > { %15612 = vmatmul.mubr.msk.bf16.vlgmr.msra.gmra.mxu0 %vm1973_vm1, %v17625_v31 }
 0x594   : > { %15622 = vmatpush3.bf16.msra.mxu0 %v4470_v1  ;;  %15623 = vmatprep.mubr.msk.bf16.mxu0 %vm16970_vm0, %v20281_v40 }
 0x595   : > { %15633 = vmatprep.subr.bf16.mxu0 %v20281_v40 }
 0x5dc   : > { %v3594_v23 = vpop.f32.mrf.mxu0 }
 0x5de   : > { %v15557_v21 = vpop.f32.mrf.mxu0 }
 0x5e0   : > { %v3597_v5 = vpop.f32.mrf.mxu0 }
 0x5e2   : > { %v15558_v6 = vpop.f32.mrf.mxu0 }
 0x5ec   : > { %v3680_v30 = vpop.f32.mrf.mxu0 }
 0x5ed   : > { %v3702_v61 = vcombine.low %v3594_v23, %v3680_v30  ;;  %v3703_v19 = vcombine.high %v3594_v23, %v3680_v30 }
 0x5ee   : > { %v15569_v41 = vpop.f32.mrf.mxu0 }
 0x5ef   : > { %v3710_v52 = vrot.slane %v3702_v61, %v17430_v20  ;;  %v3717_v49 = vrot.slane %v3703_v19, %v17430_v20 }
 0x5f0   : > { %v3683_v57 = vpop.f32.mrf.mxu0 }
 0x5f2   : > { %v15570_v16 = vpop.f32.mrf.mxu0 }
 0x61e   : > { %v18127_v0 = vpop.f32.mrf.mxu1 }
 0x620   : > { %v15521_v2 = vpop.f32.mrf.mxu1 }
 0x622   : > { %v2661_v10 = vpop.f32.mrf.mxu1 }
 0x624   : > { %v15522_v18 = vpop.f32.mrf.mxu1 }
 0x626   : > { %v3551_v58 = vpop.f32.mrf.mxu1 }
 0x628   : > { %v15551_v50 = vpop.f32.mrf.mxu1 }
 0x62a   : > { %v3554_v47 = vpop.f32.mrf.mxu1 }
 0x62c   : > { %v15552_v11 = vpop.f32.mrf.mxu1 }
 0x62e   : > { %v3637_v29 = vpop.f32.mrf.mxu1 }
 0x62f   : > { %v3686_v25 = vcombine.low %v3551_v58, %v3637_v29  ;;  %v3687_v17 = vcombine.high %v3551_v58, %v3637_v29 }
 0x630   : > { %v15563_v32 = vpop.f32.mrf.mxu1 }
 0x631   : > { %v3694_v28 = vrot.slane %v3686_v25, %v17430_v20  ;;  %v3701_v3 = vrot.slane %v3687_v17, %v17430_v20 }
 0x632   : > { %v3640_v12 = vpop.f32.mrf.mxu1 }
 0x633   : > { %v3718_v55 = vcombine.low %v3694_v28, %v3710_v52  ;;  %v3719_v42 = vcombine.high %v3694_v28, %v3710_v52  ;;  %v3734_v46 = vcombine.low %v3701_v3, %v3717_v49  ;;  %v3735_v14 = vcombine.high %v3701_v3, %v3717_v49 }
 0x634   : > { %v15564_v54 = vpop.f32.mrf.mxu1 }
 0x635   : > { %v3726_v48 = vrot.slane %v3718_v55, %v17435_v27  ;;  %v3733_v22 = vrot.slane %v3719_v42, %v17435_v27  ;;  %v3742_v13 = vrot.slane %v3734_v46, %v17435_v27  ;;  %v3749_v45 = vrot.slane %v3735_v14, %v17435_v27 }
 0x636   : > { %v18165_v55 = vmul.f32 %v17991_v63, %v17414_v9  ;;  %v1294_v14 = vadd.f32 %v17721_v33, %v17385_v56 }
 0x637   : > { %v3754_v4 = vcombine.low %v3726_v48, %v3733_v22  ;;  %v14810_v38 = vcombine.high %v3726_v48, %v3733_v22  ;;  %v3770_v15 = vcombine.low %v3742_v13, %v3749_v45  ;;  %v14811_v43 = vcombine.high %v3742_v13, %v3749_v45 }
 0x638   : > { %v18174_v22 = vmul.f32 %v18008_v37, %v1294_v14 }
 0x639   : > { %v3761_v36 = vrot.slane %v3754_v4, %v17430_v20  ;;  %v3769_v1 = vrot.slane %v14810_v38, %v17430_v20  ;;  %v3777_v23 = vrot.slane %v3770_v15, %v17430_v20  ;;  %v3785_v21 = vrot.slane %v14811_v43, %v17430_v20 }
 0x63a   : > { %v4510_v5 = vpop.f32.mrf.mxu0 }
 0x63b   : > { %v3787_v6 = vcombine.high %v3761_v36, %v3769_v1  ;;  %v3803_v30 = vcombine.high %v3777_v23, %v3785_v21  ;;  %v3786_v61 = vcombine.low %v3761_v36, %v3769_v1  ;;  %v3802_v19 = vcombine.low %v3777_v23, %v3785_v21 }
 0x63c   : > { %v15595_v41 = vpop.f32.mrf.mxu0 }
 0x63d   : > { %v3801_v57 = vrot.slane %v3787_v6, %v17435_v27  ;;  %v3817_v16 = vrot.slane %v3803_v30, %v17435_v27  ;;  %v18144_v2 = vrot.slane %v3786_v61, %v17435_v27  ;;  %v18147_v10 = vrot.slane %v3802_v19, %v17435_v27 }
 0x63e   : > { %v4513_v18 = vpop.f32.mrf.mxu0  ;;  %v4645_v6 = vmul.f32 0.088388346, %v4510_v5 }
 0x63f   : > { %v3820_v58 = vcombine.low %v3801_v57, %v3817_v16  ;;  %v3819_v50 = vcombine.high %v18144_v2, %v18147_v10  ;;  %v3821_v47 = vcombine.high %v3801_v57, %v3817_v16  ;;  %v3818_v11 = vcombine.low %v18144_v2, %v18147_v10 }
 0x640   : > { %v15596_v29 = vpop.f32.mrf.mxu0  ;;  %v4649_v41 = vsel %vm2162_vm2, %v4645_v6, -inf }
 0x641   : > { %3827 = vrot.lane.b32.xlu1 %v3820_v58, %s16972_s18  ;;  %3823 = vrot.lane.b32.xlu0 %v3819_v50, %s16974_s19  ;;  %v4650_v18 = vrot.slane %v4649_v41, 4 }
 0x642   : > { %v4553_v25 = vpop.f32.mrf.mxu0 }
 0x643   : > { %v4646_v17 = vmul.f32 0.088388346, %v4553_v25 }
 0x644   : > { %v15601_v32 = vpop.f32.mrf.mxu0 }
 0x645   : > { %5104 = vrot.lane.b32.xlu1 %v17997_v62, %s16972_s18  ;;  %5106 = vrot.lane.b32.xlu0 %v18013_v60, %s16972_s18  ;;  %v4656_v52 = vsel %vm2162_vm2, %v4646_v17, -inf  ;;  %v4651_v32 = vmax.f32 %v4649_v41, %v4650_v18 }
 0x646   : > { %v4657_v49 = vrot.slane %v4656_v52, 4  ;;  %v4556_v28 = vpop.f32.mrf.mxu0 }
 0x647   : > { %v4652_v28 = vrot.slane %v4651_v32, 2 }
 0x648   : > { %v4658_v3 = vmax.f32 %v4656_v52, %v4657_v49  ;;  %v15602_v12 = vpop.f32.mrf.mxu0 }
 0x649   : > { %5110 = vrot.lane.b32.xlu1 %v17997_v62, %s16974_s19  ;;  %3831 = vrot.lane.b32.xlu0 %v3821_v47, %s16973_s15 }
 0x64a   : > { %v4659_v42 = vrot.slane %v4658_v3, 2 }
 0x64b   : > { %v4596_v46 = vpop.f32.mrf.mxu0 }
 0x64c   : > { %v4660_v54 = vmax.f32 %v4658_v3, %v4659_v42  ;;  %v4647_v30 = vmul.f32 0.088388346, %v4596_v46  ;;  %v4653_v46 = vmax.f32 %v4651_v32, %v4652_v28 }
 0x64d   : > { %v15607_v48 = vpop.f32.mrf.mxu0  ;;  %5394 = vrot.lane.b32.xlu1 %v18165_v55, %s16973_s15  ;;  %5112 = vrot.lane.b32.xlu0 %v18013_v60, %s16974_s19 }
 0x64e   : > { %v4661_v13 = vrot.slane %v4660_v54, 1  ;;  %v4663_v57 = vsel %vm2162_vm2, %v4647_v30, -inf  ;;  %v4654_v48 = vrot.slane %v4653_v46, 1 }
 0x64f   : > { %v4599_v45 = vpop.f32.mrf.mxu0  ;;  %v4664_v47 = vrot.slane %v4663_v57, 4 }
 0x650   : > { %v4662_v9 = vmax.f32 %v4660_v54, %v4661_v13 }
 0x651   : > { %v15608_v63 = vpop.f32.mrf.mxu0  ;;  %5400 = vrot.lane.b32.xlu1 %v18165_v55, %s16972_s18  ;;  %5396 = vrot.lane.b32.xlu0 %v18174_v22, %s16973_s15  ;;  %v4665_v5 = vmax.f32 %v4663_v57, %v4664_v47 }
 0x652   : > { %v4678_v56 = vsub.f32 %v4646_v17, %v4662_v9 }
 0x653   : > { %v4639_v33 = vpop.f32.mrf.mxu0  ;;  %v4666_v12 = vrot.slane %v4665_v5, 2 }
 0x654   : > { %v4648_v4 = vmul.f32 0.088388346, %v4639_v33  ;;  %v4683_v38 = vmul.f32 1.442695, %v4678_v56  ;;  %v4655_v56 = vmax.f32 %v4653_v46, %v4654_v48  ;;  %v5101_v46 = vpop.permute.xlu0 %5100 }
 0x655   : > { %v15613_v15 = vpop.f32.mrf.mxu0  ;;  %5406 = vrot.lane.b32.xlu1 %v18165_v55, %s16974_s19  ;;  %5402 = vrot.lane.b32.xlu0 %v18174_v22, %s16972_s18  ;;  %v4667_v54 = vmax.f32 %v4665_v5, %v4666_v12 }
 0x656   : > { %v4670_v37 = vsel %vm2162_vm2, %v4648_v4, -inf  ;;  %16561 = vpow2.f32 %v4683_v38  ;;  %v4677_v15 = vsub.f32 %v4645_v6, %v4655_v56 }
 0x657   : > { %v4671_v43 = vrot.slane %v4670_v37, 4  ;;  %v4642_v36 = vpop.f32.mrf.mxu0  ;;  %v4668_v45 = vrot.slane %v4667_v54, 1 }
 0x659   : > { %v4672_v1 = vmax.f32 %v4670_v37, %v4671_v43  ;;  %v15614_v23 = vpop.f32.mrf.mxu0  ;;  %5408 = vrot.lane.b32.xlu0 %v18174_v22, %s16974_s19  ;;  %v4669_v33 = vmax.f32 %v4667_v54, %v4668_v45 }
 0x65a   : > { %v4681_v23 = vmul.f32 1.442695, %v4677_v15 }
 0x65b   : > { %v4673_v21 = vrot.slane %v4672_v1, 2  ;;  %v4679_v37 = vsub.f32 %v4647_v30, %v4669_v33 }
 0x65d   : > { %v4674_v61 = vmax.f32 %v4672_v1, %v4673_v21  ;;  %v4685_v21 = vmul.f32 1.442695, %v4679_v37 }
 0x65f   : > { %v4675_v19 = vrot.slane %v4674_v61, 1 }
 0x661   : > { %v4676_v16 = vmax.f32 %v4674_v61, %v4675_v19 }
 0x663   : > { %v4680_v58 = vsub.f32 %v4648_v4, %v4676_v16  ;;  %v16562_v50 = vpop.eup %16561 }
 0x664   : > { %v4696_v29 = vsel %vm2162_vm2, %v16562_v50, 0.0 }
 0x665   : > { %v4687_v25 = vmul.f32 1.442695, %v4680_v58  ;;  %v4697_v17 = vrot.slane %v4696_v29, 4 }
 0x667   : > { %16563 = vpow2.f32 %v4687_v25  ;;  %v4698_v52 = vadd.f32 %v4697_v17, %v4696_v29 }
 0x669   : > { %v4699_v49 = vrot.slane %v4698_v52, 2 }
 0x66b   : > { %v4700_v3 = vadd.f32 %v4699_v49, %v4698_v52 }
 0x66d   : > { %v4701_v42 = vrot.slane %v4700_v3, 1 }
 0x66f   : > { %v4702_v14 = vadd.f32 %v4701_v42, %v4700_v3  ;;  %v5099_v42 = vpop.permute.xlu1 %5098 }
 0x671   : > { %16565 = vrcp.f32 %v4702_v14 }
 0x674   : > { %v16564_v13 = vpop.eup %16563 }
 0x675   : > { %v4710_v9 = vsel %vm2162_vm2, %v16564_v13, 0.0 }
 0x676   : > { %v4711_v63 = vrot.slane %v4710_v9, 4 }
 0x678   : > { %v4712_v4 = vadd.f32 %v4711_v63, %v4710_v9 }
 0x67a   : > { %v4713_v38 = vrot.slane %v4712_v4, 2 }
 0x67c   : > { %v4714_v43 = vadd.f32 %v4713_v38, %v4712_v4 }
 0x67e   : > { %v4715_v36 = vrot.slane %v4714_v43, 1  ;;  %v16566_v1 = vpop.eup %16565 }
 0x67f   : > { %v4722_v19 = vmul.f32 %v16566_v1, %v16562_v50 }
 0x680   : > { %v4716_v61 = vadd.f32 %v4715_v36, %v4714_v43 }
 0x681   : > { %v4726_v41 = vpack.c.bf16 %v4722_v19, %v4722_v19 }
 0x682   : > { %16567 = vrcp.f32 %v4716_v61 }
 0x683   : > { %16569 = vpow2.f32 %v4681_v23  ;;  %15624 = vmatmul.mubr.msk.bf16.vlgmr.msra.gmra.mxu0 %vm2162_vm2, %v4726_v41 }
 0x684   : > { %16571 = vpow2.f32 %v4685_v21  ;;  %15634 = vmatpush3.bf16.msra.mxu0 %v18108_v59  ;;  %15635 = vmatprep.mubr.msk.bf16.mxu0 %vm16970_vm0, %v20281_v40 }
 0x685   : > { %15659 = vmatprep.subr.bf16.mxu0 %v20281_v40 }
 0x68f   : > { %v16568_v6 = vpop.eup %16567 }
 0x690   : > { %v16570_v30 = vpop.eup %16569  ;;  %v4724_v57 = vmul.f32 %v16568_v6, %v16564_v13 }
 0x691   : > { %v16572_v16 = vpop.eup %16571  ;;  %v4689_v58 = vsel %vm2162_vm2, %v16570_v30, 0.0 }
 0x692   : > { %v4728_v18 = vpack.c.bf16 %v4724_v57, %v4724_v57  ;;  %v4703_v50 = vsel %vm2162_vm2, %v16572_v16, 0.0  ;;  %v4690_v59 = vrot.slane %v4689_v58, 4 }
 0x693   : > { %v4704_v47 = vrot.slane %v4703_v50, 4 }
 0x694   : > { %15636 = vmatmul.mubr.msk.bf16.vlgmr.msra.gmra.mxu0 %vm2162_vm2, %v4728_v18  ;;  %v4691_v29 = vadd.f32 %v4690_v59, %v4689_v58 }
 0x695   : > { %15661 = vmatprep.mubr.msk.bf16.mxu0 %vm16970_vm0, %v20281_v40  ;;  %v4705_v25 = vadd.f32 %v4704_v47, %v4703_v50 }
 0x696   : > { %v4692_v17 = vrot.slane %v4691_v29, 2 }
 0x697   : > { %v4706_v32 = vrot.slane %v4705_v25, 2 }
 0x698   : > { %v4693_v52 = vadd.f32 %v4692_v17, %v4691_v29 }
 0x699   : > { %v4707_v5 = vadd.f32 %v4706_v32, %v4705_v25 }
 0x69a   : > { %v4694_v49 = vrot.slane %v4693_v52, 1 }
 0x69b   : > { %v4708_v28 = vrot.slane %v4707_v5, 1 }
 0x69c   : > { %v4695_v3 = vadd.f32 %v4694_v49, %v4693_v52 }
 0x69d   : > { %v4709_v12 = vadd.f32 %v4708_v28, %v4707_v5 }
 0x69e   : > { %16573 = vrcp.f32 %v4695_v3 }
 0x69f   : > { %16575 = vrcp.f32 %v4709_v12 }
 0x6ab   : > { %v16574_v56 = vpop.eup %16573 }
 0x6ac   : > { %v16576_v15 = vpop.eup %16575  ;;  %v4721_v6 = vmul.f32 %v16574_v56, %v16570_v30 }
 0x6ad   : > { %v18222_v57 = vmul.f32 %v16576_v15, %v16572_v16 }
 0x6b3   : > { %v3824_v14 = vpop.permute.xlu0 %3823  ;;  %v3828_v54 = vpop.permute.xlu1 %3827 }
 0x6b4   : > { %v3834_v45 = vsel %vm1973_vm1, %v3818_v11, %v3824_v14 }
 0x6b5   : > { %v3835_v33 = vsel %vm2564_vm3, %v3834_v45, %v3828_v54 }
 0x6b7   : > { %v5107_v48 = vpop.permute.xlu0 %5106  ;;  %v5105_v13 = vpop.permute.xlu1 %5104 }
 0x6b8   : > { %v5116_v9 = vcombine.low %v17997_v62, %v5105_v13  ;;  %v5117_v63 = vcombine.high %v17997_v62, %v5105_v13  ;;  %v5184_v1 = vcombine.low %v18013_v60, %v5107_v48  ;;  %v5185_v21 = vcombine.high %v18013_v60, %v5107_v48 }
 0x6ba   : > { %v5124_v10 = vrot.slane %v5116_v9, %v17430_v20  ;;  %v5131_v11 = vrot.slane %v5117_v63, %v17430_v20  ;;  %v5192_v47 = vrot.slane %v5184_v1, %v17430_v20  ;;  %v5199_v30 = vrot.slane %v5185_v21, %v17430_v20 }
 0x6bb   : > { %v3832_v4 = vpop.permute.xlu0 %3831  ;;  %v5111_v38 = vpop.permute.xlu1 %5110 }
 0x6bc   : > { %v3836_v37 = vsel %vm2566_vm4, %v3835_v33, %v3832_v4  ;;  %v5132_v43 = vcombine.low %v5099_v42, %v5111_v38  ;;  %v5133_v36 = vcombine.high %v5099_v42, %v5111_v38  ;;  %v4725_v42 = vpack.c.bf16 %v4721_v6, %v4721_v6 }
 0x6bd   : > { %v18211_v2 = vadd.f32 %v3836_v37, %v17369_v51 }
 0x6be   : > { %v5140_v62 = vrot.slane %v5132_v43, %v17430_v20  ;;  %v5147_v23 = vrot.slane %v5133_v36, %v17430_v20 }
 0x6bf   : > { %v3838_v61 = vpack.c.bf16 %v18211_v2, %v18211_v2  ;;  %v5113_v19 = vpop.permute.xlu0 %5112  ;;  %v18220_v41 = vpop.permute.xlu1 %5394 }
 0x6c0   : > { %v5148_v18 = vcombine.low %v5124_v10, %v5140_v62  ;;  %v5149_v58 = vcombine.high %v5124_v10, %v5140_v62  ;;  %v5164_v50 = vcombine.low %v5131_v11, %v5147_v23  ;;  %v5165_v59 = vcombine.high %v5131_v11, %v5147_v23 }
 0x6c1   : > { %v5200_v29 = vcombine.low %v5101_v46, %v5113_v19  ;;  %v5201_v25 = vcombine.high %v5101_v46, %v5113_v19  ;;  %15588 = vmatmul.mubr.bf16.vlgmr.msra.gmra.mxu1 %v3838_v61  ;;  %v4727_v46 = vpack.c.bf16 %v18222_v57, %v18222_v57 }
 0x6c2   : > { %v5156_v60 = vrot.slane %v5148_v18, %v17435_v27  ;;  %v5163_v17 = vrot.slane %v5149_v58, %v17435_v27  ;;  %v5172_v32 = vrot.slane %v5164_v50, %v17435_v27  ;;  %v5179_v52 = vrot.slane %v5165_v59, %v17435_v27  ;;  %15616 = vmatpush3.bf16.msra.mxu1 %v18106_v7 }
 0x6c3   : > { %v5208_v16 = vrot.slane %v5200_v29, %v17430_v20  ;;  %v5215_v5 = vrot.slane %v5201_v25, %v17430_v20  ;;  %v5397_v49 = vpop.permute.xlu0 %5396  ;;  %v5401_v28 = vpop.permute.xlu1 %5400  ;;  %15617 = vmatprep.mubr.msk.bf16.mxu1 %vm16970_vm0, %v20281_v40  ;;  %15627 = vmatprep.subr.bf16.mxu1 %v20281_v40 }
 0x6c4   : > { %v5252_v3 = vcombine.low %v5156_v60, %v5163_v17  ;;  %v14830_v12 = vcombine.high %v5156_v60, %v5163_v17  ;;  %v5268_v13 = vcombine.low %v5172_v32, %v5179_v52  ;;  %v14831_v45 = vcombine.high %v5172_v32, %v5179_v52 }
 0x6c5   : > { %v5216_v7 = vcombine.low %v5192_v47, %v5208_v16  ;;  %v5217_v14 = vcombine.high %v5192_v47, %v5208_v16  ;;  %v5232_v54 = vcombine.low %v5199_v30, %v5215_v5  ;;  %v5233_v48 = vcombine.high %v5199_v30, %v5215_v5 }
 0x6c6   : > { %v5412_v9 = vcombine.low %v18165_v55, %v5401_v28  ;;  %v5413_v63 = vcombine.high %v18165_v55, %v5401_v28  ;;  %v18247_v1 = vrot.slane %v5252_v3, %v17430_v20  ;;  %v18250_v10 = vrot.slane %v14830_v12, %v17430_v20 }
 0x6c7   : > { %v5224_v56 = vrot.slane %v5216_v7, %v17435_v27  ;;  %v5231_v33 = vrot.slane %v5217_v14, %v17435_v27  ;;  %v5240_v4 = vrot.slane %v5232_v54, %v17435_v27  ;;  %v5247_v38 = vrot.slane %v5233_v48, %v17435_v27  ;;  %v5403_v15 = vpop.permute.xlu0 %5402  ;;  %v5407_v37 = vpop.permute.xlu1 %5406 }
 0x6c8   : > { %v5480_v43 = vcombine.low %v18174_v22, %v5403_v15  ;;  %v5481_v36 = vcombine.high %v18174_v22, %v5403_v15  ;;  %v5420_v62 = vrot.slane %v5412_v9, %v17430_v20  ;;  %v5427_v23 = vrot.slane %v5413_v63, %v17430_v20 }
 0x6c9   : > { %v5320_v55 = vcombine.low %v5224_v56, %v5231_v33  ;;  %v14832_v11 = vcombine.high %v5224_v56, %v5231_v33  ;;  %15618 = vmatmul.mubr.msk.bf16.vlgmr.msra.gmra.mxu1 %vm2162_vm2, %v4725_v42  ;;  %v5336_v21 = vcombine.low %v5240_v4, %v5247_v38  ;;  %v14833_v61 = vcombine.high %v5240_v4, %v5247_v38  ;;  %v18294_v4 = vld [vmem:[#allocation8 + $0xec] ss:$16 sps:$4 sm:$0xff]  }
 0x6ca   : > { %v5428_v19 = vcombine.low %v18220_v41, %v5407_v37  ;;  %v5429_v22 = vcombine.high %v18220_v41, %v5407_v37  ;;  %15628 = vmatpush3.bf16.msra.mxu1 %v18110_v44  ;;  %v5488_v6 = vrot.slane %v5480_v43, %v17430_v20  ;;  %v5495_v57 = vrot.slane %v5481_v36, %v17430_v20 }
 0x6cb   : > { %v5409_v18 = vpop.permute.xlu0 %5408  ;;  %15629 = vmatprep.mubr.msk.bf16.mxu1 %vm16970_vm0, %v20281_v40  ;;  %v18263_v58 = vrot.slane %v5268_v13, %v17430_v20  ;;  %v18266_v50 = vrot.slane %v14831_v45, %v17430_v20  ;;  %15639 = vmatprep.subr.bf16.mxu1 %v20281_v40  ;;  %v5284_v29 = vcombine.low %v18247_v1, %v18250_v10 }
 0x6cc   : > { %v5436_v59 = vrot.slane %v5428_v19, %v17430_v20  ;;  %v5443_v41 = vrot.slane %v5429_v22, %v17430_v20  ;;  %v5496_v47 = vcombine.low %v5397_v49, %v5409_v18  ;;  %v5497_v44 = vcombine.high %v5397_v49, %v5409_v18  ;;  %v18314_v18 = vld [vmem:[#allocation8 + $0xcc] ss:$16 sps:$4 sm:$0xff]  }
 0x6cd   : > { %v5300_v25 = vcombine.low %v18263_v58, %v18266_v50  ;;  %v18276_v60 = vrot.slane %v5320_v55, %v17430_v20  ;;  %v18279_v17 = vrot.slane %v14832_v11, %v17430_v20  ;;  %v18284_v28 = vrot.slane %v5336_v21, %v17430_v20 }
 0x6ce   : > { %v5444_v32 = vcombine.low %v5420_v62, %v5436_v59  ;;  %v5445_v52 = vcombine.high %v5420_v62, %v5436_v59  ;;  %v5460_v30 = vcombine.low %v5427_v23, %v5443_v41  ;;  %v5461_v16 = vcombine.high %v5427_v23, %v5443_v41 }
 0x6cf   : > { %v5504_v5 = vrot.slane %v5496_v47, %v17430_v20  ;;  %v5511_v49 = vrot.slane %v5497_v44, %v17430_v20  ;;  %v18287_v3 = vrot.slane %v14833_v61, %v17430_v20  ;;  %v5292_v55 = vrot.slane %v5284_v29, %v17435_v27 }
 0x6d0   : > { %v5452_v12 = vrot.slane %v5444_v32, %v17435_v27  ;;  %v5459_v42 = vrot.slane %v5445_v52, %v17435_v27  ;;  %v5468_v7 = vrot.slane %v5460_v30, %v17435_v27  ;;  %v5475_v14 = vrot.slane %v5461_v16, %v17435_v27 }
 0x6d1   : > { %v5512_v54 = vcombine.low %v5488_v6, %v5504_v5  ;;  %v5513_v48 = vcombine.high %v5488_v6, %v5504_v5  ;;  %v5528_v13 = vcombine.low %v5495_v57, %v5511_v49  ;;  %v5529_v45 = vcombine.high %v5495_v57, %v5511_v49  ;;  %15630 = vmatmul.mubr.msk.bf16.vlgmr.msra.gmra.mxu1 %vm2162_vm2, %v4727_v46  ;;  %v18324_v5 = vld [vmem:[#allocation8 + $0xac] ss:$16 sps:$4 sm:$0xff]  }
 0x6d2   : > { %v5548_v9 = vcombine.low %v5452_v12, %v5459_v42  ;;  %v14834_v63 = vcombine.high %v5452_v12, %v5459_v42  ;;  %v5564_v56 = vcombine.low %v5468_v7, %v5475_v14  ;;  %v14835_v33 = vcombine.high %v5468_v7, %v5475_v14  ;;  %15640 = vmatpush3.bf16.msra.mxu1 %v18294_v4 }
 0x6d3   : > { %v5520_v38 = vrot.slane %v5512_v54, %v17435_v27  ;;  %v5527_v15 = vrot.slane %v5513_v48, %v17435_v27  ;;  %v5536_v37 = vrot.slane %v5528_v13, %v17435_v27  ;;  %v5543_v43 = vrot.slane %v5529_v45, %v17435_v27  ;;  %15641 = vmatprep.subr.bf16.mxu1 %v20281_v40 }
 0x6d4   : > { %v5555_v46 = vrot.slane %v5548_v9, %v17430_v20  ;;  %v5563_v36 = vrot.slane %v14834_v63, %v17430_v20  ;;  %v5308_v11 = vrot.slane %v5300_v25, %v17435_v27  ;;  %15655 = vmatprep.mubr.msk.bf16.mxu1 %vm16970_vm0, %v20281_v40  ;;  %v5571_v62 = vrot.slane %v5564_v56, %v17430_v20  ;;  %v18339_v56 = vld [vmem:[#allocation8 + $0x8c] ss:$16 sps:$4 sm:$0xff]  }
 0x6d5   : > { %v5579_v23 = vrot.slane %v14835_v33, %v17430_v20  ;;  %v5616_v21 = vcombine.low %v5520_v38, %v5527_v15  ;;  %v14836_v61 = vcombine.high %v5520_v38, %v5527_v15  ;;  %v5632_v19 = vcombine.low %v5536_v37, %v5543_v43 }
 0x6d6   : > { %v14837_v22 = vcombine.high %v5536_v37, %v5543_v43  ;;  %v5352_v6 = vcombine.low %v18276_v60, %v18279_v17  ;;  %v5368_v57 = vcombine.low %v18284_v28, %v18287_v3  ;;  %15642 = vmatpush3.bf16.msra.mxu1 %v18314_v18  ;;  %v5580_v29 = vcombine.low %v5555_v46, %v5563_v36 }
 0x6d7   : > { %15643 = vmatprep.subr.bf16.mxu1 %v20281_v40  ;;  %v5623_v47 = vrot.slane %v5616_v21, %v17430_v20  ;;  %v5631_v44 = vrot.slane %v14836_v61, %v17430_v20  ;;  %v5596_v25 = vcombine.low %v5571_v62, %v5579_v23  ;;  %v5639_v32 = vrot.slane %v5632_v19, %v17430_v20 }
 0x6d8   : > { %v5360_v59 = vrot.slane %v5352_v6, %v17435_v27  ;;  %v5376_v41 = vrot.slane %v5368_v57, %v17435_v27  ;;  %v5647_v52 = vrot.slane %v14837_v22, %v17430_v20  ;;  %v5316_v30 = vcombine.low %v5292_v55, %v5308_v11 }
 0x6d9   : > { %v5317_v12 = vcombine.high %v5292_v55, %v5308_v11  ;;  %v5353_v42 = vcombine.high %v18276_v60, %v18279_v17  ;;  %v5369_v7 = vcombine.high %v18284_v28, %v18287_v3  ;;  %v18333_v14 = vrot.slane %v5580_v29, %v17435_v27  ;;  %v18358_v55 = vld [vmem:[#allocation8 + $0x6c] ss:$16 sps:$4 sm:$0xff]  }
 0x6da   : > { %v5384_v16 = vcombine.low %v5360_v59, %v5376_v41  ;;  %15644 = vmatpush3.bf16.msra.mxu1 %v18324_v5  ;;  %v18336_v54 = vrot.slane %v5596_v25, %v17435_v27  ;;  %v5648_v48 = vcombine.low %v5623_v47, %v5631_v44  ;;  %v5385_v45 = vcombine.high %v5360_v59, %v5376_v41  ;;  %v18380_v25 = vld [vmem:[#allocation8 + $0x2c] ss:$16 sps:$4 sm:$0xff]  }
 0x6db   : > { %15645 = vmatprep.subr.bf16.mxu1 %v20281_v40  ;;  %v5664_v9 = vcombine.low %v5639_v32, %v5647_v52  ;;  %v5581_v63 = vcombine.high %v5555_v46, %v5563_v36  ;;  %v5285_v60 = vcombine.high %v18247_v1, %v18250_v10  ;;  %v5301_v17 = vcombine.high %v18263_v58, %v18266_v50 }
 0x6dc   : > { %v5388_v49 = vpack.c.bf16 %v5384_v16, %v5316_v30  ;;  %v5656_v28 = vrot.slane %v5648_v48, %v17435_v27  ;;  %v5597_v3 = vcombine.high %v5571_v62, %v5579_v23  ;;  %v5649_v15 = vcombine.high %v5623_v47, %v5631_v44  ;;  %v18371_v47 = vld [vmem:[#allocation8 + $0x4c] ss:$16 sps:$4 sm:$0xff]  }
 0x6dd   : > { %v5672_v33 = vrot.slane %v5664_v9, %v17435_v27  ;;  %v5595_v38 = vrot.slane %v5581_v63, %v17435_v27  ;;  %v5665_v37 = vcombine.high %v5639_v32, %v5647_v52  ;;  %v5367_v43 = vrot.slane %v5353_v42, %v17435_v27  ;;  %v18387_v30 = vld [vmem:[#allocation8 + $0xc] ss:$16 sps:$4 sm:$0xff]  }
 0x6de   : > { %v5689_v13 = vsel %vm1973_vm1, %v5388_v49, 0  ;;  %15646 = vmatpush3.bf16.msra.mxu1 %v18339_v56  ;;  %v5383_v46 = vrot.slane %v5369_v7, %v17435_v27  ;;  %v5611_v1 = vrot.slane %v5597_v3, %v17435_v27  ;;  %v5612_v10 = vcombine.low %v18333_v14, %v18336_v54 }
 0x6df   : > { %15660 = vmatpush3.bf16.xpose.msra.mxu0 %v5689_v13  ;;  %15647 = vmatprep.subr.bf16.mxu1 %v20281_v40  ;;  %v5389_v58 = vpack.c.bf16 %v5385_v45, %v5317_v12  ;;  %v5663_v50 = vrot.slane %v5649_v15, %v17435_v27  ;;  %v5679_v36 = vrot.slane %v5665_v37, %v17435_v27 }
 0x6e0   : > { %15665 = vmatprep.subr.bf16.mxu0 %v20281_v40  ;;  %v5680_v11 = vcombine.low %v5656_v28, %v5672_v33  ;;  %v5299_v62 = vrot.slane %v5285_v60, %v17435_v27  ;;  %v5615_v23 = vcombine.high %v5595_v38, %v5611_v1  ;;  %v5614_v21 = vcombine.low %v5595_v38, %v5611_v1 }
 0x6e1   : > { %v5315_v61 = vrot.slane %v5301_v17, %v17435_v27  ;;  %v5683_v19 = vcombine.high %v5663_v50, %v5679_v36  ;;  %v5682_v6 = vcombine.low %v5663_v50, %v5679_v36  ;;  %v5732_v57 = vsel %vm1973_vm1, %v5389_v58, 0 }
 0x6e2   : > { %15648 = vmatpush3.bf16.msra.mxu1 %v18358_v55  ;;  %v18364_v22 = vpack.c.bf16 %v5680_v11, %v5612_v10  ;;  %v5386_v59 = vcombine.low %v5367_v43, %v5383_v46  ;;  %v5387_v52 = vcombine.high %v5367_v43, %v5383_v46  ;;  %v5681_v12 = vcombine.high %v5656_v28, %v5672_v33  ;;  %v18407_v28 = vld [vmem:[#allocation10 + $0x3] ss:$0 sm:$0xff] }
 0x6e3   : > { %15649 = vmatprep.subr.bf16.mxu1 %v20281_v40  ;;  %v18369_v41 = vpack.c.bf16 %v5683_v19, %v5615_v23  ;;  %v18374_v44 = vpack.c.bf16 %v5682_v6, %v5614_v21  ;;  %v5318_v29 = vcombine.low %v5299_v62, %v5315_v61  ;;  %v5319_v16 = vcombine.high %v5299_v62, %v5315_v61 }
 0x6e4   : > { %v5613_v42 = vcombine.high %v18333_v14, %v18336_v54  ;;  %v2659_v14 = vadd.f32 %v18407_v28, %v18127_v0 }
 0x6e5   : > { %v5391_v49 = vpack.c.bf16 %v5387_v52, %v5319_v16 }
 0x6e6   : > { %15662 = vmatmul.mubr.msk.bf16.vlgmr.msra.gmra.mxu0 %vm1973_vm1, %v17547_v39  ;;  %15650 = vmatpush3.bf16.msra.mxu1 %v18371_v47  ;;  %v5390_v39 = vpack.c.bf16 %v5386_v59, %v5318_v29  ;;  %v5685_v7 = vpack.c.bf16 %v5681_v12, %v5613_v42  ;;  %v2664_v54 = vmax.f32 %v2659_v14, 0.0 }
 0x6e7   : > { %15666 = vmatpush3.bf16.xpose.msra.mxu0 %v5732_v57  ;;  %15667 = vmatprep.mubr.msk.bf16.mxu0 %vm16970_vm0, %v20281_v40 }
 0x6e8   : > { %15671 = vmatprep.subr.bf16.mxu0 %v20281_v40  ;;  %15651 = vmatprep.subr.bf16.mxu1 %v20281_v40  ;;  %v5775_v32 = vsel %vm1973_vm1, %v5390_v39, 0  ;;  %v2665_v37 = vadd.f32 %v2664_v54, %v17962_v26 }
 0x6ea   : > { %15652 = vmatpush3.bf16.msra.mxu1 %v18380_v25 }
 0x6eb   : > { %15653 = vmatprep.subr.bf16.mxu1 %v20281_v40 }
 0x6ee   : > { %15668 = vmatmul.mubr.msk.bf16.vlgmr.msra.gmra.mxu0 %vm1973_vm1, %v17559_v8  ;;  %15654 = vmatpush3.bf16.msra.mxu1 %v18387_v30  ;;  %v5818_v8 = vsel %vm1973_vm1, %v5391_v49, 0 }
 0x6ef   : > { %15672 = vmatpush3.bf16.xpose.msra.mxu0 %v5775_v32  ;;  %15673 = vmatprep.mubr.msk.bf16.mxu0 %vm16970_vm0, %v20281_v40 }
 0x6f0   : > { %15677 = vmatprep.subr.bf16.mxu0 %v20281_v40  ;;  %15683 = vmatprep.subr.bf16.mxu1 %v20281_v40 }
 0x6f6   : > { %15674 = vmatmul.mubr.msk.bf16.vlgmr.msra.gmra.mxu0 %vm1973_vm1, %v17580_v24 }
 0x6f7   : > { %15678 = vmatpush3.bf16.xpose.msra.mxu0 %v5818_v8  ;;  %15679 = vmatprep.mubr.msk.bf16.mxu0 %vm16970_vm0, %v20281_v40 }
 0x6f8   : > { %15689 = vmatprep.subr.bf16.mxu0 %v20281_v40 }
 0x6fe   : > { %15680 = vmatmul.mubr.msk.bf16.vlgmr.msra.gmra.mxu0 %vm1973_vm1, %v17625_v31 }
 0x6ff   : > { %15690 = vmatpush3.bf16.msra.mxu0 %v5685_v7  ;;  %15691 = vmatprep.mubr.msk.bf16.mxu0 %vm16970_vm0, %v20281_v40 }
 0x700   : > { %15701 = vmatprep.subr.bf16.mxu0 %v20281_v40 }
 0x743   : > { %v4809_v24 = vpop.f32.mrf.mxu0 }
 0x745   : > { %v15625_v48 = vpop.f32.mrf.mxu0 }
 0x747   : > { %v4812_v13 = vpop.f32.mrf.mxu0 }
 0x749   : > { %v15626_v45 = vpop.f32.mrf.mxu0 }
 0x754   : > { %v4895_v9 = vpop.f32.mrf.mxu0 }
 0x755   : > { %v4917_v11 = vcombine.low %v4809_v24, %v4895_v9  ;;  %v4918_v0 = vcombine.high %v4809_v24, %v4895_v9 }
 0x756   : > { %v15637_v63 = vpop.f32.mrf.mxu0 }
 0x757   : > { %v4925_v19 = vrot.slane %v4917_v11, %v17430_v20  ;;  %v4932_v6 = vrot.slane %v4918_v0, %v17430_v20 }
 0x758   : > { %v4898_v60 = vpop.f32.mrf.mxu0 }
 0x75a   : > { %v15638_v17 = vpop.f32.mrf.mxu0 }
 0x781   : > { %v3873_v31 = vpop.f32.mrf.mxu1 }
 0x782   : > { %v3874_v3 = vadd.f32 %v18407_v28, %v3873_v31 }
 0x783   : > { %v15589_v33 = vpop.f32.mrf.mxu1 }
 0x784   : > { %v3879_v38 = vmax.f32 %v3874_v3, 0.0 }
 0x785   : > { %v3876_v15 = vpop.f32.mrf.mxu1 }
 0x786   : > { %v3880_v43 = vadd.f32 %v3879_v38, %v18211_v2 }
 0x787   : > { %v15590_v46 = vpop.f32.mrf.mxu1 }
 0x788   : > { %v18414_v1 = vpack.c.bf16 %v3880_v43, %v2665_v37 }
 0x789   : > { %v4766_v10 = vpop.f32.mrf.mxu1 }
 0x78b   : > { %v15619_v58 = vpop.f32.mrf.mxu1 }
 0x78d   : > { %v4769_v50 = vpop.f32.mrf.mxu1 }
 0x78f   : > { %v15620_v36 = vpop.f32.mrf.mxu1 }
 0x791   : > { %v4852_v62 = vpop.f32.mrf.mxu1 }
 0x792   : > { %v4901_v23 = vcombine.low %v4766_v10, %v4852_v62  ;;  %v4902_v21 = vcombine.high %v4766_v10, %v4852_v62 }
 0x793   : > { %v15631_v61 = vpop.f32.mrf.mxu1 }
 0x794   : > { %v4909_v26 = vrot.slane %v4901_v23, %v17430_v20  ;;  %v4916_v2 = vrot.slane %v4902_v21, %v17430_v20 }
 0x795   : > { %v4855_v57 = vpop.f32.mrf.mxu1 }
 0x796   : > { %v4933_v59 = vcombine.low %v4909_v26, %v4925_v19  ;;  %v4934_v29 = vcombine.high %v4909_v26, %v4925_v19  ;;  %v4949_v39 = vcombine.low %v4916_v2, %v4932_v6  ;;  %v4950_v32 = vcombine.high %v4916_v2, %v4932_v6 }
 0x797   : > { %v15632_v52 = vpop.f32.mrf.mxu1 }
 0x798   : > { %v4941_v16 = vrot.slane %v4933_v59, %v17435_v27  ;;  %v4948_v49 = vrot.slane %v4934_v29, %v17435_v27  ;;  %v4957_v8 = vrot.slane %v4949_v39, %v17435_v27  ;;  %v4964_v12 = vrot.slane %v4950_v32, %v17435_v27 }
 0x79a   : > { %v4969_v42 = vcombine.low %v4941_v16, %v4948_v49  ;;  %v14828_v7 = vcombine.high %v4941_v16, %v4948_v49  ;;  %v4985_v24 = vcombine.low %v4957_v8, %v4964_v12  ;;  %v14829_v48 = vcombine.high %v4957_v8, %v4964_v12 }
 0x79c   : > { %v4976_v13 = vrot.slane %v4969_v42, %v17430_v20  ;;  %v4984_v45 = vrot.slane %v14828_v7, %v17430_v20  ;;  %v4992_v9 = vrot.slane %v4985_v24, %v17430_v20  ;;  %v5000_v63 = vrot.slane %v14829_v48, %v17430_v20 }
 0x79e   : > { %v5002_v60 = vcombine.high %v4976_v13, %v4984_v45  ;;  %v5018_v17 = vcombine.high %v4992_v9, %v5000_v63  ;;  %v5001_v14 = vcombine.low %v4976_v13, %v4984_v45  ;;  %v5017_v31 = vcombine.low %v4992_v9, %v5000_v63 }
 0x7a0   : > { %v5016_v54 = vrot.slane %v5002_v60, %v17435_v27  ;;  %v5032_v3 = vrot.slane %v5018_v17, %v17435_v27  ;;  %v18431_v33 = vrot.slane %v5001_v14, %v17435_v27  ;;  %v18434_v38 = vrot.slane %v5017_v31, %v17435_v27 }
 0x7a2   : > { %v5035_v15 = vcombine.low %v5016_v54, %v5032_v3  ;;  %v5034_v37 = vcombine.high %v18431_v33, %v18434_v38  ;;  %v5033_v43 = vcombine.low %v18431_v33, %v18434_v38  ;;  %v5036_v10 = vcombine.high %v5016_v54, %v5032_v3 }
 0x7a4   : > { %5042 = vrot.lane.b32.xlu0 %v5035_v15, %s16972_s18  ;;  %5038 = vrot.lane.b32.xlu1 %v5034_v37, %s16974_s19 }
 0x7a6   : > { %v5725_v46 = vpop.f32.mrf.mxu0 }
 0x7a7   : > { %v5860_v12 = vmul.f32 0.088388346, %v5725_v46 }
 0x7a8   : > { %v15663_v58 = vpop.f32.mrf.mxu0  ;;  %5046 = vrot.lane.b32.xlu1 %v5036_v10, %s16973_s15 }
 0x7a9   : > { %v5864_v45 = vsel %vm2162_vm2, %v5860_v12, -inf }
 0x7aa   : > { %v5728_v50 = vpop.f32.mrf.mxu0  ;;  %v5865_v17 = vrot.slane %v5864_v45, 4 }
 0x7ac   : > { %v15664_v36 = vpop.f32.mrf.mxu0  ;;  %v5866_v3 = vmax.f32 %v5864_v45, %v5865_v17 }
 0x7ae   : > { %v5768_v11 = vpop.f32.mrf.mxu0  ;;  %v5867_v58 = vrot.slane %v5866_v3, 2 }
 0x7af   : > { %v5861_v0 = vmul.f32 0.088388346, %v5768_v11 }
 0x7b0   : > { %v15669_v62 = vpop.f32.mrf.mxu0 }
 0x7b1   : > { %v5871_v23 = vsel %vm2162_vm2, %v5861_v0, -inf  ;;  %v5868_v62 = vmax.f32 %v5866_v3, %v5867_v58 }
 0x7b2   : > { %v5872_v21 = vrot.slane %v5871_v23, 4  ;;  %v5771_v61 = vpop.f32.mrf.mxu0 }
 0x7b4   : > { %v5873_v19 = vmax.f32 %v5871_v23, %v5872_v21  ;;  %v15670_v6 = vpop.f32.mrf.mxu0 }
 0x7b6   : > { %v5874_v26 = vrot.slane %v5873_v19, 2  ;;  %v5811_v2 = vpop.f32.mrf.mxu0 }
 0x7b7   : > { %v5862_v14 = vmul.f32 0.088388346, %v5811_v2 }
 0x7b8   : > { %v5875_v57 = vmax.f32 %v5873_v19, %v5874_v26  ;;  %v15675_v59 = vpop.f32.mrf.mxu0  ;;  %v5869_v19 = vrot.slane %v5868_v62, 1 }
 0x7b9   : > { %v5878_v15 = vsel %vm2162_vm2, %v5862_v14, -inf }
 0x7ba   : > { %v5876_v29 = vrot.slane %v5875_v57, 1  ;;  %v5814_v39 = vpop.f32.mrf.mxu0  ;;  %v5879_v50 = vrot.slane %v5878_v15, 4 }
 0x7bc   : > { %v5877_v32 = vmax.f32 %v5875_v57, %v5876_v29  ;;  %v15676_v52 = vpop.f32.mrf.mxu0  ;;  %v5880_v21 = vmax.f32 %v5878_v15, %v5879_v50  ;;  %v5870_v57 = vmax.f32 %v5868_v62, %v5869_v19  ;;  %v16462_v50 = vld [vmem:[#allocation8 + $0x1c4] ss:$16 sps:$4 sm:$0xff]  }
 0x7bd   : > { %v16465_v62 = vld [vmem:[#allocation8 + $0x1a4] ss:$16 sps:$4 sm:$0xff]  }
 0x7be   : > { %v5893_v16 = vsub.f32 %v5861_v0, %v5877_v32  ;;  %v5854_v49 = vpop.f32.mrf.mxu0  ;;  %v5881_v26 = vrot.slane %v5880_v21, 2  ;;  %v5892_v32 = vsub.f32 %v5860_v12, %v5870_v57  ;;  %v16468_v19 = vld [vmem:[#allocation8 + $0x184] ss:$16 sps:$4 sm:$0xff]  }
 0x7bf   : > { %v5863_v8 = vmul.f32 0.088388346, %v5854_v49  ;;  %v16471_v57 = vld [vmem:[#allocation8 + $0x164] ss:$16 sps:$4 sm:$0xff]  }
 0x7c0   : > { %v5898_v42 = vmul.f32 1.442695, %v5893_v16  ;;  %v15681_v7 = vpop.f32.mrf.mxu0  ;;  %v5882_v29 = vmax.f32 %v5880_v21, %v5881_v26 }
 0x7c1   : > { %v5885_v24 = vsel %vm2162_vm2, %v5863_v8, -inf }
 0x7c2   : > { %16577 = vpow2.f32 %v5898_v42  ;;  %v5886_v48 = vrot.slane %v5885_v24, 4  ;;  %v5857_v13 = vpop.f32.mrf.mxu0  ;;  %v5883_v52 = vrot.slane %v5882_v29, 1 }
 0x7c4   : > { %v5887_v9 = vmax.f32 %v5885_v24, %v5886_v48  ;;  %v15682_v63 = vpop.f32.mrf.mxu0  ;;  %v5884_v42 = vmax.f32 %v5882_v29, %v5883_v52 }
 0x7c6   : > { %v5888_v60 = vrot.slane %v5887_v9, 2  ;;  %v5894_v48 = vsub.f32 %v5862_v14, %v5884_v42 }
 0x7c8   : > { %v5889_v31 = vmax.f32 %v5887_v9, %v5888_v60  ;;  %v5900_v63 = vmul.f32 1.442695, %v5894_v48 }
 0x7ca   : > { %v5890_v54 = vrot.slane %v5889_v31, 1 }
 0x7cc   : > { %v5891_v37 = vmax.f32 %v5889_v31, %v5890_v54  ;;  %v16459_v54 = vld [vmem:[#allocation8 + $0x1e4] ss:$16 sps:$4 sm:$0xff]  }
 0x7ce   : > { %v5895_v46 = vsub.f32 %v5863_v8, %v5891_v37  ;;  %v5896_v8 = vmul.f32 1.442695, %v5892_v32  ;;  %v16474_v32 = vld [vmem:[#allocation8 + $0x144] ss:$16 sps:$4 sm:$0xff]  }
 0x7cf   : > { %v16578_v10 = vpop.eup %16577 }
 0x7d0   : > { %v5911_v36 = vsel %vm2162_vm2, %v16578_v10, 0.0  ;;  %v5902_v11 = vmul.f32 1.442695, %v5895_v46 }
 0x7d1   : > { %v5912_v0 = vrot.slane %v5911_v36, 4 }
 0x7d2   : > { %16579 = vpow2.f32 %v5902_v11  ;;  %v16460_v11 = vld [vmem:[#allocation8 + $0x1c0] ss:$16 sps:$4 sm:$0xff]  }
 0x7d3   : > { %v5913_v23 = vadd.f32 %v5912_v0, %v5911_v36  ;;  %v20282_v0 = vmov 0  }
 0x7d5   : > { %v5914_v61 = vrot.slane %v5913_v23, 2 }
 0x7d7   : > { %v5915_v6 = vadd.f32 %v5914_v61, %v5913_v23  ;;  %v16463_v61 = vld [vmem:[#allocation8 + $0x1a0] ss:$16 sps:$4 sm:$0xff]  }
 0x7d9   : > { %v5916_v2 = vrot.slane %v5915_v6, 1 }
 0x7db   : > { %v5917_v59 = vadd.f32 %v5916_v2, %v5915_v6  ;;  %v16466_v2 = vld [vmem:[#allocation8 + $0x180] ss:$16 sps:$4 sm:$0xff]  }
 0x7dd   : > { %16581 = vrcp.f32 %v5917_v59 }
 0x7de   : > { %16583 = vpow2.f32 %v5896_v8  ;;  %v16477_v8 = vld [vmem:[#allocation8 + $0x124] ss:$16 sps:$4 sm:$0xff]  }
 0x7df   : > { %v16580_v39 = vpop.eup %16579 }
 0x7e0   : > { %v5925_v16 = vsel %vm2162_vm2, %v16580_v39, 0.0 }
 0x7e1   : > { %v5926_v49 = vrot.slane %v5925_v16, 4 }
 0x7e3   : > { %v5927_v7 = vadd.f32 %v5926_v49, %v5925_v16  ;;  %v16472_v49 = vld [vmem:[#allocation8 + $0x140] ss:$16 sps:$4 sm:$0xff]  }
 0x7e5   : > { %v5928_v24 = vrot.slane %v5927_v7, 2 }
 0x7e7   : > { %v5929_v13 = vadd.f32 %v5928_v24, %v5927_v7  ;;  %v16475_v7 = vld [vmem:[#allocation8 + $0x120] ss:$16 sps:$4 sm:$0xff]   ;;  %v16480_v24 = vld [vmem:[#allocation8 + $0x104] ss:$16 sps:$4 sm:$0xff]  }
 0x7e9   : > { %v5930_v45 = vrot.slane %v5929_v13, 1 }
 0x7ea   : > { %v16582_v9 = vpop.eup %16581 }
 0x7eb   : > { %v5931_v60 = vadd.f32 %v5930_v45, %v5929_v13  ;;  %v5937_v17 = vmul.f32 %v16582_v9, %v16578_v10  ;;  %v18453_v12 = vpop.eup %16583  ;;  %v16457_v10 = vld [vmem:[#allocation8 + $0x1e0] ss:$16 sps:$4 sm:$0xff]  }
 0x7ec   : > { %v5904_v14 = vsel %vm2162_vm2, %v18453_v12, 0.0 }
 0x7ed   : > { %16585 = vrcp.f32 %v5931_v60  ;;  %v5941_v31 = vpack.c.bf16 %v5937_v17, %v5937_v17  ;;  %v5905_v15 = vrot.slane %v5904_v14, 4 }
 0x7ee   : > { %16587 = vpow2.f32 %v5900_v63  ;;  %v16478_v63 = vld [vmem:[#allocation8 + $0x100] ss:$16 sps:$4 sm:$0xff]  }
 0x7ef   : > { %15692 = vmatmul.mubr.msk.bf16.vlgmr.msra.gmra.mxu0 %vm2162_vm2, %v5941_v31  ;;  %v5906_v36 = vadd.f32 %v5905_v15, %v5904_v14 }
 0x7f0   : > { %15702 = vmatpush3.bf16.msra.mxu0 %v18369_v41  ;;  %15703 = vmatprep.mubr.msk.bf16.mxu0 %vm16970_vm0, %v20281_v40 }
 0x7f1   : > { %6492 = vmatprep.subr.bf16.mxu0 %v16459_v54  ;;  %v5907_v23 = vrot.slane %v5906_v36, 2 }
 0x7f3   : > { %v5908_v6 = vadd.f32 %v5907_v23, %v5906_v36 }
 0x7f5   : > { %v5909_v59 = vrot.slane %v5908_v6, 1 }
 0x7f7   : > { %v5910_v52 = vadd.f32 %v5909_v59, %v5908_v6 }
 0x7f9   : > { %16589 = vrcp.f32 %v5910_v52 }
 0x7fa   : > { %v16586_v3 = vpop.eup %16585 }
 0x7fb   : > { %v5939_v37 = vmul.f32 %v16586_v3, %v16580_v39  ;;  %v18457_v46 = vpop.eup %16587  ;;  %v16469_v39 = vld [vmem:[#allocation8 + $0x160] ss:$16 sps:$4 sm:$0xff]  }
 0x7fc   : > { %v5918_v41 = vsel %vm2162_vm2, %v18457_v46, 0.0 }
 0x7fd   : > { %v5943_v58 = vpack.c.bf16 %v5939_v37, %v5939_v37  ;;  %v5919_v21 = vrot.slane %v5918_v41, 4 }
 0x7ff   : > { %15704 = vmatmul.mubr.msk.bf16.vlgmr.msra.gmra.mxu0 %vm2162_vm2, %v5943_v58  ;;  %v5920_v26 = vadd.f32 %v5919_v21, %v5918_v41 }
 0x800   : > { %6493 = vmatpush1.bf16.msra.mxu0 %v16457_v10  ;;  %6524 = vmatprep.mubr.bf16.mxu0 %v20282_v0 }
 0x801   : > { %6494 = vmatprep.subr.bf16.mxu0 %v16462_v50  ;;  %v5921_v29 = vrot.slane %v5920_v26, 2 }
 0x803   : > { %v5922_v16 = vadd.f32 %v5921_v29, %v5920_v26 }
 0x804   : > { %6495 = vmatpush1.bf16.msra.mxu0 %v16460_v11 }
 0x805   : > { %6496 = vmatprep.subr.bf16.mxu0 %v16465_v62  ;;  %v5923_v42 = vrot.slane %v5922_v16, 1 }
 0x806   : > { %v16590_v38 = vpop.eup %16589 }
 0x807   : > { %v5924_v48 = vadd.f32 %v5923_v42, %v5922_v16 }
 0x808   : > { %6497 = vmatpush1.bf16.msra.mxu0 %v16463_v61 }
 0x809   : > { %6498 = vmatprep.subr.bf16.mxu0 %v16468_v19  ;;  %16591 = vrcp.f32 %v5924_v48 }
 0x80c   : > { %6499 = vmatpush1.bf16.msra.mxu0 %v16466_v2 }
 0x80d   : > { %6500 = vmatprep.subr.bf16.mxu0 %v16471_v57 }
 0x810   : > { %6501 = vmatpush1.bf16.msra.mxu0 %v16469_v39 }
 0x811   : > { %6502 = vmatprep.subr.bf16.mxu0 %v16474_v32 }
 0x814   : > { %6503 = vmatpush1.bf16.msra.mxu0 %v16472_v49 }
 0x815   : > { %6504 = vmatprep.subr.bf16.mxu0 %v16477_v8 }
 0x816   : > { %v5039_v13 = vpop.permute.xlu1 %5038  ;;  %v5043_v45 = vpop.permute.xlu0 %5042 }
 0x817   : > { %v5049_v9 = vsel %vm1973_vm1, %v5033_v43, %v5039_v13  ;;  %v5936_v43 = vmul.f32 %v16590_v38, %v18453_v12  ;;  %v16592_v3 = vpop.eup %16591 }
 0x818   : > { %6505 = vmatpush1.bf16.msra.mxu0 %v16475_v7  ;;  %v5050_v60 = vsel %vm2564_vm3, %v5049_v9, %v5043_v45  ;;  %v5938_v15 = vmul.f32 %v16592_v3, %v18457_v46 }
 0x819   : > { %6506 = vmatprep.subr.bf16.mxu0 %v16480_v24  ;;  %v5940_v14 = vpack.c.bf16 %v5936_v43, %v5936_v43 }
 0x81a   : > { %v5047_v17 = vpop.permute.xlu1 %5046 }
 0x81b   : > { %v5051_v31 = vsel %vm2566_vm4, %v5050_v60, %v5047_v17 }
 0x81c   : > { %6507 = vmatpush1.bf16.msra.mxu0 %v16478_v63  ;;  %v18470_v54 = vadd.f32 %v5051_v31, %v17369_v51 }
 0x81d   : > { %15747 = vmatprep.subr.bf16.mxu0 %v20281_v40 }
 0x81e   : > { %v5053_v33 = vpack.c.bf16 %v18470_v54, %v18470_v54 }
 0x81f   : > { %6525 = vmatmul.mubr.bf16.vlgmr.msra.gmra.mxu0 %v18414_v1 }
 0x820   : > { %15656 = vmatmul.mubr.bf16.vlgmr.msra.gmra.mxu1 %v5053_v33  ;;  %6534 = vmatprep.mubr.bf16.mxu0 %v20282_v0 }
 0x821   : > { %15684 = vmatpush3.bf16.msra.mxu1 %v18364_v22  ;;  %15685 = vmatprep.mubr.msk.bf16.mxu1 %vm16970_vm0, %v20281_v40  ;;  %v5942_v22 = vpack.c.bf16 %v5938_v15, %v5938_v15 }
 0x822   : > { %15695 = vmatprep.subr.bf16.mxu1 %v20281_v40 }
 0x828   : > { %15686 = vmatmul.mubr.msk.bf16.vlgmr.msra.gmra.mxu1 %vm2162_vm2, %v5940_v14 }
 0x829   : > { %15696 = vmatpush3.bf16.msra.mxu1 %v18374_v44  ;;  %15697 = vmatprep.mubr.msk.bf16.mxu1 %vm16970_vm0, %v20281_v40 }
 0x82a   : > { %15707 = vmatprep.subr.bf16.mxu1 %v20281_v40 }
 0x830   : > { %15698 = vmatmul.mubr.msk.bf16.vlgmr.msra.gmra.mxu1 %vm2162_vm2, %v5942_v22 }
 0x831   : > { %15708 = vmatpush3.bf16.msra.mxu1 %v18294_v4  ;;  %15723 = vmatprep.mubr.msk.bf16.mxu1 %vm16970_vm0, %v20281_v40 }
 0x832   : > { %15709 = vmatprep.subr.bf16.mxu1 %v20281_v40 }
 0x835   : > { %15710 = vmatpush3.bf16.msra.mxu1 %v18314_v18 }
 0x836   : > { %15711 = vmatprep.subr.bf16.mxu1 %v20281_v40 }
 0x839   : > { %15712 = vmatpush3.bf16.msra.mxu1 %v18324_v5 }
 0x83a   : > { %15713 = vmatprep.subr.bf16.mxu1 %v20281_v40 }
 0x83d   : > { %15714 = vmatpush3.bf16.msra.mxu1 %v18339_v56 }
 0x83e   : > { %15715 = vmatprep.subr.bf16.mxu1 %v20281_v40 }
 0x841   : > { %15716 = vmatpush3.bf16.msra.mxu1 %v18358_v55 }
 0x842   : > { %15717 = vmatprep.subr.bf16.mxu1 %v20281_v40 }
 0x845   : > { %15718 = vmatpush3.bf16.msra.mxu1 %v18371_v47 }
 0x846   : > { %15719 = vmatprep.subr.bf16.mxu1 %v20281_v40 }
 0x849   : > { %15720 = vmatpush3.bf16.msra.mxu1 %v18380_v25 }
 0x84a   : > { %15721 = vmatprep.subr.bf16.mxu1 %v20281_v40 }
 0x84d   : > { %15722 = vmatpush3.bf16.msra.mxu1 %v18387_v30 }
 0x8af   : > { %v6024_v4 = vpop.f32.mrf.mxu0 }
 0x8b1   : > { %v15693_v18 = vpop.f32.mrf.mxu0 }
 0x8b3   : > { %v6027_v5 = vpop.f32.mrf.mxu0 }
 0x8b5   : > { %v15694_v56 = vpop.f32.mrf.mxu0 }
 0x8bf   : > { %v6110_v44 = vpop.f32.mrf.mxu0 }
 0x8c0   : > { %v6132_v11 = vcombine.low %v6024_v4, %v6110_v44  ;;  %v6133_v62 = vcombine.high %v6024_v4, %v6110_v44  ;;  %v18524_v4 = vld [vmem:[#allocation10 + $0x4] sm:$0x7] }
 0x8c1   : > { %v15705_v12 = vpop.f32.mrf.mxu0  ;;  %v18528_v18 = vrot.slane %v18524_v4, %v17374_v53 }
 0x8c2   : > { %v6140_v19 = vrot.slane %v6132_v11, %v17430_v20  ;;  %v6147_v6 = vrot.slane %v6133_v62, %v17430_v20 }
 0x8c3   : > { %v6113_v37 = vpop.f32.mrf.mxu0 }
 0x8c5   : > { %v15706_v55 = vpop.f32.mrf.mxu0 }
 0x8df   : > { %v6526_v43 = vpop.f32.mrf.mxu0 }
 0x8e0   : > { %v18506_v46 = vpop.f32.mrf.mxu1 }
 0x8e1   : > { %v6528_v12 = vpop.f32.mrf.mxu0 }
 0x8e2   : > { %v15657_v10 = vpop.f32.mrf.mxu1  ;;  %v6529_v37 = vadd.f32 %v6528_v12, %v18528_v18 }
 0x8e3   : > { %v18537_v10 = vrot.slane %v18524_v4, %v17345_v35 }
 0x8e4   : > { %v5091_v47 = vpop.f32.mrf.mxu1 }
 0x8e5   : > { %v18542_v47 = vadd.f32 %v6526_v43, %v18537_v10 }
 0x8e6   : > { %v15658_v58 = vpop.f32.mrf.mxu1 }
 0x8e7   : > { %v16481_v58 = vld [vmem:[#allocation8 + $0x1e8] ss:$16 sps:$4 sm:$0xff]  }
 0x8e8   : > { %v5981_v50 = vpop.f32.mrf.mxu1  ;;  %15727 = vmatprep.subr.bf16.mxu1 %v16481_v58 }
 0x8ea   : > { %v15687_v36 = vpop.f32.mrf.mxu1 }
 0x8ec   : > { %v5984_v25 = vpop.f32.mrf.mxu1 }
 0x8ee   : > { %v15688_v41 = vpop.f32.mrf.mxu1 }
 0x8f0   : > { %v6067_v30 = vpop.f32.mrf.mxu1 }
 0x8f1   : > { %v6116_v23 = vcombine.low %v5981_v50, %v6067_v30  ;;  %v6117_v21 = vcombine.high %v5981_v50, %v6067_v30 }
 0x8f2   : > { %v15699_v61 = vpop.f32.mrf.mxu1 }
 0x8f3   : > { %v6124_v26 = vrot.slane %v6116_v23, %v17430_v20  ;;  %v6131_v2 = vrot.slane %v6117_v21, %v17430_v20 }
 0x8f4   : > { %v6070_v57 = vpop.f32.mrf.mxu1 }
 0x8f5   : > { %v6148_v59 = vcombine.low %v6124_v26, %v6140_v19  ;;  %v6149_v29 = vcombine.high %v6124_v26, %v6140_v19  ;;  %v6164_v39 = vcombine.low %v6131_v2, %v6147_v6  ;;  %v6165_v32 = vcombine.high %v6131_v2, %v6147_v6 }
 0x8f6   : > { %v15700_v52 = vpop.f32.mrf.mxu1 }
 0x8f7   : > { %v6156_v16 = vrot.slane %v6148_v59, %v17435_v27  ;;  %v6163_v49 = vrot.slane %v6149_v29, %v17435_v27  ;;  %v6172_v8 = vrot.slane %v6164_v39, %v17435_v27  ;;  %v6179_v42 = vrot.slane %v6165_v32, %v17435_v27  ;;  %v16482_v59 = vld [vmem:[#allocation8 + $0x1c8] ss:$16 sps:$4 sm:$0xff]  }
 0x8f9   : > { %v6184_v7 = vcombine.low %v6156_v16, %v6163_v49  ;;  %v14846_v24 = vcombine.high %v6156_v16, %v6163_v49  ;;  %v6200_v48 = vcombine.low %v6172_v8, %v6179_v42  ;;  %v14847_v13 = vcombine.high %v6172_v8, %v6179_v42  ;;  %v16483_v42 = vld [vmem:[#allocation8 + $0x1a8] ss:$16 sps:$4 sm:$0xff]  }
 0x8fb   : > { %v6191_v45 = vrot.slane %v6184_v7, %v17430_v20  ;;  %v6199_v9 = vrot.slane %v14846_v24, %v17430_v20  ;;  %v6207_v63 = vrot.slane %v6200_v48, %v17430_v20  ;;  %v6215_v60 = vrot.slane %v14847_v13, %v17430_v20 }
 0x8fd   : > { %v6217_v17 = vcombine.high %v6191_v45, %v6199_v9  ;;  %v6233_v31 = vcombine.high %v6207_v63, %v6215_v60  ;;  %v6216_v33 = vcombine.low %v6191_v45, %v6199_v9  ;;  %v6232_v38 = vcombine.low %v6207_v63, %v6215_v60  ;;  %v16484_v60 = vld [vmem:[#allocation8 + $0x188] ss:$16 sps:$4 sm:$0xff]  }
 0x8ff   : > { %v6231_v14 = vrot.slane %v6217_v17, %v17435_v27  ;;  %v6247_v3 = vrot.slane %v6233_v31, %v17435_v27  ;;  %v6224_v15 = vrot.slane %v6216_v33, %v17435_v27  ;;  %v6240_v22 = vrot.slane %v6232_v38, %v17435_v27 }
 0x901   : > { %v6250_v5 = vcombine.low %v6231_v14, %v6247_v3  ;;  %v6249_v56 = vcombine.high %v6224_v15, %v6240_v22  ;;  %v6248_v44 = vcombine.low %v6224_v15, %v6240_v22  ;;  %v6251_v55 = vcombine.high %v6231_v14, %v6247_v3  ;;  %v16485_v3 = vld [vmem:[#allocation8 + $0x168] ss:$16 sps:$4 sm:$0xff]  }
 0x903   : > { %6257 = vrot.lane.b32.xlu1 %v6250_v5, %s16972_s18  ;;  %6253 = vrot.lane.b32.xlu0 %v6249_v56, %s16974_s19 }
 0x907   : > { %6758 = vrot.lane.b32.xlu1 %v6529_v37, %s16973_s15  ;;  %6261 = vrot.lane.b32.xlu0 %v6251_v55, %s16973_s15  ;;  %v16486_v55 = vld [vmem:[#allocation8 + $0x148] ss:$16 sps:$4 sm:$0xff]  }
 0x90b   : > { %6764 = vrot.lane.b32.xlu1 %v6529_v37, %s16974_s19  ;;  %6761 = vrot.lane.b32.xlu0 %v6529_v37, %s16972_s18 }
 0x90f   : > { %6615 = vrot.lane.b32.xlu1 %v18542_v47, %s16972_s18  ;;  %6612 = vrot.lane.b32.xlu0 %v18542_v47, %s16973_s15 }
 0x913   : > { %6618 = vrot.lane.b32.xlu0 %v18542_v47, %s16974_s19 }
 0x975   : > { %v6258_v50 = vpop.permute.xlu1 %6257  ;;  %v6254_v36 = vpop.permute.xlu0 %6253 }
 0x976   : > { %v6264_v25 = vsel %vm1973_vm1, %v6248_v44, %v6254_v36 }
 0x977   : > { %v6265_v62 = vsel %vm2564_vm3, %v6264_v25, %v6258_v50 }
 0x979   : > { %v6759_v41 = vpop.permute.xlu1 %6758  ;;  %v6262_v11 = vpop.permute.xlu0 %6261 }
 0x97a   : > { %v6266_v30 = vsel %vm2566_vm4, %v6265_v62, %v6262_v11  ;;  %v16487_v11 = vld [vmem:[#allocation8 + $0x128] ss:$16 sps:$4 sm:$0xff]  }
 0x97b   : > { %v18554_v23 = vadd.f32 %v6266_v30, %v17369_v51  ;;  %v16488_v62 = vld [vmem:[#allocation8 + $0x108] ss:$16 sps:$4 sm:$0xff]  }
 0x97d   : > { %v6268_v21 = vpack.c.bf16 %v18554_v23, %v18554_v23  ;;  %v6765_v61 = vpop.permute.xlu1 %6764  ;;  %v6762_v19 = vpop.permute.xlu0 %6761 }
 0x97e   : > { %v6783_v6 = vcombine.low %v6759_v41, %v6765_v61  ;;  %v6784_v26 = vcombine.high %v6759_v41, %v6765_v61  ;;  %v6767_v2 = vcombine.low %v6529_v37, %v6762_v19  ;;  %v6768_v57 = vcombine.high %v6529_v37, %v6762_v19 }
 0x97f   : > { %15724 = vmatmul.mubr.bf16.vlgmr.msra.gmra.mxu1 %v6268_v21 }
 0x980   : > { %v6791_v29 = vrot.slane %v6783_v6, %v17430_v20  ;;  %v6798_v39 = vrot.slane %v6784_v26, %v17430_v20  ;;  %v6775_v32 = vrot.slane %v6767_v2, %v17430_v20  ;;  %v6782_v51 = vrot.slane %v6768_v57, %v17430_v20  ;;  %15743 = vmatprep.mubr.bf16.mxu1 %v18414_v1 }
 0x981   : > { %15728 = vmatpush3.bf16.msra.mxu1 %v16481_v58  ;;  %v6613_v30 = vpop.permute.xlu0 %6612  ;;  %v6616_v61 = vpop.permute.xlu1 %6615 }
 0x982   : > { %v6799_v52 = vcombine.low %v6775_v32, %v6791_v29  ;;  %v6800_v16 = vcombine.high %v6775_v32, %v6791_v29  ;;  %v6815_v49 = vcombine.low %v6782_v51, %v6798_v39  ;;  %v6816_v8 = vcombine.high %v6782_v51, %v6798_v39  ;;  %15729 = vmatprep.subr.bf16.mxu1 %v16482_v59 }
 0x983   : > { %v6621_v26 = vcombine.low %v18542_v47, %v6616_v61  ;;  %v6622_v2 = vcombine.high %v18542_v47, %v6616_v61 }
 0x984   : > { %v6807_v7 = vrot.slane %v6799_v52, %v17435_v27  ;;  %v6814_v24 = vrot.slane %v6800_v16, %v17435_v27  ;;  %v6823_v48 = vrot.slane %v6815_v49, %v17435_v27  ;;  %v6830_v13 = vrot.slane %v6816_v8, %v17435_v27 }
 0x985   : > { %15730 = vmatpush3.bf16.msra.mxu1 %v16482_v59  ;;  %v6619_v21 = vpop.permute.xlu0 %6618  ;;  %v6629_v29 = vrot.slane %v6621_v26, %v17430_v20  ;;  %v6636_v39 = vrot.slane %v6622_v2, %v17430_v20 }
 0x986   : > { %v6835_v45 = vcombine.low %v6807_v7, %v6814_v24  ;;  %v14874_v9 = vcombine.high %v6807_v7, %v6814_v24  ;;  %v6851_v63 = vcombine.low %v6823_v48, %v6830_v13  ;;  %v14875_v1 = vcombine.high %v6823_v48, %v6830_v13  ;;  %15731 = vmatprep.subr.bf16.mxu1 %v16483_v42 }
 0x987   : > { %v6637_v19 = vcombine.low %v6613_v30, %v6619_v21  ;;  %v6638_v6 = vcombine.high %v6613_v30, %v6619_v21 }
 0x988   : > { %v6842_v17 = vrot.slane %v6835_v45, %v17430_v20  ;;  %v6850_v31 = vrot.slane %v14874_v9, %v17430_v20  ;;  %v6858_v33 = vrot.slane %v6851_v63, %v17430_v20  ;;  %v6866_v38 = vrot.slane %v14875_v1, %v17430_v20 }
 0x989   : > { %15732 = vmatpush3.bf16.msra.mxu1 %v16483_v42  ;;  %v6645_v57 = vrot.slane %v6637_v19, %v17430_v20  ;;  %v6652_v59 = vrot.slane %v6638_v6, %v17430_v20  ;;  %v5089_v9 = vadd.f32 %v18407_v28, %v18506_v46 }
 0x98a   : > { %v6867_v43 = vcombine.low %v6842_v17, %v6850_v31  ;;  %v6883_v14 = vcombine.low %v6858_v33, %v6866_v38  ;;  %15733 = vmatprep.subr.bf16.mxu1 %v16484_v60  ;;  %v6868_v15 = vcombine.high %v6842_v17, %v6850_v31  ;;  %v6884_v22 = vcombine.high %v6858_v33, %v6866_v38 }
 0x98b   : > { %v6653_v32 = vcombine.low %v6629_v29, %v6645_v57  ;;  %v6654_v51 = vcombine.high %v6629_v29, %v6645_v57  ;;  %v6669_v52 = vcombine.low %v6636_v39, %v6652_v59  ;;  %v6670_v16 = vcombine.high %v6636_v39, %v6652_v59  ;;  %v6530_v59 = vpop.f32.mrf.mxu0 }
 0x98c   : > { %v6875_v5 = vrot.slane %v6867_v43, %v17435_v27  ;;  %v6891_v56 = vrot.slane %v6883_v14, %v17435_v27  ;;  %v6882_v44 = vrot.slane %v6868_v15, %v17435_v27  ;;  %v6898_v12 = vrot.slane %v6884_v22, %v17435_v27 }
 0x98d   : > { %15734 = vmatpush3.bf16.msra.mxu1 %v16484_v60  ;;  %v6661_v49 = vrot.slane %v6653_v32, %v17435_v27  ;;  %v6668_v8 = vrot.slane %v6654_v51, %v17435_v27  ;;  %v6677_v42 = vrot.slane %v6669_v52, %v17435_v27  ;;  %v6684_v7 = vrot.slane %v6670_v16, %v17435_v27  ;;  %v6532_v39 = vpop.f32.mrf.mxu0 }
 0x98e   : > { %v6899_v37 = vcombine.low %v6875_v5, %v6891_v56  ;;  %15735 = vmatprep.subr.bf16.mxu1 %v16485_v3  ;;  %v18575_v58 = vcombine.high %v6882_v44, %v6898_v12  ;;  %v18577_v50 = vcombine.high %v6875_v5, %v6891_v56  ;;  %v18579_v36 = vcombine.low %v6882_v44, %v6898_v12 }
 0x98f   : > { %v6689_v24 = vcombine.low %v6661_v49, %v6668_v8  ;;  %v14872_v48 = vcombine.high %v6661_v49, %v6668_v8  ;;  %v6705_v13 = vcombine.low %v6677_v42, %v6684_v7  ;;  %v14873_v45 = vcombine.high %v6677_v42, %v6684_v7 }
 0x990   : > { %v6903_v25 = vpack.c.bf16 %v6899_v37, %v6899_v37  ;;  %v5094_v33 = vmax.f32 %v5089_v9, 0.0  ;;  %v6906_v12 = vpack.c.bf16 %v18575_v58, %v18575_v58  ;;  %v6904_v58 = vpack.c.bf16 %v18577_v50, %v18577_v50 }
 0x991   : > { %15736 = vmatpush3.bf16.msra.mxu1 %v16485_v3  ;;  %v6696_v63 = vrot.slane %v6689_v24, %v17430_v20  ;;  %v6704_v1 = vrot.slane %v14872_v48, %v17430_v20  ;;  %v6712_v60 = vrot.slane %v6705_v13, %v17430_v20  ;;  %v6720_v17 = vrot.slane %v14873_v45, %v17430_v20 }
 0x992   : > { %v7065_v41 = vsel %vm1973_vm1, %v6903_v25, 0  ;;  %15737 = vmatprep.subr.bf16.mxu1 %v16486_v55  ;;  %v5095_v46 = vadd.f32 %v5094_v33, %v18470_v54  ;;  %v7111_v61 = vsel %vm1973_vm1, %v6904_v58, 0  ;;  %v6905_v50 = vpack.c.bf16 %v18579_v36, %v18579_v36 }
 0x993   : > { %15748 = vmatpush3.bf16.xpose.msra.mxu0 %v7065_v41  ;;  %v6721_v43 = vcombine.low %v6696_v63, %v6704_v1  ;;  %v6722_v3 = vcombine.high %v6696_v63, %v6704_v1  ;;  %v6737_v15 = vcombine.low %v6712_v60, %v6720_v17  ;;  %v6738_v22 = vcombine.high %v6712_v60, %v6720_v17 }
 0x994   : > { %15753 = vmatprep.subr.bf16.mxu0 %v20281_v40  ;;  %v7157_v26 = vsel %vm1973_vm1, %v6905_v50, 0  ;;  %v6359_v36 = vsub.s32 2, %v17342_v34  ;;  %v18656_v13 = vadd.f32 %v6532_v39, %v18528_v18 }
 0x995   : > { %15738 = vmatpush3.bf16.msra.mxu1 %v16486_v55  ;;  %v6729_v37 = vrot.slane %v6721_v43, %v17435_v27  ;;  %v6745_v25 = vrot.slane %v6737_v15, %v17435_v27  ;;  %v6736_v41 = vrot.slane %v6722_v3, %v17435_v27 }
 0x996   : > { %15739 = vmatprep.subr.bf16.mxu1 %v16487_v11  ;;  %v6360_v29 = vrot.slane %v18524_v4, %v6359_v36 }
 0x997   : > { %v6753_v54 = vcombine.low %v6729_v37, %v6745_v25  ;;  %v6754_v19 = vcombine.high %v6729_v37, %v6745_v25 }
 0x999   : > { %15740 = vmatpush3.bf16.msra.mxu1 %v16487_v11  ;;  %v6752_v11 = vrot.slane %v6738_v22, %v17435_v27  ;;  %v7057_v30 = vpack.c.bf16 %v6753_v54, %v6753_v54  ;;  %v7058_v6 = vpack.c.bf16 %v6754_v19, %v6754_v19 }
 0x99a   : > { %15741 = vmatprep.subr.bf16.mxu1 %v16488_v62 }
 0x99b   : > { %v6755_v2 = vcombine.low %v6736_v41, %v6752_v11 }
 0x99d   : > { %15742 = vmatpush3.bf16.msra.mxu1 %v16488_v62  ;;  %v7203_v62 = vsel %vm1973_vm1, %v6906_v12, 0  ;;  %v7059_v57 = vpack.c.bf16 %v6755_v2, %v6755_v2 }
 0x99e   : > { %15765 = vmatprep.subr.bf16.mxu1 %v20281_v40 }
 0xa3f   : > { %v6303_v31 = vpop.f32.mrf.mxu1 }
 0xa40   : > { %v6304_v38 = vadd.f32 %v18407_v28, %v6303_v31 }
 0xa41   : > { %v15725_v14 = vpop.f32.mrf.mxu1 }
 0xa42   : > { %v6309_v5 = vmax.f32 %v6304_v38, 0.0  ;;  %v18667_v38 = vadd.f32 %v6530_v59, %v18537_v10 }
 0xa43   : > { %v6306_v56 = vpop.f32.mrf.mxu1 }
 0xa44   : > { %v6310_v44 = vadd.f32 %v6309_v5, %v18554_v23  ;;  %v6756_v23 = vcombine.high %v6736_v41, %v6752_v11 }
 0xa45   : > { %v15726_v55 = vpop.f32.mrf.mxu1 }
 0xa46   : > { %v6345_v28 = vpack.c.bf16 %v6310_v44, %v5095_v46  ;;  %v7060_v21 = vpack.c.bf16 %v6756_v23, %v6756_v23 }
 0xa48   : > { %6535 = vmatmul.mubr.bf16.gmra.mxu0 %v6345_v28  ;;  %15744 = vmatmul.mubr.bf16.vlgmr.msra.gmra.mxu1 %v6345_v28 }
 0xa49   : > { %15766 = vmatpush3.bf16.xpose.msra.mxu1 %v7203_v62  ;;  %15749 = vmatprep.mubr.msk.bf16.mxu0 %vm16970_vm0, %v20281_v40 }
 0xa4a   : > { %15767 = vmatprep.mubr.msk.bf16.mxu1 %vm16970_vm0, %v20281_v40  ;;  %15777 = vmatprep.subr.bf16.mxu1 %v20281_v40 }
 0xa50   : > { %15750 = vmatmul.mubr.msk.bf16.vlgmr.msra.gmra.mxu0 %vm1973_vm1, %v7057_v30  ;;  %15768 = vmatmul.mubr.msk.bf16.vlgmr.msra.gmra.mxu1 %vm1973_vm1, %v7060_v21 }
 0xa51   : > { %15754 = vmatpush3.bf16.xpose.msra.mxu0 %v7111_v61  ;;  %15755 = vmatprep.mubr.msk.bf16.mxu0 %vm16970_vm0, %v20281_v40 }
 0xa52   : > { %15759 = vmatprep.subr.bf16.mxu0 %v20281_v40  ;;  %15779 = vmatprep.mubr.msk.bf16.mxu1 %vm16970_vm0, %v20281_v40 }
 0xa58   : > { %15756 = vmatmul.mubr.msk.bf16.vlgmr.msra.gmra.mxu0 %vm1973_vm1, %v7058_v6 }
 0xa59   : > { %15760 = vmatpush3.bf16.xpose.msra.mxu0 %v7157_v26  ;;  %15761 = vmatprep.mubr.msk.bf16.mxu0 %vm16970_vm0, %v20281_v40 }
 0xa5a   : > { %15771 = vmatprep.subr.bf16.mxu0 %v20281_v40 }
 0xa60   : > { %15762 = vmatmul.mubr.msk.bf16.vlgmr.msra.gmra.mxu0 %vm1973_vm1, %v7059_v57 }
 0xa61   : > { %15773 = vmatprep.mubr.msk.bf16.mxu0 %vm16970_vm0, %v20281_v40 }
 0xb08   : > { %v18637_v32 = vpop.f32.mrf.mxu0  ;;  %v15745_v51 = vpop.f32.mrf.mxu1 }
 0xb09   : > { %v18639_v52 = vadd.f32 %v15745_v51, %v6360_v29 }
 0xb0a   : > { %v18641_v16 = vpop.f32.mrf.mxu0  ;;  %v6579_v49 = vpop.f32.mrf.mxu1 }
 0xb0b   : > { %v18643_v8 = vadd.f32 %v6579_v49, %v6360_v29 }
 0xb0c   : > { %v18645_v42 = vpop.f32.mrf.mxu0  ;;  %v15746_v7 = vpop.f32.mrf.mxu1 }
 0xb0d   : > { %v18647_v24 = vadd.f32 %v15746_v7, %v6360_v29  ;;  %6911 = vrot.lane.b32.xlu0 %v18643_v8, %s16972_s18  ;;  %6908 = vrot.lane.b32.xlu1 %v18643_v8, %s16973_s15 }
 0xb0e   : > { %v18653_v4 = vpop.f32.mrf.mxu0  ;;  %v6582_v48 = vpop.f32.mrf.mxu1 }
 0xb0f   : > { %v18673_v3 = vadd.f32 %v6582_v48, %v6360_v29 }
 0xb10   : > { %v7101_v45 = vpop.f32.mrf.mxu0  ;;  %v7239_v9 = vpop.f32.mrf.mxu1 }
 0xb11   : > { %7911 = vrot.lane.b32.xlu0 %v18656_v13, %s16973_s15  ;;  %6914 = vrot.lane.b32.xlu1 %v18643_v8, %s16974_s19  ;;  %v7245_v12 = vmul.f32 0.088388346, %v7101_v45  ;;  %v7248_v58 = vmul.f32 0.088388346, %v7239_v9 }
 0xb12   : > { %v15751_v63 = vpop.f32.mrf.mxu0  ;;  %v15769_v1 = vpop.f32.mrf.mxu1 }
 0xb13   : > { %v7250_v55 = vsel %vm7249_vm5, %v7245_v12, -inf  ;;  %v7271_v19 = vsel %vm7249_vm5, %v7248_v58, -inf }
 0xb14   : > { %v7104_v60 = vpop.f32.mrf.mxu0  ;;  %v7242_v17 = vpop.f32.mrf.mxu1  ;;  %v7251_v28 = vrot.slane %v7250_v55, 4  ;;  %v7272_v26 = vrot.slane %v7271_v19, 4 }
 0xb15   : > { %7917 = vrot.lane.b32.xlu0 %v18656_v13, %s16974_s19  ;;  %7914 = vrot.lane.b32.xlu1 %v18656_v13, %s16972_s18 }
 0xb16   : > { %v15752_v31 = vpop.f32.mrf.mxu0  ;;  %v15770_v33 = vpop.f32.mrf.mxu1  ;;  %v7252_v11 = vmax.f32 %v7250_v55, %v7251_v28  ;;  %v7273_v59 = vmax.f32 %v7271_v19, %v7272_v26 }
 0xb18   : > { %v7147_v43 = vpop.f32.mrf.mxu0  ;;  %v7253_v54 = vrot.slane %v7252_v11, 2  ;;  %v7274_v49 = vrot.slane %v7273_v59, 2 }
 0xb19   : > { %7768 = vrot.lane.b32.xlu0 %v18667_v38, %s16972_s18  ;;  %7765 = vrot.lane.b32.xlu1 %v18667_v38, %s16973_s15  ;;  %v7246_v37 = vmul.f32 0.088388346, %v7147_v43 }
 0xb1a   : > { %v15757_v14 = vpop.f32.mrf.mxu0  ;;  %v7254_v21 = vmax.f32 %v7252_v11, %v7253_v54  ;;  %v7275_v9 = vmax.f32 %v7273_v59, %v7274_v49 }
 0xb1b   : > { %v7257_v25 = vsel %vm7249_vm5, %v7246_v37, -inf }
 0xb1c   : > { %v7150_v15 = vpop.f32.mrf.mxu0  ;;  %v7258_v41 = vrot.slane %v7257_v25, 4  ;;  %v7255_v6 = vrot.slane %v7254_v21, 1  ;;  %v7276_v60 = vrot.slane %v7275_v9, 1 }
 0xb1d   : > { %8061 = vrot.lane.b32.xlu0 %v18673_v3, %s16973_s15  ;;  %7771 = vrot.lane.b32.xlu1 %v18667_v38, %s16974_s19 }
 0xb1e   : > { %v15758_v22 = vpop.f32.mrf.mxu0  ;;  %v7259_v62 = vmax.f32 %v7257_v25, %v7258_v41  ;;  %v7256_v36 = vmax.f32 %v7254_v21, %v7255_v6  ;;  %v7277_v31 = vmax.f32 %v7275_v9, %v7276_v60 }
 0xb20   : > { %v7193_v5 = vpop.f32.mrf.mxu0  ;;  %v7260_v23 = vrot.slane %v7259_v62, 2  ;;  %v7278_v51 = vsub.f32 %v7245_v12, %v7256_v36  ;;  %v7281_v43 = vsub.f32 %v7248_v58, %v7277_v31 }
 0xb21   : > { %8067 = vrot.lane.b32.xlu0 %v18673_v3, %s16974_s19  ;;  %8064 = vrot.lane.b32.xlu1 %v18673_v3, %s16972_s18  ;;  %v7247_v30 = vmul.f32 0.088388346, %v7193_v5 }
 0xb22   : > { %v15763_v56 = vpop.f32.mrf.mxu0  ;;  %v7261_v61 = vmax.f32 %v7259_v62, %v7260_v23  ;;  %v7282_v45 = vmul.f32 1.442695, %v7278_v51  ;;  %v7288_v22 = vmul.f32 1.442695, %v7281_v43 }
 0xb23   : > { %v7264_v50 = vsel %vm7249_vm5, %v7247_v30, -inf }
 0xb24   : > { %v7196_v46 = vpop.f32.mrf.mxu0  ;;  %v7262_v2 = vrot.slane %v7261_v61, 1  ;;  %v7265_v57 = vrot.slane %v7264_v50, 4  ;;  %16593 = vpow2.f32 %v7282_v45 }
 0xb26   : > { %v15764_v44 = vpop.f32.mrf.mxu0  ;;  %v7263_v29 = vmax.f32 %v7261_v61, %v7262_v2  ;;  %v7266_v39 = vmax.f32 %v7264_v50, %v7265_v57 }
 0xb28   : > { %v7279_v7 = vsub.f32 %v7246_v37, %v7263_v29  ;;  %v7267_v48 = vrot.slane %v7266_v39, 2 }
 0xb2a   : > { %v7284_v63 = vmul.f32 1.442695, %v7279_v7  ;;  %v7268_v1 = vmax.f32 %v7266_v39, %v7267_v48 }
 0xb2c   : > { %16595 = vpow2.f32 %v7284_v63  ;;  %v7269_v17 = vrot.slane %v7268_v1, 1 }
 0xb2d   : > { %16597 = vpow2.f32 %v7288_v22 }
 0xb2e   : > { %v7270_v33 = vmax.f32 %v7268_v1, %v7269_v17 }
 0xb30   : > { %v7280_v14 = vsub.f32 %v7247_v30, %v7270_v33 }
 0xb31   : > { %v18687_v15 = vpop.eup %16593 }
 0xb32   : > { %v7286_v56 = vmul.f32 1.442695, %v7280_v14  ;;  %v7290_v46 = vsel %vm7249_vm5, %v18687_v15, 0.0 }
 0xb33   : > { %v7291_v12 = vrot.slane %v7290_v46, 4 }
 0xb34   : > { %16599 = vpow2.f32 %v7286_v56 }
 0xb35   : > { %v7292_v55 = vadd.f32 %v7291_v12, %v7290_v46 }
 0xb37   : > { %v7293_v28 = vrot.slane %v7292_v55, 2 }
 0xb39   : > { %v18689_v5 = vpop.eup %16595  ;;  %v7294_v54 = vadd.f32 %v7293_v28, %v7292_v55 }
 0xb3a   : > { %v7297_v44 = vsel %vm7249_vm5, %v18689_v5, 0.0  ;;  %v18695_v11 = vpop.eup %16597 }
 0xb3b   : > { %v7298_v37 = vrot.slane %v7297_v44, 4  ;;  %v7311_v58 = vsel %vm7249_vm5, %v18695_v11, 0.0  ;;  %v7295_v21 = vrot.slane %v7294_v54, 1 }
 0xb3c   : > { %v7312_v19 = vrot.slane %v7311_v58, 4 }
 0xb3d   : > { %v7299_v25 = vadd.f32 %v7298_v37, %v7297_v44  ;;  %v7296_v6 = vadd.f32 %v7295_v21, %v7294_v54 }
 0xb3e   : > { %v7313_v2 = vadd.f32 %v7312_v19, %v7311_v58 }
 0xb3f   : > { %v7300_v41 = vrot.slane %v7299_v25, 2  ;;  %16601 = vrcp.f32 %v7296_v6 }
 0xb40   : > { %v7314_v36 = vrot.slane %v7313_v2, 2 }
 0xb41   : > { %v18697_v62 = vpop.eup %16599  ;;  %v7301_v23 = vadd.f32 %v7300_v41, %v7299_v25 }
 0xb42   : > { %v7304_v30 = vsel %vm7249_vm5, %v18697_v62, 0.0  ;;  %v7315_v51 = vadd.f32 %v7314_v36, %v7313_v2 }
 0xb43   : > { %v7302_v61 = vrot.slane %v7301_v23, 1  ;;  %v7305_v50 = vrot.slane %v7304_v30, 4 }
 0xb44   : > { %v7316_v43 = vrot.slane %v7315_v51, 1 }
 0xb45   : > { %v7303_v26 = vadd.f32 %v7302_v61, %v7301_v23  ;;  %v7306_v57 = vadd.f32 %v7305_v50, %v7304_v30 }
 0xb46   : > { %v7317_v61 = vadd.f32 %v7316_v43, %v7315_v51 }
 0xb47   : > { %16603 = vrcp.f32 %v7303_v26  ;;  %v7307_v59 = vrot.slane %v7306_v57, 2 }
 0xb48   : > { %16605 = vrcp.f32 %v7317_v61 }
 0xb49   : > { %v7308_v49 = vadd.f32 %v7307_v59, %v7306_v57 }
 0xb4b   : > { %v7309_v14 = vrot.slane %v7308_v49, 1 }
 0xb4c   : > { %v16602_v37 = vpop.eup %16601 }
 0xb4d   : > { %v18716_v6 = vmul.f32 %v16602_v37, %v18687_v15 }
 0xb54   : > { %v16604_v28 = vpop.eup %16603 }
 0xb55   : > { %v18719_v57 = vmul.f32 %v16604_v28, %v18689_v5 }
 0xb7f   : > { %v6912_v29 = vpop.permute.xlu0 %6911  ;;  %v6909_v39 = vpop.permute.xlu1 %6908 }
 0xb80   : > { %v6917_v45 = vcombine.low %v18643_v8, %v6912_v29  ;;  %v6918_v9 = vcombine.high %v18643_v8, %v6912_v29 }
 0xb82   : > { %v6925_v22 = vrot.slane %v6917_v45, %v17430_v20  ;;  %v6932_v56 = vrot.slane %v6918_v9, %v17430_v20 }
 0xb83   : > { %v7912_v7 = vpop.permute.xlu0 %7911  ;;  %v6915_v48 = vpop.permute.xlu1 %6914 }
 0xb84   : > { %v6933_v63 = vcombine.low %v6909_v39, %v6915_v48  ;;  %v6934_v1 = vcombine.high %v6909_v39, %v6915_v48 }
 0xb86   : > { %v6941_v60 = vrot.slane %v6933_v63, %v17430_v20  ;;  %v6948_v17 = vrot.slane %v6934_v1, %v17430_v20 }
 0xb87   : > { %v7918_v31 = vpop.permute.xlu0 %7917  ;;  %v7915_v33 = vpop.permute.xlu1 %7914 }
 0xb88   : > { %v7936_v46 = vcombine.low %v7912_v7, %v7918_v31  ;;  %v7937_v44 = vcombine.high %v7912_v7, %v7918_v31  ;;  %v7920_v12 = vcombine.low %v18656_v13, %v7915_v33  ;;  %v7921_v8 = vcombine.high %v18656_v13, %v7915_v33 }
 0xb89   : > { %v6949_v55 = vcombine.low %v6925_v22, %v6941_v60  ;;  %v6950_v25 = vcombine.high %v6925_v22, %v6941_v60  ;;  %v6965_v41 = vcombine.low %v6932_v56, %v6948_v17  ;;  %v6966_v54 = vcombine.high %v6932_v56, %v6948_v17 }
 0xb8a   : > { %v7944_v23 = vrot.slane %v7936_v46, %v17430_v20  ;;  %v7928_v58 = vrot.slane %v7920_v12, %v17430_v20  ;;  %v7951_v19 = vrot.slane %v7937_v44, %v17430_v20  ;;  %v7935_v50 = vrot.slane %v7921_v8, %v17430_v20 }
 0xb8b   : > { %v7769_v30 = vpop.permute.xlu0 %7768  ;;  %v7766_v21 = vpop.permute.xlu1 %7765  ;;  %v7310_v13 = vadd.f32 %v7309_v14, %v7308_v49  ;;  %v6957_v36 = vrot.slane %v6949_v55, %v17435_v27  ;;  %v6964_v59 = vrot.slane %v6950_v25, %v17435_v27  ;;  %v6973_v29 = vrot.slane %v6965_v41, %v17435_v27 }
 0xb8c   : > { %v7952_v26 = vcombine.low %v7928_v58, %v7944_v23  ;;  %v7953_v2 = vcombine.high %v7928_v58, %v7944_v23  ;;  %v6980_v39 = vrot.slane %v6966_v54, %v17435_v27  ;;  %v7968_v48 = vcombine.low %v7935_v50, %v7951_v19 }
 0xb8d   : > { %v7969_v15 = vcombine.high %v7935_v50, %v7951_v19  ;;  %16607 = vrcp.f32 %v7310_v13  ;;  %v7326_v49 = vpack.c.bf16 %v18716_v6, %v18716_v6  ;;  %v7774_v63 = vcombine.low %v18667_v38, %v7769_v30 }
 0xb8e   : > { %v7960_v5 = vrot.slane %v7952_v26, %v17435_v27  ;;  %v7967_v9 = vrot.slane %v7953_v2, %v17435_v27  ;;  %v6985_v60 = vcombine.low %v6957_v36, %v6964_v59  ;;  %v14876_v17 = vcombine.high %v6957_v36, %v6964_v59 }
 0xb8f   : > { %v8062_v51 = vpop.permute.xlu0 %8061  ;;  %v7772_v7 = vpop.permute.xlu1 %7771  ;;  %v7001_v31 = vcombine.low %v6973_v29, %v6980_v39  ;;  %v7327_v14 = vpack.c.bf16 %v18719_v57, %v18719_v57  ;;  %v7976_v22 = vrot.slane %v7968_v48, %v17435_v27  ;;  %v7983_v56 = vrot.slane %v7969_v15, %v17435_v27 }
 0xb90   : > { %v7790_v45 = vcombine.low %v7766_v21, %v7772_v7  ;;  %v7791_v1 = vcombine.high %v7766_v21, %v7772_v7  ;;  %v7775_v46 = vcombine.high %v18667_v38, %v7769_v30  ;;  %v14877_v25 = vcombine.high %v6973_v29, %v6980_v39 }
 0xb91   : > { %v7988_v28 = vcombine.low %v7960_v5, %v7967_v9  ;;  %v7782_v41 = vrot.slane %v7774_v63, %v17430_v20  ;;  %v14899_v61 = vcombine.high %v7960_v5, %v7967_v9  ;;  %v8004_v19 = vcombine.low %v7976_v22, %v7983_v56 }
 0xb92   : > { %v7798_v44 = vrot.slane %v7790_v45, %v17430_v20  ;;  %v7805_v54 = vrot.slane %v7791_v1, %v17430_v20  ;;  %v14900_v50 = vcombine.high %v7976_v22, %v7983_v56  ;;  %v7789_v13 = vrot.slane %v7775_v46, %v17430_v20 }
 0xb93   : > { %v8068_v33 = vpop.permute.xlu0 %8067  ;;  %v8065_v43 = vpop.permute.xlu1 %8064  ;;  %v6992_v59 = vrot.slane %v6985_v60, %v17430_v20  ;;  %v7000_v29 = vrot.slane %v14876_v17, %v17430_v20  ;;  %v7008_v39 = vrot.slane %v7001_v31, %v17430_v20  ;;  %v18750_v5 = vrot.slane %v7988_v28, %v17430_v20 }
 0xb94   : > { %v8086_v12 = vcombine.low %v8062_v51, %v8068_v33  ;;  %v8087_v8 = vcombine.high %v8062_v51, %v8068_v33  ;;  %v8070_v37 = vcombine.low %v18673_v3, %v8065_v43  ;;  %v8071_v55 = vcombine.high %v18673_v3, %v8065_v43  ;;  %v16606_v60 = vpop.eup %16605 }
 0xb95   : > { %v7806_v3 = vcombine.low %v7782_v41, %v7798_v44  ;;  %v7807_v26 = vcombine.high %v7782_v41, %v7798_v44  ;;  %v7016_v51 = vrot.slane %v14877_v25, %v17430_v20  ;;  %v7822_v7 = vcombine.low %v7789_v13, %v7805_v54 }
 0xb96   : > { %v8094_v23 = vrot.slane %v8086_v12, %v17430_v20  ;;  %v8101_v58 = vrot.slane %v8087_v8, %v17430_v20  ;;  %v8078_v30 = vrot.slane %v8070_v37, %v17430_v20  ;;  %v8085_v21 = vrot.slane %v8071_v55, %v17430_v20 }
 0xb97   : > { %v7823_v48 = vcombine.high %v7789_v13, %v7805_v54  ;;  %v18753_v9 = vrot.slane %v14899_v61, %v17430_v20  ;;  %v18756_v63 = vrot.slane %v8004_v19, %v17430_v20  ;;  %v18759_v1 = vrot.slane %v14900_v50, %v17430_v20 }
 0xb98   : > { %v8102_v2 = vcombine.low %v8078_v30, %v8094_v23  ;;  %v8103_v36 = vcombine.high %v8078_v30, %v8094_v23  ;;  %v8118_v15 = vcombine.low %v8085_v21, %v8101_v58  ;;  %v8119_v45 = vcombine.high %v8085_v21, %v8101_v58 }
 0xb99   : > { %v7814_v17 = vrot.slane %v7806_v3, %v17435_v27  ;;  %v7821_v31 = vrot.slane %v7807_v26, %v17435_v27  ;;  %v7017_v56 = vcombine.low %v6992_v59, %v7000_v29  ;;  %v7033_v46 = vcombine.low %v7008_v39, %v7016_v51 }
 0xb9a   : > { %v8110_v33 = vrot.slane %v8102_v2, %v17435_v27  ;;  %v8117_v43 = vrot.slane %v8103_v36, %v17435_v27  ;;  %v16608_v22 = vpop.eup %16607  ;;  %v7018_v44 = vcombine.high %v6992_v59, %v7000_v29  ;;  %v7034_v12 = vcombine.high %v7008_v39, %v7016_v51 }
 0xb9b   : > { %v7830_v8 = vrot.slane %v7822_v7, %v17435_v27  ;;  %v7837_v37 = vrot.slane %v7823_v48, %v17435_v27  ;;  %v8126_v55 = vrot.slane %v8118_v15, %v17435_v27  ;;  %v8133_v25 = vrot.slane %v8119_v45, %v17435_v27 }
 0xb9c   : > { %v7025_v28 = vrot.slane %v7017_v56, %v17435_v27  ;;  %v7041_v41 = vrot.slane %v7033_v46, %v17435_v27  ;;  %v7032_v54 = vrot.slane %v7018_v44, %v17435_v27  ;;  %v7048_v23 = vrot.slane %v7034_v12, %v17435_v27 }
 0xb9d   : > { %v8138_v58 = vcombine.low %v8110_v33, %v8117_v43  ;;  %v14901_v30 = vcombine.high %v8110_v33, %v8117_v43  ;;  %v8020_v21 = vcombine.low %v18750_v5, %v18753_v9  ;;  %v8036_v61 = vcombine.low %v18756_v63, %v18759_v1 }
 0xb9e   : > { %v7049_v19 = vcombine.low %v7025_v28, %v7041_v41  ;;  %v7050_v50 = vcombine.high %v7025_v28, %v7041_v41  ;;  %v7051_v13 = vcombine.low %v7032_v54, %v7048_v23  ;;  %v7052_v3 = vcombine.high %v7032_v54, %v7048_v23 }
 0xb9f   : > { %v7842_v26 = vcombine.low %v7814_v17, %v7821_v31  ;;  %v14897_v2 = vcombine.high %v7814_v17, %v7821_v31  ;;  %v8154_v36 = vcombine.low %v8126_v55, %v8133_v25  ;;  %v14902_v59 = vcombine.high %v8126_v55, %v8133_v25 }
 0xba0   : > { %v7858_v29 = vcombine.low %v7830_v8, %v7837_v37  ;;  %v14898_v39 = vcombine.high %v7830_v8, %v7837_v37  ;;  %v7053_v51 = vpack.c.bf16 %v7049_v19, %v7049_v19  ;;  %v7054_v7 = vpack.c.bf16 %v7050_v50, %v7050_v50 }
 0xba1   : > { %v8145_v48 = vrot.slane %v8138_v58, %v17430_v20  ;;  %v8153_v15 = vrot.slane %v14901_v30, %v17430_v20  ;;  %v8028_v45 = vrot.slane %v8020_v21, %v17435_v27  ;;  %v8044_v33 = vrot.slane %v8036_v61, %v17435_v27 }
 0xba2   : > { %v7335_v43 = vsel %vm7333_vm6, %v7053_v51, 0  ;;  %v7381_v56 = vsel %vm7333_vm6, %v7054_v7, 0  ;;  %v7055_v46 = vpack.c.bf16 %v7051_v13, %v7051_v13  ;;  %v7056_v17 = vpack.c.bf16 %v7052_v3, %v7052_v3 }
 0xba3   : > { %v18784_v31 = vrot.slane %v7842_v26, %v17430_v20  ;;  %v8161_v44 = vrot.slane %v8154_v36, %v17430_v20  ;;  %v8169_v12 = vrot.slane %v14902_v59, %v17430_v20  ;;  %15772 = vmatpush3.bf16.msra.mxu0 %v7335_v43  ;;  %15778 = vmatpush3.bf16.msra.mxu1 %v7381_v56 }
 0xba4   : > { %v18789_v8 = vrot.slane %v14897_v2, %v17430_v20  ;;  %v18792_v37 = vrot.slane %v7858_v29, %v17430_v20  ;;  %v7873_v55 = vrot.slane %v14898_v39, %v17430_v20  ;;  %15783 = vmatprep.subr.bf16.mxu0 %v20281_v40  ;;  %15789 = vmatprep.subr.bf16.mxu1 %v20281_v40  ;;  %v7427_v28 = vsel %vm7333_vm6, %v7055_v46, 0 }
 0xba5   : > { %v8170_v25 = vcombine.low %v8145_v48, %v8153_v15  ;;  %v7473_v41 = vsel %vm7333_vm6, %v7056_v17, 0  ;;  %v7325_v54 = vmul.f32 %v16606_v60, %v18695_v11  ;;  %v8052_v23 = vcombine.low %v8028_v45, %v8044_v33 }
 0xba6   : > { %15774 = vmatmul.mubr.msk.bf16.vlgmr.msra.gmra.mxu0 %vm7249_vm5, %v7326_v49  ;;  %15780 = vmatmul.mubr.msk.bf16.vlgmr.msra.gmra.mxu1 %vm7249_vm5, %v7327_v14  ;;  %v8186_v30 = vcombine.low %v8161_v44, %v8169_v12  ;;  %v8171_v6 = vcombine.high %v8145_v48, %v8153_v15  ;;  %v7324_v49 = vmul.f32 %v16608_v22, %v18697_v62 }
 0xba7   : > { %15784 = vmatpush3.bf16.msra.mxu0 %v7427_v28  ;;  %15790 = vmatpush3.bf16.msra.mxu1 %v7473_v41  ;;  %v8178_v58 = vrot.slane %v8170_v25, %v17435_v27  ;;  %v7874_v57 = vcombine.low %v18784_v31, %v18789_v8  ;;  %v7890_v14 = vcombine.low %v18792_v37, %v7873_v55 }
 0xba8   : > { %15785 = vmatprep.mubr.msk.bf16.mxu0 %vm16970_vm0, %v20281_v40  ;;  %15791 = vmatprep.mubr.msk.bf16.mxu1 %vm16970_vm0, %v20281_v40  ;;  %v8194_v11 = vrot.slane %v8186_v30, %v17435_v27  ;;  %v8185_v60 = vrot.slane %v8171_v6, %v17435_v27  ;;  %v8187_v21 = vcombine.high %v8161_v44, %v8169_v12  ;;  %v18872_v30 = vld [vmem:[#allocation8 + $0x1cc] ss:$16 sps:$4 sm:$0xff]  }
 0xba9   : > { %15815 = vmatprep.subr.bf16.mxu1 %v20281_v40  ;;  %v8056_v61 = vpack.c.bf16 %v8052_v23, %v8052_v23  ;;  %15795 = vmatprep.subr.bf16.mxu0 %v20281_v40  ;;  %v7328_v19 = vpack.c.bf16 %v7324_v49, %v7324_v49  ;;  %v7329_v50 = vpack.c.bf16 %v7325_v54, %v7325_v54  ;;  %v18876_v6 = vld [vmem:[#allocation8 + $0x1ac] ss:$16 sps:$4 sm:$0xff]  }
 0xbaa   : > { %v8201_v62 = vrot.slane %v8187_v21, %v17435_v27  ;;  %v18822_v22 = vcombine.low %v8178_v58, %v8194_v11  ;;  %v7882_v13 = vrot.slane %v7874_v57, %v17435_v27  ;;  %v7898_v3 = vrot.slane %v7890_v14, %v17435_v27  ;;  %v18880_v49 = vld [vmem:[#allocation8 + $0x18c] ss:$16 sps:$4 sm:$0xff]  }
 0xbab   : > { %v8218_v36 = vsel %vm1973_vm1, %v8056_v61, 0  ;;  %v8053_v59 = vcombine.high %v8028_v45, %v8044_v33  ;;  %v8021_v29 = vcombine.high %v18750_v5, %v18753_v9  ;;  %v8037_v39 = vcombine.high %v18756_v63, %v18759_v1  ;;  %v18884_v57 = vld [vmem:[#allocation8 + $0x16c] ss:$16 sps:$4 sm:$0xff]  }
 0xbac   : > { %v18826_v26 = vcombine.high %v8185_v60, %v8201_v62  ;;  %v18828_v2 = vcombine.low %v8185_v60, %v8201_v62  ;;  %v7906_v51 = vcombine.low %v7882_v13, %v7898_v3  ;;  %v7875_v63 = vcombine.high %v18784_v31, %v18789_v8  ;;  %v18888_v14 = vld [vmem:[#allocation8 + $0x14c] ss:$16 sps:$4 sm:$0xff]  }
 0xbad   : > { %v8057_v7 = vpack.c.bf16 %v8053_v59, %v8053_v59  ;;  %v8035_v48 = vrot.slane %v8021_v29, %v17435_v27  ;;  %v8051_v15 = vrot.slane %v8037_v39, %v17435_v27  ;;  %v7891_v1 = vcombine.high %v18792_v37, %v7873_v55 }
 0xbae   : > { %15786 = vmatmul.mubr.msk.bf16.vlgmr.msra.gmra.mxu0 %vm7249_vm5, %v7328_v19  ;;  %15792 = vmatmul.mubr.msk.bf16.vlgmr.msra.gmra.mxu1 %vm7249_vm5, %v7329_v50  ;;  %v8210_v45 = vpack.c.bf16 %v7906_v51, %v7906_v51  ;;  %v7907_v33 = vcombine.high %v7882_v13, %v7898_v3  ;;  %v7889_v46 = vrot.slane %v7875_v63, %v17435_v27 }
 0xbaf   : > { %15816 = vmatpush3.bf16.xpose.msra.mxu1 %v8218_v36  ;;  %15817 = vmatprep.mubr.msk.bf16.mxu1 %vm16970_vm0, %v20281_v40  ;;  %v8264_v5 = vsel %vm1973_vm1, %v8057_v7, 0  ;;  %v8054_v9 = vcombine.low %v8035_v48, %v8051_v15  ;;  %v7905_v17 = vrot.slane %v7891_v1, %v17435_v27  ;;  %v8055_v12 = vcombine.high %v8035_v48, %v8051_v15 }
 0xbb0   : > { %15821 = vmatprep.subr.bf16.mxu1 %v20281_v40  ;;  %15811 = vmatprep.mubr.msk.bf16.mxu0 %vm16970_vm0, %v20281_v40  ;;  %v8211_v56 = vpack.c.bf16 %v7907_v33, %v7907_v33  ;;  %v8203_v25 = vcombine.high %v8178_v58, %v8194_v11  ;;  %v18869_v58 = vld [vmem:[#allocation8 + $0x1ec] ss:$16 sps:$4 sm:$0xff]  }
 0xbb1   : > { %v8058_v43 = vpack.c.bf16 %v8054_v9, %v8054_v9  ;;  %v7908_v31 = vcombine.low %v7889_v46, %v7905_v17  ;;  %v8059_v8 = vpack.c.bf16 %v8055_v12, %v8055_v12  ;;  %v7909_v28 = vcombine.high %v7889_v46, %v7905_v17  ;;  %15796 = vmatpush3.bf16.msra.mxu0 %v18869_v58 }
 0xbb2   : > { %v8207_v41 = vpack.c.bf16 %v8203_v25, %v8203_v25  ;;  %15797 = vmatprep.subr.bf16.mxu0 %v20281_v40 }
 0xbb3   : > { %v8310_v44 = vsel %vm1973_vm1, %v8058_v43, 0  ;;  %v8212_v37 = vpack.c.bf16 %v7908_v31, %v7908_v31  ;;  %v8356_v55 = vsel %vm1973_vm1, %v8059_v8, 0  ;;  %v8213_v54 = vpack.c.bf16 %v7909_v28, %v7909_v28 }
 0xbb4   : > { %v8532_v23 = vsel %vm7333_vm6, %v8207_v41, 0 }
 0xbb5   : > { %15798 = vmatpush3.bf16.msra.mxu0 %v18872_v30 }
 0xbb6   : > { %15818 = vmatmul.mubr.msk.bf16.vlgmr.msra.gmra.mxu1 %vm1973_vm1, %v8210_v45  ;;  %15799 = vmatprep.subr.bf16.mxu0 %v20281_v40 }
 0xbb7   : > { %15822 = vmatpush3.bf16.xpose.msra.mxu1 %v8264_v5  ;;  %15823 = vmatprep.mubr.msk.bf16.mxu1 %vm16970_vm0, %v20281_v40 }
 0xbb8   : > { %15827 = vmatprep.subr.bf16.mxu1 %v20281_v40 }
 0xbb9   : > { %15800 = vmatpush3.bf16.msra.mxu0 %v18876_v6 }
 0xbba   : > { %15801 = vmatprep.subr.bf16.mxu0 %v20281_v40 }
 0xbbd   : > { %15802 = vmatpush3.bf16.msra.mxu0 %v18880_v49 }
 0xbbe   : > { %15824 = vmatmul.mubr.msk.bf16.vlgmr.msra.gmra.mxu1 %vm1973_vm1, %v8211_v56  ;;  %15803 = vmatprep.subr.bf16.mxu0 %v20281_v40 }
 0xbbf   : > { %15828 = vmatpush3.bf16.xpose.msra.mxu1 %v8310_v44  ;;  %15829 = vmatprep.mubr.msk.bf16.mxu1 %vm16970_vm0, %v20281_v40 }
 0xbc0   : > { %15833 = vmatprep.subr.bf16.mxu1 %v20281_v40 }
 0xbc1   : > { %15804 = vmatpush3.bf16.msra.mxu0 %v18884_v57 }
 0xbc2   : > { %15805 = vmatprep.subr.bf16.mxu0 %v20281_v40 }
 0xbc5   : > { %15806 = vmatpush3.bf16.msra.mxu0 %v18888_v14 }
 0xbc6   : > { %15830 = vmatmul.mubr.msk.bf16.vlgmr.msra.gmra.mxu1 %vm1973_vm1, %v8212_v37  ;;  %15807 = vmatprep.subr.bf16.mxu0 %v20281_v40 }
 0xbc7   : > { %15834 = vmatpush3.bf16.xpose.msra.mxu1 %v8356_v55  ;;  %15835 = vmatprep.mubr.msk.bf16.mxu1 %vm16970_vm0, %v20281_v40  ;;  %v18901_v55 = vld [vmem:[#allocation8 + $0x12c] ss:$16 sps:$4 sm:$0xff]  }
 0xbc8   : > { %15845 = vmatprep.subr.bf16.mxu1 %v20281_v40 }
 0xbc9   : > { %15808 = vmatpush3.bf16.msra.mxu0 %v18901_v55 }
 0xbca   : > { %15809 = vmatprep.subr.bf16.mxu0 %v20281_v40 }
 0xbce   : > { %15836 = vmatmul.mubr.msk.bf16.vlgmr.msra.gmra.mxu1 %vm1973_vm1, %v8213_v54 }
 0xbcf   : > { %15846 = vmatpush3.bf16.msra.mxu1 %v8532_v23  ;;  %15847 = vmatprep.mubr.msk.bf16.mxu1 %vm16970_vm0, %v20281_v40 }
 0xbd0   : > { %15857 = vmatprep.subr.bf16.mxu1 %v20281_v40 }
 0xc66   : > { %v7371_v11 = vpop.f32.mrf.mxu0  ;;  %v7417_v60 = vpop.f32.mrf.mxu1 }
 0xc68   : > { %v15775_v21 = vpop.f32.mrf.mxu0  ;;  %v15781_v61 = vpop.f32.mrf.mxu1 }
 0xc6a   : > { %v7374_v62 = vpop.f32.mrf.mxu0  ;;  %v7420_v19 = vpop.f32.mrf.mxu1 }
 0xc6c   : > { %v15776_v50 = vpop.f32.mrf.mxu0  ;;  %v15782_v13 = vpop.f32.mrf.mxu1 }
 0xc6e   : > { %v7463_v3 = vpop.f32.mrf.mxu0  ;;  %v7509_v36 = vpop.f32.mrf.mxu1 }
 0xc6f   : > { %v7515_v59 = vcombine.low %v7371_v11, %v7463_v3  ;;  %v7516_v29 = vcombine.high %v7371_v11, %v7463_v3  ;;  %v7531_v39 = vcombine.low %v7417_v60, %v7509_v36  ;;  %v7532_v51 = vcombine.high %v7417_v60, %v7509_v36 }
 0xc70   : > { %v15787_v7 = vpop.f32.mrf.mxu0  ;;  %v15793_v48 = vpop.f32.mrf.mxu1 }
 0xc71   : > { %v7523_v15 = vrot.slane %v7515_v59, %v17430_v20  ;;  %v7530_v45 = vrot.slane %v7516_v29, %v17430_v20  ;;  %v7539_v5 = vrot.slane %v7531_v39, %v17430_v20  ;;  %v7546_v9 = vrot.slane %v7532_v51, %v17430_v20  ;;  %v18911_v29 = vld [vmem:[#allocation8 + $0x10c] ss:$16 sps:$4 sm:$0xff]  }
 0xc72   : > { %v7466_v63 = vpop.f32.mrf.mxu0  ;;  %v7512_v1 = vpop.f32.mrf.mxu1  ;;  %15810 = vmatpush3.bf16.msra.mxu0 %v18911_v29 }
 0xc73   : > { %v7547_v33 = vcombine.low %v7523_v15, %v7539_v5  ;;  %v7548_v43 = vcombine.high %v7523_v15, %v7539_v5  ;;  %v7563_v56 = vcombine.low %v7530_v45, %v7546_v9  ;;  %v7564_v46 = vcombine.high %v7530_v45, %v7546_v9  ;;  %15839 = vmatprep.subr.bf16.mxu0 %v20281_v40 }
 0xc74   : > { %v15788_v17 = vpop.f32.mrf.mxu0  ;;  %v15794_v44 = vpop.f32.mrf.mxu1 }
 0xc75   : > { %v7555_v12 = vrot.slane %v7547_v33, %v17435_v27  ;;  %v7562_v31 = vrot.slane %v7548_v43, %v17435_v27  ;;  %v7571_v8 = vrot.slane %v7563_v56, %v17435_v27  ;;  %v7578_v37 = vrot.slane %v7564_v46, %v17435_v27 }
 0xc76   : > { %v18903_v25 = vpop.f32.mrf.mxu1  ;;  %v18932_v46 = vadd.f32 %v18641_v16, %v18528_v18 }
 0xc77   : > { %v7583_v28 = vcombine.low %v7555_v12, %v7562_v31  ;;  %v14886_v41 = vcombine.high %v7555_v12, %v7562_v31  ;;  %v7599_v54 = vcombine.low %v7571_v8, %v7578_v37  ;;  %v14887_v23 = vcombine.high %v7571_v8, %v7578_v37 }
 0xc78   : > { %v15819_v11 = vpop.f32.mrf.mxu1 }
 0xc79   : > { %v7590_v60 = vrot.slane %v7583_v28, %v17430_v20  ;;  %v7598_v21 = vrot.slane %v14886_v41, %v17430_v20  ;;  %v7606_v61 = vrot.slane %v7599_v54, %v17430_v20  ;;  %v7614_v62 = vrot.slane %v14887_v23, %v17430_v20 }
 0xc7a   : > { %v8257_v19 = vpop.f32.mrf.mxu1  ;;  %v18943_v54 = vadd.f32 %v18637_v32, %v18537_v10 }
 0xc7b   : > { %v7616_v50 = vcombine.high %v7590_v60, %v7598_v21  ;;  %v7632_v13 = vcombine.high %v7606_v61, %v7614_v62  ;;  %v7615_v3 = vcombine.low %v7590_v60, %v7598_v21  ;;  %v7631_v59 = vcombine.low %v7606_v61, %v7614_v62 }
 0xc7c   : > { %v15820_v36 = vpop.f32.mrf.mxu1 }
 0xc7d   : > { %v7630_v39 = vrot.slane %v7616_v50, %v17435_v27  ;;  %v7646_v51 = vrot.slane %v7632_v13, %v17435_v27  ;;  %v18916_v7 = vrot.slane %v7615_v3, %v17435_v27  ;;  %v18919_v15 = vrot.slane %v7631_v59, %v17435_v27 }
 0xc7e   : > { %v8300_v48 = vpop.f32.mrf.mxu1 }
 0xc7f   : > { %v8399_v45 = vmul.f32 0.088388346, %v8300_v48  ;;  %v7649_v5 = vcombine.low %v7630_v39, %v7646_v51  ;;  %v7648_v63 = vcombine.high %v18916_v7, %v18919_v15  ;;  %v7647_v1 = vcombine.low %v18916_v7, %v18919_v15 }
 0xc80   : > { %v15825_v9 = vpop.f32.mrf.mxu1  ;;  %v7650_v12 = vcombine.high %v7630_v39, %v7646_v51 }
 0xc81   : > { %v8409_v33 = vsel %vm7249_vm5, %v8399_v45, -inf  ;;  %7656 = vrot.lane.b32.xlu0 %v7649_v5, %s16972_s18  ;;  %7652 = vrot.lane.b32.xlu1 %v7648_v63, %s16974_s19 }
 0xc82   : > { %v8410_v43 = vrot.slane %v8409_v33, 4  ;;  %v8303_v56 = vpop.f32.mrf.mxu1 }
 0xc84   : > { %v8411_v17 = vmax.f32 %v8409_v33, %v8410_v43  ;;  %v15826_v44 = vpop.f32.mrf.mxu1 }
 0xc85   : > { %9008 = vrot.lane.b32.xlu0 %v18932_v46, %s16973_s15  ;;  %7660 = vrot.lane.b32.xlu1 %v7650_v12, %s16973_s15 }
 0xc86   : > { %v8412_v31 = vrot.slane %v8411_v17, 2  ;;  %v8346_v8 = vpop.f32.mrf.mxu1 }
 0xc87   : > { %v8400_v33 = vmul.f32 0.088388346, %v8346_v8 }
 0xc88   : > { %v8413_v37 = vmax.f32 %v8411_v17, %v8412_v31  ;;  %v15831_v28 = vpop.f32.mrf.mxu1 }
 0xc89   : > { %9014 = vrot.lane.b32.xlu0 %v18932_v46, %s16974_s19  ;;  %9011 = vrot.lane.b32.xlu1 %v18932_v46, %s16972_s18  ;;  %v8416_v12 = vsel %vm7249_vm5, %v8400_v33, -inf }
 0xc8a   : > { %v8414_v41 = vrot.slane %v8413_v37, 1  ;;  %v8349_v16 = vpop.f32.mrf.mxu1 }
 0xc8c   : > { %v8415_v23 = vmax.f32 %v8413_v37, %v8414_v41  ;;  %v15832_v11 = vpop.f32.mrf.mxu1  ;;  %v8417_v41 = vrot.slane %v8416_v12, 4 }
 0xc8d   : > { %8865 = vrot.lane.b32.xlu0 %v18943_v54, %s16972_s18  ;;  %8862 = vrot.lane.b32.xlu1 %v18943_v54, %s16973_s15 }
 0xc8e   : > { %v8431_v60 = vsub.f32 %v8399_v45, %v8415_v23  ;;  %v8392_v21 = vpop.f32.mrf.mxu1  ;;  %v8398_v45 = vmul.f32 0.088388346, %v18903_v25  ;;  %v8418_v11 = vmax.f32 %v8416_v12, %v8417_v41 }
 0xc8f   : > { %v8401_v61 = vmul.f32 0.088388346, %v8392_v21 }
 0xc90   : > { %v8436_v62 = vmul.f32 1.442695, %v8431_v60  ;;  %v15837_v19 = vpop.f32.mrf.mxu1  ;;  %v8402_v17 = vsel %vm7249_vm5, %v8398_v45, -inf  ;;  %v8419_v8 = vrot.slane %v8418_v11, 2 }
 0xc91   : > { %v8423_v50 = vsel %vm7249_vm5, %v8401_v61, -inf  ;;  %9158 = vrot.lane.b32.xlu0 %v18639_v52, %s16973_s15  ;;  %8868 = vrot.lane.b32.xlu1 %v18943_v54, %s16974_s19  ;;  %v8403_v31 = vrot.slane %v8402_v17, 4 }
 0xc92   : > { %16609 = vpow2.f32 %v8436_v62  ;;  %v8424_v32 = vrot.slane %v8423_v50, 4  ;;  %v8395_v13 = vpop.f32.mrf.mxu1 }
 0xc93   : > { %v8404_v16 = vmax.f32 %v8402_v17, %v8403_v31 }
 0xc94   : > { %v8425_v3 = vmax.f32 %v8423_v50, %v8424_v32  ;;  %v15838_v36 = vpop.f32.mrf.mxu1  ;;  %v8420_v50 = vmax.f32 %v8418_v11, %v8419_v8 }
 0xc95   : > { %9164 = vrot.lane.b32.xlu0 %v18639_v52, %s16974_s19  ;;  %9161 = vrot.lane.b32.xlu1 %v18639_v52, %s16972_s18  ;;  %v8405_v60 = vrot.slane %v8404_v16, 2 }
 0xc96   : > { %v8426_v59 = vrot.slane %v8425_v3, 2  ;;  %v8421_v36 = vrot.slane %v8420_v50, 1 }
 0xc97   : > { %v8406_v62 = vmax.f32 %v8404_v16, %v8405_v60 }
 0xc98   : > { %v8427_v39 = vmax.f32 %v8425_v3, %v8426_v59 }
 0xc99   : > { %v8407_v13 = vrot.slane %v8406_v62, 1 }
 0xc9a   : > { %v8428_v51 = vrot.slane %v8427_v39, 1 }
 0xc9c   : > { %v8429_v48 = vmax.f32 %v8427_v39, %v8428_v51  ;;  %v8408_v39 = vmax.f32 %v8406_v62, %v8407_v13 }
 0xc9e   : > { %v8433_v5 = vsub.f32 %v8401_v61, %v8429_v48  ;;  %v8430_v17 = vsub.f32 %v8398_v45, %v8408_v39 }
 0xc9f   : > { %v16610_v9 = vpop.eup %16609 }
 0xca0   : > { %v8449_v63 = vsel %vm7249_vm5, %v16610_v9, 0.0  ;;  %v8440_v43 = vmul.f32 1.442695, %v8433_v5  ;;  %v8422_v5 = vmax.f32 %v8420_v50, %v8421_v36 }
 0xca1   : > { %v8450_v56 = vrot.slane %v8449_v63, 4 }
 0xca2   : > { %16611 = vpow2.f32 %v8440_v43  ;;  %v8432_v12 = vsub.f32 %v8400_v33, %v8422_v5 }
 0xca3   : > { %v8451_v44 = vadd.f32 %v8450_v56, %v8449_v63  ;;  %v8209_v56 = vpack.c.bf16 %v18826_v26, %v18826_v26 }
 0xca5   : > { %v8452_v37 = vrot.slane %v8451_v44, 2  ;;  %v8624_v31 = vsel %vm7333_vm6, %v8209_v56, 0  ;;  %v8206_v56 = vpack.c.bf16 %v18822_v22, %v18822_v22 }
 0xca7   : > { %v8453_v28 = vadd.f32 %v8452_v37, %v8451_v44  ;;  %v8434_v37 = vmul.f32 1.442695, %v8430_v17 }
 0xca9   : > { %v8454_v23 = vrot.slane %v8453_v28, 1 }
 0xcab   : > { %v8455_v25 = vadd.f32 %v8454_v23, %v8453_v28  ;;  %v8438_v28 = vmul.f32 1.442695, %v8432_v12 }
 0xcad   : > { %16613 = vrcp.f32 %v8455_v25 }
 0xcaf   : > { %v16612_v21 = vpop.eup %16611 }
 0xcb0   : > { %v8463_v61 = vsel %vm7249_vm5, %v16612_v21, 0.0 }
 0xcb1   : > { %v8464_v19 = vrot.slane %v8463_v61, 4 }
 0xcb3   : > { %v8465_v32 = vadd.f32 %v8464_v19, %v8463_v61 }
 0xcb5   : > { %v8466_v3 = vrot.slane %v8465_v32, 2 }
 0xcb7   : > { %v8467_v59 = vadd.f32 %v8466_v3, %v8465_v32 }
 0xcb9   : > { %v8468_v51 = vrot.slane %v8467_v59, 1 }
 0xcba   : > { %v16614_v48 = vpop.eup %16613 }
 0xcbb   : > { %v8469_v63 = vadd.f32 %v8468_v51, %v8467_v59  ;;  %v8475_v43 = vmul.f32 %v16614_v48, %v16610_v9 }
 0xcbd   : > { %16615 = vrcp.f32 %v8469_v63  ;;  %v8479_v44 = vpack.c.bf16 %v8475_v43, %v8475_v43 }
 0xcbe   : > { %16617 = vpow2.f32 %v8434_v37 }
 0xcbf   : > { %15848 = vmatmul.mubr.msk.bf16.vlgmr.msra.gmra.mxu1 %vm7249_vm5, %v8479_v44  ;;  %16619 = vpow2.f32 %v8438_v28 }
 0xcc0   : > { %15858 = vmatpush3.bf16.msra.mxu1 %v8624_v31  ;;  %15859 = vmatprep.mubr.msk.bf16.mxu1 %vm16970_vm0, %v20281_v40 }
 0xcc1   : > { %15883 = vmatprep.subr.bf16.mxu1 %v20281_v40 }
 0xcca   : > { %v16616_v9 = vpop.eup %16615 }
 0xccb   : > { %v8477_v26 = vmul.f32 %v16616_v9, %v16612_v21  ;;  %v16618_v33 = vpop.eup %16617  ;;  %v8486_v9 = vsel %vm7333_vm6, %v8206_v56, 0 }
 0xccc   : > { %v16620_v41 = vpop.eup %16619  ;;  %v8442_v16 = vsel %vm7249_vm5, %v16618_v33, 0.0 }
 0xccd   : > { %v8481_v45 = vpack.c.bf16 %v8477_v26, %v8477_v26  ;;  %v8456_v23 = vsel %vm7249_vm5, %v16620_v41, 0.0  ;;  %v8443_v25 = vrot.slane %v8442_v16, 4 }
 0xcce   : > { %v8457_v11 = vrot.slane %v8456_v23, 4 }
 0xccf   : > { %15860 = vmatmul.mubr.msk.bf16.vlgmr.msra.gmra.mxu1 %vm7249_vm5, %v8481_v45  ;;  %v8444_v60 = vadd.f32 %v8443_v25, %v8442_v16 }
 0xcd0   : > { %15885 = vmatprep.mubr.msk.bf16.mxu1 %vm16970_vm0, %v20281_v40  ;;  %v8458_v8 = vadd.f32 %v8457_v11, %v8456_v23 }
 0xcd1   : > { %v8445_v61 = vrot.slane %v8444_v60, 2 }
 0xcd2   : > { %v8459_v62 = vrot.slane %v8458_v8, 2 }
 0xcd3   : > { %v8446_v19 = vadd.f32 %v8445_v61, %v8444_v60 }
 0xcd4   : > { %v8460_v21 = vadd.f32 %v8459_v62, %v8458_v8 }
 0xcd5   : > { %v8447_v50 = vrot.slane %v8446_v19, 1 }
 0xcd6   : > { %v8461_v32 = vrot.slane %v8460_v21, 1 }
 0xcd7   : > { %v8448_v13 = vadd.f32 %v8447_v50, %v8446_v19 }
 0xcd8   : > { %v8462_v3 = vadd.f32 %v8461_v32, %v8460_v21  ;;  %v8208_v21 = vpack.c.bf16 %v18828_v2, %v18828_v2 }
 0xcd9   : > { %16621 = vrcp.f32 %v8448_v13 }
 0xcda   : > { %16623 = vrcp.f32 %v8462_v3  ;;  %v8578_v2 = vsel %vm7333_vm6, %v8208_v21, 0 }
 0xcf3   : > { %v7657_v36 = vpop.permute.xlu0 %7656  ;;  %v7653_v59 = vpop.permute.xlu1 %7652 }
 0xcf4   : > { %v7663_v39 = vsel %vm1973_vm1, %v7647_v1, %v7653_v59  ;;  %v16622_v1 = vpop.eup %16621 }
 0xcf5   : > { %v7664_v48 = vsel %vm2564_vm3, %v7663_v39, %v7657_v36  ;;  %v16624_v22 = vpop.eup %16623  ;;  %v8474_v23 = vmul.f32 %v16622_v1, %v16618_v33 }
 0xcf6   : > { %v8476_v61 = vmul.f32 %v16624_v22, %v16620_v41 }
 0xcf7   : > { %v9009_v51 = vpop.permute.xlu0 %9008  ;;  %v7661_v5 = vpop.permute.xlu1 %7660  ;;  %v8478_v59 = vpack.c.bf16 %v8474_v23, %v8474_v23 }
 0xcf8   : > { %v7665_v63 = vsel %vm2566_vm4, %v7664_v48, %v7661_v5  ;;  %v8480_v56 = vpack.c.bf16 %v8476_v61, %v8476_v61 }
 0xcf9   : > { %v18982_v43 = vadd.f32 %v7665_v63, %v18542_v47 }
 0xcfb   : > { %v9015_v17 = vpop.permute.xlu0 %9014  ;;  %v7667_v44 = vpack.c.bf16 %v18982_v43, %v18982_v43  ;;  %v9012_v15 = vpop.permute.xlu1 %9011 }
 0xcfc   : > { %v9033_v12 = vcombine.low %v9009_v51, %v9015_v17  ;;  %v9034_v7 = vcombine.high %v9009_v51, %v9015_v17  ;;  %v9017_v31 = vcombine.low %v18932_v46, %v9012_v15  ;;  %v9018_v37 = vcombine.high %v18932_v46, %v9012_v15 }
 0xcfd   : > { %15812 = vmatmul.mubr.bf16.vlgmr.msra.gmra.mxu0 %v7667_v44 }
 0xcfe   : > { %v9041_v28 = vrot.slane %v9033_v12, %v17430_v20  ;;  %v9048_v47 = vrot.slane %v9034_v7, %v17430_v20  ;;  %v9025_v26 = vrot.slane %v9017_v31, %v17430_v20  ;;  %v9032_v45 = vrot.slane %v9018_v37, %v17430_v20  ;;  %15840 = vmatpush3.bf16.msra.mxu0 %v8486_v9 }
 0xcff   : > { %v8866_v16 = vpop.permute.xlu0 %8865  ;;  %15841 = vmatprep.mubr.msk.bf16.mxu0 %vm16970_vm0, %v20281_v40  ;;  %v8863_v25 = vpop.permute.xlu1 %8862  ;;  %15851 = vmatprep.subr.bf16.mxu0 %v20281_v40 }
 0xd00   : > { %v9049_v46 = vcombine.low %v9025_v26, %v9041_v28  ;;  %v9050_v11 = vcombine.high %v9025_v26, %v9041_v28  ;;  %v9065_v60 = vcombine.low %v9032_v45, %v9048_v47  ;;  %v9066_v8 = vcombine.high %v9032_v45, %v9048_v47 }
 0xd01   : > { %v8871_v62 = vcombine.low %v18943_v54, %v8866_v16  ;;  %v8872_v19 = vcombine.high %v18943_v54, %v8866_v16 }
 0xd02   : > { %v9057_v50 = vrot.slane %v9049_v46, %v17435_v27  ;;  %v9064_v32 = vrot.slane %v9050_v11, %v17435_v27  ;;  %v9073_v33 = vrot.slane %v9065_v60, %v17435_v27  ;;  %v9080_v13 = vrot.slane %v9066_v8, %v17435_v27 }
 0xd03   : > { %v9159_v3 = vpop.permute.xlu0 %9158  ;;  %v8869_v36 = vpop.permute.xlu1 %8868  ;;  %v8879_v12 = vrot.slane %v8871_v62, %v17430_v20  ;;  %v8886_v7 = vrot.slane %v8872_v19, %v17430_v20 }
 0xd04   : > { %v9085_v39 = vcombine.low %v9057_v50, %v9064_v32  ;;  %v14915_v41 = vcombine.high %v9057_v50, %v9064_v32  ;;  %v9101_v51 = vcombine.low %v9073_v33, %v9080_v13  ;;  %v14916_v48 = vcombine.high %v9073_v33, %v9080_v13 }
 0xd05   : > { %v8887_v5 = vcombine.low %v8863_v25, %v8869_v36  ;;  %v8888_v63 = vcombine.high %v8863_v25, %v8869_v36  ;;  %15842 = vmatmul.mubr.msk.bf16.vlgmr.msra.gmra.mxu0 %vm7249_vm5, %v8478_v59 }
 0xd06   : > { %v19009_v17 = vrot.slane %v9085_v39, %v17430_v20  ;;  %v19012_v44 = vrot.slane %v14915_v41, %v17430_v20  ;;  %15852 = vmatpush3.bf16.msra.mxu0 %v8578_v2  ;;  %15853 = vmatprep.mubr.msk.bf16.mxu0 %vm16970_vm0, %v20281_v40  ;;  %v19021_v9 = vrot.slane %v9101_v51, %v17430_v20 }
 0xd07   : > { %v9165_v15 = vpop.permute.xlu0 %9164  ;;  %v8895_v1 = vrot.slane %v8887_v5, %v17430_v20  ;;  %v8902_v31 = vrot.slane %v8888_v63, %v17430_v20  ;;  %v9162_v47 = vpop.permute.xlu1 %9161  ;;  %v19024_v22 = vrot.slane %v14916_v48, %v17430_v20  ;;  %15863 = vmatprep.subr.bf16.mxu0 %v20281_v40 }
 0xd08   : > { %v9183_v37 = vcombine.low %v9159_v3, %v9165_v15  ;;  %v9184_v28 = vcombine.high %v9159_v3, %v9165_v15  ;;  %v9167_v26 = vcombine.low %v18639_v52, %v9162_v47  ;;  %v9168_v45 = vcombine.high %v18639_v52, %v9162_v47 }
 0xd09   : > { %v8903_v16 = vcombine.low %v8879_v12, %v8895_v1  ;;  %v8904_v23 = vcombine.high %v8879_v12, %v8895_v1  ;;  %v8919_v25 = vcombine.low %v8886_v7, %v8902_v31  ;;  %v8920_v46 = vcombine.high %v8886_v7, %v8902_v31 }
 0xd0a   : > { %v9191_v11 = vrot.slane %v9183_v37, %v17430_v20  ;;  %v9198_v60 = vrot.slane %v9184_v28, %v17430_v20  ;;  %v9175_v8 = vrot.slane %v9167_v26, %v17430_v20  ;;  %v9182_v61 = vrot.slane %v9168_v45, %v17430_v20 }
 0xd0b   : > { %v8911_v62 = vrot.slane %v8903_v16, %v17435_v27  ;;  %v8918_v19 = vrot.slane %v8904_v23, %v17435_v27  ;;  %v8927_v52 = vrot.slane %v8919_v25, %v17435_v27  ;;  %v8934_v21 = vrot.slane %v8920_v46, %v17435_v27 }
 0xd0c   : > { %v9199_v50 = vcombine.low %v9175_v8, %v9191_v11  ;;  %v9200_v32 = vcombine.high %v9175_v8, %v9191_v11  ;;  %v9215_v33 = vcombine.low %v9182_v61, %v9198_v60  ;;  %v9216_v13 = vcombine.high %v9182_v61, %v9198_v60 }
 0xd0d   : > { %v8939_v3 = vcombine.low %v8911_v62, %v8918_v19  ;;  %v14913_v36 = vcombine.high %v8911_v62, %v8918_v19  ;;  %v8955_v59 = vcombine.low %v8927_v52, %v8934_v21  ;;  %v14914_v39 = vcombine.high %v8927_v52, %v8934_v21  ;;  %15854 = vmatmul.mubr.msk.bf16.vlgmr.msra.gmra.mxu0 %vm7249_vm5, %v8480_v56 }
 0xd0e   : > { %v9207_v41 = vrot.slane %v9199_v50, %v17435_v27  ;;  %v9214_v51 = vrot.slane %v9200_v32, %v17435_v27  ;;  %v9223_v48 = vrot.slane %v9215_v33, %v17435_v27  ;;  %v9230_v5 = vrot.slane %v9216_v13, %v17435_v27  ;;  %15864 = vmatpush3.bf16.msra.mxu0 %v18869_v58 }
 0xd0f   : > { %v19044_v63 = vrot.slane %v8939_v3, %v17430_v20  ;;  %v19047_v2 = vrot.slane %v14913_v36, %v17430_v20  ;;  %v19050_v12 = vrot.slane %v8955_v59, %v17430_v20  ;;  %v19053_v56 = vrot.slane %v14914_v39, %v17430_v20  ;;  %15865 = vmatprep.subr.bf16.mxu0 %v20281_v40 }
 0xd10   : > { %v9117_v7 = vcombine.low %v19009_v17, %v19012_v44  ;;  %v9133_v58 = vcombine.low %v19021_v9, %v19024_v22  ;;  %15879 = vmatprep.mubr.msk.bf16.mxu0 %vm16970_vm0, %v20281_v40  ;;  %v9235_v15 = vcombine.low %v9207_v41, %v9214_v51  ;;  %v14917_v1 = vcombine.high %v9207_v41, %v9214_v51 }
 0xd11   : > { %v9251_v31 = vcombine.low %v9223_v48, %v9230_v5  ;;  %v14918_v37 = vcombine.high %v9223_v48, %v9230_v5  ;;  %v8971_v28 = vcombine.low %v19044_v63, %v19047_v2  ;;  %v8987_v47 = vcombine.low %v19050_v12, %v19053_v56 }
 0xd12   : > { %15866 = vmatpush3.bf16.msra.mxu0 %v18872_v30  ;;  %v9125_v26 = vrot.slane %v9117_v7, %v17435_v27  ;;  %v9141_v45 = vrot.slane %v9133_v58, %v17435_v27  ;;  %v9242_v16 = vrot.slane %v9235_v15, %v17430_v20  ;;  %v9250_v23 = vrot.slane %v14917_v1, %v17430_v20 }
 0xd13   : > { %15867 = vmatprep.subr.bf16.mxu0 %v20281_v40  ;;  %v9258_v25 = vrot.slane %v9251_v31, %v17430_v20  ;;  %v9266_v46 = vrot.slane %v14918_v37, %v17430_v20  ;;  %v8979_v11 = vrot.slane %v8971_v28, %v17435_v27  ;;  %v8995_v60 = vrot.slane %v8987_v47, %v17435_v27 }
 0xd14   : > { %v9149_v8 = vcombine.low %v9125_v26, %v9141_v45  ;;  %v9118_v61 = vcombine.high %v19009_v17, %v19012_v44  ;;  %v9267_v62 = vcombine.low %v9242_v16, %v9250_v23  ;;  %v9268_v52 = vcombine.high %v9242_v16, %v9250_v23 }
 0xd15   : > { %v9283_v19 = vcombine.low %v9258_v25, %v9266_v46  ;;  %v9284_v21 = vcombine.high %v9258_v25, %v9266_v46  ;;  %v9003_v50 = vcombine.low %v8979_v11, %v8995_v60  ;;  %v9150_v33 = vcombine.high %v9125_v26, %v9141_v45 }
 0xd16   : > { %15868 = vmatpush3.bf16.msra.mxu0 %v18876_v6  ;;  %v9153_v30 = vpack.c.bf16 %v9149_v8, %v9149_v8  ;;  %v9134_v13 = vcombine.high %v19021_v9, %v19024_v22  ;;  %v9275_v6 = vrot.slane %v9267_v62, %v17435_v27  ;;  %v9282_v17 = vrot.slane %v9268_v52, %v17435_v27 }
 0xd17   : > { %15869 = vmatprep.subr.bf16.mxu0 %v20281_v40  ;;  %v9291_v3 = vrot.slane %v9283_v19, %v17435_v27  ;;  %v9298_v44 = vrot.slane %v9284_v21, %v17435_v27  ;;  %v9154_v22 = vpack.c.bf16 %v9150_v33, %v9150_v33  ;;  %v9132_v39 = vrot.slane %v9118_v61, %v17435_v27 }
 0xd18   : > { %v9315_v32 = vsel %vm1973_vm1, %v9153_v30, 0  ;;  %v9148_v41 = vrot.slane %v9134_v13, %v17435_v27  ;;  %v8972_v5 = vcombine.high %v19044_v63, %v19047_v2  ;;  %v8988_v7 = vcombine.high %v19050_v12, %v19053_v56 }
 0xd19   : > { %15884 = vmatpush3.bf16.xpose.msra.mxu1 %v9315_v32  ;;  %v19090_v36 = vcombine.high %v9282_v17, %v9298_v44  ;;  %v19092_v59 = vcombine.low %v9275_v6, %v9291_v3  ;;  %v19094_v9 = vcombine.low %v9282_v17, %v9298_v44  ;;  %v9361_v51 = vsel %vm1973_vm1, %v9154_v22, 0 }
 0xd1a   : > { %15870 = vmatpush3.bf16.msra.mxu0 %v18880_v49  ;;  %15889 = vmatprep.subr.bf16.mxu1 %v20281_v40  ;;  %v9307_v49 = vpack.c.bf16 %v9003_v50, %v9003_v50  ;;  %v9151_v48 = vcombine.low %v9132_v39, %v9148_v41  ;;  %v9002_v15 = vrot.slane %v8988_v7, %v17435_v27 }
 0xd1b   : > { %15871 = vmatprep.subr.bf16.mxu0 %v20281_v40  ;;  %v9152_v2 = vcombine.high %v9132_v39, %v9148_v41  ;;  %v9300_v37 = vcombine.high %v9275_v6, %v9291_v3 }
 0xd1c   : > { %v9155_v58 = vpack.c.bf16 %v9151_v48, %v9151_v48 }
 0xd1d   : > { %v9304_v28 = vpack.c.bf16 %v9300_v37, %v9300_v37 }
 0xd1e   : > { %15872 = vmatpush3.bf16.msra.mxu0 %v18884_v57  ;;  %v9004_v57 = vcombine.high %v8979_v11, %v8995_v60  ;;  %v9407_v63 = vsel %vm1973_vm1, %v9155_v58, 0 }
 0xd1f   : > { %15873 = vmatprep.subr.bf16.mxu0 %v20281_v40  ;;  %v9629_v26 = vsel %vm7333_vm6, %v9304_v28, 0 }
 0xd20   : > { %15886 = vmatmul.mubr.msk.bf16.vlgmr.msra.gmra.mxu1 %vm1973_vm1, %v9307_v49  ;;  %v9308_v1 = vpack.c.bf16 %v9004_v57, %v9004_v57 }
 0xd21   : > { %15890 = vmatpush3.bf16.xpose.msra.mxu1 %v9361_v51  ;;  %15891 = vmatprep.mubr.msk.bf16.mxu1 %vm16970_vm0, %v20281_v40 }
 0xd22   : > { %15874 = vmatpush3.bf16.msra.mxu0 %v18888_v14  ;;  %15895 = vmatprep.subr.bf16.mxu1 %v20281_v40  ;;  %v8986_v14 = vrot.slane %v8972_v5, %v17435_v27 }
 0xd23   : > { %15875 = vmatprep.subr.bf16.mxu0 %v20281_v40 }
 0xd24   : > { %v9005_v12 = vcombine.low %v8986_v14, %v9002_v15 }
 0xd26   : > { %15876 = vmatpush3.bf16.msra.mxu0 %v18901_v55  ;;  %v9156_v55 = vpack.c.bf16 %v9152_v2, %v9152_v2  ;;  %v9309_v56 = vpack.c.bf16 %v9005_v12, %v9005_v12 }
 0xd27   : > { %15877 = vmatprep.subr.bf16.mxu0 %v20281_v40 }
 0xd28   : > { %15892 = vmatmul.mubr.msk.bf16.vlgmr.msra.gmra.mxu1 %vm1973_vm1, %v9308_v1  ;;  %v9453_v31 = vsel %vm1973_vm1, %v9156_v55, 0 }
 0xd29   : > { %15896 = vmatpush3.bf16.xpose.msra.mxu1 %v9407_v63  ;;  %15897 = vmatprep.mubr.msk.bf16.mxu1 %vm16970_vm0, %v20281_v40 }
 0xd2a   : > { %15878 = vmatpush3.bf16.msra.mxu0 %v18911_v29  ;;  %15901 = vmatprep.subr.bf16.mxu1 %v20281_v40  ;;  %v9006_v29 = vcombine.high %v8986_v14, %v9002_v15 }
 0xd2b   : > { %15907 = vmatprep.subr.bf16.mxu0 %v20281_v40 }
 0xd2c   : > { %v9310_v47 = vpack.c.bf16 %v9006_v29, %v9006_v29 }
 0xd30   : > { %15898 = vmatmul.mubr.msk.bf16.vlgmr.msra.gmra.mxu1 %vm1973_vm1, %v9309_v56 }
 0xd31   : > { %15902 = vmatpush3.bf16.xpose.msra.mxu1 %v9453_v31  ;;  %15903 = vmatprep.mubr.msk.bf16.mxu1 %vm16970_vm0, %v20281_v40 }
 0xd32   : > { %15913 = vmatprep.subr.bf16.mxu1 %v20281_v40 }
 0xd38   : > { %15904 = vmatmul.mubr.msk.bf16.vlgmr.msra.gmra.mxu1 %vm1973_vm1, %v9310_v47 }
 0xd39   : > { %15914 = vmatpush3.bf16.msra.mxu1 %v9629_v26  ;;  %15915 = vmatprep.mubr.msk.bf16.mxu1 %vm16970_vm0, %v20281_v40 }
 0xd3a   : > { %15925 = vmatprep.subr.bf16.mxu1 %v20281_v40 }
 0xd7f   : > { %v8568_v45 = vpop.f32.mrf.mxu1 }
 0xd81   : > { %v15849_v16 = vpop.f32.mrf.mxu1 }
 0xd83   : > { %v8571_v23 = vpop.f32.mrf.mxu1 }
 0xd85   : > { %v15850_v25 = vpop.f32.mrf.mxu1 }
 0xd8f   : > { %v8660_v46 = vpop.f32.mrf.mxu1 }
 0xd90   : > { %v8682_v33 = vcombine.low %v8568_v45, %v8660_v46  ;;  %v8683_v13 = vcombine.high %v8568_v45, %v8660_v46 }
 0xd91   : > { %v15861_v11 = vpop.f32.mrf.mxu1 }
 0xd92   : > { %v8690_v49 = vrot.slane %v8682_v33, %v17430_v20  ;;  %v8697_v22 = vrot.slane %v8683_v13, %v17430_v20 }
 0xd93   : > { %v8663_v60 = vpop.f32.mrf.mxu1 }
 0xd95   : > { %v15862_v8 = vpop.f32.mrf.mxu1 }
 0xdbd   : > { %v19132_v30 = vpop.f32.mrf.mxu0 }
 0xdbf   : > { %v15813_v61 = vpop.f32.mrf.mxu0 }
 0xdc1   : > { %v7759_v62 = vpop.f32.mrf.mxu0 }
 0xdc2   : > { %v19162_v62 = vadd.f32 %v18653_v4, %v18528_v18  ;;  %v19173_v18 = vadd.f32 %v18645_v42, %v18537_v10 }
 0xdc3   : > { %v15814_v19 = vpop.f32.mrf.mxu0 }
 0xdc5   : > { %v8522_v52 = vpop.f32.mrf.mxu0 }
 0xdc7   : > { %v15843_v21 = vpop.f32.mrf.mxu0 }
 0xdc9   : > { %v8525_v50 = vpop.f32.mrf.mxu0 }
 0xdcb   : > { %v15844_v32 = vpop.f32.mrf.mxu0 }
 0xdcd   : > { %v8614_v6 = vpop.f32.mrf.mxu0 }
 0xdce   : > { %v8666_v3 = vcombine.low %v8522_v52, %v8614_v6  ;;  %v8667_v17 = vcombine.high %v8522_v52, %v8614_v6 }
 0xdcf   : > { %v15855_v44 = vpop.f32.mrf.mxu0 }
 0xdd0   : > { %v8674_v39 = vrot.slane %v8666_v3, %v17430_v20  ;;  %v8681_v41 = vrot.slane %v8667_v17, %v17430_v20 }
 0xdd1   : > { %v8617_v51 = vpop.f32.mrf.mxu0 }
 0xdd2   : > { %v8698_v48 = vcombine.low %v8674_v39, %v8690_v49  ;;  %v8699_v5 = vcombine.high %v8674_v39, %v8690_v49  ;;  %v8714_v7 = vcombine.low %v8681_v41, %v8697_v22  ;;  %v8715_v57 = vcombine.high %v8681_v41, %v8697_v22 }
 0xdd3   : > { %v15856_v58 = vpop.f32.mrf.mxu0 }
 0xdd4   : > { %v8706_v14 = vrot.slane %v8698_v48, %v17435_v27  ;;  %v8713_v15 = vrot.slane %v8699_v5, %v17435_v27  ;;  %v8722_v1 = vrot.slane %v8714_v7, %v17435_v27  ;;  %v8729_v63 = vrot.slane %v8715_v57, %v17435_v27 }
 0xdd6   : > { %v8734_v2 = vcombine.low %v8706_v14, %v8713_v15  ;;  %v14911_v12 = vcombine.high %v8706_v14, %v8713_v15  ;;  %v8750_v55 = vcombine.low %v8722_v1, %v8729_v63  ;;  %v14912_v56 = vcombine.high %v8722_v1, %v8729_v63 }
 0xdd8   : > { %v8741_v31 = vrot.slane %v8734_v2, %v17430_v20  ;;  %v8749_v37 = vrot.slane %v14911_v12, %v17430_v20  ;;  %v8757_v29 = vrot.slane %v8750_v55, %v17430_v20  ;;  %v8765_v28 = vrot.slane %v14912_v56, %v17430_v20 }
 0xdda   : > { %v8767_v47 = vcombine.high %v8741_v31, %v8749_v37  ;;  %v8783_v26 = vcombine.high %v8757_v29, %v8765_v28  ;;  %v8766_v45 = vcombine.low %v8741_v31, %v8749_v37  ;;  %v8782_v16 = vcombine.low %v8757_v29, %v8765_v28 }
 0xddc   : > { %v8781_v23 = vrot.slane %v8767_v47, %v17435_v27  ;;  %v8797_v25 = vrot.slane %v8783_v26, %v17435_v27  ;;  %v19149_v46 = vrot.slane %v8766_v45, %v17435_v27  ;;  %v19152_v11 = vrot.slane %v8782_v16, %v17435_v27 }
 0xdde   : > { %v8800_v60 = vcombine.low %v8781_v23, %v8797_v25  ;;  %v8799_v8 = vcombine.high %v19149_v46, %v19152_v11  ;;  %v8798_v61 = vcombine.low %v19149_v46, %v19152_v11  ;;  %v8801_v52 = vcombine.high %v8781_v23, %v8797_v25 }
 0xde0   : > { %8807 = vrot.lane.b32.xlu0 %v8800_v60, %s16972_s18  ;;  %8803 = vrot.lane.b32.xlu1 %v8799_v8, %s16974_s19  ;;  %v9351_v19 = vpop.f32.mrf.mxu1 }
 0xde1   : > { %v9495_v14 = vmul.f32 0.088388346, %v9351_v19 }
 0xde2   : > { %v15887_v21 = vpop.f32.mrf.mxu1 }
 0xde3   : > { %v9499_v56 = vsel %vm7249_vm5, %v9495_v14, -inf }
 0xde4   : > { %10105 = vrot.lane.b32.xlu0 %v19162_v62, %s16973_s15  ;;  %8811 = vrot.lane.b32.xlu1 %v8801_v52, %s16973_s15  ;;  %v9354_v50 = vpop.f32.mrf.mxu1  ;;  %v9500_v47 = vrot.slane %v9499_v56, 4 }
 0xde6   : > { %v15888_v32 = vpop.f32.mrf.mxu1  ;;  %v9501_v23 = vmax.f32 %v9499_v56, %v9500_v47 }
 0xde8   : > { %10111 = vrot.lane.b32.xlu0 %v19162_v62, %s16974_s19  ;;  %10108 = vrot.lane.b32.xlu1 %v19162_v62, %s16972_s18  ;;  %v9397_v4 = vpop.f32.mrf.mxu1  ;;  %v9502_v52 = vrot.slane %v9501_v23, 2 }
 0xde9   : > { %v9496_v33 = vmul.f32 0.088388346, %v9397_v4 }
 0xdea   : > { %v15893_v13 = vpop.f32.mrf.mxu1 }
 0xdeb   : > { %v9506_v6 = vsel %vm7249_vm5, %v9496_v33, -inf }
 0xdec   : > { %9962 = vrot.lane.b32.xlu0 %v19173_v18, %s16972_s18  ;;  %9959 = vrot.lane.b32.xlu1 %v19173_v18, %s16973_s15  ;;  %v9507_v3 = vrot.slane %v9506_v6, 4  ;;  %v9400_v17 = vpop.f32.mrf.mxu1 }
 0xdee   : > { %v9508_v44 = vmax.f32 %v9506_v6, %v9507_v3  ;;  %v15894_v49 = vpop.f32.mrf.mxu1 }
 0xdf0   : > { %10255 = vrot.lane.b32.xlu0 %v18647_v24, %s16973_s15  ;;  %9965 = vrot.lane.b32.xlu1 %v19173_v18, %s16974_s19  ;;  %v9509_v10 = vrot.slane %v9508_v44, 2  ;;  %v9443_v42 = vpop.f32.mrf.mxu1 }
 0xdf1   : > { %v9497_v2 = vmul.f32 0.088388346, %v9443_v42 }
 0xdf2   : > { %v9510_v22 = vmax.f32 %v9508_v44, %v9509_v10  ;;  %v15899_v39 = vpop.f32.mrf.mxu1 }
 0xdf3   : > { %v9513_v29 = vsel %vm7249_vm5, %v9497_v2, -inf }
 0xdf4   : > { %10261 = vrot.lane.b32.xlu0 %v18647_v24, %s16974_s19  ;;  %10258 = vrot.lane.b32.xlu1 %v18647_v24, %s16972_s18  ;;  %v9511_v41 = vrot.slane %v9510_v22, 1  ;;  %v9446_v51 = vpop.f32.mrf.mxu1  ;;  %v9514_v45 = vrot.slane %v9513_v29, 4 }
 0xdf6   : > { %v9512_v48 = vmax.f32 %v9510_v22, %v9511_v41  ;;  %v15900_v5 = vpop.f32.mrf.mxu1  ;;  %v9515_v60 = vmax.f32 %v9513_v29, %v9514_v45 }
 0xdf8   : > { %v9528_v7 = vsub.f32 %v9496_v33, %v9512_v48  ;;  %v9489_v57 = vpop.f32.mrf.mxu1  ;;  %v9516_v4 = vrot.slane %v9515_v60, 2  ;;  %v9503_v33 = vmax.f32 %v9501_v23, %v9502_v52 }
 0xdf9   : > { %v9498_v58 = vmul.f32 0.088388346, %v9489_v57 }
 0xdfa   : > { %v9533_v15 = vmul.f32 1.442695, %v9528_v7  ;;  %v15905_v1 = vpop.f32.mrf.mxu1  ;;  %v9517_v3 = vmax.f32 %v9515_v60, %v9516_v4  ;;  %v9504_v17 = vrot.slane %v9503_v33, 1 }
 0xdfb   : > { %v9520_v63 = vsel %vm7249_vm5, %v9498_v58, -inf }
 0xdfc   : > { %16625 = vpow2.f32 %v9533_v15  ;;  %v9521_v12 = vrot.slane %v9520_v63, 4  ;;  %v9492_v55 = vpop.f32.mrf.mxu1  ;;  %v9518_v10 = vrot.slane %v9517_v3, 1  ;;  %v9505_v42 = vmax.f32 %v9503_v33, %v9504_v17 }
 0xdfe   : > { %v9522_v31 = vmax.f32 %v9520_v63, %v9521_v12  ;;  %v15906_v37 = vpop.f32.mrf.mxu1  ;;  %v9519_v39 = vmax.f32 %v9517_v3, %v9518_v10  ;;  %v9527_v51 = vsub.f32 %v9495_v14, %v9505_v42 }
 0xdff   : > { %v9306_v37 = vpack.c.bf16 %v19090_v36, %v19090_v36 }
 0xe00   : > { %v9523_v28 = vrot.slane %v9522_v31, 2  ;;  %v9529_v5 = vsub.f32 %v9497_v2, %v9519_v39  ;;  %v9531_v57 = vmul.f32 1.442695, %v9527_v51  ;;  %v9303_v39 = vpack.c.bf16 %v19092_v59, %v19092_v59 }
 0xe01   : > { %v9721_v2 = vsel %vm7333_vm6, %v9306_v37, 0 }
 0xe02   : > { %v9524_v26 = vmax.f32 %v9522_v31, %v9523_v28  ;;  %v9535_v15 = vmul.f32 1.442695, %v9529_v5 }
 0xe04   : > { %v9525_v16 = vrot.slane %v9524_v26, 1 }
 0xe06   : > { %v9526_v25 = vmax.f32 %v9524_v26, %v9525_v16 }
 0xe08   : > { %v9530_v8 = vsub.f32 %v9498_v58, %v9526_v25 }
 0xe09   : > { %v16626_v19 = vpop.eup %16625 }
 0xe0a   : > { %v9546_v21 = vsel %vm7249_vm5, %v16626_v19, 0.0  ;;  %v9537_v50 = vmul.f32 1.442695, %v9530_v8 }
 0xe0b   : > { %v9547_v32 = vrot.slane %v9546_v21, 4 }
 0xe0c   : > { %16627 = vpow2.f32 %v9537_v50 }
 0xe0d   : > { %v9548_v13 = vadd.f32 %v9547_v32, %v9546_v21 }
 0xe0f   : > { %v9549_v6 = vrot.slane %v9548_v13, 2 }
 0xe11   : > { %v9550_v44 = vadd.f32 %v9549_v6, %v9548_v13 }
 0xe13   : > { %v9551_v49 = vrot.slane %v9550_v44, 1 }
 0xe15   : > { %v9552_v22 = vadd.f32 %v9551_v49, %v9550_v44 }
 0xe17   : > { %16629 = vrcp.f32 %v9552_v22 }
 0xe18   : > { %16631 = vpow2.f32 %v9531_v57  ;;  %v9583_v57 = vsel %vm7333_vm6, %v9303_v39, 0 }
 0xe19   : > { %v16628_v41 = vpop.eup %16627  ;;  %16633 = vpow2.f32 %v9535_v15 }
 0xe1a   : > { %v9560_v48 = vsel %vm7249_vm5, %v16628_v41, 0.0 }
 0xe1b   : > { %v9561_v7 = vrot.slane %v9560_v48, 4 }
 0xe1d   : > { %v9562_v58 = vadd.f32 %v9561_v7, %v9560_v48 }
 0xe1f   : > { %v9563_v1 = vrot.slane %v9562_v58, 2 }
 0xe21   : > { %v9564_v63 = vadd.f32 %v9563_v1, %v9562_v58 }
 0xe23   : > { %v9565_v12 = vrot.slane %v9564_v63, 1 }
 0xe24   : > { %v16630_v55 = vpop.eup %16629 }
 0xe25   : > { %v9572_v56 = vmul.f32 %v16630_v55, %v16626_v19  ;;  %v9566_v31 = vadd.f32 %v9565_v12, %v9564_v63  ;;  %v16632_v29 = vpop.eup %16631 }
 0xe26   : > { %v16634_v28 = vpop.eup %16633  ;;  %v9539_v47 = vsel %vm7249_vm5, %v16632_v29, 0.0 }
 0xe27   : > { %16635 = vrcp.f32 %v9566_v31  ;;  %v9576_v14 = vpack.c.bf16 %v9572_v56, %v9572_v56  ;;  %v9553_v26 = vsel %vm7249_vm5, %v16634_v28, 0.0  ;;  %v9540_v36 = vrot.slane %v9539_v47, 4 }
 0xe28   : > { %v9554_v23 = vrot.slane %v9553_v26, 4 }
 0xe29   : > { %15916 = vmatmul.mubr.msk.bf16.vlgmr.msra.gmra.mxu1 %vm7249_vm5, %v9576_v14  ;;  %v9541_v60 = vadd.f32 %v9540_v36, %v9539_v47 }
 0xe2a   : > { %15926 = vmatpush3.bf16.msra.mxu1 %v9721_v2  ;;  %15927 = vmatprep.mubr.msk.bf16.mxu1 %vm16970_vm0, %v20281_v40  ;;  %v9555_v8 = vadd.f32 %v9554_v23, %v9553_v26 }
 0xe2b   : > { %15951 = vmatprep.subr.bf16.mxu1 %v20281_v40  ;;  %v9542_v19 = vrot.slane %v9541_v60, 2 }
 0xe2c   : > { %v9556_v52 = vrot.slane %v9555_v8, 2 }
 0xe2d   : > { %v9543_v21 = vadd.f32 %v9542_v19, %v9541_v60 }
 0xe2e   : > { %v9557_v50 = vadd.f32 %v9556_v52, %v9555_v8 }
 0xe2f   : > { %v9544_v32 = vrot.slane %v9543_v21, 1 }
 0xe30   : > { %v9558_v4 = vrot.slane %v9557_v50, 1 }
 0xe31   : > { %v9545_v33 = vadd.f32 %v9544_v32, %v9543_v21 }
 0xe32   : > { %v9559_v13 = vadd.f32 %v9558_v4, %v9557_v50 }
 0xe33   : > { %16637 = vrcp.f32 %v9545_v33 }
 0xe34   : > { %v16636_v45 = vpop.eup %16635  ;;  %16639 = vrcp.f32 %v9559_v13 }
 0xe35   : > { %v9574_v16 = vmul.f32 %v16636_v45, %v16628_v41 }
 0xe37   : > { %v9578_v25 = vpack.c.bf16 %v9574_v16, %v9574_v16 }
 0xe39   : > { %15928 = vmatmul.mubr.msk.bf16.vlgmr.msra.gmra.mxu1 %vm7249_vm5, %v9578_v25 }
 0xe3a   : > { %15953 = vmatprep.mubr.msk.bf16.mxu1 %vm16970_vm0, %v20281_v40 }
 0xe40   : > { %v16638_v46 = vpop.eup %16637 }
 0xe41   : > { %v9571_v63 = vmul.f32 %v16638_v46, %v16632_v29 }
 0xe52   : > { %v8808_v6 = vpop.permute.xlu0 %8807  ;;  %v8804_v3 = vpop.permute.xlu1 %8803 }
 0xe53   : > { %v8814_v17 = vsel %vm1973_vm1, %v8798_v61, %v8804_v3 }
 0xe54   : > { %v8815_v49 = vsel %vm2564_vm3, %v8814_v17, %v8808_v6 }
 0xe56   : > { %v10106_v44 = vpop.permute.xlu0 %10105  ;;  %v8812_v10 = vpop.permute.xlu1 %8811 }
 0xe57   : > { %v8816_v42 = vsel %vm2566_vm4, %v8815_v49, %v8812_v10 }
 0xe58   : > { %v19212_v22 = vadd.f32 %v8816_v42, %v18667_v38  ;;  %v16640_v38 = vpop.eup %16639 }
 0xe59   : > { %v9573_v2 = vmul.f32 %v16640_v38, %v16634_v28 }
 0xe5a   : > { %v8818_v41 = vpack.c.bf16 %v19212_v22, %v19212_v22  ;;  %v10112_v51 = vpop.permute.xlu0 %10111  ;;  %v10109_v48 = vpop.permute.xlu1 %10108 }
 0xe5b   : > { %v10130_v11 = vcombine.low %v10106_v44, %v10112_v51  ;;  %v10131_v61 = vcombine.high %v10106_v44, %v10112_v51  ;;  %v10114_v5 = vcombine.low %v19162_v62, %v10109_v48  ;;  %v10115_v7 = vcombine.high %v19162_v62, %v10109_v48 }
 0xe5c   : > { %15880 = vmatmul.mubr.bf16.vlgmr.msra.gmra.mxu0 %v8818_v41  ;;  %v9305_v62 = vpack.c.bf16 %v19094_v9, %v19094_v9  ;;  %v9575_v9 = vpack.c.bf16 %v9571_v63, %v9571_v63  ;;  %v9577_v52 = vpack.c.bf16 %v9573_v2, %v9573_v2  ;;  %v19260_v2 = vld [vmem:[#allocation8 + $0x1ec] ss:$16 sps:$4 sm:$0xff]  }
 0xe5d   : > { %v10138_v58 = vrot.slane %v10130_v11, %v17430_v20  ;;  %v10145_v59 = vrot.slane %v10131_v61, %v17430_v20  ;;  %v10122_v15 = vrot.slane %v10114_v5, %v17430_v20  ;;  %v10129_v1 = vrot.slane %v10115_v7, %v17430_v20  ;;  %15908 = vmatpush3.bf16.msra.mxu0 %v9583_v57 }
 0xe5e   : > { %v9963_v12 = vpop.permute.xlu0 %9962  ;;  %v9960_v55 = vpop.permute.xlu1 %9959  ;;  %15909 = vmatprep.mubr.msk.bf16.mxu0 %vm16970_vm0, %v20281_v40  ;;  %15919 = vmatprep.subr.bf16.mxu0 %v20281_v40  ;;  %v9675_v60 = vsel %vm7333_vm6, %v9305_v62, 0 }
 0xe5f   : > { %v10146_v56 = vcombine.low %v10122_v15, %v10138_v58  ;;  %v10147_v31 = vcombine.high %v10122_v15, %v10138_v58  ;;  %v10162_v37 = vcombine.low %v10129_v1, %v10145_v59  ;;  %v10163_v14 = vcombine.high %v10129_v1, %v10145_v59 }
 0xe60   : > { %v9968_v47 = vcombine.low %v19173_v18, %v9963_v12  ;;  %v9969_v26 = vcombine.high %v19173_v18, %v9963_v12 }
 0xe61   : > { %v10154_v29 = vrot.slane %v10146_v56, %v17435_v27  ;;  %v10161_v45 = vrot.slane %v10147_v31, %v17435_v27  ;;  %v10170_v36 = vrot.slane %v10162_v37, %v17435_v27  ;;  %v10177_v16 = vrot.slane %v10163_v14, %v17435_v27 }
 0xe62   : > { %v10256_v23 = vpop.permute.xlu0 %10255  ;;  %v9966_v25 = vpop.permute.xlu1 %9965  ;;  %v9976_v8 = vrot.slane %v9968_v47, %v17430_v20  ;;  %v9983_v4 = vrot.slane %v9969_v26, %v17430_v20 }
 0xe63   : > { %v9984_v28 = vcombine.low %v9960_v55, %v9966_v25  ;;  %v9985_v19 = vcombine.high %v9960_v55, %v9966_v25  ;;  %v10182_v21 = vcombine.low %v10154_v29, %v10161_v45  ;;  %v14931_v50 = vcombine.high %v10154_v29, %v10161_v45 }
 0xe64   : > { %15910 = vmatmul.mubr.msk.bf16.vlgmr.msra.gmra.mxu0 %vm7249_vm5, %v9575_v9  ;;  %v10198_v32 = vcombine.low %v10170_v36, %v10177_v16  ;;  %v14932_v33 = vcombine.high %v10170_v36, %v10177_v16 }
 0xe65   : > { %15920 = vmatpush3.bf16.msra.mxu0 %v9675_v60  ;;  %v9992_v13 = vrot.slane %v9984_v28, %v17430_v20  ;;  %v9999_v6 = vrot.slane %v9985_v19, %v17430_v20  ;;  %15921 = vmatprep.mubr.msk.bf16.mxu0 %vm16970_vm0, %v20281_v40  ;;  %v10189_v47 = vrot.slane %v10182_v21, %v17430_v20  ;;  %v19282_v19 = vld [vmem:[#allocation8 + $0x1cc] ss:$16 sps:$4 sm:$0xff]  }
 0xe66   : > { %v10262_v3 = vpop.permute.xlu0 %10261  ;;  %v10259_v17 = vpop.permute.xlu1 %10258  ;;  %15931 = vmatprep.subr.bf16.mxu0 %v20281_v40  ;;  %v10197_v26 = vrot.slane %v14931_v50, %v17430_v20  ;;  %v10205_v29 = vrot.slane %v10198_v32, %v17430_v20  ;;  %v10213_v45 = vrot.slane %v14932_v33, %v17430_v20 }
 0xe67   : > { %v10280_v44 = vcombine.low %v10256_v23, %v10262_v3  ;;  %v10281_v49 = vcombine.high %v10256_v23, %v10262_v3  ;;  %v10264_v10 = vcombine.low %v18647_v24, %v10259_v17  ;;  %v10265_v42 = vcombine.high %v18647_v24, %v10259_v17 }
 0xe68   : > { %v10000_v39 = vcombine.low %v9976_v8, %v9992_v13  ;;  %v10001_v41 = vcombine.high %v9976_v8, %v9992_v13  ;;  %v10016_v51 = vcombine.low %v9983_v4, %v9999_v6  ;;  %v10017_v48 = vcombine.high %v9983_v4, %v9999_v6 }
 0xe69   : > { %v10288_v46 = vrot.slane %v10280_v44, %v17430_v20  ;;  %v10295_v11 = vrot.slane %v10281_v49, %v17430_v20  ;;  %v10272_v61 = vrot.slane %v10264_v10, %v17430_v20  ;;  %v10279_v5 = vrot.slane %v10265_v42, %v17430_v20  ;;  %v19296_v44 = vld [vmem:[#allocation8 + $0x1ac] ss:$16 sps:$4 sm:$0xff]  }
 0xe6a   : > { %v10008_v7 = vrot.slane %v10000_v39, %v17435_v27  ;;  %v10015_v57 = vrot.slane %v10001_v41, %v17435_v27  ;;  %v10024_v38 = vrot.slane %v10016_v51, %v17435_v27  ;;  %v10031_v24 = vrot.slane %v10017_v48, %v17435_v27 }
 0xe6b   : > { %v10296_v58 = vcombine.low %v10272_v61, %v10288_v46  ;;  %v10297_v59 = vcombine.high %v10272_v61, %v10288_v46  ;;  %v10312_v15 = vcombine.low %v10279_v5, %v10295_v11  ;;  %v10313_v1 = vcombine.high %v10279_v5, %v10295_v11  ;;  %v19302_v61 = vld [vmem:[#allocation8 + $0x18c] ss:$16 sps:$4 sm:$0xff]  }
 0xe6c   : > { %v10036_v63 = vcombine.low %v10008_v7, %v10015_v57  ;;  %v14929_v12 = vcombine.high %v10008_v7, %v10015_v57  ;;  %v10052_v55 = vcombine.low %v10024_v38, %v10031_v24  ;;  %v14930_v62 = vcombine.high %v10024_v38, %v10031_v24  ;;  %15922 = vmatmul.mubr.msk.bf16.vlgmr.msra.gmra.mxu0 %vm7249_vm5, %v9577_v52 }
 0xe6d   : > { %v10304_v56 = vrot.slane %v10296_v58, %v17435_v27  ;;  %v10311_v31 = vrot.slane %v10297_v59, %v17435_v27  ;;  %v10320_v37 = vrot.slane %v10312_v15, %v17435_v27  ;;  %v10327_v14 = vrot.slane %v10313_v1, %v17435_v27  ;;  %15932 = vmatpush3.bf16.msra.mxu0 %v19260_v2 }
 0xe6e   : > { %15933 = vmatprep.subr.bf16.mxu0 %v20281_v40  ;;  %v19269_v36 = vrot.slane %v10036_v63, %v17430_v20  ;;  %v19272_v16 = vrot.slane %v14929_v12, %v17430_v20  ;;  %v19275_v23 = vrot.slane %v10052_v55, %v17430_v20  ;;  %v19278_v25 = vrot.slane %v14930_v62, %v17430_v20  ;;  %v19318_v55 = vld [vmem:[#allocation8 + $0x16c] ss:$16 sps:$4 sm:$0xff]  }
 0xe6f   : > { %15947 = vmatprep.mubr.msk.bf16.mxu0 %vm16970_vm0, %v20281_v40  ;;  %v10332_v9 = vcombine.low %v10304_v56, %v10311_v31  ;;  %v14933_v60 = vcombine.high %v10304_v56, %v10311_v31  ;;  %v10348_v8 = vcombine.low %v10320_v37, %v10327_v14  ;;  %v14934_v28 = vcombine.high %v10320_v37, %v10327_v14  ;;  %v19324_v14 = vld [vmem:[#allocation8 + $0x14c] ss:$16 sps:$4 sm:$0xff]  }
 0xe70   : > { %v10068_v52 = vcombine.low %v19269_v36, %v19272_v16  ;;  %v10084_v21 = vcombine.low %v19275_v23, %v19278_v25  ;;  %v10214_v50 = vcombine.low %v10189_v47, %v10197_v26  ;;  %v10230_v32 = vcombine.low %v10205_v29, %v10213_v45 }
 0xe71   : > { %15934 = vmatpush3.bf16.msra.mxu0 %v19282_v19  ;;  %v10339_v4 = vrot.slane %v10332_v9, %v17430_v20  ;;  %v10347_v33 = vrot.slane %v14933_v60, %v17430_v20  ;;  %v10355_v13 = vrot.slane %v10348_v8, %v17430_v20  ;;  %v10363_v6 = vrot.slane %v14934_v28, %v17430_v20  ;;  %v19337_v60 = vld [vmem:[#allocation8 + $0x12c] ss:$16 sps:$4 sm:$0xff]  }
 0xe72   : > { %15935 = vmatprep.subr.bf16.mxu0 %v20281_v40  ;;  %v10222_v3 = vrot.slane %v10214_v50, %v17435_v27  ;;  %v10238_v17 = vrot.slane %v10230_v32, %v17435_v27  ;;  %v10076_v49 = vrot.slane %v10068_v52, %v17435_v27  ;;  %v10092_v10 = vrot.slane %v10084_v21, %v17435_v27  ;;  %v19343_v50 = vld [vmem:[#allocation8 + $0x10c] ss:$16 sps:$4 sm:$0xff]  }
 0xe73   : > { %v10364_v39 = vcombine.low %v10339_v4, %v10347_v33  ;;  %v10380_v41 = vcombine.low %v10355_v13, %v10363_v6  ;;  %v10365_v51 = vcombine.high %v10339_v4, %v10347_v33  ;;  %v10381_v48 = vcombine.high %v10355_v13, %v10363_v6 }
 0xe74   : > { %v10246_v42 = vcombine.low %v10222_v3, %v10238_v17  ;;  %v10215_v11 = vcombine.high %v10189_v47, %v10197_v26  ;;  %v10100_v24 = vcombine.low %v10076_v49, %v10092_v10  ;;  %v10247_v59 = vcombine.high %v10222_v3, %v10238_v17 }
 0xe75   : > { %15936 = vmatpush3.bf16.msra.mxu0 %v19296_v44  ;;  %v10372_v5 = vrot.slane %v10364_v39, %v17435_v27  ;;  %v10388_v7 = vrot.slane %v10380_v41, %v17435_v27  ;;  %v10379_v57 = vrot.slane %v10365_v51, %v17435_v27  ;;  %v10395_v38 = vrot.slane %v10381_v48, %v17435_v27 }
 0xe76   : > { %15937 = vmatprep.subr.bf16.mxu0 %v20281_v40  ;;  %v10250_v46 = vpack.c.bf16 %v10246_v42, %v10246_v42  ;;  %v10231_v15 = vcombine.high %v10205_v29, %v10213_v45  ;;  %v10404_v62 = vpack.c.bf16 %v10100_v24, %v10100_v24  ;;  %v10251_v56 = vpack.c.bf16 %v10247_v59, %v10247_v59 }
 0xe77   : > { %v19311_v1 = vcombine.high %v10379_v57, %v10395_v38  ;;  %v19313_v63 = vcombine.low %v10372_v5, %v10388_v7  ;;  %v19315_v12 = vcombine.low %v10379_v57, %v10395_v38  ;;  %v10229_v31 = vrot.slane %v10215_v11, %v17435_v27  ;;  %v19362_v11 = vld [vmem:[#allocation10 + $0x7] ss:$0 sm:$0xff] }
 0xe78   : > { %v10412_v58 = vsel %vm1973_vm1, %v10250_v46, 0  ;;  %v10245_v37 = vrot.slane %v10231_v15, %v17435_v27  ;;  %v10458_v47 = vsel %vm1973_vm1, %v10251_v56, 0  ;;  %v10069_v29 = vcombine.high %v19269_v36, %v19272_v16 }
 0xe79   : > { %15938 = vmatpush3.bf16.msra.mxu0 %v19302_v61  ;;  %15952 = vmatpush3.bf16.xpose.msra.mxu1 %v10412_v58  ;;  %v10085_v45 = vcombine.high %v19275_v23, %v19278_v25  ;;  %v10101_v9 = vcombine.high %v10076_v49, %v10092_v10  ;;  %v10397_v33 = vcombine.high %v10372_v5, %v10388_v7 }
 0xe7a   : > { %15939 = vmatprep.subr.bf16.mxu0 %v20281_v40  ;;  %15957 = vmatprep.subr.bf16.mxu1 %v20281_v40  ;;  %v10248_v26 = vcombine.low %v10229_v31, %v10245_v37  ;;  %v10083_v28 = vrot.slane %v10069_v29, %v17435_v27  ;;  %v10249_v16 = vcombine.high %v10229_v31, %v10245_v37 }
 0xe7b   : > { %v10099_v52 = vrot.slane %v10085_v45, %v17435_v27  ;;  %v10405_v21 = vpack.c.bf16 %v10101_v9, %v10101_v9  ;;  %v10401_v6 = vpack.c.bf16 %v10397_v33, %v10397_v33  ;;  %v7757_v5 = vadd.f32 %v19362_v11, %v19132_v30 }
 0xe7c   : > { %v10252_v8 = vpack.c.bf16 %v10248_v26, %v10248_v26  ;;  %v10253_v25 = vpack.c.bf16 %v10249_v16, %v10249_v16 }
 0xe7d   : > { %15940 = vmatpush3.bf16.msra.mxu0 %v19318_v55  ;;  %v10102_v23 = vcombine.low %v10083_v28, %v10099_v52  ;;  %v10103_v13 = vcombine.high %v10083_v28, %v10099_v52  ;;  %v10726_v17 = vsel %vm7333_vm6, %v10401_v6, 0  ;;  %v7762_v57 = vmax.f32 %v7757_v5, 0.0 }
 0xe7e   : > { %15941 = vmatprep.subr.bf16.mxu0 %v20281_v40  ;;  %v10504_v36 = vsel %vm1973_vm1, %v10252_v8, 0  ;;  %v10550_v4 = vsel %vm1973_vm1, %v10253_v25, 0 }
 0xe7f   : > { %v10406_v32 = vpack.c.bf16 %v10102_v23, %v10102_v23  ;;  %v10407_v3 = vpack.c.bf16 %v10103_v13, %v10103_v13  ;;  %v19368_v15 = vadd.f32 %v7762_v57, %v18982_v43 }
 0xe80   : > { %15954 = vmatmul.mubr.msk.bf16.vlgmr.msra.gmra.mxu1 %vm1973_vm1, %v10404_v62 }
 0xe81   : > { %15942 = vmatpush3.bf16.msra.mxu0 %v19324_v14  ;;  %15958 = vmatpush3.bf16.xpose.msra.mxu1 %v10458_v47 }
 0xe82   : > { %15943 = vmatprep.subr.bf16.mxu0 %v20281_v40  ;;  %15959 = vmatprep.mubr.msk.bf16.mxu1 %vm16970_vm0, %v20281_v40 }
 0xe83   : > { %15963 = vmatprep.subr.bf16.mxu1 %v20281_v40 }
 0xe85   : > { %15944 = vmatpush3.bf16.msra.mxu0 %v19337_v60 }
 0xe86   : > { %15945 = vmatprep.subr.bf16.mxu0 %v20281_v40 }
 0xe88   : > { %15960 = vmatmul.mubr.msk.bf16.vlgmr.msra.gmra.mxu1 %vm1973_vm1, %v10405_v21 }
 0xe89   : > { %15946 = vmatpush3.bf16.msra.mxu0 %v19343_v50  ;;  %15964 = vmatpush3.bf16.xpose.msra.mxu1 %v10504_v36 }
 0xe8a   : > { %15975 = vmatprep.subr.bf16.mxu0 %v20281_v40  ;;  %15965 = vmatprep.mubr.msk.bf16.mxu1 %vm16970_vm0, %v20281_v40 }
 0xe8b   : > { %15969 = vmatprep.subr.bf16.mxu1 %v20281_v40 }
 0xe90   : > { %15966 = vmatmul.mubr.msk.bf16.vlgmr.msra.gmra.mxu1 %vm1973_vm1, %v10406_v32 }
 0xe91   : > { %15970 = vmatpush3.bf16.xpose.msra.mxu1 %v10550_v4  ;;  %15971 = vmatprep.mubr.msk.bf16.mxu1 %vm16970_vm0, %v20281_v40 }
 0xe92   : > { %15981 = vmatprep.subr.bf16.mxu1 %v20281_v40 }
 0xe98   : > { %15972 = vmatmul.mubr.msk.bf16.vlgmr.msra.gmra.mxu1 %vm1973_vm1, %v10407_v3 }
 0xe99   : > { %15982 = vmatpush3.bf16.msra.mxu1 %v10726_v17  ;;  %15983 = vmatprep.mubr.msk.bf16.mxu1 %vm16970_vm0, %v20281_v40 }
 0xe9a   : > { %15993 = vmatprep.subr.bf16.mxu1 %v20281_v40 }
 0xee9   : > { %v9665_v49 = vpop.f32.mrf.mxu1 }
 0xeeb   : > { %v15917_v10 = vpop.f32.mrf.mxu1 }
 0xeed   : > { %v9668_v42 = vpop.f32.mrf.mxu1 }
 0xeef   : > { %v15918_v39 = vpop.f32.mrf.mxu1 }
 0xef9   : > { %v9757_v41 = vpop.f32.mrf.mxu1 }
 0xefa   : > { %v9779_v29 = vcombine.low %v9665_v49, %v9757_v41  ;;  %v9780_v45 = vcombine.high %v9665_v49, %v9757_v41 }
 0xefb   : > { %v15929_v51 = vpop.f32.mrf.mxu1 }
 0xefc   : > { %v9787_v43 = vrot.slane %v9779_v29, %v17430_v20  ;;  %v9794_v21 = vrot.slane %v9780_v45, %v17430_v20 }
 0xefd   : > { %v9760_v48 = vpop.f32.mrf.mxu1 }
 0xeff   : > { %v15930_v46 = vpop.f32.mrf.mxu1 }
 0xf1c   : > { %v8853_v7 = vpop.f32.mrf.mxu0 }
 0xf1d   : > { %v8854_v38 = vadd.f32 %v19362_v11, %v8853_v7 }
 0xf1e   : > { %v15881_v24 = vpop.f32.mrf.mxu0 }
 0xf1f   : > { %v8859_v58 = vmax.f32 %v8854_v38, 0.0 }
 0xf20   : > { %v8856_v59 = vpop.f32.mrf.mxu0 }
 0xf21   : > { %v19371_v62 = vadd.f32 %v8859_v58, %v19212_v22 }
 0xf22   : > { %v15882_v56 = vpop.f32.mrf.mxu0 }
 0xf23   : > { %v11071_v31 = vpack.c.bf16 %v19371_v62, %v19368_v15 }
 0xf24   : > { %v9619_v37 = vpop.f32.mrf.mxu0 }
 0xf26   : > { %v15911_v47 = vpop.f32.mrf.mxu0 }
 0xf28   : > { %v9622_v30 = vpop.f32.mrf.mxu0 }
 0xf2a   : > { %v15912_v26 = vpop.f32.mrf.mxu0 }
 0xf2c   : > { %v9711_v9 = vpop.f32.mrf.mxu0 }
 0xf2d   : > { %v9763_v8 = vcombine.low %v9619_v37, %v9711_v9  ;;  %v9764_v28 = vcombine.high %v9619_v37, %v9711_v9 }
 0xf2e   : > { %v15923_v52 = vpop.f32.mrf.mxu0 }
 0xf2f   : > { %v9771_v22 = vrot.slane %v9763_v8, %v17430_v20  ;;  %v9778_v36 = vrot.slane %v9764_v28, %v17430_v20 }
 0xf30   : > { %v9714_v16 = vpop.f32.mrf.mxu0 }
 0xf31   : > { %v9795_v23 = vcombine.low %v9771_v22, %v9787_v43  ;;  %v9796_v25 = vcombine.high %v9771_v22, %v9787_v43  ;;  %v9811_v32 = vcombine.low %v9778_v36, %v9794_v21  ;;  %v9812_v4 = vcombine.high %v9778_v36, %v9794_v21 }
 0xf32   : > { %v15924_v33 = vpop.f32.mrf.mxu0 }
 0xf33   : > { %v9803_v13 = vrot.slane %v9795_v23, %v17435_v27  ;;  %v9810_v6 = vrot.slane %v9796_v25, %v17435_v27  ;;  %v9819_v3 = vrot.slane %v9811_v32, %v17435_v27  ;;  %v9826_v17 = vrot.slane %v9812_v4, %v17435_v27 }
 0xf35   : > { %v9831_v49 = vcombine.low %v9803_v13, %v9810_v6  ;;  %v14927_v10 = vcombine.high %v9803_v13, %v9810_v6  ;;  %v9847_v42 = vcombine.low %v9819_v3, %v9826_v17  ;;  %v14928_v39 = vcombine.high %v9819_v3, %v9826_v17 }
 0xf37   : > { %v9838_v41 = vrot.slane %v9831_v49, %v17430_v20  ;;  %v9846_v51 = vrot.slane %v14927_v10, %v17430_v20  ;;  %v9854_v48 = vrot.slane %v9847_v42, %v17430_v20  ;;  %v9862_v46 = vrot.slane %v14928_v39, %v17430_v20 }
 0xf39   : > { %v9864_v5 = vcombine.high %v9838_v41, %v9846_v51  ;;  %v9880_v7 = vcombine.high %v9854_v48, %v9862_v46  ;;  %v9863_v57 = vcombine.low %v9838_v41, %v9846_v51  ;;  %v9879_v38 = vcombine.low %v9854_v48, %v9862_v46 }
 0xf3b   : > { %v9878_v24 = vrot.slane %v9864_v5, %v17435_v27  ;;  %v9894_v58 = vrot.slane %v9880_v7, %v17435_v27  ;;  %v19390_v59 = vrot.slane %v9863_v57, %v17435_v27  ;;  %v19393_v56 = vrot.slane %v9879_v38, %v17435_v27 }
 0xf3d   : > { %v9897_v37 = vcombine.low %v9878_v24, %v9894_v58  ;;  %v9896_v47 = vcombine.high %v19390_v59, %v19393_v56  ;;  %v9895_v30 = vcombine.low %v19390_v59, %v19393_v56  ;;  %v9898_v26 = vcombine.high %v9878_v24, %v9894_v58 }
 0xf3f   : > { %9904 = vrot.lane.b32.xlu0 %v9897_v37, %s16972_s18  ;;  %9900 = vrot.lane.b32.xlu1 %v9896_v47, %s16974_s19 }
 0xf40   : > { %v10448_v29 = vpop.f32.mrf.mxu1 }
 0xf41   : > { %v10592_v49 = vmul.f32 0.088388346, %v10448_v29 }
 0xf42   : > { %v15955_v45 = vpop.f32.mrf.mxu1 }
 0xf43   : > { %9908 = vrot.lane.b32.xlu1 %v9898_v26, %s16973_s15  ;;  %v10596_v46 = vsel %vm7249_vm5, %v10592_v49, -inf }
 0xf44   : > { %v10451_v9 = vpop.f32.mrf.mxu1  ;;  %v10597_v24 = vrot.slane %v10596_v46, 4 }
 0xf46   : > { %v15956_v8 = vpop.f32.mrf.mxu1  ;;  %v10598_v26 = vmax.f32 %v10596_v46, %v10597_v24 }
 0xf48   : > { %v10494_v28 = vpop.f32.mrf.mxu1 }
 0xf49   : > { %v10593_v52 = vmul.f32 0.088388346, %v10494_v28  ;;  %v10599_v28 = vrot.slane %v10598_v26, 2 }
 0xf4a   : > { %v15961_v43 = vpop.f32.mrf.mxu1 }
 0xf4b   : > { %v10603_v21 = vsel %vm7249_vm5, %v10593_v52, -inf }
 0xf4c   : > { %v10604_v22 = vrot.slane %v10603_v21, 4  ;;  %v10497_v36 = vpop.f32.mrf.mxu1 }
 0xf4e   : > { %v10605_v16 = vmax.f32 %v10603_v21, %v10604_v22  ;;  %v15962_v23 = vpop.f32.mrf.mxu1 }
 0xf50   : > { %v10606_v25 = vrot.slane %v10605_v16, 2  ;;  %v10540_v32 = vpop.f32.mrf.mxu1 }
 0xf51   : > { %v10594_v58 = vmul.f32 0.088388346, %v10540_v32 }
 0xf52   : > { %v10607_v4 = vmax.f32 %v10605_v16, %v10606_v25  ;;  %v15967_v33 = vpop.f32.mrf.mxu1  ;;  %v10600_v16 = vmax.f32 %v10598_v26, %v10599_v28 }
 0xf53   : > { %v10610_v29 = vsel %vm7249_vm5, %v10594_v58, -inf }
 0xf54   : > { %v10608_v13 = vrot.slane %v10607_v4, 1  ;;  %v10543_v6 = vpop.f32.mrf.mxu1  ;;  %v10611_v9 = vrot.slane %v10610_v29, 4 }
 0xf56   : > { %v10609_v3 = vmax.f32 %v10607_v4, %v10608_v13  ;;  %v15968_v17 = vpop.f32.mrf.mxu1  ;;  %v10612_v22 = vmax.f32 %v10610_v29, %v10611_v9  ;;  %v10601_v4 = vrot.slane %v10600_v16, 1 }
 0xf58   : > { %v10625_v10 = vsub.f32 %v10593_v52, %v10609_v3  ;;  %v10586_v42 = vpop.f32.mrf.mxu1  ;;  %v10613_v32 = vrot.slane %v10612_v22, 2  ;;  %v10602_v3 = vmax.f32 %v10600_v16, %v10601_v4  ;;  %v16497_v16 = vld [vmem:[#allocation8 + $0x2e4] ss:$16 sps:$4 sm:$0xff]  }
 0xf59   : > { %v10595_v39 = vmul.f32 0.088388346, %v10586_v42 }
 0xf5a   : > { %v10630_v41 = vmul.f32 1.442695, %v10625_v10  ;;  %v15973_v51 = vpop.f32.mrf.mxu1  ;;  %v10614_v6 = vmax.f32 %v10612_v22, %v10613_v32  ;;  %v16502_v32 = vld [vmem:[#allocation8 + $0x2c8] ss:$16 sps:$4 sm:$0xff]  }
 0xf5b   : > { %v10617_v48 = vsel %vm7249_vm5, %v10595_v39, -inf }
 0xf5c   : > { %16641 = vpow2.f32 %v10630_v41  ;;  %v10618_v5 = vrot.slane %v10617_v48, 4  ;;  %v10589_v7 = vpop.f32.mrf.mxu1  ;;  %v10615_v42 = vrot.slane %v10614_v6, 1  ;;  %v10624_v41 = vsub.f32 %v10592_v49, %v10602_v3 }
 0xf5d   : > { %v10403_v49 = vpack.c.bf16 %v19311_v1, %v19311_v1 }
 0xf5e   : > { %v10619_v57 = vmax.f32 %v10617_v48, %v10618_v5  ;;  %v15974_v38 = vpop.f32.mrf.mxu1  ;;  %v10616_v51 = vmax.f32 %v10614_v6, %v10615_v42  ;;  %v10628_v46 = vmul.f32 1.442695, %v10624_v41  ;;  %v16505_v6 = vld [vmem:[#allocation8 + $0x2a8] ss:$16 sps:$4 sm:$0xff]  }
 0xf5f   : > { %v10818_v28 = vsel %vm7333_vm6, %v10403_v49, 0  ;;  %v16508_v42 = vld [vmem:[#allocation8 + $0x288] ss:$16 sps:$4 sm:$0xff]  }
 0xf60   : > { %v10620_v37 = vrot.slane %v10619_v57, 2 }
 0xf62   : > { %v10621_v47 = vmax.f32 %v10619_v57, %v10620_v37  ;;  %v10626_v57 = vsub.f32 %v10594_v58, %v10616_v51  ;;  %v16506_v51 = vld [vmem:[#allocation8 + $0x284] ss:$16 sps:$4 sm:$0xff]  }
 0xf64   : > { %v10622_v45 = vrot.slane %v10621_v47, 1  ;;  %v10632_v37 = vmul.f32 1.442695, %v10626_v57  ;;  %v16514_v57 = vld [vmem:[#allocation8 + $0x248] ss:$16 sps:$4 sm:$0xff]  }
 0xf66   : > { %v10623_v8 = vmax.f32 %v10621_v47, %v10622_v45 }
 0xf68   : > { %v10627_v52 = vsub.f32 %v10595_v39, %v10623_v8  ;;  %v16499_v8 = vld [vmem:[#allocation8 + $0x2e8] ss:$16 sps:$4 sm:$0xff]  }
 0xf69   : > { %v16642_v43 = vpop.eup %16641 }
 0xf6a   : > { %v10643_v21 = vsel %vm7249_vm5, %v16642_v43, 0.0  ;;  %v10634_v36 = vmul.f32 1.442695, %v10627_v52 }
 0xf6b   : > { %v10644_v23 = vrot.slane %v10643_v21, 4 }
 0xf6c   : > { %16643 = vpow2.f32 %v10634_v36 }
 0xf6d   : > { %v10645_v25 = vadd.f32 %v10644_v23, %v10643_v21 }
 0xf6f   : > { %v10646_v33 = vrot.slane %v10645_v25, 2 }
 0xf71   : > { %v10647_v13 = vadd.f32 %v10646_v33, %v10645_v25 }
 0xf73   : > { %v10648_v17 = vrot.slane %v10647_v13, 1 }
 0xf75   : > { %v10649_v10 = vadd.f32 %v10648_v17, %v10647_v13  ;;  %v16500_v13 = vld [vmem:[#allocation8 + $0x2c4] ss:$16 sps:$4 sm:$0xff]  }
 0xf77   : > { %16645 = vrcp.f32 %v10649_v10  ;;  %v16503_v10 = vld [vmem:[#allocation8 + $0x2a4] ss:$16 sps:$4 sm:$0xff]  }
 0xf78   : > { %16647 = vpow2.f32 %v10628_v46 }
 0xf79   : > { %v16644_v39 = vpop.eup %16643  ;;  %16649 = vpow2.f32 %v10632_v37  ;;  %v16517_v37 = vld [vmem:[#allocation8 + $0x228] ss:$16 sps:$4 sm:$0xff]  }
 0xf7a   : > { %v10657_v48 = vsel %vm7249_vm5, %v16644_v39, 0.0 }
 0xf7b   : > { %v10658_v5 = vrot.slane %v10657_v48, 4 }
 0xf7d   : > { %v10659_v7 = vadd.f32 %v10658_v5, %v10657_v48  ;;  %v16511_v48 = vld [vmem:[#allocation8 + $0x268] ss:$16 sps:$4 sm:$0xff]  }
 0xf7f   : > { %v10660_v38 = vrot.slane %v10659_v7, 2 }
 0xf81   : > { %v10661_v24 = vadd.f32 %v10660_v38, %v10659_v7  ;;  %v16509_v7 = vld [vmem:[#allocation8 + $0x264] ss:$16 sps:$4 sm:$0xff]  }
 0xf83   : > { %v10662_v47 = vrot.slane %v10661_v24, 1 }
 0xf84   : > { %v16646_v26 = vpop.eup %16645 }
 0xf85   : > { %v10669_v29 = vmul.f32 %v16646_v26, %v16642_v43  ;;  %v10663_v45 = vadd.f32 %v10662_v47, %v10661_v24  ;;  %v19414_v58 = vpop.eup %16647  ;;  %v16512_v24 = vld [vmem:[#allocation8 + $0x244] ss:$16 sps:$4 sm:$0xff]  }
 0xf86   : > { %v10636_v52 = vsel %vm7249_vm5, %v19414_v58, 0.0  ;;  %v19418_v1 = vpop.eup %16649  ;;  %v16515_v26 = vld [vmem:[#allocation8 + $0x224] ss:$16 sps:$4 sm:$0xff]  }
 0xf87   : > { %16651 = vrcp.f32 %v10663_v45  ;;  %v10673_v9 = vpack.c.bf16 %v10669_v29, %v10669_v29  ;;  %v10637_v43 = vrot.slane %v10636_v52, 4  ;;  %v10650_v23 = vsel %vm7249_vm5, %v19418_v1, 0.0  ;;  %v16520_v45 = vld [vmem:[#allocation8 + $0x208] ss:$16 sps:$4 sm:$0xff]  }
 0xf88   : > { %v10651_v33 = vrot.slane %v10650_v23, 4 }
 0xf89   : > { %15984 = vmatmul.mubr.msk.bf16.vlgmr.msra.gmra.mxu1 %vm7249_vm5, %v10673_v9  ;;  %v10638_v36 = vadd.f32 %v10637_v43, %v10636_v52 }
 0xf8a   : > { %15994 = vmatpush3.bf16.msra.mxu1 %v10818_v28  ;;  %15995 = vmatprep.mubr.msk.bf16.mxu1 %vm16970_vm0, %v20281_v40  ;;  %v10652_v17 = vadd.f32 %v10651_v33, %v10650_v23 }
 0xf8b   : > { %11165 = vmatprep.subr.bf16.mxu1 %v16499_v8  ;;  %v10639_v4 = vrot.slane %v10638_v36, 2  ;;  %v16518_v8 = vld [vmem:[#allocation8 + $0x204] ss:$16 sps:$4 sm:$0xff]  }
 0xf8d   : > { %v10640_v3 = vadd.f32 %v10639_v4, %v10638_v36 }
 0xf8f   : > { %v10641_v41 = vrot.slane %v10640_v3, 1 }
 0xf91   : > { %v10642_v46 = vadd.f32 %v10641_v41, %v10640_v3 }
 0xf93   : > { %16653 = vrcp.f32 %v10642_v46 }
 0xf94   : > { %v16652_v21 = vpop.eup %16651 }
 0xf95   : > { %v10671_v22 = vmul.f32 %v16652_v21, %v16644_v39  ;;  %v10653_v39 = vrot.slane %v10652_v17, 2 }
 0xf97   : > { %v10675_v25 = vpack.c.bf16 %v10671_v22, %v10671_v22  ;;  %v10654_v5 = vadd.f32 %v10653_v39, %v10652_v17  ;;  %v10400_v22 = vpack.c.bf16 %v19313_v63, %v19313_v63  ;;  %v10402_v63 = vpack.c.bf16 %v19315_v12, %v19315_v12 }
 0xf99   : > { %15996 = vmatmul.mubr.msk.bf16.vlgmr.msra.gmra.mxu1 %vm7249_vm5, %v10675_v25  ;;  %v10655_v38 = vrot.slane %v10654_v5, 1  ;;  %v10772_v15 = vsel %vm7333_vm6, %v10402_v63, 0 }
 0xf9a   : > { %11166 = vmatpush1.bf16.msra.mxu1 %v16497_v16  ;;  %11197 = vmatprep.mubr.bf16.mxu1 %v20282_v0 }
 0xf9b   : > { %11167 = vmatprep.subr.bf16.mxu1 %v16502_v32  ;;  %v10656_v47 = vadd.f32 %v10655_v38, %v10654_v5 }
 0xf9d   : > { %16655 = vrcp.f32 %v10656_v47 }
 0xf9e   : > { %11168 = vmatpush1.bf16.msra.mxu1 %v16500_v13 }
 0xf9f   : > { %11169 = vmatprep.subr.bf16.mxu1 %v16505_v6 }
 0xfa0   : > { %v16654_v56 = vpop.eup %16653 }
 0xfa2   : > { %11170 = vmatpush1.bf16.msra.mxu1 %v16503_v10 }
 0xfa3   : > { %11171 = vmatprep.subr.bf16.mxu1 %v16508_v42 }
 0xfa6   : > { %11172 = vmatpush1.bf16.msra.mxu1 %v16506_v51 }
 0xfa7   : > { %11173 = vmatprep.subr.bf16.mxu1 %v16511_v48 }
 0xfaa   : > { %11174 = vmatpush1.bf16.msra.mxu1 %v16509_v7  ;;  %v16656_v16 = vpop.eup %16655 }
 0xfab   : > { %11175 = vmatprep.subr.bf16.mxu1 %v16514_v57  ;;  %v10670_v62 = vmul.f32 %v16656_v16, %v19418_v1 }
 0xfae   : > { %11176 = vmatpush1.bf16.msra.mxu1 %v16512_v24 }
 0xfaf   : > { %11177 = vmatprep.subr.bf16.mxu1 %v16517_v37 }
 0xfb1   : > { %v9901_v29 = vpop.permute.xlu1 %9900  ;;  %v9905_v49 = vpop.permute.xlu0 %9904 }
 0xfb2   : > { %v9911_v9 = vsel %vm1973_vm1, %v9895_v30, %v9901_v29  ;;  %11178 = vmatpush1.bf16.msra.mxu1 %v16515_v26  ;;  %v10680_v30 = vsel %vm7333_vm6, %v10400_v22, 0 }
 0xfb3   : > { %v9912_v28 = vsel %vm2564_vm3, %v9911_v9, %v9905_v49  ;;  %11179 = vmatprep.subr.bf16.mxu1 %v16520_v45 }
 0xfb5   : > { %v9909_v52 = vpop.permute.xlu1 %9908 }
 0xfb6   : > { %v9913_v43 = vsel %vm2566_vm4, %v9912_v28, %v9909_v52  ;;  %11180 = vmatpush1.bf16.msra.mxu1 %v16518_v8 }
 0xfb7   : > { %v19431_v21 = vadd.f32 %v9913_v43, %v18943_v54  ;;  %16031 = vmatprep.subr.bf16.mxu1 %v20281_v40  ;;  %v10668_v54 = vmul.f32 %v16654_v56, %v19414_v58 }
 0xfb9   : > { %v9915_v59 = vpack.c.bf16 %v19431_v21, %v19431_v21  ;;  %11198 = vmatmul.mubr.bf16.vlgmr.msra.gmra.mxu1 %v11071_v31  ;;  %v10672_v36 = vpack.c.bf16 %v10668_v54, %v10668_v54  ;;  %v10674_v31 = vpack.c.bf16 %v10670_v62, %v10670_v62  ;;  %v11073_v54 = vld [vmem:[#allocation10 + $0x9] sm:$0x3] }
 0xfba   : > { %11207 = vmatprep.mubr.bf16.mxu1 %v20282_v0  ;;  %v19493_v62 = vrot.slane %v11073_v54, %v17345_v35  ;;  %v20283_v35 = vld [vmem:[#allocation18_spill] sm:$0xff] }
 0xfbb   : > { %15948 = vmatmul.mubr.bf16.vlgmr.msra.gmra.mxu0 %v9915_v59 }
 0xfbc   : > { %15976 = vmatpush3.bf16.msra.mxu0 %v10680_v30  ;;  %15977 = vmatprep.mubr.msk.bf16.mxu0 %vm16970_vm0, %v20281_v40 }
 0xfbd   : > { %15987 = vmatprep.subr.bf16.mxu0 %v20281_v40 }
 0xfc3   : > { %15978 = vmatmul.mubr.msk.bf16.vlgmr.msra.gmra.mxu0 %vm7249_vm5, %v10672_v36 }
 0xfc4   : > { %15988 = vmatpush3.bf16.msra.mxu0 %v10772_v15  ;;  %15989 = vmatprep.mubr.msk.bf16.mxu0 %vm16970_vm0, %v20281_v40 }
 0xfc5   : > { %15999 = vmatprep.subr.bf16.mxu0 %v20281_v40 }
 0xfcb   : > { %15990 = vmatmul.mubr.msk.bf16.vlgmr.msra.gmra.mxu0 %vm7249_vm5, %v10674_v31 }
 0xfcc   : > { %16000 = vmatpush3.bf16.msra.mxu0 %v19260_v2  ;;  %16015 = vmatprep.mubr.msk.bf16.mxu0 %vm16970_vm0, %v20281_v40 }
 0xfcd   : > { %16001 = vmatprep.subr.bf16.mxu0 %v20281_v40 }
 0xfd0   : > { %16002 = vmatpush3.bf16.msra.mxu0 %v19282_v19 }
 0xfd1   : > { %16003 = vmatprep.subr.bf16.mxu0 %v20281_v40 }
 0xfd4   : > { %16004 = vmatpush3.bf16.msra.mxu0 %v19296_v44 }
 0xfd5   : > { %16005 = vmatprep.subr.bf16.mxu0 %v20281_v40 }
 0xfd8   : > { %16006 = vmatpush3.bf16.msra.mxu0 %v19302_v61 }
 0xfd9   : > { %16007 = vmatprep.subr.bf16.mxu0 %v20281_v40 }
 0xfdc   : > { %16008 = vmatpush3.bf16.msra.mxu0 %v19318_v55 }
 0xfdd   : > { %16009 = vmatprep.subr.bf16.mxu0 %v20281_v40 }
 0xfe0   : > { %16010 = vmatpush3.bf16.msra.mxu0 %v19324_v14 }
 0xfe1   : > { %16011 = vmatprep.subr.bf16.mxu0 %v20281_v40 }
 0xfe4   : > { %16012 = vmatpush3.bf16.msra.mxu0 %v19337_v60 }
 0xfe5   : > { %16013 = vmatprep.subr.bf16.mxu0 %v20281_v40 }
 0xfe8   : > { %16014 = vmatpush3.bf16.msra.mxu0 %v19343_v50 }
 0xfe9   : > { %16019 = vmatprep.subr.bf16.mxu0 %v20281_v40 }
0x1049   : > { %v10762_v0 = vpop.f32.mrf.mxu1 }
0x104b   : > { %v15985_v2 = vpop.f32.mrf.mxu1 }
0x104d   : > { %v10765_v19 = vpop.f32.mrf.mxu1 }
0x104f   : > { %v15986_v44 = vpop.f32.mrf.mxu1 }
0x1059   : > { %v10854_v61 = vpop.f32.mrf.mxu1 }
0x105a   : > { %v10876_v50 = vcombine.low %v10762_v0, %v10854_v61  ;;  %v10877_v13 = vcombine.high %v10762_v0, %v10854_v61 }
0x105b   : > { %v15997_v12 = vpop.f32.mrf.mxu1 }
0x105c   : > { %v10884_v42 = vrot.slane %v10876_v50, %v17430_v20  ;;  %v10891_v41 = vrot.slane %v10877_v13, %v17430_v20  ;;  %v564_v12 = vld [vmem:[#allocation10 + $0x8] sm:$0x1] }
0x105d   : > { %v10857_v55 = vpop.f32.mrf.mxu1 }
0x105e   : > { %v19503_v55 = vadd.f32 %v20283_v35, %v564_v12 }
0x105f   : > { %v15998_v58 = vpop.f32.mrf.mxu1 }
0x1060   : > { %v19506_v58 = vrot.slane %v11073_v54, %v17374_v53 }
0x1079   : > { %v11199_v19 = vpop.f32.mrf.mxu1 }
0x107a   : > { %v11200_v44 = vadd.f32 %v11199_v19, %v19493_v62 }
0x107b   : > { %v19474_v1 = vpop.f32.mrf.mxu0 }
0x107d   : > { %v15949_v14 = vpop.f32.mrf.mxu0 }
0x107e   : > { %v11201_v14 = vpop.f32.mrf.mxu1 }
0x107f   : > { %v9953_v23 = vpop.f32.mrf.mxu0 }
0x1080   : > { %v19513_v23 = vadd.f32 %v11201_v14, %v19506_v58 }
0x1081   : > { %v15950_v25 = vpop.f32.mrf.mxu0 }
0x1082   : > { %v11203_v25 = vpop.f32.mrf.mxu1 }
0x1083   : > { %v10716_v60 = vpop.f32.mrf.mxu0  ;;  %v19524_v53 = vadd.f32 %v11203_v25, %v19493_v62 }
0x1085   : > { %v15979_v32 = vpop.f32.mrf.mxu0 }
0x1087   : > { %v10719_v4 = vpop.f32.mrf.mxu0 }
0x1089   : > { %v15980_v33 = vpop.f32.mrf.mxu0 }
0x108b   : > { %v10808_v6 = vpop.f32.mrf.mxu0 }
0x108c   : > { %v10860_v3 = vcombine.low %v10716_v60, %v10808_v6  ;;  %v10861_v17 = vcombine.high %v10716_v60, %v10808_v6  ;;  %v11205_v60 = vpop.f32.mrf.mxu1 }
0x108d   : > { %v15991_v10 = vpop.f32.mrf.mxu0  ;;  %v19531_v32 = vadd.f32 %v11205_v60, %v19506_v58 }
0x108e   : > { %v10868_v39 = vrot.slane %v10860_v3, %v17430_v20  ;;  %v10875_v51 = vrot.slane %v10861_v17, %v17430_v20 }
0x108f   : > { %v10811_v48 = vpop.f32.mrf.mxu0 }
0x1090   : > { %v10892_v46 = vcombine.low %v10868_v39, %v10884_v42  ;;  %v10893_v5 = vcombine.high %v10868_v39, %v10884_v42  ;;  %v10908_v7 = vcombine.low %v10875_v51, %v10891_v41  ;;  %v10909_v57 = vcombine.high %v10875_v51, %v10891_v41 }
0x1091   : > { %v15992_v38 = vpop.f32.mrf.mxu0 }
0x1092   : > { %v10900_v24 = vrot.slane %v10892_v46, %v17435_v27  ;;  %v10907_v37 = vrot.slane %v10893_v5, %v17435_v27  ;;  %v10916_v47 = vrot.slane %v10908_v7, %v17435_v27  ;;  %v10923_v26 = vrot.slane %v10909_v57, %v17435_v27 }
0x1094   : > { %v10928_v29 = vcombine.low %v10900_v24, %v10907_v37  ;;  %v14943_v45 = vcombine.high %v10900_v24, %v10907_v37  ;;  %v10944_v49 = vcombine.low %v10916_v47, %v10923_v26  ;;  %v14944_v9 = vcombine.high %v10916_v47, %v10923_v26 }
0x1096   : > { %v10935_v8 = vrot.slane %v10928_v29, %v17430_v20  ;;  %v10943_v28 = vrot.slane %v14943_v45, %v17430_v20  ;;  %v10951_v52 = vrot.slane %v10944_v49, %v17430_v20  ;;  %v10959_v43 = vrot.slane %v14944_v9, %v17430_v20 }
0x1098   : > { %v10961_v22 = vcombine.high %v10935_v8, %v10943_v28  ;;  %v10977_v59 = vcombine.high %v10951_v52, %v10959_v43  ;;  %v10960_v56 = vcombine.low %v10935_v8, %v10943_v28  ;;  %v10976_v30 = vcombine.low %v10951_v52, %v10959_v43 }
0x109a   : > { %v10975_v63 = vrot.slane %v10961_v22, %v17435_v27  ;;  %v10991_v36 = vrot.slane %v10977_v59, %v17435_v27  ;;  %v10968_v16 = vrot.slane %v10960_v56, %v17435_v27  ;;  %v10984_v15 = vrot.slane %v10976_v30, %v17435_v27 }
0x109c   : > { %v10994_v31 = vcombine.low %v10975_v63, %v10991_v36  ;;  %v10993_v0 = vcombine.high %v10968_v16, %v10984_v15  ;;  %v10992_v2 = vcombine.low %v10968_v16, %v10984_v15  ;;  %v10995_v61 = vcombine.high %v10975_v63, %v10991_v36 }
0x109e   : > { %11001 = vrot.lane.b32.xlu1 %v10994_v31, %s16972_s18  ;;  %10997 = vrot.lane.b32.xlu0 %v10993_v0, %s16974_s19 }
0x10a2   : > { %11236 = vrot.lane.b32.xlu1 %v11200_v44, %s16973_s15  ;;  %11005 = vrot.lane.b32.xlu0 %v10995_v61, %s16973_s15 }
0x10a6   : > { %11242 = vrot.lane.b32.xlu1 %v11200_v44, %s16974_s19  ;;  %11239 = vrot.lane.b32.xlu0 %v11200_v44, %s16972_s18 }
0x10aa   : > { %803 = vrot.lane.b32.xlu1 %v19503_v55, %s16972_s18  ;;  %800 = vrot.lane.b32.xlu0 %v19503_v55, %s16973_s15 }
0x10ae   : > { %11386 = vrot.lane.b32.xlu1 %v19513_v23, %s16973_s15  ;;  %806 = vrot.lane.b32.xlu0 %v19503_v55, %s16974_s19 }
0x10b2   : > { %11392 = vrot.lane.b32.xlu1 %v19513_v23, %s16974_s19  ;;  %11389 = vrot.lane.b32.xlu0 %v19513_v23, %s16972_s18 }
0x10b6   : > { %12098 = vrot.lane.b32.xlu1 %v19524_v53, %s16972_s18  ;;  %12095 = vrot.lane.b32.xlu0 %v19524_v53, %s16973_s15 }
0x10ba   : > { %12245 = vrot.lane.b32.xlu1 %v19531_v32, %s16973_s15  ;;  %12101 = vrot.lane.b32.xlu0 %v19524_v53, %s16974_s19 }
0x10be   : > { %12251 = vrot.lane.b32.xlu1 %v19531_v32, %s16974_s19  ;;  %12248 = vrot.lane.b32.xlu0 %v19531_v32, %s16972_s18 }
0x1110   : > { %v11002_v4 = vpop.permute.xlu1 %11001  ;;  %v10998_v33 = vpop.permute.xlu0 %10997 }
0x1111   : > { %v11008_v50 = vsel %vm1973_vm1, %v10992_v2, %v10998_v33 }
0x1112   : > { %v11009_v3 = vsel %vm2564_vm3, %v11008_v50, %v11002_v4 }
0x1114   : > { %v11237_v13 = vpop.permute.xlu1 %11236  ;;  %v11006_v6 = vpop.permute.xlu0 %11005 }
0x1115   : > { %v11010_v17 = vsel %vm2566_vm4, %v11009_v3, %v11006_v6 }
0x1116   : > { %v19545_v10 = vadd.f32 %v11010_v17, %v19173_v18 }
0x1118   : > { %v11012_v42 = vpack.c.bf16 %v19545_v10, %v19545_v10  ;;  %v11243_v41 = vpop.permute.xlu1 %11242  ;;  %v11240_v39 = vpop.permute.xlu0 %11239 }
0x1119   : > { %v11261_v51 = vcombine.low %v11237_v13, %v11243_v41  ;;  %v11262_v48 = vcombine.high %v11237_v13, %v11243_v41  ;;  %v11245_v46 = vcombine.low %v11200_v44, %v11240_v39  ;;  %v11246_v5 = vcombine.high %v11200_v44, %v11240_v39 }
0x111a   : > { %16016 = vmatmul.mubr.bf16.vlgmr.msra.gmra.mxu0 %v11012_v42 }
0x111b   : > { %v11269_v7 = vrot.slane %v11261_v51, %v17430_v20  ;;  %v11276_v57 = vrot.slane %v11262_v48, %v17430_v20  ;;  %v11253_v38 = vrot.slane %v11245_v46, %v17430_v20  ;;  %v11260_v24 = vrot.slane %v11246_v5, %v17430_v20  ;;  %16021 = vmatprep.mubr.msk.bf16.mxu0 %vm16970_vm0, %v20281_v40 }
0x111c   : > { %v804_v18 = vpop.permute.xlu1 %803  ;;  %v801_v37 = vpop.permute.xlu0 %800 }
0x111d   : > { %v11277_v47 = vcombine.low %v11253_v38, %v11269_v7  ;;  %v11278_v26 = vcombine.high %v11253_v38, %v11269_v7  ;;  %v11293_v29 = vcombine.low %v11260_v24, %v11276_v57  ;;  %v11294_v45 = vcombine.high %v11260_v24, %v11276_v57 }
0x111e   : > { %v809_v54 = vcombine.low %v19503_v55, %v804_v18 }
0x111f   : > { %v11285_v49 = vrot.slane %v11277_v47, %v17435_v27  ;;  %v11292_v9 = vrot.slane %v11278_v26, %v17435_v27  ;;  %v11301_v8 = vrot.slane %v11293_v29, %v17435_v27  ;;  %v11308_v28 = vrot.slane %v11294_v45, %v17435_v27 }
0x1120   : > { %v11387_v52 = vpop.permute.xlu1 %11386  ;;  %v807_v43 = vpop.permute.xlu0 %806  ;;  %v816_v60 = vrot.slane %v809_v54, %v17430_v20 }
0x1121   : > { %v11313_v22 = vcombine.low %v11285_v49, %v11292_v9  ;;  %v14961_v59 = vcombine.high %v11285_v49, %v11292_v9  ;;  %v11329_v56 = vcombine.low %v11301_v8, %v11308_v28  ;;  %v14962_v30 = vcombine.high %v11301_v8, %v11308_v28 }
0x1122   : > { %v817_v63 = vcombine.low %v801_v37, %v807_v43 }
0x1123   : > { %v11320_v36 = vrot.slane %v11313_v22, %v17430_v20  ;;  %v11328_v16 = vrot.slane %v14961_v59, %v17430_v20  ;;  %v11336_v15 = vrot.slane %v11329_v56, %v17430_v20  ;;  %v11344_v31 = vrot.slane %v14962_v30, %v17430_v20 }
0x1124   : > { %v824_v0 = vrot.slane %v817_v63, %v17430_v20  ;;  %v11393_v2 = vpop.permute.xlu1 %11392  ;;  %v11390_v19 = vpop.permute.xlu0 %11389 }
0x1125   : > { %v11411_v44 = vcombine.low %v11387_v52, %v11393_v2  ;;  %v11412_v61 = vcombine.high %v11387_v52, %v11393_v2  ;;  %v11395_v12 = vcombine.low %v19513_v23, %v11390_v19  ;;  %v11396_v35 = vcombine.high %v19513_v23, %v11390_v19 }
0x1126   : > { %v11345_v14 = vcombine.low %v11320_v36, %v11328_v16  ;;  %v11361_v25 = vcombine.low %v11336_v15, %v11344_v31  ;;  %v825_v17 = vcombine.low %v816_v60, %v824_v0  ;;  %v11346_v7 = vcombine.high %v11320_v36, %v11328_v16 }
0x1127   : > { %v11419_v4 = vrot.slane %v11411_v44, %v17430_v20  ;;  %v11403_v33 = vrot.slane %v11395_v12, %v17430_v20  ;;  %v11426_v50 = vrot.slane %v11412_v61, %v17430_v20  ;;  %v11410_v13 = vrot.slane %v11396_v35, %v17430_v20 }
0x1128   : > { %v19572_v6 = vpop.permute.xlu1 %12098  ;;  %v19574_v3 = vpop.permute.xlu0 %12095  ;;  %v11353_v42 = vrot.slane %v11345_v14, %v17435_v27  ;;  %v11369_v23 = vrot.slane %v11361_v25, %v17435_v27  ;;  %v832_v57 = vrot.slane %v825_v17, %v17435_v27  ;;  %v11360_v26 = vrot.slane %v11346_v7, %v17435_v27 }
0x1129   : > { %v11427_v41 = vcombine.low %v11403_v33, %v11419_v4  ;;  %v11428_v39 = vcombine.high %v11403_v33, %v11419_v4  ;;  %v11443_v51 = vcombine.low %v11410_v13, %v11426_v50  ;;  %v11444_v48 = vcombine.high %v11410_v13, %v11426_v50 }
0x112a   : > { %v11377_v38 = vcombine.low %v11353_v42, %v11369_v23  ;;  %v839_v49 = vrot.slane %v832_v57, %v17430_v20  ;;  %v11362_v8 = vcombine.high %v11336_v15, %v11344_v31  ;;  %v11378_v35 = vcombine.high %v11353_v42, %v11369_v23 }
0x112b   : > { %v11435_v24 = vrot.slane %v11427_v41, %v17435_v27  ;;  %v11442_v18 = vrot.slane %v11428_v39, %v17435_v27  ;;  %v11451_v37 = vrot.slane %v11443_v51, %v17435_v27  ;;  %v11458_v47 = vrot.slane %v11444_v48, %v17435_v27 }
0x112c   : > { %v12246_v46 = vpop.permute.xlu1 %12245  ;;  %v19578_v5 = vpop.permute.xlu0 %12101  ;;  %v11381_v9 = vpack.c.bf16 %v11377_v38, %v11377_v38  ;;  %v11376_v30 = vrot.slane %v11362_v8, %v17435_v27  ;;  %v847_v16 = vrot.slane %v839_v49, %v17435_v27  ;;  %v11382_v42 = vpack.c.bf16 %v11378_v35, %v11378_v35 }
0x112d   : > { %v11463_v52 = vcombine.low %v11435_v24, %v11442_v18  ;;  %v14963_v59 = vcombine.high %v11435_v24, %v11442_v18  ;;  %v11479_v54 = vcombine.low %v11451_v37, %v11458_v47  ;;  %v14964_v63 = vcombine.high %v11451_v37, %v11458_v47 }
0x112e   : > { %v11543_v56 = vsel %vm1973_vm1, %v11381_v9, 0  ;;  %v11379_v0 = vcombine.low %v11360_v26, %v11376_v30  ;;  %v19601_v33 = vpack.c.bf16 %v847_v16, %v847_v16  ;;  %v11589_v57 = vsel %vm1973_vm1, %v11382_v42, 0 }
0x112f   : > { %16020 = vmatpush3.bf16.xpose.msra.mxu0 %v11543_v56  ;;  %v11470_v2 = vrot.slane %v11463_v52, %v17430_v20  ;;  %v11478_v44 = vrot.slane %v14963_v59, %v17430_v20  ;;  %v11486_v14 = vrot.slane %v11479_v54, %v17430_v20  ;;  %v11494_v25 = vrot.slane %v14964_v63, %v17430_v20 }
0x1130   : > { %v12252_v29 = vpop.permute.xlu1 %12251  ;;  %v12249_v45 = vpop.permute.xlu0 %12248  ;;  %16025 = vmatprep.subr.bf16.mxu0 %v20281_v40  ;;  %v11383_v61 = vpack.c.bf16 %v11379_v0, %v11379_v0  ;;  %v11380_v38 = vcombine.high %v11360_v26, %v11376_v30  ;;  %v840_v18 = vcombine.high %v839_v49, %v20281_v40  ;;  %v855_v37 = vcombine.high %v847_v16, %v20281_v40 }
0x1131   : > { %v12270_v28 = vcombine.low %v12246_v46, %v12252_v29  ;;  %v12271_v43 = vcombine.high %v12246_v46, %v12252_v29  ;;  %v12254_v22 = vcombine.low %v19531_v32, %v12249_v45  ;;  %v12255_v31 = vcombine.high %v19531_v32, %v12249_v45 }
0x1132   : > { %v11635_v32 = vsel %vm1973_vm1, %v11383_v61, 0  ;;  %v11495_v48 = vcombine.low %v11470_v2, %v11478_v44  ;;  %v11511_v46 = vcombine.low %v11486_v14, %v11494_v25  ;;  %v11496_v24 = vcombine.high %v11470_v2, %v11478_v44 }
0x1133   : > { %v12278_v36 = vrot.slane %v12270_v28, %v17430_v20  ;;  %v12285_v15 = vrot.slane %v12271_v43, %v17430_v20  ;;  %v12262_v19 = vrot.slane %v12254_v22, %v17430_v20  ;;  %v12269_v12 = vrot.slane %v12255_v31, %v17430_v20  ;;  %16032 = vmatpush3.bf16.xpose.msra.mxu1 %v11635_v32 }
0x1134   : > { %16043 = vmatprep.subr.bf16.mxu1 %v20281_v40  ;;  %v11503_v47 = vrot.slane %v11495_v48, %v17435_v27  ;;  %v11519_v29 = vrot.slane %v11511_v46, %v17435_v27  ;;  %v11510_v52 = vrot.slane %v11496_v24, %v17435_v27  ;;  %v11512_v43 = vcombine.high %v11486_v14, %v11494_v25 }
0x1135   : > { %v12286_v60 = vcombine.low %v12262_v19, %v12278_v36  ;;  %v12287_v4 = vcombine.high %v12262_v19, %v12278_v36  ;;  %v12302_v50 = vcombine.low %v12269_v12, %v12285_v15  ;;  %v12303_v41 = vcombine.high %v12269_v12, %v12285_v15 }
0x1136   : > { %16022 = vmatmul.mubr.msk.bf16.vlgmr.msra.gmra.mxu0 %vm1973_vm1, %v19601_v33  ;;  %v11527_v26 = vcombine.low %v11503_v47, %v11519_v29  ;;  %v11384_v49 = vpack.c.bf16 %v11380_v38, %v11380_v38  ;;  %v11526_v56 = vrot.slane %v11512_v43, %v17435_v27  ;;  %v854_v30 = vrot.slane %v840_v18, %v17435_v27 }
0x1137   : > { %v12294_v13 = vrot.slane %v12286_v60, %v17435_v27  ;;  %v12301_v17 = vrot.slane %v12287_v4, %v17435_v27  ;;  %v12310_v39 = vrot.slane %v12302_v50, %v17435_v27  ;;  %16027 = vmatprep.mubr.msk.bf16.mxu0 %vm16970_vm0, %v20281_v40  ;;  %v12317_v7 = vrot.slane %v12303_v41, %v17435_v27 }
0x1138   : > { %16026 = vmatpush3.bf16.xpose.msra.mxu0 %v11589_v57  ;;  %v19626_v54 = vpack.c.bf16 %v855_v37, %v855_v37  ;;  %v19628_v36 = vcombine.low %v11510_v52, %v11526_v56  ;;  %v19630_v16 = vcombine.high %v11510_v52, %v11526_v56  ;;  %v11681_v0 = vsel %vm1973_vm1, %v11384_v49, 0 }
0x1139   : > { %v12322_v23 = vcombine.low %v12294_v13, %v12301_v17  ;;  %v14983_v51 = vcombine.high %v12294_v13, %v12301_v17  ;;  %v12338_v8 = vcombine.low %v12310_v39, %v12317_v7  ;;  %v14984_v28 = vcombine.high %v12310_v39, %v12317_v7  ;;  %16037 = vmatprep.subr.bf16.mxu0 %v20281_v40 }
0x113a   : > { %v11528_v15 = vcombine.high %v11503_v47, %v11519_v29  ;;  %v856_v19 = vcombine.high %v854_v30, %v20281_v40  ;;  %v9951_v17 = vadd.f32 %v19362_v11, %v19474_v1  ;;  %v11531_v24 = vpack.c.bf16 %v11527_v26, %v11527_v26 }
0x113b   : > { %v12329_v45 = vrot.slane %v12322_v23, %v17430_v20  ;;  %v12337_v9 = vrot.slane %v14983_v51, %v17430_v20  ;;  %v12345_v22 = vrot.slane %v12338_v8, %v17430_v20  ;;  %v12353_v59 = vrot.slane %v14984_v28, %v17430_v20 }
0x113c   : > { %v11532_v12 = vpack.c.bf16 %v11528_v15, %v11528_v15  ;;  %v19650_v60 = vpack.c.bf16 %v856_v19, %v856_v19  ;;  %v9956_v39 = vmax.f32 %v9951_v17, 0.0  ;;  %v19670_v18 = vpack.c.bf16 %v854_v30, %v854_v30 }
0x113d   : > { %v12354_v63 = vcombine.low %v12329_v45, %v12337_v9  ;;  %v12370_v2 = vcombine.low %v12345_v22, %v12353_v59  ;;  %v12355_v61 = vcombine.high %v12329_v45, %v12337_v9  ;;  %v12371_v14 = vcombine.high %v12345_v22, %v12353_v59 }
0x113e   : > { %v11805_v32 = vsel %vm7333_vm6, %v11532_v12, 0  ;;  %v9957_v46 = vadd.f32 %v9956_v39, %v19431_v21  ;;  %v12120_v49 = vcombine.low %v19574_v3, %v19578_v5  ;;  %v12121_v59 = vcombine.high %v19574_v3, %v19578_v5 }
0x113f   : > { %16028 = vmatmul.mubr.msk.bf16.vlgmr.msra.gmra.mxu0 %vm1973_vm1, %v19626_v54  ;;  %v19638_v31 = vrot.slane %v12354_v63, %v17435_v27  ;;  %v19643_v44 = vrot.slane %v12370_v2, %v17435_v27  ;;  %v12369_v35 = vrot.slane %v12355_v61, %v17435_v27  ;;  %v12385_v4 = vrot.slane %v12371_v14, %v17435_v27 }
0x1140   : > { %16038 = vmatpush3.bf16.xpose.msra.mxu0 %v11681_v0  ;;  %16039 = vmatprep.mubr.msk.bf16.mxu0 %vm16970_vm0, %v20281_v40  ;;  %v12104_v56 = vcombine.low %v19524_v53, %v19572_v6  ;;  %v12105_v63 = vcombine.high %v19524_v53, %v19572_v6  ;;  %v12128_v2 = vrot.slane %v12120_v49, %v17430_v20 }
0x1141   : > { %16049 = vmatprep.subr.bf16.mxu0 %v20281_v40  ;;  %v19648_v25 = vcombine.low %v19638_v31, %v19643_v44  ;;  %v19658_v50 = vcombine.high %v12369_v35, %v12385_v4  ;;  %v19660_v13 = vcombine.low %v12369_v35, %v12385_v4  ;;  %v12135_v61 = vrot.slane %v12121_v59, %v17430_v20 }
0x1142   : > { %v12112_v35 = vrot.slane %v12104_v56, %v17430_v20  ;;  %v12119_v5 = vrot.slane %v12105_v63, %v17430_v20 }
0x1144   : > { %v12136_v4 = vcombine.low %v12112_v35, %v12128_v2  ;;  %v12153_v53 = vcombine.high %v12119_v5, %v12135_v61 }
0x1146   : > { %v12144_v6 = vrot.slane %v12136_v4, %v17435_v27 }
0x1147   : > { %16040 = vmatmul.mubr.msk.bf16.vlgmr.msra.gmra.mxu0 %vm1973_vm1, %v19650_v60 }
0x1148   : > { %16050 = vmatpush3.bf16.msra.mxu0 %v11805_v32  ;;  %16051 = vmatprep.mubr.msk.bf16.mxu0 %vm16970_vm0, %v20281_v40  ;;  %v12137_v32 = vcombine.high %v12112_v35, %v12128_v2 }
0x1149   : > { %16061 = vmatprep.subr.bf16.mxu0 %v20281_v40 }
0x114a   : > { %v12151_v39 = vrot.slane %v12137_v32, %v17435_v27 }
0x11da   : > { %v11047_v41 = vpop.f32.mrf.mxu0 }
0x11db   : > { %v11048_v42 = vadd.f32 %v19362_v11, %v11047_v41  ;;  %v11759_v11 = vsel %vm7333_vm6, %v11531_v24, 0  ;;  %v12152_v41 = vcombine.low %v12119_v5, %v12135_v61 }
0x11dc   : > { %v16017_v23 = vpop.f32.mrf.mxu0 }
0x11dd   : > { %v11053_v51 = vmax.f32 %v11048_v42, 0.0  ;;  %v12160_v42 = vrot.slane %v12152_v41, %v17435_v27  ;;  %v12167_v23 = vrot.slane %v12153_v53, %v17435_v27  ;;  %v12387_v53 = vcombine.high %v19638_v31, %v19643_v44 }
0x11de   : > { %v11050_v48 = vpop.f32.mrf.mxu0 }
0x11df   : > { %v11054_v7 = vadd.f32 %v11053_v51, %v19545_v10  ;;  %v12172_v48 = vcombine.low %v12144_v6, %v12151_v39 }
0x11e0   : > { %v16018_v57 = vpop.f32.mrf.mxu0 }
0x11e1   : > { %v11072_v38 = vpack.c.bf16 %v11054_v7, %v9957_v46  ;;  %v14981_v46 = vcombine.high %v12144_v6, %v12151_v39  ;;  %v12188_v7 = vcombine.low %v12160_v42, %v12167_v23  ;;  %v14982_v57 = vcombine.high %v12160_v42, %v12167_v23 }
0x11e2   : > { %v12391_v6 = vpack.c.bf16 %v12387_v53, %v12387_v53 }
0x11e3   : > { %11208 = vmatmul.mubr.bf16.gmra.mxu1 %v11072_v38 }
0x11e4   : > { %16033 = vmatprep.mubr.msk.bf16.mxu1 %vm16970_vm0, %v20281_v40  ;;  %v12648_v39 = vsel %vm7333_vm6, %v12391_v6, 0 }
0x11eb   : > { %16034 = vmatmul.mubr.msk.bf16.vlgmr.msra.gmra.mxu1 %vm1973_vm1, %v19670_v18 }
0x11ec   : > { %16044 = vmatpush3.bf16.msra.mxu1 %v11759_v11  ;;  %16045 = vmatprep.mubr.msk.bf16.mxu1 %vm16970_vm0, %v20281_v40  ;;  %v11533_v11 = vpack.c.bf16 %v19628_v36, %v19628_v36 }
0x11ed   : > { %16055 = vmatprep.subr.bf16.mxu1 %v20281_v40 }
0x11f6   : > { %v11579_v21 = vpop.f32.mrf.mxu0 }
0x11f7   : > { %v11723_v1 = vmul.f32 0.088388346, %v11579_v21  ;;  %v12179_v21 = vrot.slane %v12172_v48, %v17430_v20 }
0x11f8   : > { %v16023_v10 = vpop.f32.mrf.mxu0 }
0x11f9   : > { %v11727_v37 = vsub.f32 %v11723_v1, %v11723_v1  ;;  %v12187_v1 = vrot.slane %v14981_v46, %v17430_v20  ;;  %v12195_v10 = vrot.slane %v12188_v7, %v17430_v20 }
0x11fa   : > { %v11582_v47 = vpop.f32.mrf.mxu0 }
0x11fb   : > { %v11731_v29 = vmul.f32 1.442695, %v11727_v37  ;;  %v12203_v37 = vrot.slane %v14982_v57, %v17430_v20  ;;  %v12204_v36 = vcombine.low %v12179_v21, %v12187_v1  ;;  %v12205_v2 = vcombine.high %v12179_v21, %v12187_v1 }
0x11fc   : > { %v16024_v45 = vpop.f32.mrf.mxu0 }
0x11fd   : > { %16657 = vpow2.f32 %v11731_v29  ;;  %v11851_v45 = vsel %vm7333_vm6, %v11533_v11, 0 }
0x11ff   : > { %v11625_v9 = vpop.f32.mrf.mxu0 }
0x1200   : > { %v11724_v8 = vmul.f32 0.088388346, %v11625_v9  ;;  %v12220_v9 = vcombine.low %v12195_v10, %v12203_v37 }
0x1201   : > { %v16029_v28 = vpop.f32.mrf.mxu0 }
0x1202   : > { %v11728_v26 = vsub.f32 %v11724_v8, %v11724_v8 }
0x1203   : > { %v11628_v52 = vpop.f32.mrf.mxu0 }
0x1204   : > { %v11733_v43 = vmul.f32 1.442695, %v11728_v26  ;;  %v11534_v26 = vpack.c.bf16 %v19630_v16, %v19630_v16  ;;  %v12212_v52 = vrot.slane %v12204_v36, %v17435_v27 }
0x1205   : > { %v16030_v22 = vpop.f32.mrf.mxu0 }
0x1206   : > { %16659 = vpow2.f32 %v11733_v43  ;;  %v12228_v43 = vrot.slane %v12220_v9, %v17435_v27  ;;  %v11897_v22 = vsel %vm7333_vm6, %v11534_v26, 0 }
0x1207   : > { %v11717_v30 = vpop.f32.mrf.mxu0 }
0x1208   : > { %v11726_v0 = vmul.f32 0.088388346, %v11717_v30  ;;  %v12236_v59 = vcombine.low %v12212_v52, %v12228_v43 }
0x1209   : > { %v16041_v19 = vpop.f32.mrf.mxu0 }
0x120a   : > { %v16658_v15 = vpop.eup %16657  ;;  %v11730_v12 = vsub.f32 %v11726_v0, %v11726_v0  ;;  %v12240_v63 = vpack.c.bf16 %v12236_v59, %v12236_v59  ;;  %v12221_v19 = vcombine.high %v12195_v10, %v12203_v37 }
0x120b   : > { %16661 = vrcp.f32 %v16658_v15  ;;  %v11720_v3 = vpop.f32.mrf.mxu0 }
0x120c   : > { %v11737_v14 = vmul.f32 1.442695, %v11730_v12  ;;  %v12395_v0 = vsel %vm1973_vm1, %v12240_v63, 0  ;;  %v12219_v12 = vrot.slane %v12205_v2, %v17435_v27  ;;  %v12235_v35 = vrot.slane %v12221_v19, %v17435_v27 }
0x120d   : > { %v16042_v17 = vpop.f32.mrf.mxu0 }
0x120e   : > { %16663 = vpow2.f32 %v11737_v14  ;;  %v12238_v5 = vcombine.low %v12219_v12, %v12235_v35  ;;  %v12239_v32 = vcombine.high %v12219_v12, %v12235_v35 }
0x1210   : > { %v12242_v14 = vpack.c.bf16 %v12238_v5, %v12238_v5  ;;  %v12243_v17 = vpack.c.bf16 %v12239_v32, %v12239_v32 }
0x1212   : > { %v12481_v4 = vsel %vm1973_vm1, %v12242_v14, 0  ;;  %v12524_v41 = vsel %vm1973_vm1, %v12243_v17, 0 }
0x1213   : > { %v16660_v51 = vpop.eup %16659 }
0x1214   : > { %16665 = vrcp.f32 %v16660_v51 }
0x1218   : > { %v16662_v38 = vpop.eup %16661 }
0x1219   : > { %v11747_v24 = vmul.f32 %v16662_v38, %v16658_v15  ;;  %v12237_v15 = vcombine.high %v12212_v52, %v12228_v43 }
0x121b   : > { %v11751_v47 = vpack.c.bf16 %v11747_v24, %v11747_v24  ;;  %v16664_v29 = vpop.eup %16663  ;;  %v12241_v61 = vpack.c.bf16 %v12237_v15, %v12237_v15 }
0x121c   : > { %16667 = vrcp.f32 %v16664_v29 }
0x121d   : > { %16046 = vmatmul.mubr.msk.bf16.vlgmr.msra.gmra.mxu1 %vm7249_vm5, %v11751_v47  ;;  %v12438_v3 = vsel %vm1973_vm1, %v12241_v61, 0 }
0x121e   : > { %16056 = vmatpush3.bf16.msra.mxu1 %v11851_v45  ;;  %16057 = vmatprep.mubr.msk.bf16.mxu1 %vm16970_vm0, %v20281_v40 }
0x121f   : > { %16067 = vmatprep.subr.bf16.mxu1 %v20281_v40 }
0x1221   : > { %v16666_v8 = vpop.eup %16665 }
0x1222   : > { %v11748_v28 = vmul.f32 %v16666_v8, %v16660_v51 }
0x1224   : > { %v11752_v49 = vpack.c.bf16 %v11748_v28, %v11748_v28 }
0x1226   : > { %16052 = vmatmul.mubr.msk.bf16.vlgmr.msra.gmra.mxu0 %vm7249_vm5, %v11752_v49 }
0x1227   : > { %16062 = vmatpush3.bf16.msra.mxu0 %v11897_v22  ;;  %16063 = vmatprep.mubr.msk.bf16.mxu0 %vm16970_vm0, %v20281_v40 }
0x1228   : > { %16087 = vmatprep.subr.bf16.mxu0 %v20281_v40 }
0x1229   : > { %v16668_v56 = vpop.eup %16667 }
0x122a   : > { %v11750_v30 = vmul.f32 %v16668_v56, %v16664_v29 }
0x122c   : > { %v11754_v16 = vpack.c.bf16 %v11750_v30, %v11750_v30 }
0x122e   : > { %16064 = vmatmul.mubr.msk.bf16.vlgmr.msra.gmra.mxu0 %vm7249_vm5, %v11754_v16 }
0x122f   : > { %16088 = vmatpush3.bf16.xpose.msra.mxu0 %v12395_v0  ;;  %16089 = vmatprep.mubr.msk.bf16.mxu0 %vm16970_vm0, %v20281_v40 }
0x1230   : > { %16093 = vmatprep.subr.bf16.mxu0 %v20281_v40 }
0x1236   : > { %16090 = vmatmul.mubr.msk.bf16.vlgmr.msra.gmra.mxu0 %vm1973_vm1, %v19601_v33 }
0x1237   : > { %16094 = vmatpush3.bf16.xpose.msra.mxu0 %v12438_v3  ;;  %16095 = vmatprep.mubr.msk.bf16.mxu0 %vm16970_vm0, %v20281_v40 }
0x1238   : > { %16099 = vmatprep.subr.bf16.mxu0 %v20281_v40 }
0x123e   : > { %16096 = vmatmul.mubr.msk.bf16.vlgmr.msra.gmra.mxu0 %vm1973_vm1, %v19626_v54 }
0x123f   : > { %16100 = vmatpush3.bf16.xpose.msra.mxu0 %v12481_v4  ;;  %16101 = vmatprep.mubr.msk.bf16.mxu0 %vm16970_vm0, %v20281_v40 }
0x1240   : > { %16105 = vmatprep.subr.bf16.mxu0 %v20281_v40 }
0x1246   : > { %16102 = vmatmul.mubr.msk.bf16.vlgmr.msra.gmra.mxu0 %vm1973_vm1, %v19670_v18 }
0x1247   : > { %16106 = vmatpush3.bf16.xpose.msra.mxu0 %v12524_v41  ;;  %16107 = vmatprep.mubr.msk.bf16.mxu0 %vm16970_vm0, %v20281_v40 }
0x1248   : > { %16117 = vmatprep.subr.bf16.mxu0 %v20281_v40 }
0x124e   : > { %16108 = vmatmul.mubr.msk.bf16.vlgmr.msra.gmra.mxu0 %vm1973_vm1, %v19650_v60 }
0x124f   : > { %16118 = vmatpush3.bf16.msra.mxu0 %v12648_v39  ;;  %16119 = vmatprep.mubr.msk.bf16.mxu0 %vm16970_vm0, %v20281_v40 }
0x1250   : > { %16129 = vmatprep.subr.bf16.mxu0 %v20281_v40 }
0x12a3   : > { %v19747_v42 = vpop.f32.mrf.mxu1 }
0x12a5   : > { %v19749_v31 = vpop.f32.mrf.mxu1 }
0x12a7   : > { %v19751_v44 = vpop.f32.mrf.mxu1 }
0x12a9   : > { %v19753_v23 = vpop.f32.mrf.mxu1 }
0x12ab   : > { %v11671_v51 = vpop.f32.mrf.mxu1 }
0x12ac   : > { %v11725_v48 = vmul.f32 0.088388346, %v11671_v51 }
0x12ad   : > { %v16035_v46 = vpop.f32.mrf.mxu1 }
0x12ae   : > { %v11729_v7 = vsub.f32 %v11725_v48, %v11725_v48 }
0x12af   : > { %v11674_v57 = vpop.f32.mrf.mxu1 }
0x12b0   : > { %v11735_v38 = vmul.f32 1.442695, %v11729_v7  ;;  %v12393_v7 = vpack.c.bf16 %v19658_v50, %v19658_v50  ;;  %v19780_v50 = vld [vmem:[#allocation8 + $0x2ec] ss:$16 sps:$4 sm:$0xff]  }
0x12b1   : > { %v16036_v24 = vpop.f32.mrf.mxu1 }
0x12b2   : > { %16669 = vpow2.f32 %v11735_v38  ;;  %v12740_v24 = vsel %vm7333_vm6, %v12393_v7, 0 }
0x12bf   : > { %v16670_v11 = vpop.eup %16669 }
0x12c0   : > { %16671 = vrcp.f32 %v16670_v11 }
0x12cd   : > { %v16672_v21 = vpop.eup %16671 }
0x12ce   : > { %v11749_v1 = vmul.f32 %v16672_v21, %v16670_v11 }
0x12d0   : > { %v11753_v10 = vpack.c.bf16 %v11749_v1, %v11749_v1 }
0x12d2   : > { %16058 = vmatmul.mubr.msk.bf16.vlgmr.msra.gmra.mxu1 %vm7249_vm5, %v11753_v10  ;;  %v19783_v10 = vld [vmem:[#allocation8 + $0x2cc] ss:$16 sps:$4 sm:$0xff]  }
0x12d3   : > { %16083 = vmatprep.mubr.msk.bf16.mxu1 %vm16970_vm0, %v20281_v40  ;;  %16068 = vmatpush3.bf16.msra.mxu1 %v19780_v50 }
0x12d4   : > { %16069 = vmatprep.subr.bf16.mxu1 %v20281_v40 }
0x12d7   : > { %16070 = vmatpush3.bf16.msra.mxu1 %v19783_v10 }
0x12d8   : > { %16071 = vmatprep.subr.bf16.mxu1 %v20281_v40 }
0x12dd   : > { %v19758_v37 = vpop.f32.mrf.mxu1 }
0x12df   : > { %v16047_v47 = vpop.f32.mrf.mxu1 }
0x12e0   : > { %v19787_v47 = vld [vmem:[#allocation8 + $0x2ac] ss:$16 sps:$4 sm:$0xff]  }
0x12e1   : > { %v11798_v29 = vpop.f32.mrf.mxu1  ;;  %16072 = vmatpush3.bf16.msra.mxu1 %v19787_v47 }
0x12e2   : > { %v19791_v29 = vld [vmem:[#allocation8 + $0x28c] ss:$16 sps:$4 sm:$0xff]   ;;  %16073 = vmatprep.subr.bf16.mxu1 %v20281_v40 }
0x12e3   : > { %v16048_v45 = vpop.f32.mrf.mxu1 }
0x12e4   : > { %v19795_v45 = vld [vmem:[#allocation8 + $0x26c] ss:$16 sps:$4 sm:$0xff]  }
0x12e5   : > { %16074 = vmatpush3.bf16.msra.mxu1 %v19791_v29 }
0x12e6   : > { %v19760_v36 = vpop.f32.mrf.mxu0  ;;  %16075 = vmatprep.subr.bf16.mxu1 %v20281_v40 }
0x12e8   : > { %v16053_v9 = vpop.f32.mrf.mxu0 }
0x12e9   : > { %16076 = vmatpush3.bf16.msra.mxu1 %v19795_v45 }
0x12ea   : > { %v11844_v8 = vpop.f32.mrf.mxu0  ;;  %16077 = vmatprep.subr.bf16.mxu1 %v20281_v40 }
0x12ec   : > { %v16054_v28 = vpop.f32.mrf.mxu0 }
0x12ed   : > { %v19800_v28 = vld [vmem:[#allocation8 + $0x24c] ss:$16 sps:$4 sm:$0xff]  }
0x12ee   : > { %v19762_v26 = vpop.f32.mrf.mxu0  ;;  %16078 = vmatpush3.bf16.msra.mxu1 %v19800_v28 }
0x12ef   : > { %v11947_v52 = vcombine.low %v19760_v36, %v19762_v26  ;;  %16079 = vmatprep.subr.bf16.mxu1 %v20281_v40 }
0x12f0   : > { %v16065_v43 = vpop.f32.mrf.mxu0 }
0x12f2   : > { %v11936_v49 = vpop.f32.mrf.mxu0 }
0x12f3   : > { %v11954_v49 = vrot.slane %v11947_v52, %v17430_v20 }
0x12f4   : > { %v16066_v22 = vpop.f32.mrf.mxu0 }
0x12f6   : > { %v19766_v59 = vpop.f32.mrf.mxu0 }
0x12f8   : > { %v16091_v56 = vpop.f32.mrf.mxu0 }
0x12fa   : > { %v12434_v30 = vpop.f32.mrf.mxu0 }
0x12fc   : > { %v16092_v63 = vpop.f32.mrf.mxu0 }
0x12fd   : > { %v19809_v63 = vld [vmem:[#allocation8 + $0x22c] ss:$16 sps:$4 sm:$0xff]  }
0x12fe   : > { %v12474_v16 = vpop.f32.mrf.mxu0  ;;  %16080 = vmatpush3.bf16.msra.mxu1 %v19809_v63 }
0x12ff   : > { %v12567_v0 = vmul.f32 0.088388346, %v12474_v16  ;;  %16081 = vmatprep.subr.bf16.mxu1 %v20281_v40 }
0x1300   : > { %v16097_v15 = vpop.f32.mrf.mxu0 }
0x1301   : > { %v12571_v2 = vsub.f32 %v12567_v0, %v12567_v0  ;;  %v19815_v15 = vld [vmem:[#allocation8 + $0x20c] ss:$16 sps:$4 sm:$0xff]  }
0x1302   : > { %v12477_v19 = vpop.f32.mrf.mxu0  ;;  %16082 = vmatpush3.bf16.msra.mxu1 %v19815_v15 }
0x1303   : > { %v12576_v61 = vmul.f32 1.442695, %v12571_v2  ;;  %16111 = vmatprep.subr.bf16.mxu1 %v20281_v40  ;;  %v11210_v19 = vadd.f32 %v19747_v42, %v19493_v62 }
0x1304   : > { %v16098_v12 = vpop.f32.mrf.mxu0 }
0x1305   : > { %16673 = vpow2.f32 %v12576_v61  ;;  %v19835_v12 = vadd.f32 %v19749_v31, %v19506_v58 }
0x1306   : > { %v19768_v35 = vpop.f32.mrf.mxu0 }
0x1307   : > { %v12568_v31 = vmul.f32 0.088388346, %v19768_v35 }
0x1308   : > { %v16103_v3 = vpop.f32.mrf.mxu0 }
0x130a   : > { %v12520_v5 = vpop.f32.mrf.mxu0 }
0x130c   : > { %v16104_v14 = vpop.f32.mrf.mxu0 }
0x130e   : > { %v12560_v4 = vpop.f32.mrf.mxu0 }
0x130f   : > { %v12569_v32 = vmul.f32 0.088388346, %v12560_v4  ;;  %v12566_v4 = vmul.f32 0.088388346, %v19766_v59 }
0x1310   : > { %v16109_v17 = vpop.f32.mrf.mxu0 }
0x1311   : > { %v12573_v41 = vsub.f32 %v12569_v32, %v12569_v32  ;;  %v12570_v32 = vsub.f32 %v12566_v4, %v12566_v4 }
0x1312   : > { %v16674_v53 = vpop.eup %16673  ;;  %v12563_v6 = vpop.f32.mrf.mxu0 }
0x1313   : > { %16675 = vrcp.f32 %v16674_v53  ;;  %v12580_v39 = vmul.f32 1.442695, %v12573_v41  ;;  %v12574_v17 = vmul.f32 1.442695, %v12570_v32  ;;  %v12572_v6 = vsub.f32 %v12568_v31, %v12568_v31 }
0x1314   : > { %v16110_v51 = vpop.f32.mrf.mxu0 }
0x1315   : > { %16677 = vpow2.f32 %v12580_v39 }
0x1320   : > { %v16676_v48 = vpop.eup %16675 }
0x1321   : > { %v12591_v46 = vmul.f32 %v16676_v48, %v16674_v53  ;;  %v12578_v48 = vmul.f32 1.442695, %v12572_v6 }
0x1322   : > { %v16678_v57 = vpop.eup %16677 }
0x1323   : > { %v12595_v38 = vpack.c.bf16 %v12591_v46, %v12591_v46  ;;  %16679 = vrcp.f32 %v16678_v57 }
0x1324   : > { %16681 = vpow2.f32 %v12574_v17 }
0x1325   : > { %16120 = vmatmul.mubr.msk.bf16.vlgmr.msra.gmra.mxu0 %vm7249_vm5, %v12595_v38  ;;  %16683 = vpow2.f32 %v12578_v48 }
0x1326   : > { %16130 = vmatpush3.bf16.msra.mxu0 %v12740_v24  ;;  %16131 = vmatprep.mubr.msk.bf16.mxu0 %vm16970_vm0, %v20281_v40 }
0x1327   : > { %16155 = vmatprep.subr.bf16.mxu0 %v20281_v40 }
0x1330   : > { %v16680_v11 = vpop.eup %16679 }
0x1331   : > { %v12593_v21 = vmul.f32 %v16680_v11, %v16678_v57  ;;  %v16682_v7 = vpop.eup %16681 }
0x1332   : > { %16685 = vrcp.f32 %v16682_v7  ;;  %v16684_v57 = vpop.eup %16683 }
0x1333   : > { %v12597_v1 = vpack.c.bf16 %v12593_v21, %v12593_v21  ;;  %16687 = vrcp.f32 %v16684_v57 }
0x1335   : > { %16132 = vmatmul.mubr.msk.bf16.vlgmr.msra.gmra.mxu0 %vm7249_vm5, %v12597_v1 }
0x1336   : > { %16157 = vmatprep.mubr.msk.bf16.mxu0 %vm16970_vm0, %v20281_v40 }
0x1392   : > { %v11887_v9 = vpop.f32.mrf.mxu1 }
0x1393   : > { %v11939_v8 = vcombine.low %v19758_v37, %v11887_v9 }
0x1394   : > { %v16059_v43 = vpop.f32.mrf.mxu1 }
0x1395   : > { %v11946_v22 = vrot.slane %v11939_v8, %v17430_v20  ;;  %v12390_v8 = vpack.c.bf16 %v19648_v25, %v19648_v25 }
0x1396   : > { %v11890_v56 = vpop.f32.mrf.mxu1 }
0x1397   : > { %v11955_v30 = vcombine.low %v11946_v22, %v11954_v49  ;;  %v16686_v56 = vpop.eup %16685 }
0x1398   : > { %v16060_v37 = vpop.f32.mrf.mxu1  ;;  %v16688_v6 = vpop.eup %16687 }
0x1399   : > { %v11962_v16 = vrot.slane %v11955_v30, %v17435_v27 }
0x139b   : > { %v11969_v0 = vrot.slane %v11962_v16, %v17430_v20 }
0x139d   : > { %v11977_v36 = vrot.slane %v11969_v0, %v17435_v27  ;;  %v11970_v26 = vcombine.high %v11969_v0, %v20281_v40 }
0x139f   : > { %v11985_v52 = vcombine.high %v11977_v36, %v20281_v40  ;;  %v11984_v2 = vrot.slane %v11970_v26, %v17435_v27 }
0x13a1   : > { %11988 = vrot.lane.b32.xlu0 %v11985_v52, %s16974_s19  ;;  %11992 = vrot.lane.b32.xlu1 %v11984_v2, %s16972_s18  ;;  %v11986_v61 = vcombine.high %v11984_v2, %v20281_v40 }
0x13a5   : > { %12890 = vrot.lane.b32.xlu1 %v11210_v19, %s16973_s15  ;;  %11996 = vrot.lane.b32.xlu0 %v11986_v61, %s16973_s15  ;;  %v12590_v61 = vmul.f32 %v16686_v56, %v16682_v7 }
0x13a7   : > { %v12594_v7 = vpack.c.bf16 %v12590_v61, %v12590_v61 }
0x13a9   : > { %12896 = vrot.lane.b32.xlu1 %v11210_v19, %s16974_s19  ;;  %12893 = vrot.lane.b32.xlu0 %v11210_v19, %s16972_s18 }
0x13ad   : > { %13043 = vrot.lane.b32.xlu1 %v19835_v12, %s16972_s18  ;;  %13040 = vrot.lane.b32.xlu0 %v19835_v12, %s16973_s15 }
0x13b1   : > { %13046 = vrot.lane.b32.xlu0 %v19835_v12, %s16974_s19 }
0x13e5   : > { %v19843_v42 = vpop.f32.mrf.mxu0 }
0x13e7   : > { %v16121_v3 = vpop.f32.mrf.mxu0 }
0x13e9   : > { %v12687_v5 = vpop.f32.mrf.mxu0 }
0x13eb   : > { %v16122_v14 = vpop.f32.mrf.mxu0 }
0x13f5   : > { %v19847_v41 = vpop.f32.mrf.mxu0 }
0x13f6   : > { %v12790_v53 = vcombine.low %v19843_v42, %v19847_v41 }
0x13f7   : > { %v16133_v39 = vpop.f32.mrf.mxu0 }
0x13f9   : > { %v12779_v51 = vpop.f32.mrf.mxu0 }
0x13fb   : > { %v16134_v46 = vpop.f32.mrf.mxu0 }
0x1413   : > { %v11989_v59 = vpop.permute.xlu0 %11988  ;;  %v11993_v38 = vpop.permute.xlu1 %11992 }
0x1414   : > { %v11999_v35 = vsel %vm1973_vm1, %v11977_v36, %v11989_v59  ;;  %v12602_v36 = vsel %vm7333_vm6, %v12390_v8, 0 }
0x1415   : > { %v12000_v24 = vsel %vm2564_vm3, %v11999_v35, %v11993_v38 }
0x1417   : > { %v12891_v11 = vpop.permute.xlu1 %12890  ;;  %v11997_v21 = vpop.permute.xlu0 %11996 }
0x1418   : > { %v12001_v1 = vsel %vm2566_vm4, %v12000_v24, %v11997_v21 }
0x1419   : > { %v19855_v9 = vadd.f32 %v12001_v1, %v19503_v55  ;;  %v12592_v1 = vmul.f32 %v16688_v6, %v16684_v57 }
0x141b   : > { %v12003_v43 = vpack.c.bf16 %v19855_v9, %v19855_v9  ;;  %v12897_v49 = vpop.permute.xlu1 %12896  ;;  %v12894_v22 = vpop.permute.xlu0 %12893  ;;  %v12596_v61 = vpack.c.bf16 %v12592_v1, %v12592_v1 }
0x141c   : > { %v12915_v30 = vcombine.low %v12891_v11, %v12897_v49  ;;  %v12916_v37 = vcombine.high %v12891_v11, %v12897_v49  ;;  %v12899_v16 = vcombine.low %v11210_v19, %v12894_v22  ;;  %v12900_v0 = vcombine.high %v11210_v19, %v12894_v22 }
0x141d   : > { %16084 = vmatmul.mubr.bf16.vlgmr.msra.gmra.mxu1 %v12003_v43  ;;  %v12392_v19 = vpack.c.bf16 %v19660_v13, %v19660_v13 }
0x141e   : > { %v12923_v26 = vrot.slane %v12915_v30, %v17430_v20  ;;  %v12930_v52 = vrot.slane %v12916_v37, %v17430_v20  ;;  %v12907_v2 = vrot.slane %v12899_v16, %v17430_v20  ;;  %v12914_v25 = vrot.slane %v12900_v0, %v17430_v20  ;;  %16112 = vmatpush3.bf16.msra.mxu1 %v12602_v36 }
0x141f   : > { %v13044_v3 = vpop.permute.xlu1 %13043  ;;  %v13041_v5 = vpop.permute.xlu0 %13040  ;;  %16113 = vmatprep.mubr.msk.bf16.mxu1 %vm16970_vm0, %v20281_v40  ;;  %16123 = vmatprep.subr.bf16.mxu1 %v20281_v40  ;;  %v12694_v13 = vsel %vm7333_vm6, %v12392_v19, 0 }
0x1420   : > { %v12931_v14 = vcombine.low %v12907_v2, %v12923_v26  ;;  %v12932_v4 = vcombine.high %v12907_v2, %v12923_v26  ;;  %v12947_v32 = vcombine.low %v12914_v25, %v12930_v52  ;;  %v12948_v31 = vcombine.high %v12914_v25, %v12930_v52 }
0x1421   : > { %v13049_v17 = vcombine.low %v19835_v12, %v13044_v3  ;;  %v13050_v59 = vcombine.high %v19835_v12, %v13044_v3 }
0x1422   : > { %v12939_v39 = vrot.slane %v12931_v14, %v17435_v27  ;;  %v12946_v51 = vrot.slane %v12932_v4, %v17435_v27  ;;  %v12955_v48 = vrot.slane %v12947_v32, %v17435_v27  ;;  %v12962_v46 = vrot.slane %v12948_v31, %v17435_v27 }
0x1423   : > { %v13047_v38 = vpop.permute.xlu0 %13046  ;;  %v13057_v8 = vrot.slane %v13049_v17, %v17430_v20  ;;  %v13064_v37 = vrot.slane %v13050_v59, %v17430_v20 }
0x1424   : > { %v12967_v35 = vcombine.low %v12939_v39, %v12946_v51  ;;  %v14993_v24 = vcombine.high %v12939_v39, %v12946_v51  ;;  %v12983_v11 = vcombine.low %v12955_v48, %v12962_v46  ;;  %v14994_v21 = vcombine.high %v12955_v48, %v12962_v46 }
0x1425   : > { %v13065_v43 = vcombine.low %v13041_v5, %v13047_v38  ;;  %v13066_v49 = vcombine.high %v13041_v5, %v13047_v38  ;;  %16114 = vmatmul.mubr.msk.bf16.vlgmr.msra.gmra.mxu1 %vm7249_vm5, %v12594_v7 }
0x1426   : > { %v12974_v22 = vrot.slane %v12967_v35, %v17430_v20  ;;  %v12982_v56 = vrot.slane %v14993_v24, %v17430_v20  ;;  %v12990_v12 = vrot.slane %v12983_v11, %v17430_v20  ;;  %v12998_v30 = vrot.slane %v14994_v21, %v17430_v20  ;;  %16124 = vmatpush3.bf16.msra.mxu1 %v12694_v13 }
0x1427   : > { %v13073_v16 = vrot.slane %v13065_v43, %v17430_v20  ;;  %v13080_v57 = vrot.slane %v13066_v49, %v17430_v20  ;;  %16125 = vmatprep.mubr.msk.bf16.mxu1 %vm16970_vm0, %v20281_v40  ;;  %16135 = vmatprep.subr.bf16.mxu1 %v20281_v40 }
0x1428   : > { %v12999_v0 = vcombine.low %v12974_v22, %v12982_v56  ;;  %v13015_v36 = vcombine.low %v12990_v12, %v12998_v30  ;;  %v13000_v24 = vcombine.high %v12974_v22, %v12982_v56  ;;  %v13016_v11 = vcombine.high %v12990_v12, %v12998_v30 }
0x1429   : > { %v13081_v26 = vcombine.low %v13057_v8, %v13073_v16  ;;  %v13082_v52 = vcombine.high %v13057_v8, %v13073_v16  ;;  %v13097_v2 = vcombine.low %v13064_v37, %v13080_v57  ;;  %v13098_v25 = vcombine.high %v13064_v37, %v13080_v57 }
0x142a   : > { %v13007_v3 = vrot.slane %v12999_v0, %v17435_v27  ;;  %v13023_v5 = vrot.slane %v13015_v36, %v17435_v27  ;;  %v13014_v12 = vrot.slane %v13000_v24, %v17435_v27  ;;  %v13030_v30 = vrot.slane %v13016_v11, %v17435_v27 }
0x142b   : > { %v13089_v19 = vrot.slane %v13081_v26, %v17435_v27  ;;  %v13096_v14 = vrot.slane %v13082_v52, %v17435_v27  ;;  %v13105_v4 = vrot.slane %v13097_v2, %v17435_v27  ;;  %v13112_v32 = vrot.slane %v13098_v25, %v17435_v27 }
0x142c   : > { %v13031_v31 = vcombine.low %v13007_v3, %v13023_v5  ;;  %v13032_v35 = vcombine.high %v13007_v3, %v13023_v5  ;;  %v13033_v52 = vcombine.low %v13014_v12, %v13030_v30 }
0x142d   : > { %v13117_v17 = vcombine.low %v13089_v19, %v13096_v14  ;;  %v14995_v6 = vcombine.high %v13089_v19, %v13096_v14  ;;  %v13133_v39 = vcombine.low %v13105_v4, %v13112_v32  ;;  %v14996_v51 = vcombine.high %v13105_v4, %v13112_v32  ;;  %16126 = vmatmul.mubr.msk.bf16.vlgmr.msra.gmra.mxu1 %vm7249_vm5, %v12596_v61 }
0x142e   : > { %v13035_v48 = vpack.c.bf16 %v13031_v31, %v13031_v31  ;;  %16136 = vmatpush3.bf16.msra.mxu1 %v19780_v50  ;;  %16151 = vmatprep.mubr.msk.bf16.mxu1 %vm16970_vm0, %v20281_v40  ;;  %v13036_v56 = vpack.c.bf16 %v13032_v35, %v13032_v35  ;;  %v13037_v2 = vpack.c.bf16 %v13033_v52, %v13033_v52 }
0x142f   : > { %v13124_v46 = vrot.slane %v13117_v17, %v17430_v20  ;;  %v13132_v7 = vrot.slane %v14995_v6, %v17430_v20  ;;  %v13140_v59 = vrot.slane %v13133_v39, %v17430_v20  ;;  %v13148_v38 = vrot.slane %v14996_v51, %v17430_v20  ;;  %16137 = vmatprep.subr.bf16.mxu1 %v20281_v40 }
0x1430   : > { %v13190_v13 = vsel %vm1973_vm1, %v13035_v48, 0  ;;  %v13233_v26 = vsel %vm1973_vm1, %v13036_v56, 0  ;;  %v13276_v25 = vsel %vm1973_vm1, %v13037_v2, 0  ;;  %v13034_v61 = vcombine.high %v13014_v12, %v13030_v30 }
0x1431   : > { %16156 = vmatpush3.bf16.xpose.msra.mxu0 %v13190_v13  ;;  %v13149_v21 = vcombine.low %v13124_v46, %v13132_v7  ;;  %v13165_v1 = vcombine.low %v13140_v59, %v13148_v38  ;;  %v13150_v8 = vcombine.high %v13124_v46, %v13132_v7  ;;  %v13166_v43 = vcombine.high %v13140_v59, %v13148_v38 }
0x1432   : > { %16161 = vmatprep.subr.bf16.mxu0 %v20281_v40  ;;  %16138 = vmatpush3.bf16.msra.mxu1 %v19783_v10  ;;  %v13038_v3 = vpack.c.bf16 %v13034_v61, %v13034_v61  ;;  %v12797_v13 = vrot.slane %v12790_v53, %v17430_v20 }
0x1433   : > { %v13157_v49 = vrot.slane %v13149_v21, %v17435_v27  ;;  %v13173_v37 = vrot.slane %v13165_v1, %v17435_v27  ;;  %v13164_v16 = vrot.slane %v13150_v8, %v17435_v27  ;;  %v13180_v22 = vrot.slane %v13166_v43, %v17435_v27  ;;  %16139 = vmatprep.subr.bf16.mxu1 %v20281_v40 }
0x1434   : > { %v13319_v5 = vsel %vm1973_vm1, %v13038_v3, 0 }
0x1435   : > { %v19915_v57 = vcombine.high %v13164_v16, %v13180_v22  ;;  %v19917_v0 = vcombine.low %v13157_v49, %v13173_v37  ;;  %v19919_v36 = vcombine.low %v13164_v16, %v13180_v22  ;;  %v13182_v19 = vcombine.high %v13157_v49, %v13173_v37 }
0x1436   : > { %16140 = vmatpush3.bf16.msra.mxu1 %v19787_v47  ;;  %v19977_v22 = vadd.f32 %v19751_v44, %v19493_v62 }
0x1437   : > { %16141 = vmatprep.subr.bf16.mxu1 %v20281_v40  ;;  %v13186_v14 = vpack.c.bf16 %v13182_v19, %v13182_v19 }
0x1438   : > { %16158 = vmatmul.mubr.msk.bf16.vlgmr.msra.gmra.mxu0 %vm1973_vm1, %v19601_v33 }
0x1439   : > { %16162 = vmatpush3.bf16.xpose.msra.mxu0 %v13233_v26  ;;  %16163 = vmatprep.mubr.msk.bf16.mxu0 %vm16970_vm0, %v20281_v40  ;;  %v13443_v4 = vsel %vm7333_vm6, %v13186_v14, 0 }
0x143a   : > { %16167 = vmatprep.subr.bf16.mxu0 %v20281_v40  ;;  %16142 = vmatpush3.bf16.msra.mxu1 %v19791_v29 }
0x143b   : > { %16143 = vmatprep.subr.bf16.mxu1 %v20281_v40 }
0x143e   : > { %16144 = vmatpush3.bf16.msra.mxu1 %v19795_v45 }
0x143f   : > { %16145 = vmatprep.subr.bf16.mxu1 %v20281_v40 }
0x1440   : > { %16164 = vmatmul.mubr.msk.bf16.vlgmr.msra.gmra.mxu0 %vm1973_vm1, %v19626_v54 }
0x1441   : > { %16168 = vmatpush3.bf16.xpose.msra.mxu0 %v13276_v25  ;;  %16169 = vmatprep.mubr.msk.bf16.mxu0 %vm16970_vm0, %v20281_v40  ;;  %v19989_v25 = vadd.f32 %v19753_v23, %v19506_v58 }
0x1442   : > { %16173 = vmatprep.subr.bf16.mxu0 %v20281_v40  ;;  %16146 = vmatpush3.bf16.msra.mxu1 %v19800_v28 }
0x1443   : > { %16147 = vmatprep.subr.bf16.mxu1 %v20281_v40 }
0x1446   : > { %16148 = vmatpush3.bf16.msra.mxu1 %v19809_v63 }
0x1447   : > { %16149 = vmatprep.subr.bf16.mxu1 %v20281_v40 }
0x1448   : > { %16170 = vmatmul.mubr.msk.bf16.vlgmr.msra.gmra.mxu0 %vm1973_vm1, %v19670_v18 }
0x1449   : > { %16174 = vmatpush3.bf16.xpose.msra.mxu0 %v13319_v5  ;;  %16175 = vmatprep.mubr.msk.bf16.mxu0 %vm16970_vm0, %v20281_v40 }
0x144a   : > { %16185 = vmatprep.subr.bf16.mxu0 %v20281_v40  ;;  %16150 = vmatpush3.bf16.msra.mxu1 %v19815_v15 }
0x144b   : > { %16179 = vmatprep.subr.bf16.mxu1 %v20281_v40 }
0x1450   : > { %16176 = vmatmul.mubr.msk.bf16.vlgmr.msra.gmra.mxu0 %vm1973_vm1, %v19650_v60 }
0x1451   : > { %16186 = vmatpush3.bf16.msra.mxu0 %v13443_v4  ;;  %16187 = vmatprep.mubr.msk.bf16.mxu0 %vm16970_vm0, %v20281_v40 }
0x1452   : > { %16197 = vmatprep.subr.bf16.mxu0 %v20281_v40 }
0x14dd   : > { %v19957_v32 = vpop.f32.mrf.mxu1 }
0x14df   : > { %v16085_v31 = vpop.f32.mrf.mxu1 }
0x14e1   : > { %v12089_v17 = vpop.f32.mrf.mxu1 }
0x14e3   : > { %v16086_v6 = vpop.f32.mrf.mxu1 }
0x14e5   : > { %v12638_v39 = vpop.f32.mrf.mxu1 }
0x14e7   : > { %v16115_v51 = vpop.f32.mrf.mxu1 }
0x14e9   : > { %v12641_v48 = vpop.f32.mrf.mxu1 }
0x14eb   : > { %v16116_v46 = vpop.f32.mrf.mxu1 }
0x14ed   : > { %v12730_v7 = vpop.f32.mrf.mxu1 }
0x14ee   : > { %v12782_v59 = vcombine.low %v12638_v39, %v12730_v7  ;;  %v13188_v7 = vpack.c.bf16 %v19915_v57, %v19915_v57 }
0x14ef   : > { %v16127_v38 = vpop.f32.mrf.mxu1 }
0x14f0   : > { %v12789_v35 = vrot.slane %v12782_v59, %v17430_v20 }
0x14f1   : > { %v12733_v24 = vpop.f32.mrf.mxu1 }
0x14f2   : > { %v12798_v11 = vcombine.low %v12789_v35, %v12797_v13  ;;  %v13535_v13 = vsel %vm7333_vm6, %v13188_v7, 0 }
0x14f3   : > { %v16128_v21 = vpop.f32.mrf.mxu1 }
0x14f4   : > { %v12805_v1 = vrot.slane %v12798_v11, %v17435_v27 }
0x14f6   : > { %v12812_v8 = vrot.slane %v12805_v1, %v17430_v20 }
0x14f8   : > { %v13226_v43 = vpop.f32.mrf.mxu0  ;;  %v19967_v49 = vrot.slane %v12812_v8, %v17435_v27  ;;  %v12813_v37 = vcombine.high %v12812_v8, %v20281_v40 }
0x14f9   : > { %v13361_v57 = vmul.f32 0.088388346, %v13226_v43 }
0x14fa   : > { %v16159_v16 = vpop.f32.mrf.mxu0  ;;  %v12828_v42 = vcombine.high %v19967_v49, %v20281_v40  ;;  %v12827_v41 = vrot.slane %v12813_v37, %v17435_v27 }
0x14fb   : > { %v13365_v21 = vsub.f32 %v13361_v57, %v13361_v57 }
0x14fc   : > { %12831 = vrot.lane.b32.xlu1 %v12828_v42, %s16974_s19  ;;  %12835 = vrot.lane.b32.xlu0 %v12827_v41, %s16972_s18  ;;  %v13229_v53 = vpop.f32.mrf.mxu0  ;;  %v12829_v12 = vcombine.high %v12827_v41, %v20281_v40 }
0x14fd   : > { %v13369_v8 = vmul.f32 1.442695, %v13365_v21 }
0x14fe   : > { %v16160_v56 = vpop.f32.mrf.mxu0 }
0x1500   : > { %13685 = vrot.lane.b32.xlu0 %v19977_v22, %s16973_s15  ;;  %12839 = vrot.lane.b32.xlu1 %v12829_v12, %s16973_s15  ;;  %v13269_v30 = vpop.f32.mrf.mxu0 }
0x1501   : > { %v13362_v26 = vmul.f32 0.088388346, %v13269_v30 }
0x1502   : > { %v16165_v52 = vpop.f32.mrf.mxu0 }
0x1503   : > { %v13366_v2 = vsub.f32 %v13362_v26, %v13362_v26 }
0x1504   : > { %13691 = vrot.lane.b32.xlu0 %v19977_v22, %s16974_s19  ;;  %13688 = vrot.lane.b32.xlu1 %v19977_v22, %s16972_s18  ;;  %v13272_v62 = vpop.f32.mrf.mxu0 }
0x1505   : > { %v13371_v44 = vmul.f32 1.442695, %v13366_v2  ;;  %v13185_v62 = vpack.c.bf16 %v19917_v0, %v19917_v0 }
0x1506   : > { %v16166_v61 = vpop.f32.mrf.mxu0 }
0x1507   : > { %16689 = vpow2.f32 %v13371_v44 }
0x1508   : > { %13838 = vrot.lane.b32.xlu0 %v19989_v25, %s16972_s18  ;;  %13835 = vrot.lane.b32.xlu1 %v19989_v25, %s16973_s15  ;;  %v13312_v3 = vpop.f32.mrf.mxu0 }
0x1509   : > { %v13363_v1 = vmul.f32 0.088388346, %v13312_v3 }
0x150a   : > { %v16171_v5 = vpop.f32.mrf.mxu0 }
0x150b   : > { %v13367_v37 = vsub.f32 %v13363_v1, %v13363_v1 }
0x150c   : > { %13841 = vrot.lane.b32.xlu1 %v19989_v25, %s16974_s19  ;;  %v13315_v19 = vpop.f32.mrf.mxu0 }
0x150d   : > { %v13373_v16 = vmul.f32 1.442695, %v13367_v37 }
0x150e   : > { %v16172_v14 = vpop.f32.mrf.mxu0 }
0x1510   : > { %v13355_v4 = vpop.f32.mrf.mxu0 }
0x1511   : > { %v13364_v31 = vmul.f32 0.088388346, %v13355_v4 }
0x1512   : > { %v16177_v17 = vpop.f32.mrf.mxu0 }
0x1513   : > { %v13368_v58 = vsub.f32 %v13364_v31, %v13364_v31  ;;  %v13397_v31 = vsel %vm7333_vm6, %v13185_v62, 0 }
0x1514   : > { %v16690_v23 = vpop.eup %16689  ;;  %v13358_v6 = vpop.f32.mrf.mxu0 }
0x1515   : > { %16691 = vrcp.f32 %v16690_v23  ;;  %v13375_v39 = vmul.f32 1.442695, %v13368_v58 }
0x1516   : > { %v16178_v51 = vpop.f32.mrf.mxu0 }
0x1517   : > { %16693 = vpow2.f32 %v13375_v39 }
0x1522   : > { %v16692_v48 = vpop.eup %16691 }
0x1523   : > { %v13386_v46 = vmul.f32 %v16692_v48, %v16690_v23 }
0x1524   : > { %v16694_v59 = vpop.eup %16693 }
0x1525   : > { %v13390_v38 = vpack.c.bf16 %v13386_v46, %v13386_v46  ;;  %16695 = vrcp.f32 %v16694_v59 }
0x1526   : > { %16697 = vpow2.f32 %v13369_v8 }
0x1527   : > { %16188 = vmatmul.mubr.msk.bf16.vlgmr.msra.gmra.mxu0 %vm7249_vm5, %v13390_v38  ;;  %16699 = vpow2.f32 %v13373_v16 }
0x1528   : > { %16198 = vmatpush3.bf16.msra.mxu0 %v13535_v13  ;;  %16199 = vmatprep.mubr.msk.bf16.mxu0 %vm16970_vm0, %v20281_v40 }
0x1529   : > { %16223 = vmatprep.subr.bf16.mxu0 %v20281_v40 }
0x1532   : > { %v16696_v35 = vpop.eup %16695 }
0x1533   : > { %v13388_v24 = vmul.f32 %v16696_v35, %v16694_v59  ;;  %v16698_v42 = vpop.eup %16697 }
0x1534   : > { %16701 = vrcp.f32 %v16698_v42  ;;  %v16700_v41 = vpop.eup %16699 }
0x1535   : > { %v13392_v11 = vpack.c.bf16 %v13388_v24, %v13388_v24  ;;  %16703 = vrcp.f32 %v16700_v41 }
0x1537   : > { %16200 = vmatmul.mubr.msk.bf16.vlgmr.msra.gmra.mxu0 %vm7249_vm5, %v13392_v11 }
0x1538   : > { %16225 = vmatprep.mubr.msk.bf16.mxu0 %vm16970_vm0, %v20281_v40 }
0x1541   : > { %v16702_v5 = vpop.eup %16701 }
0x1542   : > { %v13385_v6 = vmul.f32 %v16702_v5, %v16698_v42  ;;  %v16704_v13 = vpop.eup %16703 }
0x1544   : > { %v13389_v21 = vpack.c.bf16 %v13385_v6, %v13385_v6 }
0x156e   : > { %v12832_v53 = vpop.permute.xlu1 %12831  ;;  %v12836_v56 = vpop.permute.xlu0 %12835 }
0x156f   : > { %v12842_v12 = vsel %vm1973_vm1, %v19967_v49, %v12832_v53 }
0x1570   : > { %v12843_v30 = vsel %vm2564_vm3, %v12842_v12, %v12836_v56  ;;  %v13387_v56 = vmul.f32 %v16704_v13, %v16700_v41 }
0x1572   : > { %v13686_v26 = vpop.permute.xlu0 %13685  ;;  %v12840_v43 = vpop.permute.xlu1 %12839 }
0x1573   : > { %v12844_v52 = vsel %vm2566_vm4, %v12843_v30, %v12840_v43 }
0x1574   : > { %v20012_v2 = vadd.f32 %v12844_v52, %v19503_v55 }
0x1576   : > { %v12846_v44 = vpack.c.bf16 %v20012_v2, %v20012_v2  ;;  %v13692_v61 = vpop.permute.xlu0 %13691  ;;  %v13689_v3 = vpop.permute.xlu1 %13688 }
0x1577   : > { %v13710_v49 = vcombine.low %v13686_v26, %v13692_v61  ;;  %v13711_v19 = vcombine.high %v13686_v26, %v13692_v61  ;;  %v13694_v14 = vcombine.low %v19977_v22, %v13689_v3  ;;  %v13695_v4 = vcombine.high %v19977_v22, %v13689_v3 }
0x1578   : > { %16152 = vmatmul.mubr.bf16.vlgmr.msra.gmra.mxu1 %v12846_v44  ;;  %v13187_v22 = vpack.c.bf16 %v19919_v36, %v19919_v36 }
0x1579   : > { %v13718_v17 = vrot.slane %v13710_v49, %v17430_v20  ;;  %v13725_v58 = vrot.slane %v13711_v19, %v17430_v20  ;;  %v13702_v0 = vrot.slane %v13694_v14, %v17430_v20  ;;  %v13709_v23 = vrot.slane %v13695_v4, %v17430_v20  ;;  %16180 = vmatpush3.bf16.msra.mxu1 %v13397_v31 }
0x157a   : > { %v13839_v39 = vpop.permute.xlu0 %13838  ;;  %v13836_v51 = vpop.permute.xlu1 %13835  ;;  %16181 = vmatprep.mubr.msk.bf16.mxu1 %vm16970_vm0, %v20281_v40  ;;  %16191 = vmatprep.subr.bf16.mxu1 %v20281_v40  ;;  %v13489_v36 = vsel %vm7333_vm6, %v13187_v22, 0  ;;  %v13391_v31 = vpack.c.bf16 %v13387_v56, %v13387_v56 }
0x157b   : > { %v13726_v48 = vcombine.low %v13702_v0, %v13718_v17  ;;  %v13727_v46 = vcombine.high %v13702_v0, %v13718_v17  ;;  %v13742_v7 = vcombine.low %v13709_v23, %v13725_v58  ;;  %v13743_v59 = vcombine.high %v13709_v23, %v13725_v58 }
0x157c   : > { %v13844_v38 = vcombine.low %v19989_v25, %v13839_v39  ;;  %v13845_v1 = vcombine.high %v19989_v25, %v13839_v39 }
0x157d   : > { %v13734_v35 = vrot.slane %v13726_v48, %v17435_v27  ;;  %v13741_v24 = vrot.slane %v13727_v46, %v17435_v27  ;;  %v13750_v11 = vrot.slane %v13742_v7, %v17435_v27  ;;  %v13757_v57 = vrot.slane %v13743_v59, %v17435_v27 }
0x157e   : > { %v13842_v8 = vpop.permute.xlu1 %13841  ;;  %v13852_v12 = vrot.slane %v13844_v38, %v17430_v20  ;;  %v13859_v44 = vrot.slane %v13845_v1, %v17430_v20 }
0x157f   : > { %v13762_v37 = vcombine.low %v13734_v35, %v13741_v24  ;;  %v15005_v16 = vcombine.high %v13734_v35, %v13741_v24  ;;  %v13778_v42 = vcombine.low %v13750_v11, %v13757_v57  ;;  %v15006_v53 = vcombine.high %v13750_v11, %v13757_v57 }
0x1580   : > { %v13860_v30 = vcombine.low %v13836_v51, %v13842_v8  ;;  %v13861_v26 = vcombine.high %v13836_v51, %v13842_v8  ;;  %16182 = vmatmul.mubr.msk.bf16.vlgmr.msra.gmra.mxu1 %vm7249_vm5, %v13389_v21 }
0x1581   : > { %v13769_v43 = vrot.slane %v13762_v37, %v17430_v20  ;;  %v13777_v52 = vrot.slane %v15005_v16, %v17430_v20  ;;  %v13785_v25 = vrot.slane %v13778_v42, %v17430_v20  ;;  %v13793_v62 = vrot.slane %v15006_v53, %v17430_v20  ;;  %16192 = vmatpush3.bf16.msra.mxu1 %v13489_v36 }
0x1582   : > { %v13868_v61 = vrot.slane %v13860_v30, %v17430_v20  ;;  %v13875_v41 = vrot.slane %v13861_v26, %v17430_v20  ;;  %16193 = vmatprep.mubr.msk.bf16.mxu1 %vm16970_vm0, %v20281_v40  ;;  %16203 = vmatprep.subr.bf16.mxu1 %v20281_v40 }
0x1583   : > { %v13794_v3 = vcombine.low %v13769_v43, %v13777_v52  ;;  %v13810_v5 = vcombine.low %v13785_v25, %v13793_v62  ;;  %v13795_v21 = vcombine.high %v13769_v43, %v13777_v52  ;;  %v13811_v1 = vcombine.high %v13785_v25, %v13793_v62 }
0x1584   : > { %v13876_v49 = vcombine.low %v13852_v12, %v13868_v61  ;;  %v13877_v19 = vcombine.high %v13852_v12, %v13868_v61  ;;  %v13892_v14 = vcombine.low %v13859_v44, %v13875_v41  ;;  %v13893_v4 = vcombine.high %v13859_v44, %v13875_v41 }
0x1585   : > { %v13802_v17 = vrot.slane %v13794_v3, %v17435_v27  ;;  %v13818_v58 = vrot.slane %v13810_v5, %v17435_v27  ;;  %v13809_v30 = vrot.slane %v13795_v21, %v17435_v27  ;;  %v13825_v26 = vrot.slane %v13811_v1, %v17435_v27 }
0x1586   : > { %v13884_v0 = vrot.slane %v13876_v49, %v17435_v27  ;;  %v13891_v23 = vrot.slane %v13877_v19, %v17435_v27  ;;  %v13900_v6 = vrot.slane %v13892_v14, %v17435_v27  ;;  %v13907_v39 = vrot.slane %v13893_v4, %v17435_v27  ;;  %v20116_v4 = vld [vmem:[#allocation10 + $0xb] sm:$0x1] }
0x1587   : > { %v13826_v51 = vcombine.low %v13802_v17, %v13818_v58  ;;  %v13827_v57 = vcombine.high %v13802_v17, %v13818_v58  ;;  %v13828_v62 = vcombine.low %v13809_v30, %v13825_v26 }
0x1588   : > { %v13912_v22 = vcombine.low %v13884_v0, %v13891_v23  ;;  %v15007_v48 = vcombine.high %v13884_v0, %v13891_v23  ;;  %v13928_v46 = vcombine.low %v13900_v6, %v13907_v39  ;;  %v15008_v7 = vcombine.high %v13900_v6, %v13907_v39  ;;  %16194 = vmatmul.mubr.msk.bf16.vlgmr.msra.gmra.mxu1 %vm7249_vm5, %v13391_v31 }
0x1589   : > { %v13830_v59 = vpack.c.bf16 %v13826_v51, %v13826_v51  ;;  %16204 = vmatpush3.bf16.msra.mxu1 %v19780_v50  ;;  %16219 = vmatprep.mubr.msk.bf16.mxu1 %vm16970_vm0, %v20281_v40  ;;  %v13831_v12 = vpack.c.bf16 %v13827_v57, %v13827_v57  ;;  %v13832_v44 = vpack.c.bf16 %v13828_v62, %v13828_v62 }
0x158a   : > { %v13919_v38 = vrot.slane %v13912_v22, %v17430_v20  ;;  %v13927_v13 = vrot.slane %v15007_v48, %v17430_v20  ;;  %v13935_v35 = vrot.slane %v13928_v46, %v17430_v20  ;;  %v13943_v24 = vrot.slane %v15008_v7, %v17430_v20  ;;  %16205 = vmatprep.subr.bf16.mxu1 %v20281_v40 }
0x158b   : > { %v13985_v11 = vsel %vm1973_vm1, %v13830_v59, 0  ;;  %v14028_v25 = vsel %vm1973_vm1, %v13831_v12, 0 }
0x158c   : > { %16224 = vmatpush3.bf16.xpose.msra.mxu0 %v13985_v11  ;;  %v13944_v50 = vcombine.low %v13919_v38, %v13927_v13  ;;  %v13960_v8 = vcombine.low %v13935_v35, %v13943_v24  ;;  %v13945_v36 = vcombine.high %v13919_v38, %v13927_v13  ;;  %v13961_v37 = vcombine.high %v13935_v35, %v13943_v24 }
0x158d   : > { %16229 = vmatprep.subr.bf16.mxu0 %v20281_v40  ;;  %16206 = vmatpush3.bf16.msra.mxu1 %v19783_v10 }
0x158e   : > { %v13952_v16 = vrot.slane %v13944_v50, %v17435_v27  ;;  %v13968_v42 = vrot.slane %v13960_v8, %v17435_v27  ;;  %v13959_v53 = vrot.slane %v13945_v36, %v17435_v27  ;;  %v13975_v56 = vrot.slane %v13961_v37, %v17435_v27  ;;  %16207 = vmatprep.subr.bf16.mxu1 %v20281_v40 }
0x1590   : > { %v20074_v43 = vcombine.high %v13959_v53, %v13975_v56  ;;  %v20076_v52 = vcombine.low %v13952_v16, %v13968_v42  ;;  %v20078_v10 = vcombine.low %v13959_v53, %v13975_v56 }
0x1591   : > { %16208 = vmatpush3.bf16.msra.mxu1 %v19787_v47  ;;  %v13829_v47 = vcombine.high %v13809_v30, %v13825_v26 }
0x1592   : > { %16209 = vmatprep.subr.bf16.mxu1 %v20281_v40 }
0x1593   : > { %16226 = vmatmul.mubr.msk.bf16.vlgmr.msra.gmra.mxu0 %vm1973_vm1, %v19601_v33  ;;  %v14071_v33 = vsel %vm1973_vm1, %v13832_v44, 0 }
0x1594   : > { %16230 = vmatpush3.bf16.xpose.msra.mxu0 %v14028_v25  ;;  %16231 = vmatprep.mubr.msk.bf16.mxu0 %vm16970_vm0, %v20281_v40 }
0x1595   : > { %16235 = vmatprep.subr.bf16.mxu0 %v20281_v40  ;;  %16210 = vmatpush3.bf16.msra.mxu1 %v19791_v29  ;;  %v13833_v29 = vpack.c.bf16 %v13829_v47, %v13829_v47 }
0x1596   : > { %16211 = vmatprep.subr.bf16.mxu1 %v20281_v40 }
0x1599   : > { %16212 = vmatpush3.bf16.msra.mxu1 %v19795_v45  ;;  %v13977_v45 = vcombine.high %v13952_v16, %v13968_v42 }
0x159a   : > { %16213 = vmatprep.subr.bf16.mxu1 %v20281_v40 }
0x159b   : > { %16232 = vmatmul.mubr.msk.bf16.vlgmr.msra.gmra.mxu0 %vm1973_vm1, %v19626_v54  ;;  %v14114_v54 = vsel %vm1973_vm1, %v13833_v29, 0 }
0x159c   : > { %16236 = vmatpush3.bf16.xpose.msra.mxu0 %v14071_v33  ;;  %16237 = vmatprep.mubr.msk.bf16.mxu0 %vm16970_vm0, %v20281_v40 }
0x159d   : > { %16241 = vmatprep.subr.bf16.mxu0 %v20281_v40  ;;  %16214 = vmatpush3.bf16.msra.mxu1 %v19800_v28  ;;  %v13981_v28 = vpack.c.bf16 %v13977_v45, %v13977_v45 }
0x159e   : > { %16215 = vmatprep.subr.bf16.mxu1 %v20281_v40 }
0x15a1   : > { %16216 = vmatpush3.bf16.msra.mxu1 %v19809_v63  ;;  %v14238_v63 = vsel %vm7333_vm6, %v13981_v28, 0 }
0x15a2   : > { %16217 = vmatprep.subr.bf16.mxu1 %v20281_v40 }
0x15a3   : > { %16238 = vmatmul.mubr.msk.bf16.vlgmr.msra.gmra.mxu0 %vm1973_vm1, %v19670_v18 }
0x15a4   : > { %16242 = vmatpush3.bf16.xpose.msra.mxu0 %v14114_v54  ;;  %16243 = vmatprep.mubr.msk.bf16.mxu0 %vm16970_vm0, %v20281_v40 }
0x15a5   : > { %16253 = vmatprep.subr.bf16.mxu0 %v20281_v40  ;;  %16218 = vmatpush3.bf16.msra.mxu1 %v19815_v15 }
0x15a6   : > { %16247 = vmatprep.subr.bf16.mxu1 %v20281_v40 }
0x15ab   : > { %16244 = vmatmul.mubr.msk.bf16.vlgmr.msra.gmra.mxu0 %vm1973_vm1, %v19650_v60  ;;  %v12087_v60 = vadd.f32 %v19957_v32, %v20116_v4 }
0x15ac   : > { %16254 = vmatpush3.bf16.msra.mxu0 %v14238_v63  ;;  %16255 = vmatprep.mubr.msk.bf16.mxu0 %vm16970_vm0, %v20281_v40 }
0x15ad   : > { %16265 = vmatprep.subr.bf16.mxu0 %v20281_v40  ;;  %v12092_v0 = vmax.f32 %v12087_v60, 0.0 }
0x15af   : > { %v12093_v22 = vadd.f32 %v12092_v0, %v19855_v9 }
0x15e7   : > { %v13479_v18 = vpop.f32.mrf.mxu0 }
0x15e9   : > { %v16189_v61 = vpop.f32.mrf.mxu0 }
0x15eb   : > { %v13482_v41 = vpop.f32.mrf.mxu0 }
0x15ed   : > { %v16190_v3 = vpop.f32.mrf.mxu0 }
0x15f7   : > { %v13571_v5 = vpop.f32.mrf.mxu0 }
0x15f8   : > { %v13585_v15 = vcombine.low %v13479_v18, %v13571_v5 }
0x15f9   : > { %v16201_v49 = vpop.f32.mrf.mxu0 }
0x15fa   : > { %v13592_v11 = vrot.slane %v13585_v15, %v17430_v20 }
0x15fb   : > { %v13574_v19 = vpop.f32.mrf.mxu0 }
0x15fd   : > { %v16202_v14 = vpop.f32.mrf.mxu0 }
0x1638   : > { %v12881_v31 = vpop.f32.mrf.mxu1 }
0x1639   : > { %v12882_v17 = vadd.f32 %v12881_v31, %v20116_v4  ;;  %v13983_v31 = vpack.c.bf16 %v20074_v43, %v20074_v43 }
0x163a   : > { %v16153_v58 = vpop.f32.mrf.mxu1 }
0x163b   : > { %v12887_v23 = vmax.f32 %v12882_v17, 0.0  ;;  %v14330_v0 = vsel %vm7333_vm6, %v13983_v31, 0 }
0x163c   : > { %v12884_v6 = vpop.f32.mrf.mxu1 }
0x163d   : > { %v12888_v39 = vadd.f32 %v12887_v23, %v20012_v2 }
0x163e   : > { %v16154_v51 = vpop.f32.mrf.mxu1 }
0x163f   : > { %v14480_v48 = vrot.slane %v12888_v39, 7 }
0x1640   : > { %v13433_v46 = vpop.f32.mrf.mxu1 }
0x1641   : > { %v20123_v7 = vsel %vm14488_vm7, %v12093_v22, %v14480_v48 }
0x1642   : > { %v16183_v59 = vpop.f32.mrf.mxu1 }
0x1644   : > { %v13436_v38 = vpop.f32.mrf.mxu1 }
0x1646   : > { %v16184_v32 = vpop.f32.mrf.mxu1 }
0x1648   : > { %v13525_v13 = vpop.f32.mrf.mxu1 }
0x1649   : > { %v13577_v35 = vcombine.low %v13433_v46, %v13525_v13 }
0x164a   : > { %v16195_v24 = vpop.f32.mrf.mxu1 }
0x164b   : > { %v13584_v57 = vrot.slane %v13577_v35, %v17430_v20 }
0x164c   : > { %v13528_v21 = vpop.f32.mrf.mxu1 }
0x164d   : > { %v13593_v2 = vcombine.low %v13584_v57, %v13592_v11 }
0x164e   : > { %v16196_v1 = vpop.f32.mrf.mxu1 }
0x164f   : > { %v13600_v50 = vrot.slane %v13593_v2, %v17435_v27  ;;  %v13980_v1 = vpack.c.bf16 %v20076_v52, %v20076_v52 }
0x1651   : > { %v13607_v9 = vrot.slane %v13600_v50, %v17430_v20 }
0x1653   : > { %v14021_v8 = vpop.f32.mrf.mxu0  ;;  %v13615_v36 = vrot.slane %v13607_v9, %v17435_v27  ;;  %v13608_v37 = vcombine.high %v13607_v9, %v20281_v40 }
0x1654   : > { %v14156_v51 = vmul.f32 0.088388346, %v14021_v8  ;;  %v14192_v8 = vsel %vm7333_vm6, %v13980_v1, 0 }
0x1655   : > { %v16227_v16 = vpop.f32.mrf.mxu0  ;;  %v13623_v42 = vcombine.high %v13615_v36, %v20281_v40  ;;  %v13622_v53 = vrot.slane %v13608_v37, %v17435_v27  ;;  %v13982_v37 = vpack.c.bf16 %v20078_v10, %v20078_v10  ;;  %v16738_v10 = vld [vmem:[#allocation8 + $0x2cc] ss:$16 sps:$4 sm:$0xff]  }
0x1656   : > { %v14160_v22 = vsub.f32 %v14156_v51, %v14156_v51 }
0x1657   : > { %13626 = vrot.lane.b32.xlu0 %v13623_v42, %s16974_s19  ;;  %13630 = vrot.lane.b32.xlu1 %v13622_v53, %s16972_s18  ;;  %v14024_v56 = vpop.f32.mrf.mxu0  ;;  %v13624_v30 = vcombine.high %v13622_v53, %v20281_v40  ;;  %v14284_v52 = vsel %vm7333_vm6, %v13982_v37, 0 }
0x1658   : > { %v14164_v48 = vmul.f32 1.442695, %v14160_v22 }
0x1659   : > { %v16228_v12 = vpop.f32.mrf.mxu0 }
0x165a   : > { %v16737_v12 = vld [vmem:[#allocation8 + $0x2ec] ss:$16 sps:$4 sm:$0xff]  }
0x165b   : > { %13634 = vrot.lane.b32.xlu0 %v13624_v30, %s16973_s15  ;;  %v14064_v26 = vpop.f32.mrf.mxu0  ;;  %v16739_v30 = vld [vmem:[#allocation8 + $0x2ac] ss:$16 sps:$4 sm:$0xff]  }
0x165c   : > { %v14157_v25 = vmul.f32 0.088388346, %v14064_v26  ;;  %v16740_v26 = vld [vmem:[#allocation8 + $0x28c] ss:$16 sps:$4 sm:$0xff]  }
0x165d   : > { %v16233_v62 = vpop.f32.mrf.mxu0 }
0x165e   : > { %v14161_v44 = vsub.f32 %v14157_v25, %v14157_v25  ;;  %v16741_v25 = vld [vmem:[#allocation8 + $0x26c] ss:$16 sps:$4 sm:$0xff]  }
0x165f   : > { %v14067_v33 = vpop.f32.mrf.mxu0  ;;  %v16742_v62 = vld [vmem:[#allocation8 + $0x24c] ss:$16 sps:$4 sm:$0xff]  }
0x1660   : > { %v14166_v47 = vmul.f32 1.442695, %v14161_v44  ;;  %v16743_v44 = vld [vmem:[#allocation8 + $0x22c] ss:$16 sps:$4 sm:$0xff]  }
0x1661   : > { %v16234_v29 = vpop.f32.mrf.mxu0  ;;  %v16744_v33 = vld [vmem:[#allocation8 + $0x20c] ss:$16 sps:$4 sm:$0xff]  }
0x1662   : > { %16705 = vpow2.f32 %v14166_v47 }
0x1663   : > { %v14107_v54 = vpop.f32.mrf.mxu0 }
0x1664   : > { %v14158_v43 = vmul.f32 0.088388346, %v14107_v54 }
0x1665   : > { %v16239_v45 = vpop.f32.mrf.mxu0 }
0x1666   : > { %v14162_v46 = vsub.f32 %v14158_v43, %v14158_v43 }
0x1667   : > { %v14110_v28 = vpop.f32.mrf.mxu0 }
0x1668   : > { %v14168_v59 = vmul.f32 1.442695, %v14162_v46 }
0x1669   : > { %v16240_v63 = vpop.f32.mrf.mxu0 }
0x166b   : > { %v14150_v18 = vpop.f32.mrf.mxu0 }
0x166c   : > { %v14159_v61 = vmul.f32 0.088388346, %v14150_v18 }
0x166d   : > { %v16245_v41 = vpop.f32.mrf.mxu0 }
0x166e   : > { %v14163_v3 = vsub.f32 %v14159_v61, %v14159_v61 }
0x166f   : > { %v16706_v5 = vpop.eup %16705  ;;  %v14153_v15 = vpop.f32.mrf.mxu0 }
0x1670   : > { %16707 = vrcp.f32 %v16706_v5  ;;  %v14170_v49 = vmul.f32 1.442695, %v14163_v3 }
0x1671   : > { %v16246_v19 = vpop.f32.mrf.mxu0 }
0x1672   : > { %16709 = vpow2.f32 %v14170_v49 }
0x167d   : > { %v16708_v14 = vpop.eup %16707 }
0x167e   : > { %v14181_v60 = vmul.f32 %v16708_v14, %v16706_v5 }
0x167f   : > { %v16710_v17 = vpop.eup %16709 }
0x1680   : > { %v14185_v58 = vpack.c.bf16 %v14181_v60, %v14181_v60  ;;  %16711 = vrcp.f32 %v16710_v17 }
0x1681   : > { %16713 = vpow2.f32 %v14164_v48 }
0x1682   : > { %16256 = vmatmul.mubr.msk.bf16.vlgmr.msra.gmra.mxu0 %vm7249_vm5, %v14185_v58  ;;  %16715 = vpow2.f32 %v14168_v59 }
0x1683   : > { %16266 = vmatpush3.bf16.msra.mxu0 %v14330_v0  ;;  %16267 = vmatprep.mubr.msk.bf16.mxu0 %vm16970_vm0, %v20281_v40 }
0x168d   : > { %v16712_v23 = vpop.eup %16711 }
0x168e   : > { %v14183_v6 = vmul.f32 %v16712_v23, %v16710_v17  ;;  %v16714_v38 = vpop.eup %16713 }
0x168f   : > { %16717 = vrcp.f32 %v16714_v38  ;;  %v16716_v13 = vpop.eup %16715 }
0x1690   : > { %v14187_v39 = vpack.c.bf16 %v14183_v6, %v14183_v6  ;;  %16719 = vrcp.f32 %v16716_v13 }
0x1692   : > { %16268 = vmatmul.mubr.msk.bf16.vlgmr.msra.gmra.mxu0 %vm7249_vm5, %v14187_v39 }
0x169c   : > { %v16718_v9 = vpop.eup %16717 }
0x169d   : > { %v16720_v42 = vpop.eup %16719 }
0x169e   : > { %v14182_v53 = vmul.f32 %v16720_v42, %v16716_v13 }
0x16a0   : > { %v14186_v56 = vpack.c.bf16 %v14182_v53, %v14182_v53 }
0x16c9   : > { %v13627_v32 = vpop.permute.xlu0 %13626  ;;  %v13631_v24 = vpop.permute.xlu1 %13630 }
0x16ca   : > { %v13637_v35 = vsel %vm1973_vm1, %v13615_v36, %v13627_v32  ;;  %v14180_v36 = vmul.f32 %v16718_v9, %v16714_v38 }
0x16cb   : > { %v13638_v11 = vsel %vm2564_vm3, %v13637_v35, %v13631_v24 }
0x16cc   : > { %v14184_v16 = vpack.c.bf16 %v14180_v36, %v14180_v36  ;;  %v16977_v36 = vmov 1966171168  }
0x16cd   : > { %v13635_v57 = vpop.permute.xlu0 %13634  ;;  %v14496_v37 = vunpack.c.l.s4 %v16977_v36 }
0x16ce   : > { %v13639_v21 = vsel %vm2566_vm4, %v13638_v11, %v13635_v57 }
0x16cf   : > { %v13640_v2 = vadd.f32 %v13639_v21, %v19503_v55  ;;  %v14497_v42 = vunpack.c.0.s8 %v14496_v37 }
0x16d1   : > { %v13641_v50 = vpack.c.bf16 %v13640_v2, %v13640_v2 }
0x16d3   : > { %16220 = vmatmul.mubr.bf16.vlgmr.msra.gmra.mxu1 %v13641_v50 }
0x16d4   : > { %16248 = vmatpush3.bf16.msra.mxu1 %v14192_v8  ;;  %16249 = vmatprep.mubr.msk.bf16.mxu1 %vm16970_vm0, %v20281_v40 }
0x16d5   : > { %16259 = vmatprep.subr.bf16.mxu1 %v20281_v40 }
0x16db   : > { %16250 = vmatmul.mubr.msk.bf16.vlgmr.msra.gmra.mxu1 %vm7249_vm5, %v14184_v16 }
0x16dc   : > { %16260 = vmatpush3.bf16.msra.mxu1 %v14284_v52  ;;  %16261 = vmatprep.mubr.msk.bf16.mxu1 %vm16970_vm0, %v20281_v40 }
0x16dd   : > { %16271 = vmatprep.subr.bf16.mxu1 %v20281_v40 }
0x16e3   : > { %16262 = vmatmul.mubr.msk.bf16.vlgmr.msra.gmra.mxu1 %vm7249_vm5, %v14186_v56 }
0x16e4   : > { %16272 = vmatpush3.bf16.msra.mxu1 %v16737_v12  ;;  %16287 = vmatprep.mubr.msk.bf16.mxu1 %vm16970_vm0, %v20281_v40 }
0x16e5   : > { %16273 = vmatprep.subr.bf16.mxu1 %v20281_v40 }
0x16e8   : > { %16274 = vmatpush3.bf16.msra.mxu1 %v16738_v10  ;;  %v14500_v10 = vsub.s32 %v14497_v42, %v17342_v34 }
0x16e9   : > { %16275 = vmatprep.subr.bf16.mxu1 %v20281_v40 }
0x16ec   : > { %16276 = vmatpush3.bf16.msra.mxu1 %v16739_v30 }
0x16ed   : > { %16277 = vmatprep.subr.bf16.mxu1 %v20281_v40 }
0x16f0   : > { %16278 = vmatpush3.bf16.msra.mxu1 %v16740_v26 }
0x16f1   : > { %16279 = vmatprep.subr.bf16.mxu1 %v20281_v40 }
0x16f4   : > { %16280 = vmatpush3.bf16.msra.mxu1 %v16741_v25 }
0x16f5   : > { %16281 = vmatprep.subr.bf16.mxu1 %v20281_v40 }
0x16f8   : > { %16282 = vmatpush3.bf16.msra.mxu1 %v16742_v62 }
0x16f9   : > { %16283 = vmatprep.subr.bf16.mxu1 %v20281_v40 }
0x16fc   : > { %16284 = vmatpush3.bf16.msra.mxu1 %v16743_v44 }
0x16fd   : > { %16285 = vmatprep.subr.bf16.mxu1 %v20281_v40 }
0x1700   : > { %16286 = vmatpush3.bf16.msra.mxu1 %v16744_v33 }
0x1742   : > { %v14274_v47 = vpop.f32.mrf.mxu0 }
0x1744   : > { %v16257_v29 = vpop.f32.mrf.mxu0 }
0x1746   : > { %v14277_v54 = vpop.f32.mrf.mxu0 }
0x1748   : > { %v16258_v45 = vpop.f32.mrf.mxu0 }
0x1752   : > { %v14366_v28 = vpop.f32.mrf.mxu0 }
0x1753   : > { %v14380_v63 = vcombine.low %v14274_v47, %v14366_v28 }
0x1754   : > { %v16269_v18 = vpop.f32.mrf.mxu0 }
0x1755   : > { %v14387_v48 = vrot.slane %v14380_v63, %v17430_v20 }
0x1756   : > { %v14369_v61 = vpop.f32.mrf.mxu0 }
0x1758   : > { %v16270_v41 = vpop.f32.mrf.mxu0 }
0x1793   : > { %v13676_v3 = vpop.f32.mrf.mxu1 }
0x1794   : > { %v13677_v5 = vadd.f32 %v13676_v3, %v20116_v4 }
0x1795   : > { %v16221_v15 = vpop.f32.mrf.mxu1 }
0x1796   : > { %v13682_v49 = vmax.f32 %v13677_v5, 0.0 }
0x1797   : > { %v13679_v19 = vpop.f32.mrf.mxu1 }
0x1798   : > { %v13683_v14 = vadd.f32 %v13682_v49, %v13640_v2 }
0x1799   : > { %v16222_v60 = vpop.f32.mrf.mxu1 }
0x179a   : > { %v14483_v31 = vrot.slane %v13683_v14, 6 }
0x179b   : > { %v14228_v17 = vpop.f32.mrf.mxu1 }
0x179c   : > { %v14491_v58 = vsel %vm14490_vm8, %v20123_v7, %v14483_v31 }
0x179d   : > { %v16251_v0 = vpop.f32.mrf.mxu1 }
0x179f   : > { %v14231_v23 = vpop.f32.mrf.mxu1 }
0x17a1   : > { %v16252_v6 = vpop.f32.mrf.mxu1 }
0x17a3   : > { %v14320_v39 = vpop.f32.mrf.mxu1 }
0x17a4   : > { %v14372_v51 = vcombine.low %v14228_v17, %v14320_v39 }
0x17a5   : > { %v16263_v22 = vpop.f32.mrf.mxu1 }
0x17a6   : > { %v14379_v43 = vrot.slane %v14372_v51, %v17430_v20 }
0x17a7   : > { %v14323_v46 = vpop.f32.mrf.mxu1 }
0x17a8   : > { %v14388_v59 = vcombine.low %v14379_v43, %v14387_v48 }
0x17a9   : > { %v16264_v38 = vpop.f32.mrf.mxu1 }
0x17aa   : > { %v14395_v32 = vrot.slane %v14388_v59, %v17435_v27 }
0x17ac   : > { %v14402_v13 = vrot.slane %v14395_v32, %v17430_v20 }
0x17ae   : > { %v14410_v35 = vrot.slane %v14402_v13, %v17435_v27  ;;  %v14403_v7 = vcombine.high %v14402_v13, %v20281_v40 }
0x17b0   : > { %v14418_v24 = vcombine.high %v14410_v35, %v20281_v40  ;;  %v14417_v11 = vrot.slane %v14403_v7, %v17435_v27 }
0x17b2   : > { %14421 = vrot.lane.b32.xlu1 %v14418_v24, %s16974_s19  ;;  %14425 = vrot.lane.b32.xlu0 %v14417_v11, %s16972_s18  ;;  %v14419_v57 = vcombine.high %v14417_v11, %v20281_v40 }
0x17b6   : > { %14429 = vrot.lane.b32.xlu1 %v14419_v57, %s16973_s15 }
0x1824   : > { %v14422_v21 = vpop.permute.xlu1 %14421  ;;  %v14426_v20 = vpop.permute.xlu0 %14425 }
0x1825   : > { %v14432_v2 = vsel %vm1973_vm1, %v14410_v35, %v14422_v21 }
0x1826   : > { %v14433_v1 = vsel %vm2564_vm3, %v14432_v2, %v14426_v20 }
0x1828   : > { %v14430_v50 = vpop.permute.xlu1 %14429 }
0x1829   : > { %v14434_v9 = vsel %vm2566_vm4, %v14433_v1, %v14430_v50 }
0x182a   : > { %v14435_v27 = vadd.f32 %v14434_v9, %v19503_v55 }
0x182c   : > { %v14436_v8 = vpack.c.bf16 %v14435_v27, %v14435_v27 }
0x182e   : > { %16288 = vmatmul.mubr.bf16.vlgmr.msra.gmra.mxu1 %v14436_v8 }
0x18ee   : > { %v14471_v16 = vpop.f32.mrf.mxu1 }
0x18ef   : > { %v14472_v40 = vadd.f32 %v14471_v16, %v20116_v4 }
0x18f0   : > { %v16289_v52 = vpop.f32.mrf.mxu1 }
0x18f1   : > { %v14477_v53 = vmax.f32 %v14472_v40, 0.0 }
0x18f2   : > { %v14474_v56 = vpop.f32.mrf.mxu1 }
0x18f3   : > { %v14478_v12 = vadd.f32 %v14477_v53, %v14435_v27 }
0x18f4   : > { %v16290_v30 = vpop.f32.mrf.mxu1 }
0x18f5   : > { %v14486_v26 = vrot.slane %v14478_v12, 5 }
0x18f7   : > { %v14493_v55 = vsel %vm14492_vm9, %v14491_v58, %v14486_v26 }
0x18f8   : > { %v14501_v25 = vrot.slane %v14493_v55, %v14500_v10 }
0x18fa   : > { %v14502_v62 = vcombine.high %v14501_v25, %v14501_v25  ;;  %v14509_v44 = vrot.slane %v14501_v25, %v14500_v10  ;;  %15017 = vst.sshfl [vmem:[%s422_s6] sm:$0x1 pattern:$0x73625140] %v14501_v25 }
0x18fc   : > { %v14516_v4 = vrot.slane %v14502_v62, %v14500_v10  ;;  %v14517_v33 = vcombine.high %v14509_v44, %v14509_v44  ;;  %15018 = vst.sshfl [vmem:[%s422_s6 + $0x1] sm:$0x1 pattern:$0x73625140] %v14502_v62 }
0x18fe   : > { %v14518_v34 = vcombine.high %v14516_v4, %v14516_v4  ;;  %14525 = vst [vmem:[%s422_s6 + $0x2] sm:$0x1] %v14517_v33 }
0x1900   : > { %14526 = vst [vmem:[%s422_s6 + $0x3] sm:$0x1] %v14518_v34 }
0x1901   : > { %16892 = shalt.err (!%p16889_p0)
}
0x1902   : > { %s16893_s5 = scalar_lea.hbm %s20196_s16, 64  ;;  %s16897_s18 = scalar_lea.hbm %s20249_s8, 128 }
0x1903   : > { %p16894_p6 = scmp.ne.s32.totalorder %s20196_s16, %s16893_s5  ;;  %p16898_p13 = scmp.lt.s32.totalorder %s20196_s16, %s20249_s8 }
0x1904   : > { %p16899_p5 = scmp.lt.s32.totalorder %s16897_s18, %s16893_s5 }
0x1905   : > { %p16895_p8 = pnand %p16894_p6, %p20284_p7 }
0x1906   : > { %p16900_p10 = por %p16899_p5, %p16898_p13 }
0x1907   : > { %p16896_p11 = pneg %p16895_p8 }
0x1909   : > { %p16901_p3 = pnand %p16900_p10, %p16896_p11 }
0x190b   : > { %16904 = shalt.err (!%p16901_p3)
}
0x190c   : > { %s16979_s20 = smov 16   ;;  %s16980_s6 = smov 1  }
0x190d   : > { %16307 = dma.vmem_to_hbm [thread:$0]  (%p20284_p7), %s20198_s11, 64, %s20196_s16, %s14528_s17, %s16979_s20, %s16979_s20, %s16980_s6  }
0x190e PF: > { %s14556_s13 = sand.u32 1, %s16943_s27   ;;  %p20285_p2 = scmp.ne.s32.totalorder %s20263_s12, 0 }
0x190f   : > { %p20286_p9 = scmp.ge.s32.totalorder %s16955_s30, 2  ;;  %s14557_s4 = scalar_lea.sflag [#allocation4], %s14556_s13 }
0x1911   : > { %p16327_p12 = pnand %p20286_p9, %p20285_p2 }
0x1913   : > { %p16328_p4 = pneg %p16327_p12 }
0x1915   : > { %16938 = dma.done.wait (%p16328_p4), %s14557_s4, 64  }
0x1916   : > { %16940 = vsyncadd (%p16328_p4), %s14557_s4, 4294967232  ;;  %s20287_s14 = sld [smem:[#allocation17_spill]]  ;;  %p25_p1 = scmp.ge.s32.totalorder %s17106_s22, 4  }
0x1917   : > { %s20288_s27 = smov %s16947_s28  ;;  %s20289_s28 = smov %s16951_s29 }
0x1918   : > { %s20291_s30 = smov %s17106_s22  ;;  %27 = sbr.rel (!%p25_p1) target bundleno = 13 (0xd), region = 131 }
0x191c   : > { %s20290_s29 = smov %s20287_s14 }
0x191d   :  { %14562 = vsyncpa [#allocation3], 1 }
0x191e   :  { %14564 = vsyncpa [#allocation3 + $0x1], 1 }
0x191f   :  { %14565 = vsyncpa [#allocation6], 1 }
0x1920   :  { %14567 = vsyncpa [#allocation6 + $0x1], 1 }
0x1921   :  { %14568 = vsyncpa [#allocation9], 1 }
0x1922   :  { %14569 = vsyncpa [#allocation4], 1 }
0x1923   :  { %14571 = vsyncpa [#allocation4 + $0x1], 1 }

</bundles_post_ra>
